<compile_context>
chip_gen: v7x
topology: tpu7x:2x2x1
jax: 0.10.0
libtpu: 0.0.40
codegen_flags: <defaults>
</compile_context>

<pallas_src>
import jax
import jax.numpy as jnp
from jax import lax
from jax.experimental import pallas as pl
from jax.experimental.pallas import tpu as pltpu

EPS = 1e-5  # wetts LayerNorm default
HIGHEST = jax.lax.Precision.HIGHEST


def _round_up(n, m):
    return ((n + m - 1) // m) * m


# --------------------------------- wrapper ----------------------------------
def duration_discriminator_v2(x, x_mask, dur_r, dur_hat, params, *,
                              max_block_lanes=4096):
    """x: (B, Cin, T); x_mask, dur_r, dur_hat: (B, 1, T).

    Returns [[prob_r], [prob_hat]], each of shape (B, T, 1), matching
    DurationDiscriminatorV2.forward (g/conditioning is unused by the module).
    """
    f32 = jnp.float32
    B, Cin, T = x.shape
    F = params["conv1_w"].shape[0]
    K = params["conv1_w"].shape[2]
    pad = K // 2

    # Lane-dense time axis with >= `pad` zero lanes terminating every segment.
    Tpad = _round_up(T + pad, 128)
    assert Tpad >= T + pad

    # Segments (batch elements) per grid block; lane block sized for v7x VMEM.
    spb = max(1, min(B, max_block_lanes // Tpad))
    B_pad = _round_up(B, spb)
    n_blocks = B_pad // spb
    Lb = spb * Tpad                      # lanes per block (multiple of 128)
    L_total = B_pad * Tpad

    SLOT1 = _round_up(K * Cin, 128)      # conv_1 im2col weight slot width
    TAP = _round_up(F, 128)              # per-tap weight slot for F-input convs
    W_W = SLOT1 + 4 * K * TAP            # consolidated weight-slab width

    # ---- pack (B, C, T) -> (C, B_pad*Tpad), zero padded per segment ---------
    def pack(a):
        a = a.astype(f32)
        a = jnp.pad(a, ((0, B_pad - B), (0, 0), (0, Tpad - T)))
        return jnp.transpose(a, (1, 0, 2)).reshape(a.shape[1], L_total)

    # conv_1's im2col is built here (Cin is tiny) with exact per-batch zero
    # padding, so the kernel's first conv is a single dot with no in-kernel
    # shifts.  TODO(synk): for production-sized in_channels move this into the
    # kernel (rolls on packed x) to avoid tripling the HBM read volume of x.
    xm = x.astype(f32) * x_mask.astype(f32)                 # (B, Cin, T)
    taps = []
    for k in range(K):
        s = k - pad                                         # out[t] needs in[t+s]
        if s < 0:
            t_k = jnp.pad(xm, ((0, 0), (0, 0), (-s, 0)))[..., :T]
        elif s > 0:
            t_k = jnp.pad(xm, ((0, 0), (0, 0), (0, s)))[..., s:]
        else:
            t_k = xm
        taps.append(t_k)
    x_col = pack(jnp.concatenate(taps, axis=1))             # (K*Cin, L_total)

    mask_pk = pack(x_mask)                                  # (1, L_total)
    dur2 = jnp.concatenate([pack(dur_r), pack(dur_hat)], axis=0)   # (2, L_total)

    # ---- consolidated parameter slabs ----------------------------------------
    def prep_conv1(w):                      # (F, Cin, K) -> (F, SLOT1), im2col
        co, ci, kk = w.shape
        w2 = jnp.transpose(w.astype(f32), (0, 2, 1)).reshape(co, kk * ci)
        return jnp.pad(w2, ((0, 0), (0, SLOT1 - kk * ci)))

    def prep_taps(w):                       # (F, F, K) -> (F, K*TAP), lane-aligned taps
        co, ci, kk = w.shape
        parts = [jnp.pad(w[:, :, k].astype(f32), ((0, 0), (0, TAP - ci)))
                 for k in range(kk)]
        return jnp.concatenate(parts, axis=1)

    w_slab = jnp.concatenate([
        prep_conv1(params["conv1_w"]),              # [0 : SLOT1)
        prep_taps(params["conv2_w"]),               # conv_idx 0
        prep_taps(params["pre1_w"][:, :F, :]),      # conv_idx 1: x-feature half
        prep_taps(params["pre1_w"][:, F:, :]),      # conv_idx 2: duration half
        prep_taps(params["pre2_w"]),                # conv_idx 3
    ], axis=1)                                              # (F, W_W)

    vec_names = ["conv1_b", "norm1_g", "norm1_b", "conv2_b", "norm2_g",
                 "norm2_b", "dur_w", "dur_b", "pre1_b", "pnorm1_g",
                 "pnorm1_b", "pre2_b", "pnorm2_g", "pnorm2_b"]
    v_slab = jnp.stack([params[n].astype(f32).reshape(F) for n in vec_names],
                       axis=1)                              # (F, 14)

    o_row = jnp.concatenate([params["out_w"].astype(f32).reshape(1, F),
                             params["out_b"].astype(f32).reshape(1, 1)],
                            axis=1)                         # (1, F + 1)

    # --------------------------------- kernel --------------------------------
    def kernel(xcol_ref, m_ref, dur_ref, w_ref, v_ref, o_ref, out_ref):
        mask = m_ref[...]                                   # (1, Lb)
        inv_f = jnp.full((1, F), 1.0 / F, f32)              # hoisted channel reducer

        def col(i):                                         # (F, 1) param column
            return v_ref[:, i:i + 1]

        def dot(a, b):
            return jnp.dot(a, b, preferred_element_type=f32, precision=HIGHEST)

        def conv_taps(a_masked, conv_idx, bias=None):
            # Conv1d(K, pad=K//2) as K accumulated per-tap MXU dots (no im2col
            # concat).  a_masked MUST already be mask-multiplied (halo safety).
            Ll = a_masked.shape[1]
            base = SLOT1 + conv_idx * K * TAP

            def wk(k):                                      # (F, F) tap weight
                return w_ref[:, base + k * TAP: base + k * TAP + F]

            acc = dot(wk(pad), a_masked)                    # shift-0 tap first
            if bias is not None:
                acc = acc + bias
            for k in range(K):
                if k == pad:
                    continue
                s = k - pad                                 # out[t] needs in[t+s]
                # jnp.roll semantics: roll(a, m)[t] == a[t - m]  ->  shift = -s
                acc = acc + dot(wk(k),
                                pltpu.roll(a_masked, shift=(-s) % Ll, axis=1))
            return acc

        def layer_norm(a, g, b):
            # Channel LN on the (idle) MXU; mean and E[x^2] are independent dots
            # so the second doesn't serialize behind the first's result pop.
            mean = dot(inv_f, a)                            # (1, L)
            meansq = dot(inv_f, a * a)                      # (1, L)
            var = jnp.maximum(meansq - mean * mean, 0.0)
            return (a - mean) * lax.rsqrt(var + EPS) * g + b

        b1, g1, be1 = col(0), col(1), col(2)
        b2, g2, be2 = col(3), col(4), col(5)
        wd, bd = col(6), col(7)
        bp1, gp1, bep1 = col(8), col(9), col(10)
        bp2, gp2, bep2 = col(11), col(12), col(13)
        wo = o_ref[:, :F]                                   # (1, F)
        bo = o_ref[:, F:F + 1]                              # (1, 1)

        # ---- trunk (conv_1 input already masked + im2col'ed in the wrapper) --
        h = jnp.maximum(dot(w_ref[:, :K * Cin], xcol_ref[...]) + b1, 0.0)
        h = layer_norm(h, g1, be1)
        h = jnp.maximum(conv_taps(h * mask, 0, b2), 0.0)
        x_feat = layer_norm(h, g2, be2)                     # (F, Lb)

        # x-feature half of pre_out_conv_1: computed once, shared by both branches
        shared = conv_taps(x_feat * mask, 1, bp1)           # (F, Lb)

        # ---- duration branches fused along lanes: [dur_r | dur_hat] ----------
        dur_all = dur_ref[...]                              # (2, Lb)
        dur_f = jnp.concatenate([dur_all[0:1, :], dur_all[1:2, :]], axis=1)
        mask2 = jnp.concatenate([mask, mask], axis=1)       # (1, 2*Lb)
        shared2 = jnp.concatenate([shared, shared], axis=1)  # (F, 2*Lb)

        durp = wd * dur_f + bd                              # 1x1 conv = VPU broadcast
        p = shared2 + conv_taps(durp * mask2, 2)            # bias already in `shared`
        p = jnp.maximum(p, 0.0)
        p = layer_norm(p, gp1, bep1)
        p = jnp.maximum(conv_taps(p * mask2, 3, bp2), 0.0)
        p = layer_norm(p, gp2, bep2)
        p = p * mask2
        logits = dot(wo, p) + bo                            # (1, 2*Lb)
        out_ref[...] = jax.nn.sigmoid(logits)               # lane-dense unmasked store

    out = pl.pallas_call(
        kernel,
        out_shape=jax.ShapeDtypeStruct((1, 2 * L_total), f32),
        grid=(n_blocks,),
        in_specs=[
            pl.BlockSpec((K * Cin, Lb), lambda i: (0, i)),          # x_col
            pl.BlockSpec((1, Lb), lambda i: (0, i)),                # mask
            pl.BlockSpec((2, Lb), lambda i: (0, i)),                # dur_r / dur_hat
            pl.BlockSpec((F, W_W), lambda i: (0, 0)),               # weights (resident)
            pl.BlockSpec((F, len(vec_names)), lambda i: (0, 0)),    # vectors (resident)
            pl.BlockSpec((1, F + 1), lambda i: (0, 0)),             # output row (resident)
        ],
        out_specs=pl.BlockSpec((1, 2 * Lb), lambda i: (0, i)),
        compiler_params=pltpu.CompilerParams(
            dimension_semantics=("parallel",),          # megacore on v7x
            vmem_limit_bytes=32 * 1024 * 1024,          # v7x-safe explicit budget
        ),
    )(x_col, mask_pk, dur2, w_slab, v_slab, o_row)

    # (1, n_blocks*2*Lb) -> per-branch (B, T, 1)
    out = out.reshape(n_blocks, 2, spb, Tpad)

    def unpack(j):
        return out[:, j].reshape(B_pad, Tpad)[:B, :T, None]

    return [[unpack(0)], [unpack(1)]]


# --------------------------- plain-JAX reference ----------------------------
def _ref_forward(x, mask, dur_r, dur_hat, p):
    P = HIGHEST

    def conv(a, w, b):
        pd = w.shape[2] // 2
        y = lax.conv_general_dilated(a, w, (1,), [(pd, pd)],
                                     dimension_numbers=("NCH", "OIH", "NCH"),
                                     precision=P)
        return y + b[None, :, None]

    def ln(a, g, bta):
        m = jnp.mean(a, axis=1, keepdims=True)
        v = jnp.mean((a - m) ** 2, axis=1, keepdims=True)
        return (a - m) / jnp.sqrt(v + EPS) * g[None, :, None] + bta[None, :, None]

    h = conv(x * mask, p["conv1_w"], p["conv1_b"])
    h = jax.nn.relu(h)
    h = ln(h, p["norm1_g"], p["norm1_b"])
    h = conv(h * mask, p["conv2_w"], p["conv2_b"])
    h = jax.nn.relu(h)
    h = ln(h, p["norm2_g"], p["norm2_b"])
    outs = []
    for dur in (dur_r, dur_hat):
        d = conv(dur, p["dur_w"], p["dur_b"])
        c = jnp.concatenate([h, d], axis=1)
        q = conv(c * mask, p["pre1_w"], p["pre1_b"])
        q = jax.nn.relu(q)
        q = ln(q, p["pnorm1_g"], p["pnorm1_b"])
        q = conv(q * mask, p["pre2_w"], p["pre2_b"])
        q = jax.nn.relu(q)
        q = ln(q, p["pnorm2_g"], p["pnorm2_b"])
        q = q * mask
        qt = jnp.transpose(q, (0, 2, 1))                    # (B, T, F)
        logit = jnp.einsum("btf,of->bto", qt, p["out_w"], precision=P) + p["out_b"]
        outs.append(jax.nn.sigmoid(logit))
    return outs


# ----------------------------------- main ------------------------------------
if __name__ == "__main__":
    B, Cin, F_, T, K = 2, 4, 32, 16, 3

    key = jax.random.PRNGKey(0)
    ks = jax.random.split(key, 24)
    n = lambda k, shape, s=0.2: s * jax.random.normal(k, shape, dtype=jnp.float32)

    params = {
        "conv1_w": n(ks[0], (F_, Cin, K)), "conv1_b": n(ks[1], (F_,), 0.05),
        "norm1_g": 1.0 + n(ks[2], (F_,), 0.1), "norm1_b": n(ks[3], (F_,), 0.1),
        "conv2_w": n(ks[4], (F_, F_, K)), "conv2_b": n(ks[5], (F_,), 0.05),
        "norm2_g": 1.0 + n(ks[6], (F_,), 0.1), "norm2_b": n(ks[7], (F_,), 0.1),
        "dur_w": n(ks[8], (F_, 1, 1)), "dur_b": n(ks[9], (F_,), 0.05),
        "pre1_w": n(ks[10], (F_, 2 * F_, K)), "pre1_b": n(ks[11], (F_,), 0.05),
        "pnorm1_g": 1.0 + n(ks[12], (F_,), 0.1), "pnorm1_b": n(ks[13], (F_,), 0.1),
        "pre2_w": n(ks[14], (F_, F_, K)), "pre2_b": n(ks[15], (F_,), 0.05),
        "pnorm2_g": 1.0 + n(ks[16], (F_,), 0.1), "pnorm2_b": n(ks[17], (F_,), 0.1),
        "out_w": n(ks[18], (1, F_)), "out_b": n(ks[19], (1,), 0.05),
    }

    x = jax.random.normal(ks[20], (B, Cin, T), dtype=jnp.float32)
    lengths = jnp.array([T, T - 4], dtype=jnp.int32)
    x_mask = (jnp.arange(T)[None, None, :] < lengths[:, None, None]).astype(jnp.float32)
    dur_r = jnp.abs(jax.random.normal(ks[21], (B, 1, T), dtype=jnp.float32))
    dur_hat = jnp.abs(jax.random.normal(ks[22], (B, 1, T), dtype=jnp.float32))

    out = duration_discriminator_v2(x, x_mask, dur_r, dur_hat, params)
    out = jax.block_until_ready(out)

    ref = _ref_forward(x, x_mask, dur_r, dur_hat, params)
    for got_list, exp in zip(out, ref):
        got = got_list[0]
        assert got.shape == (B, T, 1), got.shape
        err = float(jnp.max(jnp.abs(got - exp)))
        # f32 path with precision=HIGHEST dots: honest tight tolerance.
        assert jnp.allclose(got, exp, atol=2e-4, rtol=2e-4), err

    print("KERNEL_OK")
</pallas_src>

<mosaic_0001>
module attributes {stable_mosaic.version = 11 : i64} {
  func.func @kernel(%arg0: i32, %arg1: memref<12x256xf32, #tpu.memory_space<vmem>>, %arg2: memref<1x256xf32, #tpu.memory_space<vmem>>, %arg3: memref<2x256xf32, #tpu.memory_space<vmem>>, %arg4: memref<32x1664xf32, #tpu.memory_space<vmem>>, %arg5: memref<32x14xf32, #tpu.memory_space<vmem>>, %arg6: memref<1x33xf32, #tpu.memory_space<vmem>>, %arg7: memref<1x512xf32, #tpu.memory_space<vmem>>) attributes {dimension_semantics = [#tpu.dimension_semantics<parallel>], iteration_bounds = array<i64: 1>, scalar_prefetch = 0 : i64, scratch_operands = 0 : i64, tpu.core_type = #tpu.core_type<tc>, window_params = [{transform_indices = @transform_0, window_bounds = array<i64: 12, 256>}, {transform_indices = @transform_1, window_bounds = array<i64: 1, 256>}, {transform_indices = @transform_2, window_bounds = array<i64: 2, 256>}, {pipeline_mode = #tpu.pipeline_mode<synchronous>, transform_indices = @transform_3, window_bounds = array<i64: 32, 1664>}, {pipeline_mode = #tpu.pipeline_mode<synchronous>, transform_indices = @transform_4, window_bounds = array<i64: 32, 14>}, {pipeline_mode = #tpu.pipeline_mode<synchronous>, transform_indices = @transform_5, window_bounds = array<i64: 1, 33>}, {transform_indices = @transform_6, window_bounds = array<i64: 1, 512>}]} {
    %c0 = arith.constant 0 : index
    %c0_0 = arith.constant 0 : index
    %0 = vector.load %arg2[%c0, %c0_0] : memref<1x256xf32, #tpu.memory_space<vmem>>, vector<1x256xf32>
    %cst = arith.constant 3.125000e-02 : f32
    %1 = vector.broadcast %cst : f32 to vector<1x32xf32>
    %c0_1 = arith.constant 0 : index
    %c0_2 = arith.constant 0 : index
    %2 = vector.load %arg5[%c0_1, %c0_2] : memref<32x14xf32, #tpu.memory_space<vmem>>, vector<32x1xf32>
    %c0_3 = arith.constant 0 : index
    %c1 = arith.constant 1 : index
    %3 = vector.load %arg5[%c0_3, %c1] : memref<32x14xf32, #tpu.memory_space<vmem>>, vector<32x1xf32>
    %c0_4 = arith.constant 0 : index
    %c2 = arith.constant 2 : index
    %4 = vector.load %arg5[%c0_4, %c2] : memref<32x14xf32, #tpu.memory_space<vmem>>, vector<32x1xf32>
    %c0_5 = arith.constant 0 : index
    %c3 = arith.constant 3 : index
    %5 = vector.load %arg5[%c0_5, %c3] : memref<32x14xf32, #tpu.memory_space<vmem>>, vector<32x1xf32>
    %c0_6 = arith.constant 0 : index
    %c4 = arith.constant 4 : index
    %6 = vector.load %arg5[%c0_6, %c4] : memref<32x14xf32, #tpu.memory_space<vmem>>, vector<32x1xf32>
    %c0_7 = arith.constant 0 : index
    %c5 = arith.constant 5 : index
    %7 = vector.load %arg5[%c0_7, %c5] : memref<32x14xf32, #tpu.memory_space<vmem>>, vector<32x1xf32>
    %c0_8 = arith.constant 0 : index
    %c6 = arith.constant 6 : index
    %8 = vector.load %arg5[%c0_8, %c6] : memref<32x14xf32, #tpu.memory_space<vmem>>, vector<32x1xf32>
    %c0_9 = arith.constant 0 : index
    %c7 = arith.constant 7 : index
    %9 = vector.load %arg5[%c0_9, %c7] : memref<32x14xf32, #tpu.memory_space<vmem>>, vector<32x1xf32>
    %c0_10 = arith.constant 0 : index
    %c8 = arith.constant 8 : index
    %10 = vector.load %arg5[%c0_10, %c8] : memref<32x14xf32, #tpu.memory_space<vmem>>, vector<32x1xf32>
    %c0_11 = arith.constant 0 : index
    %c9 = arith.constant 9 : index
    %11 = vector.load %arg5[%c0_11, %c9] : memref<32x14xf32, #tpu.memory_space<vmem>>, vector<32x1xf32>
    %c0_12 = arith.constant 0 : index
    %c10 = arith.constant 10 : index
    %12 = vector.load %arg5[%c0_12, %c10] : memref<32x14xf32, #tpu.memory_space<vmem>>, vector<32x1xf32>
    %c0_13 = arith.constant 0 : index
    %c11 = arith.constant 11 : index
    %13 = vector.load %arg5[%c0_13, %c11] : memref<32x14xf32, #tpu.memory_space<vmem>>, vector<32x1xf32>
    %c0_14 = arith.constant 0 : index
    %c12 = arith.constant 12 : index
    %14 = vector.load %arg5[%c0_14, %c12] : memref<32x14xf32, #tpu.memory_space<vmem>>, vector<32x1xf32>
    %c0_15 = arith.constant 0 : index
    %c13 = arith.constant 13 : index
    %15 = vector.load %arg5[%c0_15, %c13] : memref<32x14xf32, #tpu.memory_space<vmem>>, vector<32x1xf32>
    %c0_16 = arith.constant 0 : index
    %c0_17 = arith.constant 0 : index
    %16 = vector.load %arg6[%c0_16, %c0_17] : memref<1x33xf32, #tpu.memory_space<vmem>>, vector<1x32xf32>
    %c0_18 = arith.constant 0 : index
    %c32 = arith.constant 32 : index
    %17 = vector.load %arg6[%c0_18, %c32] : memref<1x33xf32, #tpu.memory_space<vmem>>, vector<1x1xf32>
    %c0_19 = arith.constant 0 : index
    %c0_20 = arith.constant 0 : index
    %18 = vector.load %arg4[%c0_19, %c0_20] : memref<32x1664xf32, #tpu.memory_space<vmem>>, vector<32x12xf32>
    %c0_21 = arith.constant 0 : index
    %c0_22 = arith.constant 0 : index
    %19 = vector.load %arg1[%c0_21, %c0_22] : memref<12x256xf32, #tpu.memory_space<vmem>>, vector<12x256xf32>
    %cst_23 = arith.constant dense<0.000000e+00> : vector<32x256xf32>
    %20 = tpu.matmul %18, %19, %cst_23 {dimension_numbers = #tpu.dot_dimension_numbers<[1], [0], [0], [1], [0, 0, 1, 1], [], []>, precision = #tpu.contract_precision<fp32>} : vector<32x12xf32>, vector<12x256xf32>, vector<32x256xf32> -> vector<32x256xf32>
    %21 = vector.broadcast %2 : vector<32x1xf32> to vector<32x256xf32>
    %22 = arith.addf %20, %21 : vector<32x256xf32>
    %cst_24 = arith.constant 0.000000e+00 : f32
    %23 = vector.broadcast %cst_24 : f32 to vector<32x256xf32>
    %24 = arith.maximumf %22, %23 : vector<32x256xf32>
    %cst_25 = arith.constant dense<0.000000e+00> : vector<1x256xf32>
    %25 = tpu.matmul %1, %24, %cst_25 {dimension_numbers = #tpu.dot_dimension_numbers<[1], [0], [0], [1], [0, 0, 1, 1], [], []>, precision = #tpu.contract_precision<fp32>} : vector<1x32xf32>, vector<32x256xf32>, vector<1x256xf32> -> vector<1x256xf32>
    %26 = arith.mulf %24, %24 : vector<32x256xf32>
    %cst_26 = arith.constant dense<0.000000e+00> : vector<1x256xf32>
    %27 = tpu.matmul %1, %26, %cst_26 {dimension_numbers = #tpu.dot_dimension_numbers<[1], [0], [0], [1], [0, 0, 1, 1], [], []>, precision = #tpu.contract_precision<fp32>} : vector<1x32xf32>, vector<32x256xf32>, vector<1x256xf32> -> vector<1x256xf32>
    %28 = arith.mulf %25, %25 : vector<1x256xf32>
    %29 = arith.subf %27, %28 : vector<1x256xf32>
    %cst_27 = arith.constant 0.000000e+00 : f32
    %30 = vector.broadcast %cst_27 : f32 to vector<1x256xf32>
    %31 = arith.maximumf %29, %30 : vector<1x256xf32>
    %32 = vector.broadcast %25 : vector<1x256xf32> to vector<32x256xf32>
    %33 = arith.subf %24, %32 : vector<32x256xf32>
    %cst_28 = arith.constant 9.99999974E-6 : f32
    %34 = vector.broadcast %cst_28 : f32 to vector<1x256xf32>
    %35 = arith.addf %31, %34 : vector<1x256xf32>
    %36 = math.rsqrt %35 : vector<1x256xf32>
    %37 = vector.broadcast %36 : vector<1x256xf32> to vector<32x256xf32>
    %38 = arith.mulf %33, %37 : vector<32x256xf32>
    %39 = vector.broadcast %3 : vector<32x1xf32> to vector<32x256xf32>
    %40 = arith.mulf %38, %39 : vector<32x256xf32>
    %41 = vector.broadcast %4 : vector<32x1xf32> to vector<32x256xf32>
    %42 = arith.addf %40, %41 : vector<32x256xf32>
    %43 = vector.broadcast %0 : vector<1x256xf32> to vector<32x256xf32>
    %44 = arith.mulf %42, %43 : vector<32x256xf32>
    %c0_29 = arith.constant 0 : index
    %c256 = arith.constant 256 : index
    %45 = vector.load %arg4[%c0_29, %c256] : memref<32x1664xf32, #tpu.memory_space<vmem>>, vector<32x32xf32>
    %cst_30 = arith.constant dense<0.000000e+00> : vector<32x256xf32>
    %46 = tpu.matmul %45, %44, %cst_30 {dimension_numbers = #tpu.dot_dimension_numbers<[1], [0], [0], [1], [0, 0, 1, 1], [], []>, precision = #tpu.contract_precision<fp32>} : vector<32x32xf32>, vector<32x256xf32>, vector<32x256xf32> -> vector<32x256xf32>
    %47 = vector.broadcast %5 : vector<32x1xf32> to vector<32x256xf32>
    %48 = arith.addf %46, %47 : vector<32x256xf32>
    %c0_31 = arith.constant 0 : index
    %c128 = arith.constant 128 : index
    %49 = vector.load %arg4[%c0_31, %c128] : memref<32x1664xf32, #tpu.memory_space<vmem>>, vector<32x32xf32>
    %c1_i32 = arith.constant 1 : i32
    %50 = tpu.dynamic_rotate %44 by %c1_i32 dim 1 : vector<32x256xf32>, i32 -> vector<32x256xf32>
    %cst_32 = arith.constant dense<0.000000e+00> : vector<32x256xf32>
    %51 = tpu.matmul %49, %50, %cst_32 {dimension_numbers = #tpu.dot_dimension_numbers<[1], [0], [0], [1], [0, 0, 1, 1], [], []>, precision = #tpu.contract_precision<fp32>} : vector<32x32xf32>, vector<32x256xf32>, vector<32x256xf32> -> vector<32x256xf32>
    %52 = arith.addf %48, %51 : vector<32x256xf32>
    %c0_33 = arith.constant 0 : index
    %c384 = arith.constant 384 : index
    %53 = vector.load %arg4[%c0_33, %c384] : memref<32x1664xf32, #tpu.memory_space<vmem>>, vector<32x32xf32>
    %c255_i32 = arith.constant 255 : i32
    %54 = tpu.dynamic_rotate %44 by %c255_i32 dim 1 : vector<32x256xf32>, i32 -> vector<32x256xf32>
    %cst_34 = arith.constant dense<0.000000e+00> : vector<32x256xf32>
    %55 = tpu.matmul %53, %54, %cst_34 {dimension_numbers = #tpu.dot_dimension_numbers<[1], [0], [0], [1], [0, 0, 1, 1], [], []>, precision = #tpu.contract_precision<fp32>} : vector<32x32xf32>, vector<32x256xf32>, vector<32x256xf32> -> vector<32x256xf32>
    %56 = arith.addf %52, %55 : vector<32x256xf32>
    %cst_35 = arith.constant 0.000000e+00 : f32
    %57 = vector.broadcast %cst_35 : f32 to vector<32x256xf32>
    %58 = arith.maximumf %56, %57 : vector<32x256xf32>
    %cst_36 = arith.constant dense<0.000000e+00> : vector<1x256xf32>
    %59 = tpu.matmul %1, %58, %cst_36 {dimension_numbers = #tpu.dot_dimension_numbers<[1], [0], [0], [1], [0, 0, 1, 1], [], []>, precision = #tpu.contract_precision<fp32>} : vector<1x32xf32>, vector<32x256xf32>, vector<1x256xf32> -> vector<1x256xf32>
    %60 = arith.mulf %58, %58 : vector<32x256xf32>
    %cst_37 = arith.constant dense<0.000000e+00> : vector<1x256xf32>
    %61 = tpu.matmul %1, %60, %cst_37 {dimension_numbers = #tpu.dot_dimension_numbers<[1], [0], [0], [1], [0, 0, 1, 1], [], []>, precision = #tpu.contract_precision<fp32>} : vector<1x32xf32>, vector<32x256xf32>, vector<1x256xf32> -> vector<1x256xf32>
    %62 = arith.mulf %59, %59 : vector<1x256xf32>
    %63 = arith.subf %61, %62 : vector<1x256xf32>
    %cst_38 = arith.constant 0.000000e+00 : f32
    %64 = vector.broadcast %cst_38 : f32 to vector<1x256xf32>
    %65 = arith.maximumf %63, %64 : vector<1x256xf32>
    %66 = vector.broadcast %59 : vector<1x256xf32> to vector<32x256xf32>
    %67 = arith.subf %58, %66 : vector<32x256xf32>
    %cst_39 = arith.constant 9.99999974E-6 : f32
    %68 = vector.broadcast %cst_39 : f32 to vector<1x256xf32>
    %69 = arith.addf %65, %68 : vector<1x256xf32>
    %70 = math.rsqrt %69 : vector<1x256xf32>
    %71 = vector.broadcast %70 : vector<1x256xf32> to vector<32x256xf32>
    %72 = arith.mulf %67, %71 : vector<32x256xf32>
    %73 = vector.broadcast %6 : vector<32x1xf32> to vector<32x256xf32>
    %74 = arith.mulf %72, %73 : vector<32x256xf32>
    %75 = vector.broadcast %7 : vector<32x1xf32> to vector<32x256xf32>
    %76 = arith.addf %74, %75 : vector<32x256xf32>
    %77 = vector.broadcast %0 : vector<1x256xf32> to vector<32x256xf32>
    %78 = arith.mulf %76, %77 : vector<32x256xf32>
    %c0_40 = arith.constant 0 : index
    %c640 = arith.constant 640 : index
    %79 = vector.load %arg4[%c0_40, %c640] : memref<32x1664xf32, #tpu.memory_space<vmem>>, vector<32x32xf32>
    %cst_41 = arith.constant dense<0.000000e+00> : vector<32x256xf32>
    %80 = tpu.matmul %79, %78, %cst_41 {dimension_numbers = #tpu.dot_dimension_numbers<[1], [0], [0], [1], [0, 0, 1, 1], [], []>, precision = #tpu.contract_precision<fp32>} : vector<32x32xf32>, vector<32x256xf32>, vector<32x256xf32> -> vector<32x256xf32>
    %81 = vector.broadcast %10 : vector<32x1xf32> to vector<32x256xf32>
    %82 = arith.addf %80, %81 : vector<32x256xf32>
    %c0_42 = arith.constant 0 : index
    %c512 = arith.constant 512 : index
    %83 = vector.load %arg4[%c0_42, %c512] : memref<32x1664xf32, #tpu.memory_space<vmem>>, vector<32x32xf32>
    %c1_i32_43 = arith.constant 1 : i32
    %84 = tpu.dynamic_rotate %78 by %c1_i32_43 dim 1 : vector<32x256xf32>, i32 -> vector<32x256xf32>
    %cst_44 = arith.constant dense<0.000000e+00> : vector<32x256xf32>
    %85 = tpu.matmul %83, %84, %cst_44 {dimension_numbers = #tpu.dot_dimension_numbers<[1], [0], [0], [1], [0, 0, 1, 1], [], []>, precision = #tpu.contract_precision<fp32>} : vector<32x32xf32>, vector<32x256xf32>, vector<32x256xf32> -> vector<32x256xf32>
    %86 = arith.addf %82, %85 : vector<32x256xf32>
    %c0_45 = arith.constant 0 : index
    %c768 = arith.constant 768 : index
    %87 = vector.load %arg4[%c0_45, %c768] : memref<32x1664xf32, #tpu.memory_space<vmem>>, vector<32x32xf32>
    %c255_i32_46 = arith.constant 255 : i32
    %88 = tpu.dynamic_rotate %78 by %c255_i32_46 dim 1 : vector<32x256xf32>, i32 -> vector<32x256xf32>
    %cst_47 = arith.constant dense<0.000000e+00> : vector<32x256xf32>
    %89 = tpu.matmul %87, %88, %cst_47 {dimension_numbers = #tpu.dot_dimension_numbers<[1], [0], [0], [1], [0, 0, 1, 1], [], []>, precision = #tpu.contract_precision<fp32>} : vector<32x32xf32>, vector<32x256xf32>, vector<32x256xf32> -> vector<32x256xf32>
    %90 = arith.addf %86, %89 : vector<32x256xf32>
    %c0_48 = arith.constant 0 : index
    %c0_49 = arith.constant 0 : index
    %91 = vector.load %arg3[%c0_48, %c0_49] : memref<2x256xf32, #tpu.memory_space<vmem>>, vector<2x256xf32>
    %92 = vector.extract_strided_slice %91 {offsets = [0, 0], sizes = [1, 256], strides = [1, 1]} : vector<2x256xf32> to vector<1x256xf32>
    %93 = vector.extract_strided_slice %91 {offsets = [1, 0], sizes = [1, 256], strides = [1, 1]} : vector<2x256xf32> to vector<1x256xf32>
    %94 = tpu.concatenate %92, %93 in 1 : vector<1x256xf32>, vector<1x256xf32> -> vector<1x512xf32>
    %95 = tpu.concatenate %0, %0 in 1 : vector<1x256xf32>, vector<1x256xf32> -> vector<1x512xf32>
    %96 = tpu.concatenate %90, %90 in 1 : vector<32x256xf32>, vector<32x256xf32> -> vector<32x512xf32>
    %97 = vector.broadcast %8 : vector<32x1xf32> to vector<32x512xf32>
    %98 = vector.broadcast %94 : vector<1x512xf32> to vector<32x512xf32>
    %99 = arith.mulf %97, %98 : vector<32x512xf32>
    %100 = vector.broadcast %9 : vector<32x1xf32> to vector<32x512xf32>
    %101 = arith.addf %99, %100 : vector<32x512xf32>
    %102 = vector.broadcast %95 : vector<1x512xf32> to vector<32x512xf32>
    %103 = arith.mulf %101, %102 : vector<32x512xf32>
    %c0_50 = arith.constant 0 : index
    %c1024 = arith.constant 1024 : index
    %104 = vector.load %arg4[%c0_50, %c1024] : memref<32x1664xf32, #tpu.memory_space<vmem>>, vector<32x32xf32>
    %cst_51 = arith.constant dense<0.000000e+00> : vector<32x512xf32>
    %105 = tpu.matmul %104, %103, %cst_51 {dimension_numbers = #tpu.dot_dimension_numbers<[1], [0], [0], [1], [0, 0, 1, 1], [], []>, precision = #tpu.contract_precision<fp32>} : vector<32x32xf32>, vector<32x512xf32>, vector<32x512xf32> -> vector<32x512xf32>
    %c0_52 = arith.constant 0 : index
    %c896 = arith.constant 896 : index
    %106 = vector.load %arg4[%c0_52, %c896] : memref<32x1664xf32, #tpu.memory_space<vmem>>, vector<32x32xf32>
    %c1_i32_53 = arith.constant 1 : i32
    %107 = tpu.dynamic_rotate %103 by %c1_i32_53 dim 1 : vector<32x512xf32>, i32 -> vector<32x512xf32>
    %cst_54 = arith.constant dense<0.000000e+00> : vector<32x512xf32>
    %108 = tpu.matmul %106, %107, %cst_54 {dimension_numbers = #tpu.dot_dimension_numbers<[1], [0], [0], [1], [0, 0, 1, 1], [], []>, precision = #tpu.contract_precision<fp32>} : vector<32x32xf32>, vector<32x512xf32>, vector<32x512xf32> -> vector<32x512xf32>
    %109 = arith.addf %105, %108 : vector<32x512xf32>
    %c0_55 = arith.constant 0 : index
    %c1152 = arith.constant 1152 : index
    %110 = vector.load %arg4[%c0_55, %c1152] : memref<32x1664xf32, #tpu.memory_space<vmem>>, vector<32x32xf32>
    %c511_i32 = arith.constant 511 : i32
    %111 = tpu.dynamic_rotate %103 by %c511_i32 dim 1 : vector<32x512xf32>, i32 -> vector<32x512xf32>
    %cst_56 = arith.constant dense<0.000000e+00> : vector<32x512xf32>
    %112 = tpu.matmul %110, %111, %cst_56 {dimension_numbers = #tpu.dot_dimension_numbers<[1], [0], [0], [1], [0, 0, 1, 1], [], []>, precision = #tpu.contract_precision<fp32>} : vector<32x32xf32>, vector<32x512xf32>, vector<32x512xf32> -> vector<32x512xf32>
    %113 = arith.addf %109, %112 : vector<32x512xf32>
    %114 = arith.addf %96, %113 : vector<32x512xf32>
    %cst_57 = arith.constant 0.000000e+00 : f32
    %115 = vector.broadcast %cst_57 : f32 to vector<32x512xf32>
    %116 = arith.maximumf %114, %115 : vector<32x512xf32>
    %cst_58 = arith.constant dense<0.000000e+00> : vector<1x512xf32>
    %117 = tpu.matmul %1, %116, %cst_58 {dimension_numbers = #tpu.dot_dimension_numbers<[1], [0], [0], [1], [0, 0, 1, 1], [], []>, precision = #tpu.contract_precision<fp32>} : vector<1x32xf32>, vector<32x512xf32>, vector<1x512xf32> -> vector<1x512xf32>
    %118 = arith.mulf %116, %116 : vector<32x512xf32>
    %cst_59 = arith.constant dense<0.000000e+00> : vector<1x512xf32>
    %119 = tpu.matmul %1, %118, %cst_59 {dimension_numbers = #tpu.dot_dimension_numbers<[1], [0], [0], [1], [0, 0, 1, 1], [], []>, precision = #tpu.contract_precision<fp32>} : vector<1x32xf32>, vector<32x512xf32>, vector<1x512xf32> -> vector<1x512xf32>
    %120 = arith.mulf %117, %117 : vector<1x512xf32>
    %121 = arith.subf %119, %120 : vector<1x512xf32>
    %cst_60 = arith.constant 0.000000e+00 : f32
    %122 = vector.broadcast %cst_60 : f32 to vector<1x512xf32>
    %123 = arith.maximumf %121, %122 : vector<1x512xf32>
    %124 = vector.broadcast %117 : vector<1x512xf32> to vector<32x512xf32>
    %125 = arith.subf %116, %124 : vector<32x512xf32>
    %cst_61 = arith.constant 9.99999974E-6 : f32
    %126 = vector.broadcast %cst_61 : f32 to vector<1x512xf32>
    %127 = arith.addf %123, %126 : vector<1x512xf32>
    %128 = math.rsqrt %127 : vector<1x512xf32>
    %129 = vector.broadcast %128 : vector<1x512xf32> to vector<32x512xf32>
    %130 = arith.mulf %125, %129 : vector<32x512xf32>
    %131 = vector.broadcast %11 : vector<32x1xf32> to vector<32x512xf32>
    %132 = arith.mulf %130, %131 : vector<32x512xf32>
    %133 = vector.broadcast %12 : vector<32x1xf32> to vector<32x512xf32>
    %134 = arith.addf %132, %133 : vector<32x512xf32>
    %135 = vector.broadcast %95 : vector<1x512xf32> to vector<32x512xf32>
    %136 = arith.mulf %134, %135 : vector<32x512xf32>
    %c0_62 = arith.constant 0 : index
    %c1408 = arith.constant 1408 : index
    %137 = vector.load %arg4[%c0_62, %c1408] : memref<32x1664xf32, #tpu.memory_space<vmem>>, vector<32x32xf32>
    %cst_63 = arith.constant dense<0.000000e+00> : vector<32x512xf32>
    %138 = tpu.matmul %137, %136, %cst_63 {dimension_numbers = #tpu.dot_dimension_numbers<[1], [0], [0], [1], [0, 0, 1, 1], [], []>, precision = #tpu.contract_precision<fp32>} : vector<32x32xf32>, vector<32x512xf32>, vector<32x512xf32> -> vector<32x512xf32>
    %139 = vector.broadcast %13 : vector<32x1xf32> to vector<32x512xf32>
    %140 = arith.addf %138, %139 : vector<32x512xf32>
    %c0_64 = arith.constant 0 : index
    %c1280 = arith.constant 1280 : index
    %141 = vector.load %arg4[%c0_64, %c1280] : memref<32x1664xf32, #tpu.memory_space<vmem>>, vector<32x32xf32>
    %c1_i32_65 = arith.constant 1 : i32
    %142 = tpu.dynamic_rotate %136 by %c1_i32_65 dim 1 : vector<32x512xf32>, i32 -> vector<32x512xf32>
    %cst_66 = arith.constant dense<0.000000e+00> : vector<32x512xf32>
    %143 = tpu.matmul %141, %142, %cst_66 {dimension_numbers = #tpu.dot_dimension_numbers<[1], [0], [0], [1], [0, 0, 1, 1], [], []>, precision = #tpu.contract_precision<fp32>} : vector<32x32xf32>, vector<32x512xf32>, vector<32x512xf32> -> vector<32x512xf32>
    %144 = arith.addf %140, %143 : vector<32x512xf32>
    %c0_67 = arith.constant 0 : index
    %c1536 = arith.constant 1536 : index
    %145 = vector.load %arg4[%c0_67, %c1536] : memref<32x1664xf32, #tpu.memory_space<vmem>>, vector<32x32xf32>
    %c511_i32_68 = arith.constant 511 : i32
    %146 = tpu.dynamic_rotate %136 by %c511_i32_68 dim 1 : vector<32x512xf32>, i32 -> vector<32x512xf32>
    %cst_69 = arith.constant dense<0.000000e+00> : vector<32x512xf32>
    %147 = tpu.matmul %145, %146, %cst_69 {dimension_numbers = #tpu.dot_dimension_numbers<[1], [0], [0], [1], [0, 0, 1, 1], [], []>, precision = #tpu.contract_precision<fp32>} : vector<32x32xf32>, vector<32x512xf32>, vector<32x512xf32> -> vector<32x512xf32>
    %148 = arith.addf %144, %147 : vector<32x512xf32>
    %cst_70 = arith.constant 0.000000e+00 : f32
    %149 = vector.broadcast %cst_70 : f32 to vector<32x512xf32>
    %150 = arith.maximumf %148, %149 : vector<32x512xf32>
    %cst_71 = arith.constant dense<0.000000e+00> : vector<1x512xf32>
    %151 = tpu.matmul %1, %150, %cst_71 {dimension_numbers = #tpu.dot_dimension_numbers<[1], [0], [0], [1], [0, 0, 1, 1], [], []>, precision = #tpu.contract_precision<fp32>} : vector<1x32xf32>, vector<32x512xf32>, vector<1x512xf32> -> vector<1x512xf32>
    %152 = arith.mulf %150, %150 : vector<32x512xf32>
    %cst_72 = arith.constant dense<0.000000e+00> : vector<1x512xf32>
    %153 = tpu.matmul %1, %152, %cst_72 {dimension_numbers = #tpu.dot_dimension_numbers<[1], [0], [0], [1], [0, 0, 1, 1], [], []>, precision = #tpu.contract_precision<fp32>} : vector<1x32xf32>, vector<32x512xf32>, vector<1x512xf32> -> vector<1x512xf32>
    %154 = arith.mulf %151, %151 : vector<1x512xf32>
    %155 = arith.subf %153, %154 : vector<1x512xf32>
    %cst_73 = arith.constant 0.000000e+00 : f32
    %156 = vector.broadcast %cst_73 : f32 to vector<1x512xf32>
    %157 = arith.maximumf %155, %156 : vector<1x512xf32>
    %158 = vector.broadcast %151 : vector<1x512xf32> to vector<32x512xf32>
    %159 = arith.subf %150, %158 : vector<32x512xf32>
    %cst_74 = arith.constant 9.99999974E-6 : f32
    %160 = vector.broadcast %cst_74 : f32 to vector<1x512xf32>
    %161 = arith.addf %157, %160 : vector<1x512xf32>
    %162 = math.rsqrt %161 : vector<1x512xf32>
    %163 = vector.broadcast %162 : vector<1x512xf32> to vector<32x512xf32>
    %164 = arith.mulf %159, %163 : vector<32x512xf32>
    %165 = vector.broadcast %14 : vector<32x1xf32> to vector<32x512xf32>
    %166 = arith.mulf %164, %165 : vector<32x512xf32>
    %167 = vector.broadcast %15 : vector<32x1xf32> to vector<32x512xf32>
    %168 = arith.addf %166, %167 : vector<32x512xf32>
    %169 = vector.broadcast %95 : vector<1x512xf32> to vector<32x512xf32>
    %170 = arith.mulf %168, %169 : vector<32x512xf32>
    %cst_75 = arith.constant dense<0.000000e+00> : vector<1x512xf32>
    %171 = tpu.matmul %16, %170, %cst_75 {dimension_numbers = #tpu.dot_dimension_numbers<[1], [0], [0], [1], [0, 0, 1, 1], [], []>, precision = #tpu.contract_precision<fp32>} : vector<1x32xf32>, vector<32x512xf32>, vector<1x512xf32> -> vector<1x512xf32>
    %172 = vector.broadcast %17 : vector<1x1xf32> to vector<1x512xf32>
    %173 = arith.addf %171, %172 : vector<1x512xf32>
    %174 = arith.negf %173 : vector<1x512xf32>
    %175 = math.exp %174 : vector<1x512xf32>
    %cst_76 = arith.constant 1.000000e+00 : f32
    %176 = vector.broadcast %cst_76 : f32 to vector<1x512xf32>
    %177 = arith.addf %176, %175 : vector<1x512xf32>
    %178 = arith.divf %176, %177 : vector<1x512xf32>
    %c0_77 = arith.constant 0 : index
    %c0_78 = arith.constant 0 : index
    %179 = vector.load %arg7[%c0_77, %c0_78] : memref<1x512xf32, #tpu.memory_space<vmem>>, vector<1x512xf32>
    tpu.vector_store %arg7[%c0_77, %c0_78], %178 {strides = array<i32>} : memref<1x512xf32, #tpu.memory_space<vmem>>, vector<1x512xf32>,
    return
  }
  func.func @transform_0(%arg0: i32) -> (i32, i32) {
    %c0_i32 = arith.constant 0 : i32
    %c0_i32_0 = arith.constant 0 : i32
    return %c0_i32, %arg0 : i32, i32
  }
  func.func @transform_1(%arg0: i32) -> (i32, i32) {
    %c0_i32 = arith.constant 0 : i32
    %c0_i32_0 = arith.constant 0 : i32
    return %c0_i32, %arg0 : i32, i32
  }
  func.func @transform_2(%arg0: i32) -> (i32, i32) {
    %c0_i32 = arith.constant 0 : i32
    %c0_i32_0 = arith.constant 0 : i32
    return %c0_i32, %arg0 : i32, i32
  }
  func.func @transform_3(%arg0: i32) -> (i32, i32) {
    %c0_i32 = arith.constant 0 : i32
    %c0_i32_0 = arith.constant 0 : i32
    %c0_i32_1 = arith.constant 0 : i32
    return %c0_i32, %c0_i32_0 : i32, i32
  }
  func.func @transform_4(%arg0: i32) -> (i32, i32) {
    %c0_i32 = arith.constant 0 : i32
    %c0_i32_0 = arith.constant 0 : i32
    %c0_i32_1 = arith.constant 0 : i32
    return %c0_i32, %c0_i32_0 : i32, i32
  }
  func.func @transform_5(%arg0: i32) -> (i32, i32) {
    %c0_i32 = arith.constant 0 : i32
    %c0_i32_0 = arith.constant 0 : i32
    %c0_i32_1 = arith.constant 0 : i32
    return %c0_i32, %c0_i32_0 : i32, i32
  }
  func.func @transform_6(%arg0: i32) -> (i32, i32) {
    %c0_i32 = arith.constant 0 : i32
    %c0_i32_0 = arith.constant 0 : i32
    return %c0_i32, %arg0 : i32, i32
  }
}

</mosaic_0001>

<bundles_post_ra>
// kernel: tpu_custom_call.1
= control target key start
LH: loop header
LB: loop body
LE: loop exit
PB: predicated region body
PF: predicated region fallthrough
CT: control target
= control target key end

     0   :  { %11 = vsyncpa [#allocation3], 0  ;;  %s31142_s0 = inlined_call_operand.vmem [shape: f32[12,256], index: 0, kind: input, shape index: {}]   ;;  %s31143_s1 = inlined_call_operand.vmem [shape: f32[1,256], index: 1, kind: input, shape index: {}]   ;;  %s31144_s2 = inlined_call_operand.vmem [shape: f32[2,256], index: 2, kind: input, shape index: {}]   ;;  %s31145_s3 = inlined_call_operand.hbm [shape: f32[32,1664], index: 3, kind: input, shape index: {}]   ;;  %s31146_s4 = inlined_call_operand.vmem [shape: f32[32,14], index: 4, kind: input, shape index: {}]   ;;  %s31147_s5 = inlined_call_operand.vmem [shape: f32[1,33], index: 5, kind: input, shape index: {}]   ;;  %s31148_s6 = inlined_call_operand.hbm [shape: f32[1,512], index: 6, kind: output, shape index: {}]  }
   0x1   :  { %12 = vsyncpa [#allocation4], 0  ;;  %s25033_s21 = smov [#allocation2]   ;;  %s24985_s25 = scalar_lea.hbm %s31145_s3, 6656 }
   0x2   :  { %s24_s22 = sshll.u32 %s25033_s21, 4  ;;  %p24986_p0 = scmp.ne.s32.totalorder %s31145_s3, %s24985_s25  ;;  %s25_s22 = int_to_ptr.vmem [resolvable:$true] %s24_s22 }
   0x3   :  { %p24989_p1 = scmp.lt.u32.totalorder %s24985_s25, %s31145_s3 }
   0x5   :  { %p24991_p2 = pnand %p24989_p1, %p24986_p0 }
   0x7   :  { %24994 = shalt.err (!%p24991_p2)
}
   0x8   :  { %s24995_s30 = scalar_lea.vmem %s25_s22, 6656  ;;  %p25000_p4 = scmp.lt.s32.totalorder %s25_s22, %s25_s22 }
   0x9   :  { %p24996_p3 = scmp.ne.s32.totalorder %s25_s22, %s24995_s30  ;;  %p25001_p5 = scmp.lt.s32.totalorder %s24995_s30, %s24995_s30 }
   0xb   :  { %p25002_p6 = por %p25001_p5, %p25000_p4 }
   0xd   :  { %p25003_p7 = pnand %p25002_p6, %p24996_p3 }
   0xf   :  { %25006 = shalt.err (!%p25003_p7)
}
  0x10   :  { %s25034_s7 = smov 1664   ;;  %s25035_s8 = smov 104  }
  0x11   :  { %30 = dma.hbm_to_vmem [thread:$0]  %s31145_s3, 6656, %s25_s22, [#allocation3], %s25034_s7, %s25034_s7, %s25035_s8  }
  0x12   :  { %25029 = dma.done.wait [#allocation3], 6656  }
  0x13   :  { %25030 = vsyncadd [#allocation3], 4294960640  ;;  %v31157_v0 = vmov 0.0   ;;  %v25037_v1 = vmov 0   ;;  %vm85_vm0 = vcmask 1043456   ;;  %vm72_vm1 = vcmask 97280  }
  0x14   :  { %160 = vmatprep.mubr.f32.mxu0 %v31157_v0  ;;  %24889 = vset.pattern.permute.xlu0 %v25037_v1  ;;  %v49_v2 = vld [vmem:[%s31142_s0 + $0x8] sm:$0xff]  ;;  %v51_v3 = vld [vmem:[%s31142_s0 + $0x18] sm:$0xf]  ;;  %v48_v4 = vld [vmem:[%s31142_s0] sm:$0xff]  ;;  %vm738_vm2 = vcmask 261120   ;;  %s25043_s27 = smov 127  }
  0x15   :  { %24890 = vset.pattern.permute.xlu1 %v25037_v1  ;;  %814 = vmatprep.mubr.f32.mxu1 %v31157_v0  ;;  %v90_v5 = vsel %vm85_vm0, %v51_v3, 0  ;;  %v92_v6 = vand.u32 4294901760, %v49_v2  ;;  %v50_v7 = vld [vmem:[%s31142_s0 + $0x10] sm:$0xf]  ;;  %v94_v8 = vand.u32 4294901760, %v48_v4  ;;  %v44_v9 = vld [vmem:[#allocation2] sm:$0xff] }
  0x16   :  { %v96_v10 = vand.u32 4294901760, %v90_v5  ;;  %v87_v11 = vsel %vm85_vm0, %v50_v7, 0  ;;  %v74_v12 = vsel %vm72_vm1, %v44_v9, 0  ;;  %v45_v13 = vld [vmem:[#allocation2 + $0x68] sm:$0xff]  ;;  %v46_v14 = vld [vmem:[#allocation2 + $0xd0] sm:$0xff]  ;;  %v25130_v19 = vld [vmem:[%s31146_s4] sm:$0xff] }
  0x17   :  { %v25121_v15 = vsub.f32 %v49_v2, %v92_v6  ;;  %v98_v16 = vand.u32 4294901760, %v87_v11  ;;  %v25123_v17 = vsub.f32 %v48_v4, %v94_v8  ;;  %v25125_v18 = vand.u32 4294901760, %v74_v12  ;;  %v25135_v20 = vld [vmem:[%s31146_s4 + $0x10] sm:$0xff]  ;;  %v47_v25 = vld [vmem:[#allocation2 + $0x138] sm:$0xff]  ;;  %54 = vperm.xlu0 %24889, %v25130_v19   ;;  %v25157_v30 = vld [vmem:[%s31146_s4 + $0x8] sm:$0xff] }
  0x18   :  { %v25137_v21 = vpack.c.bf16 %v96_v10, %v92_v6  ;;  %v25139_v22 = vsub.f32 %v90_v5, %v96_v10  ;;  %v77_v23 = vsel %vm72_vm1, %v45_v13, 0  ;;  %v80_v24 = vsel %vm72_vm1, %v46_v14, 0  ;;  %64 = vperm.xlu1 %24890, %v25135_v20   ;;  %v25168_v35 = vld [vmem:[%s31146_s4 + $0x18] sm:$0xff] }
  0x19   :  { %v25145_v26 = vpack.c.bf16 %v98_v16, %v94_v8  ;;  %v25147_v27 = vsub.f32 %v87_v11, %v98_v16  ;;  %v25150_v28 = vsub.f32 %v74_v12, %v25125_v18  ;;  %v25152_v29 = vand.u32 4294901760, %v77_v23 }
  0x1a   :  { %22266 = vmatprep.subr.bf16.mxu0 %v25137_v21  ;;  %v25160_v31 = vand.u32 4294901760, %v80_v24  ;;  %v207_v32 = vand.u32 4294901760, %v25121_v15  ;;  %v219_v33 = vand.u32 4294901760, %v25139_v22  ;;  %v213_v34 = vand.u32 4294901760, %v25123_v17 }
  0x1b   :  { %22268 = vmatpush1.bf16.msra.mxu0 %v25145_v26  ;;  %v163_v36 = vand.u32 4294901760, %v25150_v28  ;;  %v25173_v37 = vsub.f32 %v77_v23, %v25152_v29  ;;  %v225_v38 = vand.u32 4294901760, %v25147_v27  ;;  %v83_v39 = vsel %vm72_vm1, %v47_v25, 0  ;;  %59 = vperm.xlu0 %24889, %v25157_v30  }
  0x1c   :  { %v25178_v40 = vsub.f32 %v80_v24, %v25160_v31  ;;  %v208_v41 = vsub.f32 %v25121_v15, %v207_v32  ;;  %v220_v42 = vsub.f32 %v25139_v22, %v219_v33  ;;  %v214_v43 = vsub.f32 %v25123_v17, %v213_v34  ;;  %69 = vperm.xlu1 %24890, %v25168_v35  }
  0x1d   :  { %v164_v44 = vsub.f32 %v25150_v28, %v163_v36  ;;  %v174_v45 = vand.u32 4294901760, %v25173_v37  ;;  %v226_v46 = vsub.f32 %v25147_v27, %v225_v38  ;;  %v25191_v47 = vand.u32 4294901760, %v83_v39 }
  0x1e   :  { %v185_v48 = vand.u32 4294901760, %v25178_v40  ;;  %v209_v49 = vand.u32 4294901760, %v208_v41  ;;  %v221_v50 = vand.u32 4294901760, %v220_v42  ;;  %v215_v51 = vand.u32 4294901760, %v214_v43 }
  0x1f   :  { %v165_v52 = vand.u32 4294901760, %v164_v44  ;;  %v175_v53 = vsub.f32 %v25173_v37, %v174_v45  ;;  %v227_v54 = vand.u32 4294901760, %v226_v46  ;;  %v195_v55 = vsub.f32 %v83_v39, %v25191_v47 }
  0x20   :  { %v22269_v56 = vpack.c.bf16 %v221_v50, %v209_v49  ;;  %v22273_v57 = vpack.c.bf16 %v25139_v22, %v25121_v15  ;;  %v186_v59 = vsub.f32 %v25178_v40, %v185_v48  ;;  %v22275_v3 = vpack.c.bf16 %v25147_v27, %v25123_v17 }
  0x21   :  { %166 = vmatmul.mubr.f32.vlgmr.msra.gmra.mrb[0].mxu0 %v165_v52  ;;  %v176_v58 = vand.u32 4294901760, %v175_v53  ;;  %v22271_v60 = vpack.c.bf16 %v227_v54, %v215_v51  ;;  %v196_v61 = vand.u32 4294901760, %v195_v55  ;;  %v22281_v4 = vpack.c.bf16 %v219_v33, %v207_v32 }
  0x22   :  { %171 = vmatprep.mubr.f32.mxu0 %v31157_v0  ;;  %22270 = vmatprep.subr.bf16.mxu0 %v22269_v56  ;;  %v187_v62 = vand.u32 4294901760, %v186_v59  ;;  %v22283_v5 = vpack.c.bf16 %v225_v38, %v213_v34  ;;  %v25038_v6 = vmov 1   ;;  %v25039_v7 = vmov 2  }
  0x23   :  { %22272 = vmatpush1.bf16.msra.mxu0 %v22271_v60  ;;  %v197_v63 = vsub.f32 %v195_v55, %v196_v61  ;;  %24892 = vset.pattern.permute.xlu1 %v25038_v6 }
  0x24   :  { %22274 = vmatprep.subr.bf16.mxu0 %v22273_v57  ;;  %24891 = vset.pattern.permute.xlu0 %v25038_v6 }
  0x25   :  { %177 = vmatmul.mubr.f32.gmra.mrb[2].mxu0 %v176_v58  ;;  %v198_v2 = vand.u32 4294901760, %v197_v63  ;;  %1883 = vperm.xlu1 %24892, %v25157_v30  }
  0x26   :  { %182 = vmatprep.mubr.f32.mxu0 %v31157_v0  ;;  %1879 = vperm.xlu0 %24891, %v25130_v19  }
  0x29   :  { %188 = vmatmul.mubr.f32.gmra.mrb[4].mxu0 %v187_v62  ;;  %24893 = vset.pattern.permute.xlu1 %v25039_v7 }
  0x2a   :  { %193 = vmatprep.mubr.f32.mxu0 %v31157_v0  ;;  %24894 = vset.pattern.permute.xlu0 %v25039_v7 }
  0x2b   :  { %1903 = vperm.xlu1 %24893, %v25130_v19   ;;  %1907 = vperm.xlu0 %24894, %v25157_v30  }
  0x2d   :  { %199 = vmatmul.mubr.f32.gmra.mrb[6].mxu0 %v198_v2 }
  0x2e   :  { %289 = vmatprep.mubr.f32.mxu0 %v31157_v0 }
  0x2f   :  { %24895 = vset.pattern.permute.xlu1 %v25038_v6  ;;  %1911 = vperm.xlu0 %24894, %v25135_v20  }
  0x30   :  { %1887 = vperm.xlu1 %24895, %v25135_v20   ;;  %v740_v20 = vsel %vm738_vm2, 0.03125, %v25037_v1 }
  0x31   :  { %291 = vmatmul.mubr.f32.vlgmr.msra.gmra.mrb[0].mxu0 %v25125_v18 }
  0x32   :  { %296 = vmatprep.mubr.f32.mxu0 %v31157_v0  ;;  %22276 = vmatpush1.bf16.msra.mxu0 %v22275_v3 }
  0x33   :  { %22278 = vmatprep.subr.bf16.mxu0 %v25137_v21 }
  0x34   :  { %1891 = vperm.xlu1 %24895, %v25168_v35  }
  0x35   :  { %298 = vmatmul.mubr.f32.gmra.mrb[2].mxu0 %v25152_v29 }
  0x36   :  { %303 = vmatprep.mubr.f32.mxu0 %v31157_v0 }
  0x38   :  { %24896 = vset.pattern.permute.xlu1 %v25039_v7 }
  0x39   :  { %305 = vmatmul.mubr.f32.gmra.mrb[4].mxu0 %v25160_v31  ;;  %1915 = vperm.xlu1 %24896, %v25168_v35  }
  0x3a   :  { %310 = vmatprep.mubr.f32.mxu0 %v31157_v0 }
  0x3d   :  { %312 = vmatmul.mubr.f32.gmra.mrb[6].mxu0 %v25191_v47 }
  0x3e   :  { %390 = vmatprep.mubr.f32.mxu0 %v31157_v0 }
  0x41   :  { %393 = vmatmul.mubr.f32.vlgmr.msra.gmra.mrb[0].mxu0 %v25150_v28 }
  0x42   :  { %398 = vmatprep.mubr.f32.mxu0 %v31157_v0  ;;  %22280 = vmatpush1.bf16.msra.mxu0 %v25145_v26 }
  0x43   :  { %22282 = vmatprep.subr.bf16.mxu0 %v22281_v4 }
  0x45   :  { %401 = vmatmul.mubr.f32.gmra.mrb[2].mxu0 %v25173_v37 }
  0x46   :  { %406 = vmatprep.mubr.f32.mxu0 %v31157_v0 }
  0x49   :  { %409 = vmatmul.mubr.f32.gmra.mrb[4].mxu0 %v25178_v40 }
  0x4a   :  { %414 = vmatprep.mubr.f32.mxu0 %v31157_v0 }
  0x4d   :  { %417 = vmatmul.mubr.f32.gmra.mrb[6].mxu0 %v195_v55 }
  0x4e   :  { %491 = vmatprep.mubr.f32.mxu0 %v31157_v0 }
  0x51   :  { %495 = vmatmul.mubr.f32.vlgmr.msra.gmra.mrb[0].mxu0 %v163_v36 }
  0x52   :  { %500 = vmatprep.mubr.f32.mxu0 %v31157_v0  ;;  %22284 = vmatpush1.bf16.msra.mxu0 %v22283_v5 }
  0x53   :  { %22286 = vmatprep.subr.bf16.mxu0 %v25137_v21 }
  0x55   :  { %504 = vmatmul.mubr.f32.gmra.mrb[2].mxu0 %v174_v45 }
  0x56   :  { %509 = vmatprep.mubr.f32.mxu0 %v31157_v0 }
  0x59   :  { %513 = vmatmul.mubr.f32.gmra.mrb[4].mxu0 %v185_v48 }
  0x5a   :  { %518 = vmatprep.mubr.f32.mxu0 %v31157_v0 }
  0x5d   :  { %522 = vmatmul.mubr.f32.gmra.mrb[6].mxu0 %v196_v61 }
  0x5e   :  { %604 = vmatprep.mubr.f32.mxu0 %v31157_v0 }
  0x61   :  { %606 = vmatmul.mubr.f32.vlgmr.msra.gmra.mrb[0].mxu0 %v25125_v18 }
  0x62   :  { %611 = vmatprep.mubr.f32.mxu0 %v31157_v0  ;;  %22288 = vmatpush1.bf16.msra.mxu0 %v25145_v26 }
  0x65   :  { %613 = vmatmul.mubr.f32.gmra.mrb[2].mxu0 %v25152_v29 }
  0x66   :  { %618 = vmatprep.mubr.f32.mxu0 %v31157_v0 }
  0x69   :  { %620 = vmatmul.mubr.f32.gmra.mrb[4].mxu0 %v25160_v31 }
  0x6a   :  { %625 = vmatprep.mubr.f32.mxu0 %v31157_v0 }
  0x6d   :  { %627 = vmatmul.mubr.f32.gmra.mrb[6].mxu0 %v25191_v47 }
  0x6e   :  { %701 = vmatprep.mubr.f32.mxu0 %v31157_v0 }
  0x71   :  { %703 = vmatmul.mubr.f32.vlgmr.msra.gmra.mrb[0].mxu0 %v25125_v18 }
  0x72   :  { %708 = vmatprep.mubr.f32.mxu0 %v31157_v0 }
  0x75   :  { %710 = vmatmul.mubr.f32.gmra.mrb[2].mxu0 %v25152_v29 }
  0x76   :  { %715 = vmatprep.mubr.f32.mxu0 %v31157_v0 }
  0x79   :  { %717 = vmatmul.mubr.f32.gmra.mrb[4].mxu0 %v25160_v31  ;;  %v25273_v31 = vsub.f32 %v740_v20, %v740_v20 }
  0x7a   :  { %722 = vmatprep.mubr.f32.mxu0 %v31157_v0 }
  0x7b   :  { %31414 = vst [vmem:[#allocation8_spill] sm:$0xff] %v25273_v31  ;;  %v25296_v46 = vand.u32 4294901760, %v25273_v31 }
  0x7d   :  { %724 = vmatmul.mubr.f32.gmra.mrb[6].mxu0 %v25191_v47  ;;  %31415 = vst [vmem:[#allocation9_spill] sm:$0xff] %v25296_v46  ;;  %v818_v62 = vsub.f32 %v25273_v31, %v25296_v46 }
  0x7e   :  { %2049 = vmatprep.mubr.f32.mxu0 %v31157_v0 }
  0x96   :  { %v55_v8 = vpop.permute.xlu0 %54 }
  0x97   :  { %v65_v21 = vpop.permute.xlu1 %64 }
  0x9a   :  { %v60_v13 = vpop.permute.xlu0 %59 }
  0x9b   :  { %v70_v37 = vpop.permute.xlu1 %69 }
 0x144   :  { %v704_v9 = vpop.f32.mrb[0].mxu0 }
 0x145   :  { %v23825_v10 = vadd.f32 %v704_v9, %v55_v8  ;;  %v706_v11 = vpop.f32.mrb[1].mxu0 }
 0x146   :  { %v23826_v12 = vadd.f32 %v706_v11, %v55_v8 }
 0x147   :  { %v25256_v14 = vmax.f32 %v23825_v10, 0.0 }
 0x148   :  { %v25258_v15 = vmax.f32 %v23826_v12, 0.0  ;;  %v711_v16 = vpop.f32.mrb[2].mxu0  ;;  %v25342_v12 = vand.u32 4294901760, %v818_v62 }
 0x149   :  { %v23827_v17 = vadd.f32 %v711_v16, %v60_v13  ;;  %v713_v18 = vpop.f32.mrb[3].mxu0  ;;  %v744_v24 = vand.u32 4294901760, %v25256_v14 }
 0x14a   :  { %v23828_v19 = vadd.f32 %v713_v18, %v60_v13  ;;  %v742_v22 = vand.u32 4294901760, %v25258_v15  ;;  %31416 = vst [vmem:[#allocation10_spill] sm:$0xff] %v25342_v12 }
 0x14b   :  { %v25263_v23 = vmax.f32 %v23827_v17, 0.0  ;;  %v25279_v34 = vsub.f32 %v25256_v14, %v744_v24 }
 0x14c   :  { %v25267_v25 = vmax.f32 %v23828_v19, 0.0  ;;  %v718_v26 = vpop.f32.mrb[4].mxu0  ;;  %v25270_v27 = vsub.f32 %v25258_v15, %v742_v22 }
 0x14d   :  { %v23829_v28 = vadd.f32 %v718_v26, %v65_v21  ;;  %v720_v29 = vpop.f32.mrb[5].mxu0  ;;  %v748_v30 = vand.u32 4294901760, %v25263_v23  ;;  %v834_v52 = vand.u32 4294901760, %v25279_v34 }
 0x14e   :  { %v23830_v32 = vadd.f32 %v720_v29, %v65_v21  ;;  %v746_v1 = vand.u32 4294901760, %v25267_v25  ;;  %v828_v41 = vand.u32 4294901760, %v25270_v27 }
 0x14f   :  { %v25276_v33 = vmax.f32 %v23829_v28, 0.0  ;;  %v25282_v35 = vsub.f32 %v25263_v23, %v748_v30  ;;  %v25292_v44 = vpack.c.bf16 %v748_v30, %v744_v24  ;;  %v835_v3 = vsub.f32 %v25279_v34, %v834_v52 }
 0x150   :  { %v25284_v36 = vmax.f32 %v23830_v32, 0.0  ;;  %v725_v38 = vpop.f32.mrb[6].mxu0  ;;  %v25286_v39 = vpack.c.bf16 %v746_v1, %v742_v22  ;;  %v25289_v40 = vsub.f32 %v25267_v25, %v746_v1  ;;  %v829_v56 = vsub.f32 %v25270_v27, %v828_v41 }
 0x151   :  { %v23831_v42 = vadd.f32 %v725_v38, %v70_v37  ;;  %v727_v43 = vpop.f32.mrb[7].mxu0  ;;  %v752_v45 = vand.u32 4294901760, %v25276_v33  ;;  %v846_v53 = vand.u32 4294901760, %v25282_v35  ;;  %v836_v17 = vand.u32 4294901760, %v835_v3 }
 0x152   :  { %v23832_v47 = vadd.f32 %v727_v43, %v70_v37  ;;  %22290 = vmatprep.subr.bf16.mxu1 %v25286_v39  ;;  %v750_v48 = vand.u32 4294901760, %v25284_v36  ;;  %v840_v49 = vand.u32 4294901760, %v25289_v40  ;;  %v830_v7 = vand.u32 4294901760, %v829_v56 }
 0x153   :  { %v25301_v50 = vmax.f32 %v23831_v42, 0.0  ;;  %22292 = vmatpush1.bf16.msra.mxu1 %v25292_v44  ;;  %v25305_v51 = vsub.f32 %v25276_v33, %v752_v45  ;;  %v847_v59 = vsub.f32 %v25282_v35, %v846_v53  ;;  %v22305_v32 = vpack.c.bf16 %v25289_v40, %v25270_v27 }
 0x154   :  { %v25309_v54 = vmax.f32 %v23832_v47, 0.0  ;;  %v25312_v55 = vsub.f32 %v25284_v36, %v750_v48  ;;  %v841_v57 = vsub.f32 %v25289_v40, %v840_v49  ;;  %v22307_v1 = vpack.c.bf16 %v25282_v35, %v25279_v34 }
 0x155   :  { %v756_v58 = vand.u32 4294901760, %v25301_v50  ;;  %v858_v4 = vand.u32 4294901760, %v25305_v51  ;;  %v848_v9 = vand.u32 4294901760, %v847_v59  ;;  %v31149_v37 = vmov 0.03125  }
 0x156   :  { %v754_v60 = vand.u32 4294901760, %v25309_v54  ;;  %v842_v61 = vand.u32 4294901760, %v841_v57  ;;  %v852_v63 = vand.u32 4294901760, %v25312_v55  ;;  %v22321_v43 = vpack.c.bf16 %v840_v49, %v828_v41 }
 0x157   :  { %v25329_v2 = vsub.f32 %v25301_v50, %v756_v58  ;;  %v25338_v8 = vpack.c.bf16 %v756_v58, %v752_v45  ;;  %v859_v18 = vsub.f32 %v25305_v51, %v858_v4  ;;  %v22299_v22 = vpack.c.bf16 %v848_v9, %v836_v17 }
 0x158   :  { %v25335_v5 = vpack.c.bf16 %v754_v60, %v750_v48  ;;  %v863_v6 = vsub.f32 %v25309_v54, %v754_v60  ;;  %v22297_v11 = vpack.c.bf16 %v842_v61, %v830_v7  ;;  %v853_v13 = vsub.f32 %v25312_v55, %v852_v63 }
 0x159   :  { %v870_v10 = vand.u32 4294901760, %v25329_v2  ;;  %v860_v28 = vand.u32 4294901760, %v859_v18  ;;  %v22311_v42 = vpack.c.bf16 %v25329_v2, %v25305_v51  ;;  %v1288_v45 = vmul.f32 %v25267_v25, %v25267_v25 }
 0x15a   :  { %22294 = vmatprep.subr.bf16.mxu1 %v25335_v5  ;;  %v864_v16 = vand.u32 4294901760, %v863_v6  ;;  %v854_v24 = vand.u32 4294901760, %v853_v13  ;;  %v22309_v38 = vpack.c.bf16 %v863_v6, %v25312_v55  ;;  %v1286_v47 = vmul.f32 %v25258_v15, %v25258_v15 }
 0x15b   :  { %22296 = vmatpush1.bf16.msra.mxu1 %v25338_v8  ;;  %v871_v19 = vsub.f32 %v25329_v2, %v870_v10  ;;  %v22323_v48 = vpack.c.bf16 %v846_v53, %v834_v52  ;;  %v1287_v27 = vmul.f32 %v25263_v23, %v25263_v23  ;;  %v1297_v41 = vand.u32 4294901760, %v1288_v45 }
 0x15c   :  { %22298 = vmatprep.subr.bf16.mxu1 %v22297_v11  ;;  %v865_v21 = vsub.f32 %v863_v6, %v864_v16  ;;  %v22325_v40 = vpack.c.bf16 %v864_v16, %v852_v63  ;;  %v1292_v49 = vmul.f32 %v25309_v54, %v25309_v54  ;;  %v1285_v55 = vmul.f32 %v25256_v14, %v25256_v14 }
 0x15d   :  { %v872_v20 = vand.u32 4294901760, %v871_v19  ;;  %v1293_v34 = vand.u32 4294901760, %v1286_v47  ;;  %v1290_v35 = vmul.f32 %v25284_v36, %v25284_v36  ;;  %v1291_v52 = vmul.f32 %v25301_v50, %v25301_v50 }
 0x15e   :  { %820 = vmatmul.mubr.f32.vlgmr.msra.gmra.mrb[0].mxu1 %v25342_v12  ;;  %v866_v26 = vand.u32 4294901760, %v865_v21  ;;  %v22327_v53 = vpack.c.bf16 %v870_v10, %v858_v4  ;;  %v1299_v56 = vand.u32 4294901760, %v1287_v27  ;;  %v25394_v57 = vsub.f32 %v1288_v45, %v1297_v41 }
 0x15f   :  { %22300 = vmatpush1.bf16.msra.mxu1 %v22299_v22  ;;  %930 = vmatprep.mubr.f32.mxu1 %v31157_v0  ;;  %v22303_v30 = vpack.c.bf16 %v872_v20, %v860_v28  ;;  %v1305_v58 = vand.u32 4294901760, %v1292_v49  ;;  %v1289_v59 = vmul.f32 %v25276_v33, %v25276_v33  ;;  %v1295_v60 = vand.u32 4294901760, %v1285_v55 }
 0x160   :  { %v22301_v29 = vpack.c.bf16 %v866_v26, %v854_v24  ;;  %v25399_v61 = vsub.f32 %v1286_v47, %v1293_v34  ;;  %v1301_v62 = vand.u32 4294901760, %v1290_v35  ;;  %v25401_v63 = vsub.f32 %v1287_v27, %v1299_v56 }
 0x161   :  { %v1307_v2 = vand.u32 4294901760, %v1291_v52  ;;  %v25405_v51 = vsub.f32 %v1292_v49, %v1305_v58  ;;  %v1391_v3 = vand.u32 4294901760, %v25394_v57  ;;  %v25410_v4 = vsub.f32 %v1285_v55, %v1295_v60 }
 0x162   :  { %22302 = vmatprep.subr.bf16.mxu1 %v22301_v29  ;;  %v25413_v6 = vsub.f32 %v1290_v35, %v1301_v62  ;;  %v1379_v7 = vand.u32 4294901760, %v25399_v61  ;;  %v1397_v10 = vand.u32 4294901760, %v25401_v63  ;;  %v25419_v11 = vpack.c.bf16 %v1297_v41, %v1293_v34 }
 0x163   :  { %22304 = vmatpush1.bf16.msra.mxu1 %v22303_v30  ;;  %v25416_v9 = vsub.f32 %v1291_v52, %v1307_v2  ;;  %v1415_v13 = vand.u32 4294901760, %v25405_v51  ;;  %v22339_v19 = vpack.c.bf16 %v1299_v56, %v1295_v60  ;;  %v22341_v20 = vpack.c.bf16 %v1305_v58, %v1301_v62 }
 0x164   :  { %22306 = vmatprep.subr.bf16.mxu1 %v22305_v32  ;;  %v1380_v17 = vsub.f32 %v25399_v61, %v1379_v7  ;;  %v1403_v18 = vand.u32 4294901760, %v25413_v6  ;;  %v1398_v21 = vsub.f32 %v25401_v63, %v1397_v10  ;;  %v22353_v34 = vpack.c.bf16 %v25394_v57, %v25399_v61 }
 0x165   :  { %v1421_v22 = vand.u32 4294901760, %v25416_v9  ;;  %v1416_v24 = vsub.f32 %v25405_v51, %v1415_v13  ;;  %v22355_v35 = vpack.c.bf16 %v25401_v63, %v25410_v4  ;;  %v22357_v52 = vpack.c.bf16 %v25405_v51, %v25413_v6  ;;  %v1945_v63 = vld [vmem:[#allocation2 + $0x10] sm:$0xff] }
 0x166   :  { %22225 = vmatmul.mubr.msk.f32.vlgmr.msra.gmra.mrb[0].mxu1 %vm738_vm2, %v31149_v37  ;;  %v1381_v29 = vand.u32 4294901760, %v1380_v17  ;;  %v1404_v30 = vsub.f32 %v25413_v6, %v1403_v18  ;;  %v22369_v56 = vpack.c.bf16 %v1391_v3, %v1379_v7  ;;  %v1966_v51 = vsel %vm738_vm2, %v1945_v63, 0 }
 0x167   :  { %22308 = vmatpush1.bf16.msra.mxu1 %v22307_v1  ;;  %1018 = vmatprep.mubr.f32.mxu1 %v31157_v0  ;;  %v1399_v1 = vand.u32 4294901760, %v1398_v21 }
 0x168   :  { %22310 = vmatprep.subr.bf16.mxu1 %v22309_v38  ;;  %v1422_v38 = vsub.f32 %v25416_v9, %v1421_v22 }
 0x16b   :  { %22312 = vmatpush1.bf16.msra.mxu1 %v22311_v42 }
 0x16c   :  { %22314 = vmatprep.subr.bf16.mxu1 %v25286_v39 }
 0x16e   :  { %1021 = vmatmul.mubr.f32.vlgmr.msra.gmra.mrb[0].mxu1 %v25273_v31 }
 0x16f   :  { %22316 = vmatpush1.bf16.msra.mxu1 %v25292_v44  ;;  %1099 = vmatprep.mubr.f32.mxu1 %v31157_v0 }
 0x170   :  { %22318 = vmatprep.subr.bf16.mxu1 %v25335_v5 }
 0x173   :  { %22320 = vmatpush1.bf16.msra.mxu1 %v25338_v8 }
 0x174   :  { %22322 = vmatprep.subr.bf16.mxu1 %v22321_v43  ;;  %v1417_v43 = vand.u32 4294901760, %v1416_v24 }
 0x176   :  { %1103 = vmatmul.mubr.f32.vlgmr.msra.gmra.mrb[0].mxu1 %v25296_v46 }
 0x177   :  { %22324 = vmatpush1.bf16.msra.mxu1 %v22323_v48  ;;  %1197 = vmatprep.mubr.f32.mxu1 %v31157_v0  ;;  %v1405_v48 = vand.u32 4294901760, %v1404_v30 }
 0x178   :  { %22326 = vmatprep.subr.bf16.mxu1 %v22325_v40  ;;  %v1423_v40 = vand.u32 4294901760, %v1422_v38  ;;  %v1880_v38 = vpop.permute.xlu0 %1879 }
 0x179   :  { %v22349_v41 = vpack.c.bf16 %v1417_v43, %v1405_v48 }
 0x17b   :  { %22328 = vmatpush1.bf16.msra.mxu1 %v22327_v53 }
 0x17c   :  { %22330 = vmatprep.subr.bf16.mxu1 %v25286_v39  ;;  %v1303_v39 = vand.u32 4294901760, %v1289_v59 }
 0x17e   :  { %22226 = vmatmul.mubr.msk.f32.vlgmr.msra.gmra.mrb[0].mxu1 %vm738_vm2, %v31149_v37  ;;  %v25426_v16 = vsub.f32 %v1289_v59, %v1303_v39  ;;  %v22343_v32 = vpack.c.bf16 %v1307_v2, %v1303_v39  ;;  %v22373_v59 = vpack.c.bf16 %v1415_v13, %v1403_v18  ;;  %v25470_v2 = vpop.permute.xlu1 %1883  ;;  %v1947_v39 = vld [vmem:[#allocation2 + $0xe0] sm:$0xff] }
 0x17f   :  { %22332 = vmatpush1.bf16.msra.mxu1 %v25292_v44  ;;  %1277 = vmatprep.mubr.f32.mxu1 %v31157_v0  ;;  %v1392_v44 = vsub.f32 %v25394_v57, %v1391_v3  ;;  %v25041_v57 = vmov 3   ;;  %v1946_v3 = vld [vmem:[#allocation2 + $0x78] sm:$0xff] }
 0x180   :  { %22334 = vmatprep.subr.bf16.mxu1 %v25335_v5  ;;  %v1385_v5 = vand.u32 4294901760, %v25410_v4  ;;  %v1409_v28 = vand.u32 4294901760, %v25426_v16  ;;  %v22359_v53 = vpack.c.bf16 %v25416_v9, %v25426_v16  ;;  %24898 = vset.pattern.permute.xlu1 %v25041_v57  ;;  %v25473_v9 = vand.u32 4294901760, %v1966_v51 }
 0x181   :  { %24897 = vset.pattern.permute.xlu0 %v25041_v57  ;;  %v1969_v13 = vsel %vm738_vm2, %v1946_v3, 0 }
 0x182   :  { %v1386_v26 = vsub.f32 %v25410_v4, %v1385_v5  ;;  %v1410_v47 = vsub.f32 %v25426_v16, %v1409_v28  ;;  %v22371_v58 = vpack.c.bf16 %v1397_v10, %v1385_v5  ;;  %v22375_v60 = vpack.c.bf16 %v1421_v22, %v1409_v28  ;;  %v25477_v18 = vpop.permute.xlu1 %1903  ;;  %v1948_v28 = vld [vmem:[#allocation2 + $0x148] sm:$0xff] }
 0x183   :  { %22336 = vmatpush1.bf16.msra.mxu1 %v25338_v8  ;;  %v1393_v8 = vand.u32 4294901760, %v1392_v44  ;;  %v31152_v10 = vlaneseq  ;;  %v1972_v5 = vsel %vm738_vm2, %v1947_v39, 0  ;;  %v25480_v21 = vsub.f32 %v1966_v51, %v25473_v9 }
 0x184   :  { %22338 = vmatprep.subr.bf16.mxu1 %v25419_v11  ;;  %v1387_v45 = vand.u32 4294901760, %v1386_v26  ;;  %v1411_v49 = vand.u32 4294901760, %v1410_v47  ;;  %v25482_v22 = vand.u32 4294901760, %v1969_v13  ;;  %v25487_v24 = vand.u32 4294901760, %v1972_v5 }
 0x185   :  { %v22345_v42 = vpack.c.bf16 %v1393_v8, %v1381_v29  ;;  %v31156_v29 = vand.u32 4294901760, %v25480_v21  ;;  %v1975_v43 = vsel %vm738_vm2, %v1948_v28, 0 }
 0x186   :  { %22227 = vmatmul.mubr.msk.f32.vlgmr.msra.gmra.mrb[0].mxu1 %vm738_vm2, %v31149_v37  ;;  %v22347_v27 = vpack.c.bf16 %v1399_v1, %v1387_v45  ;;  %v22351_v55 = vpack.c.bf16 %v1423_v40, %v1411_v49  ;;  %v25491_v30 = vsub.f32 %v1969_v13, %v25482_v22  ;;  %v1888_v1 = vpop.permute.xlu1 %1887  ;;  %v38_v40 = vld [vmem:[%s31143_s1] sm:$0x3]  ;;  %v25512_v49 = vand.u32 4294901760, %v1975_v43  ;;  %s25042_s1 = smov 1  }
 0x187   :  { %22340 = vmatpush1.bf16.msra.mxu1 %v22339_v19  ;;  %1365 = vmatprep.mubr.f32.mxu1 %v31157_v0  ;;  %v25504_v47 = vsub.f32 %v25480_v21, %v31156_v29 }
 0x188   :  { %22342 = vmatprep.subr.bf16.mxu1 %v22341_v20  ;;  %v31155_v48 = vand.u32 4294901760, %v25491_v30 }
 0x18b   :  { %22344 = vmatpush1.bf16.msra.mxu1 %v22343_v32 }
 0x18c   :  { %22346 = vmatprep.subr.bf16.mxu1 %v22345_v42  ;;  %v25497_v42 = vsub.f32 %v1972_v5, %v25487_v24 }
 0x18e   :  { %1371 = vmatmul.mubr.f32.vlgmr.msra.gmra.mrb[2].mxu1 %v25342_v12 }
 0x18f   :  { %22348 = vmatpush1.bf16.msra.mxu1 %v22347_v27  ;;  %1481 = vmatprep.mubr.f32.mxu1 %v31157_v0 }
 0x190   :  { %22350 = vmatprep.subr.bf16.mxu1 %v22349_v41  ;;  %v31154_v41 = vand.u32 4294901760, %v25497_v42 }
 0x193   :  { %22352 = vmatpush1.bf16.msra.mxu1 %v22351_v55 }
 0x194   :  { %22354 = vmatprep.subr.bf16.mxu1 %v22353_v34  ;;  %v1892_v34 = vpop.permute.xlu1 %1891 }
 0x196   :  { %22228 = vmatmul.mubr.msk.f32.vlgmr.msra.gmra.mrb[2].mxu1 %vm738_vm2, %v31149_v37 }
 0x197   :  { %22356 = vmatpush1.bf16.msra.mxu1 %v22355_v35  ;;  %1569 = vmatprep.mubr.f32.mxu1 %v31157_v0  ;;  %v1908_v35 = vpop.permute.xlu0 %1907 }
 0x198   :  { %22358 = vmatprep.subr.bf16.mxu1 %v22357_v52 }
 0x19b   :  { %22360 = vmatpush1.bf16.msra.mxu1 %v22359_v53 }
 0x19c   :  { %22362 = vmatprep.subr.bf16.mxu1 %v25419_v11 }
 0x19e   :  { %1572 = vmatmul.mubr.f32.vlgmr.msra.gmra.mrb[2].mxu1 %v25273_v31 }
 0x19f   :  { %22364 = vmatpush1.bf16.msra.mxu1 %v22339_v19  ;;  %1650 = vmatprep.mubr.f32.mxu1 %v31157_v0 }
 0x1a0   :  { %22366 = vmatprep.subr.bf16.mxu1 %v22341_v20 }
 0x1a3   :  { %22368 = vmatpush1.bf16.msra.mxu1 %v22343_v32 }
 0x1a4   :  { %22370 = vmatprep.subr.bf16.mxu1 %v22369_v56 }
 0x1a6   :  { %1654 = vmatmul.mubr.f32.vlgmr.msra.gmra.mrb[2].mxu1 %v25296_v46 }
 0x1a7   :  { %22372 = vmatpush1.bf16.msra.mxu1 %v22371_v58  ;;  %1748 = vmatprep.mubr.f32.mxu1 %v31157_v0  ;;  %v25526_v58 = vsub.f32 %v25491_v30, %v31155_v48 }
 0x1a8   :  { %22374 = vmatprep.subr.bf16.mxu1 %v22373_v59 }
 0x1ab   :  { %22376 = vmatpush1.bf16.msra.mxu1 %v22375_v60 }
 0x1ac   :  { %22378 = vmatprep.subr.bf16.mxu1 %v25419_v11 }
 0x1ae   :  { %22229 = vmatmul.mubr.msk.f32.vlgmr.msra.gmra.mrb[2].mxu1 %vm738_vm2, %v31149_v37 }
 0x1af   :  { %22380 = vmatpush1.bf16.msra.mxu1 %v22339_v19  ;;  %1828 = vmatprep.mubr.f32.mxu1 %v31157_v0 }
 0x1b0   :  { %22382 = vmatprep.subr.bf16.mxu1 %v22341_v20  ;;  %v25485_v20 = vshrl.u32 %v31152_v10, 7 }
 0x1b2   :  { %31417 = vst [vmem:[#allocation11_spill] sm:$0xff] %v25485_v20  ;;  %v31151_v45 = vsub.s32 1, %v25485_v20 }
 0x1b3   :  { %22384 = vmatpush1.bf16.msra.mxu1 %v22343_v32  ;;  %v25494_v32 = vsub.s32 0, %v25485_v20 }
 0x1b4   :  { %v25517_v52 = vrot.slane %v38_v40, %v31151_v45 }
 0x1b5   :  { %31418 = vst [vmem:[#allocation12_spill] sm:$0xff] %v25494_v32  ;;  %v25520_v53 = vrot.slane %v38_v40, %v25494_v32 }
 0x1b6   :  { %22230 = vmatmul.mubr.msk.f32.vlgmr.msra.gmra.mrb[2].mxu1 %vm738_vm2, %v31149_v37  ;;  %31419 = vst [vmem:[#allocation13_spill] sm:$0xff] %v25517_v52 }
 0x1b7   :  { %4227 = vmatprep.mubr.f32.mxu1 %v31157_v0  ;;  %31420 = vst [vmem:[#allocation14_spill] sm:$0xff] %v25520_v53 }
 0x259   :  { %v1280_v61 = vpop.f32.mrb[0].mxu1 }
 0x25a   :  { %v1282_v62 = vpop.f32.mrb[1].mxu1  ;;  %v1836_v4 = vmul.f32 %v1280_v61, %v1280_v61  ;;  %v1845_v27 = vrot.slane %v1280_v61, %v25494_v32  ;;  %v25533_v61 = vsub.f32 %v25497_v42, %v31154_v41 }
 0x25b   :  { %v1837_v6 = vmul.f32 %v1282_v62, %v1282_v62  ;;  %v1849_v55 = vrot.slane %v1282_v62, %v25494_v32  ;;  %v25536_v62 = vsub.f32 %v1975_v43, %v25512_v49 }
 0x25c   :  { %v1852_v60 = vsub.f32 %v25263_v23, %v1845_v27  ;;  %v1854_v57 = vsub.f32 %v25276_v33, %v1845_v27  ;;  %v1856_v39 = vsub.f32 %v25301_v50, %v1845_v27 }
 0x25d   :  { %v1853_v3 = vsub.f32 %v25267_v25, %v1849_v55  ;;  %v1855_v33 = vsub.f32 %v25284_v36, %v1849_v55 }
 0x289   :  { %v1831_v7 = vpop.f32.mrb[2].mxu1 }
 0x28a   :  { %v1838_v11 = vsub.f32 %v1831_v7, %v1836_v4  ;;  %v1833_v44 = vpop.f32.mrb[3].mxu1  ;;  %v1850_v4 = vsub.f32 %v25256_v14, %v1845_v27  ;;  %v1857_v7 = vsub.f32 %v25309_v54, %v1849_v55  ;;  %v1912_v14 = vpop.permute.xlu0 %1911 }
 0x28b   :  { %v1839_v16 = vsub.f32 %v1833_v44, %v1837_v6  ;;  %v1851_v6 = vsub.f32 %v25258_v15, %v1849_v55 }
 0x28c   :  { %v1840_v17 = vmax.f32 %v1838_v11, 0.0 }
 0x28d   :  { %v1841_v19 = vmax.f32 %v1839_v16, 0.0 }
 0x28e   :  { %v1858_v8 = vadd.f32 1e-05, %v1840_v17 }
 0x28f   :  { %v1859_v26 = vadd.f32 1e-05, %v1841_v19 }
 0x290   :  { %24929 = vrsqrt.f32 %v1858_v8  ;;  %v1916_v8 = vpop.permute.xlu1 %1915 }
 0x291   :  { %24931 = vrsqrt.f32 %v1859_v26 }
 0x29a   :  { %v24930_v59 = vpop.eup %24929 }
 0x29b   :  { %v24932_v63 = vpop.eup %24931  ;;  %v1865_v51 = vrot.slane %v24930_v59, %v25494_v32 }
 0x29c   :  { %v1869_v23 = vrot.slane %v24932_v63, %v25494_v32 }
 0x29d   :  { %v1872_v11 = vmul.f32 %v1865_v51, %v1852_v60  ;;  %v1874_v44 = vmul.f32 %v1865_v51, %v1854_v57  ;;  %v1870_v13 = vmul.f32 %v1865_v51, %v1850_v4  ;;  %v1876_v16 = vmul.f32 %v1865_v51, %v1856_v39 }
 0x29e   :  { %v1873_v5 = vmul.f32 %v1869_v23, %v1853_v3  ;;  %v1875_v17 = vmul.f32 %v1869_v23, %v1855_v33  ;;  %v1871_v19 = vmul.f32 %v1869_v23, %v1851_v6  ;;  %v1877_v25 = vmul.f32 %v1869_v23, %v1857_v7 }
 0x29f   :  { %v1896_v50 = vmul.f32 %v25470_v2, %v1872_v11  ;;  %v1898_v26 = vmul.f32 %v1888_v1, %v1874_v44  ;;  %v1894_v28 = vmul.f32 %v1880_v38, %v1870_v13  ;;  %v1900_v43 = vmul.f32 %v1892_v34, %v1876_v16 }
 0x2a0   :  { %v1897_v36 = vmul.f32 %v25470_v2, %v1873_v5  ;;  %v1899_v15 = vmul.f32 %v1888_v1, %v1875_v17  ;;  %v1895_v27 = vmul.f32 %v1880_v38, %v1871_v19  ;;  %v1901_v54 = vmul.f32 %v1892_v34, %v1877_v25 }
 0x2a1   :  { %v1918_v40 = vadd.f32 %v25477_v18, %v1894_v28  ;;  %v1920_v55 = vadd.f32 %v1908_v35, %v1896_v50  ;;  %v1924_v59 = vadd.f32 %v1916_v8, %v1900_v43  ;;  %v1922_v60 = vadd.f32 %v1912_v14, %v1898_v26 }
 0x2a2   :  { %v1919_v57 = vadd.f32 %v25477_v18, %v1895_v27  ;;  %v1921_v63 = vadd.f32 %v1908_v35, %v1897_v36  ;;  %v1925_v51 = vadd.f32 %v1916_v8, %v1901_v54  ;;  %v1923_v3 = vadd.f32 %v1912_v14, %v1899_v15 }
 0x2a3   :  { %v25551_v4 = vmul.f32 %v25520_v53, %v1920_v55  ;;  %v25554_v39 = vmul.f32 %v25520_v53, %v1924_v59  ;;  %v25557_v2 = vmul.f32 %v25520_v53, %v1922_v60  ;;  %v25560_v1 = vmul.f32 %v25520_v53, %v1918_v40 }
 0x2a4   :  { %v25563_v38 = vmul.f32 %v25517_v52, %v1919_v57  ;;  %v25566_v18 = vmul.f32 %v25517_v52, %v1921_v63  ;;  %v25569_v34 = vmul.f32 %v25517_v52, %v1925_v51  ;;  %v25572_v35 = vmul.f32 %v25517_v52, %v1923_v3 }
 0x2a5   :  { %2673 = vrot.lane.b32.xlu1 %v25551_v4, %s25042_s1  ;;  %2671 = vrot.lane.b32.xlu0 %v25560_v1, %s25042_s1  ;;  %v1979_v23 = vand.u32 4294901760, %v25560_v1  ;;  %v1983_v33 = vand.u32 4294901760, %v25551_v4  ;;  %v1987_v6 = vand.u32 4294901760, %v25557_v2  ;;  %v1991_v7 = vand.u32 4294901760, %v25554_v39 }
 0x2a6   :  { %v1977_v11 = vand.u32 4294901760, %v25563_v38  ;;  %v1981_v44 = vand.u32 4294901760, %v25566_v18  ;;  %v1985_v13 = vand.u32 4294901760, %v25572_v35  ;;  %v1989_v16 = vand.u32 4294901760, %v25569_v34 }
 0x2a7   :  { %v25586_v5 = vpack.c.bf16 %v1983_v33, %v1979_v23  ;;  %v25589_v17 = vsub.f32 %v25560_v1, %v1979_v23  ;;  %v25592_v19 = vsub.f32 %v25551_v4, %v1983_v33  ;;  %v25594_v25 = vpack.c.bf16 %v1991_v7, %v1987_v6 }
 0x2a8   :  { %v25596_v8 = vpack.c.bf16 %v1981_v44, %v1977_v11  ;;  %v25599_v14 = vsub.f32 %v25563_v38, %v1977_v11  ;;  %v25602_v50 = vsub.f32 %v25566_v18, %v1981_v44  ;;  %v25604_v26 = vpack.c.bf16 %v1989_v16, %v1985_v13 }
 0x2a9   :  { %2677 = vrot.lane.b32.xlu1 %v25554_v39, %s25042_s1  ;;  %2675 = vrot.lane.b32.xlu0 %v25557_v2, %s25042_s1  ;;  %v25611_v28 = vsub.f32 %v25572_v35, %v1985_v13  ;;  %v25614_v43 = vsub.f32 %v25569_v34, %v1989_v16  ;;  %v25617_v36 = vsub.f32 %v25557_v2, %v1987_v6  ;;  %v2102_v15 = vand.u32 4294901760, %v25589_v17 }
 0x2aa   :  { %22386 = vmatprep.subr.bf16.mxu0 %v25596_v8  ;;  %v25622_v27 = vsub.f32 %v25554_v39, %v1991_v7  ;;  %v2096_v54 = vand.u32 4294901760, %v25599_v14  ;;  %v2108_v40 = vand.u32 4294901760, %v25602_v50  ;;  %v2114_v55 = vand.u32 4294901760, %v25592_v19 }
 0x2ab   :  { %22388 = vmatpush1.bf16.msra.mxu0 %v25586_v5  ;;  %v2103_v59 = vsub.f32 %v25589_v17, %v2102_v15  ;;  %v2120_v60 = vand.u32 4294901760, %v25611_v28  ;;  %v2132_v57 = vand.u32 4294901760, %v25614_v43  ;;  %v2126_v63 = vand.u32 4294901760, %v25617_v36 }
 0x2ac   :  { %22390 = vmatprep.subr.bf16.mxu0 %v25604_v26  ;;  %v2097_v51 = vsub.f32 %v25599_v14, %v2096_v54  ;;  %v2109_v3 = vsub.f32 %v25602_v50, %v2108_v40  ;;  %v2115_v23 = vsub.f32 %v25592_v19, %v2114_v55  ;;  %v2138_v33 = vand.u32 4294901760, %v25622_v27 }
 0x2ad   :  { %2681 = vrot.lane.b32.xlu1 %v25566_v18, %s25042_s1  ;;  %2679 = vrot.lane.b32.xlu0 %v25563_v38, %s25042_s1  ;;  %v2104_v6 = vand.u32 4294901760, %v2103_v59  ;;  %v2121_v7 = vsub.f32 %v25611_v28, %v2120_v60  ;;  %v2133_v11 = vsub.f32 %v25614_v43, %v2132_v57  ;;  %v2127_v44 = vsub.f32 %v25617_v36, %v2126_v63 }
 0x2ae   :  { %v2098_v13 = vand.u32 4294901760, %v2097_v51  ;;  %v2110_v16 = vand.u32 4294901760, %v2109_v3  ;;  %v2116_v37 = vand.u32 4294901760, %v2115_v23  ;;  %v2139_v45 = vsub.f32 %v25622_v27, %v2138_v33 }
 0x2af   :  { %22392 = vmatpush1.bf16.msra.mxu0 %v25594_v25  ;;  %v2122_v10 = vand.u32 4294901760, %v2121_v7  ;;  %v2134_v41 = vand.u32 4294901760, %v2133_v11  ;;  %v2128_v48 = vand.u32 4294901760, %v2127_v44  ;;  %v22401_v29 = vpack.c.bf16 %v25602_v50, %v25599_v14 }
 0x2b0   :  { %v22393_v59 = vpack.c.bf16 %v2110_v16, %v2098_v13  ;;  %v22395_v0 = vpack.c.bf16 %v2116_v37, %v2104_v6  ;;  %v2140_v56 = vand.u32 4294901760, %v2139_v45  ;;  %v22403_v46 = vpack.c.bf16 %v25592_v19, %v25589_v17 }
 0x2b1   :  { %2685 = vrot.lane.b32.xlu1 %v25569_v34, %s25042_s1  ;;  %2683 = vrot.lane.b32.xlu0 %v25572_v35, %s25042_s1  ;;  %v22397_v51 = vpack.c.bf16 %v2134_v41, %v2122_v10  ;;  %v2065_v3 = vand.u32 4294901760, %v25526_v58  ;;  %v22405_v23 = vpack.c.bf16 %v25614_v43, %v25611_v28  ;;  %v22407_v14 = vpack.c.bf16 %v25622_v27, %v25617_v36  ;;  %v2670_v36 = vld [vmem:[#allocation2 + $0x140] sm:$0xff] }
 0x2b2   :  { %v31421_v37 = vand.u32 4294901760, %v25504_v47  ;;  %22394 = vmatprep.subr.bf16.mxu0 %v22393_v59  ;;  %v22399_v45 = vpack.c.bf16 %v2140_v56, %v2128_v48  ;;  %v2085_v17 = vand.u32 4294901760, %v25536_v62  ;;  %v22417_v19 = vpack.c.bf16 %v2108_v40, %v2096_v54  ;;  %v24970_v56 = vld [vmem:[%s31146_s4] sm:$0xff] }
 0x2b3   :  { %v25662_v50 = vpack.c.bf16 %v2114_v55, %v2102_v15  ;;  %v31422_v10 = vmov 0.0   ;;  %v25665_v41 = vpack.c.bf16 %v2132_v57, %v2120_v60  ;;  %v25667_v58 = vpack.c.bf16 %v2138_v33, %v2126_v63 }
 0x2b4   :  { %2055 = vmatmul.mubr.f32.vlgmr.msra.gmra.mrb[8].mxu0 %v31421_v37  ;;  %v2076_v47 = vand.u32 4294901760, %v25533_v61  ;;  %v24972_v61 = vld [vmem:[%s31146_s4 + $0x18] sm:$0xff]  ;;  %v2708_v60 = vsel %vm738_vm2, %v2670_v36, 0 }
 0x2b5   :  { %22396 = vmatpush1.bf16.msra.mxu0 %v22395_v0  ;;  %2060 = vmatprep.mubr.f32.mxu0 %v31422_v10  ;;  %v2086_v0 = vsub.f32 %v25536_v62, %v2085_v17 }
 0x2b6   :  { %22398 = vmatprep.subr.bf16.mxu0 %v22397_v51  ;;  %3414 = vrot.lane.b32.xlu1 %v25551_v4, %s25043_s27  ;;  %v25044_v4 = vmov 6  }
 0x2b7   :  { %3412 = vrot.lane.b32.xlu0 %v25560_v1, %s25043_s27  ;;  %v2087_v48 = vand.u32 4294901760, %v2086_v0  ;;  %v31424_v1 = vand.u32 4294901760, %v25491_v30 }
 0x2b8   :  { %2066 = vmatmul.mubr.f32.gmra.mrb[10].mxu0 %v2065_v3  ;;  %v25803_v3 = vand.u32 4294901760, %v2708_v60 }
 0x2b9   :  { %22400 = vmatpush1.bf16.msra.mxu0 %v22399_v45  ;;  %2071 = vmatprep.mubr.f32.mxu0 %v31422_v10 }
 0x2ba   :  { %22402 = vmatprep.subr.bf16.mxu0 %v22401_v29  ;;  %3418 = vrot.lane.b32.xlu1 %v25554_v39, %s25043_s27  ;;  %v24969_v29 = vld [vmem:[%s31146_s4 + $0x8] sm:$0xff]  ;;  %v25045_v39 = vmov 7  }
 0x2bb   :  { %3416 = vrot.lane.b32.xlu0 %v25557_v2, %s25043_s27  ;;  %v31423_v2 = vand.u32 4294901760, %v25480_v21 }
 0x2bc   :  { %2077 = vmatmul.mubr.f32.gmra.mrb[12].mxu0 %v2076_v47 }
 0x2bd   :  { %2082 = vmatprep.mubr.f32.mxu0 %v31422_v10 }
 0x2be   :  { %3422 = vrot.lane.b32.xlu1 %v25566_v18, %s25043_s27 }
 0x2bf   :  { %3420 = vrot.lane.b32.xlu0 %v25563_v38, %s25043_s27  ;;  %v31425_v38 = vand.u32 4294901760, %v25497_v42 }
 0x2c0   :  { %2088 = vmatmul.mubr.f32.gmra.mrb[14].mxu0 %v2087_v48 }
 0x2c1   :  { %2198 = vmatprep.mubr.f32.mxu0 %v31422_v10 }
 0x2c2   :  { %3426 = vrot.lane.b32.xlu1 %v25569_v34, %s25043_s27 }
 0x2c3   :  { %3424 = vrot.lane.b32.xlu0 %v25572_v35, %s25043_s27  ;;  %v2669_v35 = vld [vmem:[#allocation2 + $0xd8] sm:$0xff] }
 0x2c4   :  { %2200 = vmatmul.mubr.f32.vlgmr.msra.gmra.mrb[8].mxu0 %v25473_v9  ;;  %v2705_v43 = vsel %vm738_vm2, %v2669_v35, 0 }
 0x2c5   :  { %22404 = vmatpush1.bf16.msra.mxu0 %v22403_v46  ;;  %2205 = vmatprep.mubr.f32.mxu0 %v31422_v10  ;;  %v24971_v46 = vld [vmem:[%s31146_s4 + $0x10] sm:$0xff]  ;;  %v25783_v54 = vand.u32 4294901760, %v2705_v43 }
 0x2c6   :  { %22406 = vmatprep.subr.bf16.mxu0 %v22405_v23  ;;  %1954 = vperm.xlu1 %24898, %v24969_v29  }
 0x2c7   :  { %1950 = vperm.xlu0 %24897, %v24970_v56   ;;  %v25801_v51 = vsub.f32 %v2705_v43, %v25783_v54 }
 0x2c8   :  { %2207 = vmatmul.mubr.f32.gmra.mrb[10].mxu0 %v25482_v22 }
 0x2c9   :  { %22408 = vmatpush1.bf16.msra.mxu0 %v22407_v14  ;;  %2212 = vmatprep.mubr.f32.mxu0 %v31422_v10 }
 0x2ca   :  { %22410 = vmatprep.subr.bf16.mxu0 %v25596_v8  ;;  %1958 = vperm.xlu1 %24898, %v24971_v46  }
 0x2cb   :  { %1962 = vperm.xlu0 %24897, %v24972_v61  }
 0x2cc   :  { %2214 = vmatmul.mubr.f32.gmra.mrb[12].mxu0 %v25487_v24 }
 0x2cd   :  { %2219 = vmatprep.mubr.f32.mxu0 %v31422_v10 }
 0x2ce   :  { %24899 = vset.pattern.permute.xlu1 %v25044_v4 }
 0x2cf   :  { %24900 = vset.pattern.permute.xlu0 %v25044_v4  ;;  %7568 = vperm.xlu1 %24899, %v24970_v56  }
 0x2d0   :  { %2221 = vmatmul.mubr.f32.gmra.mrb[14].mxu0 %v25512_v49  ;;  %7572 = vperm.xlu0 %24900, %v24969_v29  }
 0x2d1   :  { %2307 = vmatprep.mubr.f32.mxu0 %v31422_v10 }
 0x2d3   :  { %24901 = vset.pattern.permute.xlu1 %v25045_v39 }
 0x2d4   :  { %2310 = vmatmul.mubr.f32.vlgmr.msra.gmra.mrb[8].mxu0 %v25480_v21  ;;  %7616 = vperm.xlu1 %24901, %v24970_v56   ;;  %v2667_v21 = vld [vmem:[#allocation2 + $0x8] sm:$0xff] }
 0x2d5   :  { %22412 = vmatpush1.bf16.msra.mxu0 %v25586_v5  ;;  %2315 = vmatprep.mubr.f32.mxu0 %v31422_v10 }
 0x2d6   :  { %22414 = vmatprep.subr.bf16.mxu0 %v25604_v26  ;;  %7576 = vperm.xlu0 %24900, %v24971_v46  }
 0x2d8   :  { %2318 = vmatmul.mubr.f32.gmra.mrb[10].mxu0 %v25491_v30  ;;  %7620 = vperm.xlu1 %24901, %v24969_v29   ;;  %v2699_v30 = vsel %vm738_vm2, %v2667_v21, 0 }
 0x2d9   :  { %22416 = vmatpush1.bf16.msra.mxu0 %v25594_v25  ;;  %2323 = vmatprep.mubr.f32.mxu0 %v31422_v10 }
 0x2da   :  { %22418 = vmatprep.subr.bf16.mxu0 %v22417_v19  ;;  %24903 = vset.pattern.permute.xlu0 %v25045_v39 }
 0x2db   :  { %7624 = vperm.xlu0 %24903, %v24971_v46  }
 0x2dc   :  { %2326 = vmatmul.mubr.f32.gmra.mrb[12].mxu0 %v25497_v42  ;;  %24902 = vset.pattern.permute.xlu1 %v25044_v4  ;;  %v2668_v42 = vld [vmem:[#allocation2 + $0x70] sm:$0xff] }
 0x2dd   :  { %2331 = vmatprep.mubr.f32.mxu0 %v31422_v10  ;;  %7580 = vperm.xlu1 %24902, %v24972_v61  }
 0x2e0   :  { %2334 = vmatmul.mubr.f32.gmra.mrb[14].mxu0 %v25536_v62  ;;  %v25760_v62 = vand.u32 4294901760, %v2699_v30 }
 0x2e1   :  { %2412 = vmatprep.mubr.f32.mxu0 %v31422_v10  ;;  %24904 = vset.pattern.permute.xlu1 %v25045_v39 }
 0x2e2   :  { %7628 = vperm.xlu1 %24904, %v24972_v61  }
 0x2e4   :  { %2416 = vmatmul.mubr.f32.vlgmr.msra.gmra.mrb[8].mxu0 %v31423_v2 }
 0x2e5   :  { %22420 = vmatpush1.bf16.msra.mxu0 %v25662_v50  ;;  %2421 = vmatprep.mubr.f32.mxu0 %v31422_v10 }
 0x2e6   :  { %22422 = vmatprep.subr.bf16.mxu0 %v25665_v41 }
 0x2e8   :  { %2425 = vmatmul.mubr.f32.gmra.mrb[10].mxu0 %v31424_v1 }
 0x2e9   :  { %22424 = vmatpush1.bf16.msra.mxu0 %v25667_v58  ;;  %2430 = vmatprep.mubr.f32.mxu0 %v31422_v10 }
 0x2ea   :  { %22426 = vmatprep.subr.bf16.mxu0 %v25596_v8 }
 0x2ec   :  { %2434 = vmatmul.mubr.f32.gmra.mrb[12].mxu0 %v31425_v38 }
 0x2ed   :  { %2439 = vmatprep.mubr.f32.mxu0 %v31422_v10 }
 0x2f0   :  { %2443 = vmatmul.mubr.f32.gmra.mrb[14].mxu0 %v2085_v17 }
 0x2f1   :  { %2537 = vmatprep.mubr.f32.mxu0 %v31422_v10 }
 0x2f4   :  { %2539 = vmatmul.mubr.f32.vlgmr.msra.gmra.mrb[8].mxu0 %v25473_v9 }
 0x2f5   :  { %22428 = vmatpush1.bf16.msra.mxu0 %v25586_v5  ;;  %2544 = vmatprep.mubr.f32.mxu0 %v31422_v10  ;;  %v31426_v5 = vlaneseq }
 0x2f6   :  { %22430 = vmatprep.subr.bf16.mxu0 %v25604_v26 }
 0x2f8   :  { %2546 = vmatmul.mubr.f32.gmra.mrb[10].mxu0 %v25482_v22 }
 0x2f9   :  { %22432 = vmatpush1.bf16.msra.mxu0 %v25594_v25  ;;  %2551 = vmatprep.mubr.f32.mxu0 %v31422_v10  ;;  %v25769_v25 = vand.u32 127, %v31426_v5 }
 0x2fb   :  { %31427 = vst [vmem:[#allocation15_spill] sm:$0xff] %v25769_v25  ;;  %vm2689_vm3 = vcmp.lt.s32.totalorder %v25769_v25, 1  ;;  %vm3428_vm4 = vcmp.lt.s32.totalorder %v25769_v25, 127 }
 0x2fc   :  { %2553 = vmatmul.mubr.f32.gmra.mrb[12].mxu0 %v25487_v24 }
 0x2fd   :  { %2558 = vmatprep.mubr.f32.mxu0 %v31422_v10 }
 0x300   :  { %2560 = vmatmul.mubr.f32.gmra.mrb[14].mxu0 %v25512_v49 }
 0x301   :  { %2638 = vmatprep.mubr.f32.mxu0 %v31422_v10 }
 0x304   :  { %2640 = vmatmul.mubr.f32.vlgmr.msra.gmra.mrb[8].mxu0 %v25473_v9  ;;  %v2702_v9 = vsel %vm738_vm2, %v2668_v42, 0 }
 0x305   :  { %2645 = vmatprep.mubr.f32.mxu0 %v31422_v10  ;;  %v25766_v18 = vand.u32 4294901760, %v2702_v9 }
 0x307   :  { %v25773_v8 = vsub.f32 %v2702_v9, %v25766_v18 }
 0x308   :  { %2647 = vmatmul.mubr.f32.gmra.mrb[10].mxu0 %v25482_v22  ;;  %v25764_v22 = vsub.f32 %v2699_v30, %v25760_v62 }
 0x309   :  { %2652 = vmatprep.mubr.f32.mxu0 %v31422_v10  ;;  %v31163_v27 = vand.u32 4294901760, %v25773_v8 }
 0x30a   :  { %v31438_v12 = vand.u32 4294901760, %v25764_v22 }
 0x30b   :  { %v25798_v59 = vsub.f32 %v25773_v8, %v31163_v27 }
 0x30c   :  { %2654 = vmatmul.mubr.f32.gmra.mrb[12].mxu0 %v25487_v24 }
 0x30d   :  { %2659 = vmatprep.mubr.f32.mxu0 %v31422_v10 }
 0x310   :  { %2661 = vmatmul.mubr.f32.gmra.mrb[14].mxu0 %v25512_v49  ;;  %v31168_v49 = vand.u32 4294901760, %v25764_v22 }
 0x311   :  { %2782 = vmatprep.mubr.f32.mxu0 %v31422_v10 }
 0x312   :  { %v25780_v15 = vsub.f32 %v25764_v22, %v31168_v49 }
 0x314   :  { %v2787_v16 = vand.u32 4294901760, %v25780_v15 }
 0x317   :  { %v2674_v24 = vpop.permute.xlu1 %2673  ;;  %v2672_v34 = vpop.permute.xlu0 %2671 }
 0x31b   :  { %v2678_v26 = vpop.permute.xlu1 %2677  ;;  %v2676_v28 = vpop.permute.xlu0 %2675 }
 0x31f   :  { %v2682_v40 = vpop.permute.xlu1 %2681  ;;  %v2680_v55 = vpop.permute.xlu0 %2679 }
 0x320   :  { %v2691_v57 = vsel %vm2689_vm3, %v2674_v24, %v2682_v40  ;;  %v2695_v63 = vsel %vm2689_vm3, %v2682_v40, %v2674_v24  ;;  %v2690_v33 = vsel %vm2689_vm3, %v2672_v34, %v2680_v55  ;;  %v2694_v6 = vsel %vm2689_vm3, %v2680_v55, %v2672_v34 }
 0x321   :  { %v2714_v7 = vand.u32 4294901760, %v2691_v57  ;;  %v2716_v11 = vand.u32 4294901760, %v2695_v63  ;;  %v2710_v44 = vand.u32 4294901760, %v2690_v33  ;;  %v2712_v13 = vand.u32 4294901760, %v2694_v6 }
 0x323   :  { %v25805_v23 = vsub.f32 %v2691_v57, %v2714_v7  ;;  %v25807_v14 = vsub.f32 %v2695_v63, %v2716_v11  ;;  %v25809_v37 = vpack.c.bf16 %v2716_v11, %v2712_v13  ;;  %v25811_v45 = vsub.f32 %v2690_v33, %v2710_v44  ;;  %v2686_v17 = vpop.permute.xlu1 %2685  ;;  %v2684_v19 = vpop.permute.xlu0 %2683 }
 0x324   :  { %v25813_v50 = vsub.f32 %v2694_v6, %v2712_v13  ;;  %v2693_v41 = vsel %vm2689_vm3, %v2678_v26, %v2686_v17  ;;  %v2697_v58 = vsel %vm2689_vm3, %v2686_v17, %v2678_v26  ;;  %v2692_v47 = vsel %vm2689_vm3, %v2676_v28, %v2684_v19 }
 0x325   :  { %v31169_v0 = vand.u32 4294901760, %v25807_v14  ;;  %v2722_v48 = vand.u32 4294901760, %v2693_v41  ;;  %v2724_v29 = vand.u32 4294901760, %v2697_v58  ;;  %v2696_v56 = vsel %vm2689_vm3, %v2684_v19, %v2676_v28 }
 0x326   :  { %v31170_v46 = vand.u32 4294901760, %v25813_v50  ;;  %v2718_v61 = vand.u32 4294901760, %v2692_v47  ;;  %v2720_v4 = vand.u32 4294901760, %v2696_v56  ;;  %v25825_v39 = vpack.c.bf16 %v2714_v7, %v2710_v44 }
 0x327   :  { %v2848_v2 = vsub.f32 %v25807_v14, %v31169_v0  ;;  %v25830_v1 = vsub.f32 %v2693_v41, %v2722_v48  ;;  %v25832_v38 = vsub.f32 %v2697_v58, %v2724_v29  ;;  %v2829_v21 = vand.u32 4294901760, %v25811_v45 }
 0x328   :  { %v2836_v30 = vsub.f32 %v25813_v50, %v31170_v46  ;;  %v25838_v42 = vpack.c.bf16 %v2724_v29, %v2720_v4  ;;  %v25840_v9 = vsub.f32 %v2692_v47, %v2718_v61  ;;  %v25842_v24 = vsub.f32 %v2696_v56, %v2720_v4  ;;  %22434 = vmatprep.subr.bf16.mxu0 %v25825_v39  ;;  %v25877_v19 = vpop.permute.xlu1 %3414 }
 0x329   :  { %v31164_v34 = vand.u32 4294901760, %v25832_v38  ;;  %22436 = vmatpush1.bf16.msra.mxu0 %v25809_v37  ;;  %v25847_v35 = vpack.c.bf16 %v2722_v48, %v2718_v61  ;;  %v2830_v26 = vsub.f32 %v25811_v45, %v2829_v21  ;;  %v2841_v28 = vand.u32 4294901760, %v25805_v23  ;;  %v25879_v29 = vpop.permute.xlu0 %3412 }
 0x32a   :  { %v31165_v43 = vand.u32 4294901760, %v25842_v24  ;;  %v2837_v36 = vand.u32 4294901760, %v2836_v30  ;;  %v2849_v15 = vand.u32 4294901760, %v2848_v2  ;;  %v31167_v40 = vand.u32 4294901760, %v25840_v9 }
 0x32b   :  { %v2872_v55 = vsub.f32 %v25832_v38, %v31164_v34  ;;  %22438 = vmatprep.subr.bf16.mxu0 %v25847_v35  ;;  %v2831_v57 = vand.u32 4294901760, %v2830_v26  ;;  %v2842_v63 = vsub.f32 %v25805_v23, %v2841_v28  ;;  %v31166_v33 = vand.u32 4294901760, %v25830_v1 }
 0x32c   :  { %v2860_v6 = vsub.f32 %v25842_v24, %v31165_v43  ;;  %v2854_v7 = vsub.f32 %v25840_v9, %v31167_v40  ;;  %v31162_v11 = vand.u32 4294901760, %v25801_v51  ;;  %v25871_v44 = vsub.f32 %v2708_v60, %v25803_v3 }
 0x32d   :  { %22440 = vmatpush1.bf16.msra.mxu0 %v25838_v42  ;;  %v2843_v13 = vand.u32 4294901760, %v2842_v63  ;;  %v2866_v17 = vsub.f32 %v25830_v1, %v31166_v33  ;;  %v22443_v41 = vpack.c.bf16 %v2849_v15, %v2837_v36  ;;  %v2873_v48 = vand.u32 4294901760, %v2872_v55  ;;  %v25887_v36 = vpop.permute.xlu1 %3418 }
 0x32e   :  { %v2855_v58 = vand.u32 4294901760, %v2854_v7  ;;  %v2861_v47 = vand.u32 4294901760, %v2860_v6  ;;  %v2798_v60 = vand.u32 4294901760, %v25798_v59  ;;  %v2808_v4 = vsub.f32 %v25801_v51, %v31162_v11  ;;  %v25892_v59 = vpop.permute.xlu0 %3416 }
 0x32f   :  { %v22441_v56 = vpack.c.bf16 %v2843_v13, %v2831_v57  ;;  %v2867_v61 = vand.u32 4294901760, %v2866_v17  ;;  %v31161_v2 = vand.u32 4294901760, %v25871_v44  ;;  %v22449_v55 = vpack.c.bf16 %v25805_v23, %v25811_v45 }
 0x330   :  { %2788 = vmatmul.mubr.f32.vlgmr.msra.gmra.mrb[8].mxu0 %v2787_v16  ;;  %v22447_v26 = vpack.c.bf16 %v2873_v48, %v2861_v47  ;;  %v2809_v15 = vand.u32 4294901760, %v2808_v4  ;;  %v22451_v7 = vpack.c.bf16 %v25807_v14, %v25813_v50  ;;  %v22453_v17 = vpack.c.bf16 %v25830_v1, %v25840_v9 }
 0x331   :  { %22442 = vmatprep.subr.bf16.mxu0 %v22441_v56  ;;  %2793 = vmatprep.mubr.f32.mxu0 %v31422_v10  ;;  %v22445_v30 = vpack.c.bf16 %v2867_v61, %v2855_v58  ;;  %v2819_v16 = vsub.f32 %v25871_v44, %v31161_v2  ;;  %v25898_v63 = vpop.permute.xlu1 %3422  ;;  %v22455_v58 = vpack.c.bf16 %v25832_v38, %v25842_v24  ;;  %v7545_v56 = vld [vmem:[%s31144_s2] sm:$0xf]  ;;  %v7553_v61 = vsub.s32 2, %v25485_v20 }
 0x332   :  { %22444 = vmatpush1.bf16.msra.mxu0 %v22443_v41  ;;  %v25900_v6 = vpop.permute.xlu0 %3420  ;;  %v7550_v4 = vrot.slane %v7545_v56, %v25494_v32  ;;  %v22465_v2 = vpack.c.bf16 %v2841_v28, %v2829_v21  ;;  %v31436_v5 = vand.u32 4294901760, %v25807_v14 }
 0x333   :  { %22446 = vmatprep.subr.bf16.mxu0 %v22445_v30  ;;  %v2820_v57 = vand.u32 4294901760, %v2819_v16  ;;  %v7554_v30 = vrot.slane %v7545_v56, %v7553_v61  ;;  %v25948_v61 = vrot.slane %v25520_v53, %v25494_v32 }
 0x334   :  { %2799 = vmatmul.mubr.f32.gmra.mrb[10].mxu0 %v2798_v60  ;;  %v7586_v16 = vrot.slane %v7550_v4, %v25494_v32 }
 0x335   :  { %2804 = vmatprep.mubr.f32.mxu0 %v31422_v10  ;;  %v25905_v13 = vpop.permute.xlu1 %3426  ;;  %31428 = vst [vmem:[#allocation16_spill] sm:$0xff] %v25948_v61 }
 0x336   :  { %22448 = vmatpush1.bf16.msra.mxu0 %v22447_v26  ;;  %v25910_v41 = vpop.permute.xlu0 %3424  ;;  %v7563_v26 = vsub.s32 3, %v25485_v20 }
 0x337   :  { %22450 = vmatprep.subr.bf16.mxu0 %v22449_v55 }
 0x338   :  { %2810 = vmatmul.mubr.f32.gmra.mrb[12].mxu0 %v2809_v15 }
 0x339   :  { %2815 = vmatprep.mubr.f32.mxu0 %v31422_v10 }
 0x33c   :  { %2821 = vmatmul.mubr.f32.gmra.mrb[14].mxu0 %v2820_v57  ;;  %v7590_v57 = vrot.slane %v7554_v30, %v25494_v32 }
 0x33d   :  { %2931 = vmatprep.mubr.f32.mxu0 %v31422_v10 }
 0x340   :  { %2933 = vmatmul.mubr.f32.vlgmr.msra.gmra.mrb[8].mxu0 %v25760_v62 }
 0x341   :  { %22452 = vmatpush1.bf16.msra.mxu0 %v22451_v7  ;;  %2938 = vmatprep.mubr.f32.mxu0 %v31422_v10  ;;  %v7564_v7 = vrot.slane %v7545_v56, %v7563_v26 }
 0x342   :  { %22454 = vmatprep.subr.bf16.mxu0 %v22453_v17 }
 0x343   :  { %v7598_v30 = vrot.slane %v7564_v7, %v25494_v32  ;;  %v25967_v7 = vrot.slane %v25517_v52, %v25494_v32 }
 0x344   :  { %2940 = vmatmul.mubr.f32.gmra.mrb[10].mxu0 %v25766_v18 }
 0x345   :  { %v25916_v47 = vpop.permute.xlu1 %1954  ;;  %22456 = vmatpush1.bf16.msra.mxu0 %v22455_v58  ;;  %2945 = vmatprep.mubr.f32.mxu0 %v31422_v10  ;;  %31429 = vst [vmem:[#allocation17_spill] sm:$0xff] %v25967_v7 }
 0x346   :  { %v25919_v48 = vpop.permute.xlu0 %1950  ;;  %22458 = vmatprep.subr.bf16.mxu0 %v25825_v39 }
 0x348   :  { %2947 = vmatmul.mubr.f32.gmra.mrb[12].mxu0 %v25783_v54 }
 0x349   :  { %v25927_v60 = vpop.permute.xlu1 %1958  ;;  %2952 = vmatprep.mubr.f32.mxu0 %v31422_v10 }
 0x34a   :  { %v25932_v15 = vpop.permute.xlu0 %1962 }
 0x34c   :  { %2954 = vmatmul.mubr.f32.gmra.mrb[14].mxu0 %v25803_v3 }
 0x34d   :  { %3040 = vmatprep.mubr.f32.mxu0 %v31422_v10 }
 0x34e   :  { %v25937_v55 = vpop.permute.xlu1 %7568 }
 0x34f   :  { %v7599_v17 = vmul.f32 %v7586_v16, %v25937_v55  ;;  %v25944_v58 = vpop.permute.xlu0 %7572  ;;  %v7600_v4 = vmul.f32 %v7590_v57, %v25937_v55  ;;  %v7602_v28 = vmul.f32 %v7598_v30, %v25937_v55 }
 0x350   :  { %3043 = vmatmul.mubr.f32.vlgmr.msra.gmra.mrb[8].mxu0 %v25764_v22  ;;  %v7603_v27 = vmul.f32 %v7586_v16, %v25944_v58  ;;  %v7604_v34 = vmul.f32 %v7590_v57, %v25944_v58  ;;  %v7606_v43 = vmul.f32 %v7598_v30, %v25944_v58 }
 0x351   :  { %22460 = vmatpush1.bf16.msra.mxu0 %v25809_v37  ;;  %3048 = vmatprep.mubr.f32.mxu0 %v31422_v10 }
 0x352   :  { %22462 = vmatprep.subr.bf16.mxu0 %v25847_v35 }
 0x353   :  { %v25953_v26 = vpop.permute.xlu1 %7616 }
 0x354   :  { %3051 = vmatmul.mubr.f32.gmra.mrb[10].mxu0 %v25773_v8  ;;  %v7631_v11 = vadd.f32 %v25953_v26, %v7599_v17  ;;  %v7632_v45 = vadd.f32 %v25953_v26, %v7600_v4  ;;  %v7634_v4 = vadd.f32 %v25953_v26, %v7602_v28 }
 0x355   :  { %22464 = vmatpush1.bf16.msra.mxu0 %v25838_v42  ;;  %3056 = vmatprep.mubr.f32.mxu0 %v31422_v10  ;;  %v25973_v21 = vpop.permute.xlu0 %7576 }
 0x356   :  { %22466 = vmatprep.subr.bf16.mxu0 %v22465_v2  ;;  %v25971_v23 = vmul.f32 %v25948_v61, %v7631_v11  ;;  %v25989_v2 = vmul.f32 %v25967_v7, %v7632_v45  ;;  %v7607_v49 = vmul.f32 %v7586_v16, %v25973_v21  ;;  %v31434_v45 = vsub.s32 1, %v25485_v20 }
 0x357   :  { %v25976_v17 = vpop.permute.xlu1 %7620  ;;  %v7608_v53 = vmul.f32 %v7590_v57, %v25973_v21  ;;  %v7610_v22 = vmul.f32 %v7598_v30, %v25973_v21 }
 0x358   :  { %31430 = vst [vmem:[#allocation18_spill] sm:$0xff] %v25971_v23  ;;  %3059 = vmatmul.mubr.f32.gmra.mrb[12].mxu0 %v25801_v51  ;;  %v7635_v33 = vadd.f32 %v25976_v17, %v7603_v27  ;;  %v7636_v40 = vadd.f32 %v25976_v17, %v7604_v34  ;;  %7679 = vrot.lane.b32.xlu1 %v25971_v23, %s25042_s1  ;;  %31432 = vst [vmem:[#allocation20_spill] sm:$0xff] %v25989_v2 }
 0x359   :  { %3064 = vmatprep.mubr.f32.mxu0 %v31422_v10  ;;  %v7638_v0 = vadd.f32 %v25976_v17, %v7606_v43  ;;  %v7560_v46 = vrot.slane %v7545_v56, %v31434_v45  ;;  %v31435_v43 = vand.u32 4294901760, %v25813_v50  ;;  %v31439_v56 = vand.u32 4294901760, %v25840_v9 }
 0x35a   :  { %v25986_v11 = vmul.f32 %v25948_v61, %v7635_v33  ;;  %v25998_v34 = vmul.f32 %v25967_v7, %v7636_v40  ;;  %v7625_v33 = vpop.permute.xlu0 %7624  ;;  %v26011_v40 = vmul.f32 %v25967_v7, %v7634_v4  ;;  %v31442_v50 = vand.u32 4294901760, %v25842_v24 }
 0x35b   :  { %v22467_v52 = vpack.c.bf16 %v31436_v5, %v31435_v43  ;;  %v7639_v31 = vadd.f32 %v7625_v33, %v7607_v49  ;;  %v26022_v5 = vmul.f32 %v25967_v7, %v7638_v0  ;;  %v7594_v14 = vrot.slane %v7560_v46, %v25494_v32 }
 0x35c   :  { %31431 = vst [vmem:[#allocation19_spill] sm:$0xff] %v25986_v11  ;;  %3067 = vmatmul.mubr.f32.gmra.mrb[14].mxu0 %v25871_v44  ;;  %7681 = vrot.lane.b32.xlu0 %v25986_v11, %s25042_s1  ;;  %v7581_v27 = vpop.permute.xlu1 %7580  ;;  %31433 = vst [vmem:[#allocation21_spill] sm:$0xff] %v25998_v34  ;;  %v31445_v4 = vand.u32 4294901760, %v25773_v8 }
 0x35d   :  { %3145 = vmatprep.mubr.f32.mxu0 %v31422_v10  ;;  %v7611_v28 = vmul.f32 %v7586_v16, %v7581_v27  ;;  %7687 = vrot.lane.b32.xlu1 %v25989_v2, %s25042_s1  ;;  %31437 = vst [vmem:[#allocation22_spill] sm:$0xff] %v26011_v40  ;;  %v31440_v16 = vand.u32 4294901760, %v25830_v1  ;;  %v7612_v20 = vmul.f32 %v7590_v57, %v7581_v27  ;;  %31441 = vst [vmem:[#allocation23_spill] sm:$0xff] %v26022_v5 }
 0x35e   :  { %v31443_v1 = vand.u32 4294901760, %v25832_v38  ;;  %v7640_v57 = vadd.f32 %v7625_v33, %v7608_v53  ;;  %v7614_v0 = vmul.f32 %v7598_v30, %v7581_v27  ;;  %v7601_v53 = vmul.f32 %v7594_v14, %v25937_v55 }
 0x35f   :  { %v22469_v45 = vpack.c.bf16 %v31440_v16, %v31439_v56  ;;  %v31448_v30 = vand.u32 4294901760, %v25801_v51  ;;  %v3434_v55 = vsel %vm3428_vm4, %v25898_v63, %v25877_v19  ;;  %v7613_v56 = vmul.f32 %v7594_v14, %v7581_v27 }
 0x360   :  { %3149 = vmatmul.mubr.f32.vlgmr.msra.gmra.mrb[8].mxu0 %v31438_v12  ;;  %7689 = vrot.lane.b32.xlu0 %v25998_v34, %s25042_s1  ;;  %v22471_v9 = vpack.c.bf16 %v31443_v1, %v31442_v50  ;;  %v26049_v8 = vmul.f32 %v25967_v7, %v7640_v57  ;;  %v31451_v16 = vand.u32 4294901760, %v25871_v44  ;;  %v3408_v1 = vld [vmem:[#allocation2 + $0x18] sm:$0xff] }
 0x361   :  { %22468 = vmatpush1.bf16.msra.mxu0 %v22467_v52  ;;  %3154 = vmatprep.mubr.f32.mxu0 %v31422_v10  ;;  %v7629_v49 = vpop.permute.xlu1 %7628  ;;  %v26034_v52 = vmul.f32 %v25948_v61, %v7639_v31  ;;  %v7642_v31 = vadd.f32 %v7625_v33, %v7610_v22  ;;  %v3438_v57 = vsel %vm738_vm2, %v3408_v1, 0 }
 0x362   :  { %22470 = vmatprep.subr.bf16.mxu0 %v22469_v45  ;;  %v7643_v12 = vadd.f32 %v7629_v49, %v7611_v28  ;;  %7703 = vrot.lane.b32.xlu1 %v26011_v40, %s25042_s1  ;;  %v7644_v46 = vadd.f32 %v7629_v49, %v7612_v20  ;;  %31447 = vst [vmem:[#allocation26_spill] sm:$0xff] %v26049_v8 }
 0x363   :  { %31444 = vst [vmem:[#allocation24_spill] sm:$0xff] %v26034_v52  ;;  %v7605_v20 = vmul.f32 %v7594_v14, %v25944_v58  ;;  %v7646_v38 = vadd.f32 %v7629_v49, %v7614_v0  ;;  %v7633_v28 = vadd.f32 %v25953_v26, %v7601_v53  ;;  %v7609_v58 = vmul.f32 %v7594_v14, %v25973_v21 }
 0x364   :  { %3158 = vmatmul.mubr.f32.gmra.mrb[10].mxu0 %v31445_v4  ;;  %7705 = vrot.lane.b32.xlu0 %v26022_v5, %s25042_s1  ;;  %v26041_v24 = vmul.f32 %v25948_v61, %v7643_v12  ;;  %v26070_v51 = vmul.f32 %v25967_v7, %v7642_v31  ;;  %v3433_v26 = vsel %vm3428_vm4, %v25900_v6, %v25879_v29  ;;  %v3453_v21 = vand.u32 4294901760, %v3434_v55 }
 0x365   :  { %22472 = vmatpush1.bf16.msra.mxu0 %v22471_v9  ;;  %3163 = vmatprep.mubr.f32.mxu0 %v31422_v10  ;;  %v7637_v43 = vadd.f32 %v25976_v17, %v7605_v20  ;;  %v26078_v45 = vmul.f32 %v25967_v7, %v7646_v38  ;;  %v7641_v12 = vadd.f32 %v7625_v33, %v7609_v58  ;;  %v3449_v17 = vand.u32 4294901760, %v3433_v26 }
 0x366   :  { %31446 = vst [vmem:[#allocation25_spill] sm:$0xff] %v26041_v24  ;;  %22474 = vmatprep.subr.bf16.mxu0 %v25825_v39  ;;  %7683 = vrot.lane.b32.xlu1 %v26034_v52, %s25042_s1  ;;  %v26058_v39 = vmul.f32 %v25967_v7, %v7644_v46  ;;  %31450 = vst [vmem:[#allocation28_spill] sm:$0xff] %v26070_v51  ;;  %v26088_v44 = vmul.f32 %v25948_v61, %v7633_v28  ;;  %v26144_v46 = vand.u32 4294901760, %v3438_v57 }
 0x367   :  { %31452 = vst [vmem:[#allocation29_spill] sm:$0xff] %v26078_v45  ;;  %v7645_v27 = vadd.f32 %v7629_v49, %v7613_v56  ;;  %v26094_v14 = vmul.f32 %v25948_v61, %v7637_v43  ;;  %v26099_v33 = vsub.f32 %v3434_v55, %v3453_v21  ;;  %v26104_v49 = vmul.f32 %v25948_v61, %v7641_v12 }
 0x368   :  { %3167 = vmatmul.mubr.f32.gmra.mrb[12].mxu0 %v31448_v30  ;;  %7685 = vrot.lane.b32.xlu0 %v26041_v24, %s25042_s1  ;;  %31449 = vst [vmem:[#allocation27_spill] sm:$0xff] %v26058_v39  ;;  %31453 = vst [vmem:[#allocation30_spill] sm:$0xff] %v26088_v44  ;;  %v26106_v22 = vsub.f32 %v3433_v26, %v3449_v17  ;;  %v26109_v50 = vpack.c.bf16 %v3453_v21, %v3449_v17 }
 0x369   :  { %3172 = vmatprep.mubr.f32.mxu0 %v31422_v10  ;;  %31454 = vst [vmem:[#allocation31_spill] sm:$0xff] %v26094_v14  ;;  %31455 = vst [vmem:[#allocation32_spill] sm:$0xff] %v26104_v49  ;;  %v3429_v9 = vsel %vm3428_vm4, %v25879_v29, %v25900_v6  ;;  %v3435_v29 = vsel %vm3428_vm4, %v25910_v41, %v25892_v59  ;;  %v3432_v53 = vsel %vm3428_vm4, %v25887_v36, %v25905_v13 }
 0x36a   :  { %7691 = vrot.lane.b32.xlu1 %v26049_v8, %s25042_s1  ;;  %v31187_v0 = vand.u32 4294901760, %v26106_v22  ;;  %v3451_v4 = vand.u32 4294901760, %v3429_v9  ;;  %v3431_v38 = vsel %vm3428_vm4, %v25892_v59, %v25910_v41  ;;  %v3457_v30 = vand.u32 4294901760, %v3435_v29  ;;  %v3410_v41 = vld [vmem:[#allocation2 + $0xe8] sm:$0xff] }
 0x36b   :  { %v26168_v58 = vsub.f32 %v3438_v57, %v26144_v46  ;;  %v3463_v56 = vand.u32 4294901760, %v3432_v53  ;;  %v3459_v26 = vand.u32 4294901760, %v3431_v38  ;;  %v3444_v1 = vsel %vm738_vm2, %v3410_v41, 0 }
 0x36c   :  { %3176 = vmatmul.mubr.f32.gmra.mrb[14].mxu0 %v31451_v16  ;;  %7693 = vrot.lane.b32.xlu0 %v26058_v39, %s25042_s1  ;;  %v3569_v55 = vsub.f32 %v26106_v22, %v31187_v0  ;;  %v26172_v43 = vsub.f32 %v3429_v9, %v3451_v4  ;;  %v26176_v21 = vsub.f32 %v3435_v29, %v3457_v30 }
 0x36d   :  { %3270 = vmatprep.mubr.f32.mxu0 %v31422_v10  ;;  %v31182_v9 = vand.u32 4294901760, %v26168_v58  ;;  %v26193_v29 = vpack.c.bf16 %v3463_v56, %v3459_v26 }
 0x36e   :  { %7707 = vrot.lane.b32.xlu1 %v26070_v51, %s25042_s1  ;;  %v3570_v17 = vand.u32 4294901760, %v3569_v55  ;;  %v26200_v55 = vand.u32 4294901760, %v3444_v1 }
 0x370   :  { %3272 = vmatmul.mubr.f32.vlgmr.msra.gmra.mrb[8].mxu0 %v25760_v62  ;;  %7709 = vrot.lane.b32.xlu0 %v26078_v45, %s25042_s1 }
 0x371   :  { %22476 = vmatpush1.bf16.msra.mxu0 %v25809_v37  ;;  %3277 = vmatprep.mubr.f32.mxu0 %v31422_v10  ;;  %v26114_v37 = vmul.f32 %v25948_v61, %v7645_v27 }
 0x372   :  { %22478 = vmatprep.subr.bf16.mxu0 %v25847_v35  ;;  %7695 = vrot.lane.b32.xlu1 %v26088_v44, %s25042_s1  ;;  %v3430_v35 = vsel %vm3428_vm4, %v25877_v19, %v25898_v63  ;;  %v31185_v19 = vand.u32 4294901760, %v26099_v33  ;;  %v3409_v63 = vld [vmem:[#allocation2 + $0x80] sm:$0xff] }
 0x373   :  { %31456 = vst [vmem:[#allocation33_spill] sm:$0xff] %v26114_v37  ;;  %v3455_v6 = vand.u32 4294901760, %v3430_v35  ;;  %v3441_v20 = vsel %vm738_vm2, %v3409_v63, 0  ;;  %v26191_v63 = vsub.f32 %v3432_v53, %v3463_v56 }
 0x374   :  { %3279 = vmatmul.mubr.f32.gmra.mrb[10].mxu0 %v25766_v18  ;;  %7697 = vrot.lane.b32.xlu0 %v26094_v14, %s25042_s1  ;;  %v3581_v28 = vsub.f32 %v26099_v33, %v31185_v19  ;;  %v26170_v59 = vand.u32 4294901760, %v3441_v20 }
 0x375   :  { %22480 = vmatpush1.bf16.msra.mxu0 %v25838_v42  ;;  %3284 = vmatprep.mubr.f32.mxu0 %v31422_v10  ;;  %v3436_v42 = vsel %vm3428_vm4, %v25905_v13, %v25887_v36  ;;  %v26163_v36 = vsub.f32 %v3430_v35, %v3455_v6  ;;  %v26165_v13 = vpack.c.bf16 %v3455_v6, %v3451_v4  ;;  %v31188_v41 = vand.u32 4294901760, %v26191_v63 }
 0x376   :  { %22482 = vmatprep.subr.bf16.mxu0 %v26109_v50  ;;  %7699 = vrot.lane.b32.xlu1 %v26104_v49, %s25042_s1  ;;  %v3461_v31 = vand.u32 4294901760, %v3436_v42  ;;  %v3582_v27 = vand.u32 4294901760, %v3581_v28  ;;  %v26188_v57 = vsub.f32 %v3441_v20, %v26170_v59  ;;  %v26195_v6 = vsub.f32 %v3431_v38, %v3459_v26 }
 0x377   :  { %v31183_v35 = vand.u32 4294901760, %v26163_v36  ;;  %v3525_v20 = vsub.f32 %v26168_v58, %v31182_v9 }
 0x378   :  { %3286 = vmatmul.mubr.f32.gmra.mrb[12].mxu0 %v25783_v54  ;;  %7701 = vrot.lane.b32.xlu0 %v26114_v37, %s25042_s1  ;;  %v26174_v16 = vsub.f32 %v3436_v42, %v3461_v31  ;;  %v26179_v12 = vpack.c.bf16 %v3461_v31, %v3457_v30  ;;  %v31184_v42 = vand.u32 4294901760, %v26172_v43  ;;  %v22489_v4 = vpack.c.bf16 %v3582_v27, %v3570_v17 }
 0x379   :  { %3291 = vmatprep.mubr.f32.mxu0 %v31422_v10  ;;  %v31180_v31 = vand.u32 4294901760, %v26176_v21  ;;  %v3587_v38 = vsub.f32 %v26163_v36, %v31183_v35  ;;  %v3598_v56 = vand.u32 4294901760, %v26195_v6  ;;  %v26225_v27 = vsub.f32 %v3444_v1, %v26200_v55 }
 0x37a   :  { %v31181_v30 = vand.u32 4294901760, %v26174_v16  ;;  %v3575_v28 = vsub.f32 %v26172_v43, %v31184_v42 }
 0x37b   :  { %v3593_v26 = vsub.f32 %v26176_v21, %v31180_v31  ;;  %v3611_v31 = vsub.f32 %v26191_v63, %v31188_v41  ;;  %v3588_v1 = vand.u32 4294901760, %v3587_v38 }
 0x37c   :  { %3293 = vmatmul.mubr.f32.gmra.mrb[14].mxu0 %v25803_v3  ;;  %v3605_v17 = vsub.f32 %v26174_v16, %v31181_v30  ;;  %v3599_v30 = vsub.f32 %v26195_v6, %v3598_v56  ;;  %v3576_v9 = vand.u32 4294901760, %v3575_v28 }
 0x37d   :  { %3371 = vmatprep.mubr.f32.mxu0 %v31422_v10  ;;  %v3594_v35 = vand.u32 4294901760, %v3593_v26  ;;  %v3612_v41 = vand.u32 4294901760, %v3611_v31 }
 0x37e   :  { %v3606_v42 = vand.u32 4294901760, %v3605_v17  ;;  %v3600_v0 = vand.u32 4294901760, %v3599_v30  ;;  %v31462_v17 = vand.u32 4294901760, %v26176_v21 }
 0x380   :  { %3373 = vmatmul.mubr.f32.vlgmr.msra.gmra.mrb[8].mxu0 %v25760_v62  ;;  %v3411_v62 = vld [vmem:[#allocation2 + $0x150] sm:$0xff]  ;;  %v22493_v7 = vpack.c.bf16 %v3606_v42, %v3594_v35  ;;  %v31457_v42 = vand.u32 4294901760, %v26106_v22 }
 0x381   :  { %22484 = vmatpush1.bf16.msra.mxu0 %v26165_v13  ;;  %3378 = vmatprep.mubr.f32.mxu0 %v31422_v10  ;;  %v3447_v53 = vsel %vm738_vm2, %v3411_v62, 0 }
 0x382   :  { %22486 = vmatprep.subr.bf16.mxu0 %v26179_v12  ;;  %v26227_v62 = vand.u32 4294901760, %v3447_v53 }
 0x384   :  { %3380 = vmatmul.mubr.f32.gmra.mrb[10].mxu0 %v25766_v18  ;;  %v31186_v18 = vand.u32 4294901760, %v26188_v57  ;;  %v26242_v19 = vsub.f32 %v3447_v53, %v26227_v62  ;;  %v22495_v53 = vpack.c.bf16 %v3612_v41, %v3600_v0  ;;  %v22503_v0 = vpack.c.bf16 %v26191_v63, %v26195_v6 }
 0x385   :  { %22488 = vmatpush1.bf16.msra.mxu0 %v26193_v29  ;;  %3385 = vmatprep.mubr.f32.mxu0 %v31422_v10  ;;  %v31459_v41 = vand.u32 4294901760, %v26172_v43 }
 0x386   :  { %22490 = vmatprep.subr.bf16.mxu0 %v22489_v4  ;;  %v3526_v4 = vand.u32 4294901760, %v3525_v20  ;;  %v3546_v20 = vand.u32 4294901760, %v26225_v27 }
 0x388   :  { %3387 = vmatmul.mubr.f32.gmra.mrb[12].mxu0 %v25783_v54  ;;  %v3536_v54 = vsub.f32 %v26188_v57, %v31186_v18  ;;  %v22491_v18 = vpack.c.bf16 %v3588_v1, %v3576_v9  ;;  %v3547_v38 = vsub.f32 %v26225_v27, %v3546_v20  ;;  %v22497_v9 = vpack.c.bf16 %v26099_v33, %v26106_v22 }
 0x389   :  { %3392 = vmatprep.mubr.f32.mxu0 %v31422_v10  ;;  %v31460_v22 = vand.u32 4294901760, %v26163_v36 }
 0x38a   :  { %v3537_v61 = vand.u32 4294901760, %v3536_v54  ;;  %v3548_v30 = vand.u32 4294901760, %v3547_v38 }
 0x38b   :  { %v22515_v26 = vpack.c.bf16 %v31460_v22, %v31459_v41 }
 0x38c   :  { %3394 = vmatmul.mubr.f32.gmra.mrb[14].mxu0 %v25803_v3  ;;  %v3557_v3 = vand.u32 4294901760, %v26242_v19 }
 0x38d   :  { %3521 = vmatprep.mubr.f32.mxu0 %v31422_v10 }
 0x38e   :  { %v3558_v31 = vsub.f32 %v26242_v19, %v3557_v3 }
 0x390   :  { %3527 = vmatmul.mubr.f32.vlgmr.msra.gmra.mrb[8].mxu0 %v3526_v4  ;;  %v3559_v35 = vand.u32 4294901760, %v3558_v31  ;;  %v31463_v4 = vand.u32 4294901760, %v26174_v16 }
 0x391   :  { %22492 = vmatpush1.bf16.msra.mxu0 %v22491_v18  ;;  %3532 = vmatprep.mubr.f32.mxu0 %v31422_v10  ;;  %v31458_v18 = vand.u32 4294901760, %v26099_v33  ;;  %v31461_v33 = vand.u32 4294901760, %v26168_v58 }
 0x392   :  { %22494 = vmatprep.subr.bf16.mxu0 %v22493_v7  ;;  %v22501_v7 = vpack.c.bf16 %v26174_v16, %v26176_v21  ;;  %v22517_v54 = vpack.c.bf16 %v31463_v4, %v31462_v17  ;;  %v7677_v17 = vld [vmem:[#allocation2 + $0x108] sm:$0xff] }
 0x393   :  { %v22513_v28 = vpack.c.bf16 %v31458_v18, %v31457_v42 }
 0x394   :  { %3538 = vmatmul.mubr.f32.gmra.mrb[10].mxu0 %v3537_v61  ;;  %v22499_v61 = vpack.c.bf16 %v26163_v36, %v26172_v43  ;;  %v31465_v36 = vand.u32 4294901760, %v26188_v57 }
 0x395   :  { %22496 = vmatpush1.bf16.msra.mxu0 %v22495_v53  ;;  %3543 = vmatprep.mubr.f32.mxu0 %v31422_v10 }
 0x396   :  { %22498 = vmatprep.subr.bf16.mxu0 %v22497_v9 }
 0x398   :  { %3549 = vmatmul.mubr.f32.gmra.mrb[12].mxu0 %v3548_v30 }
 0x399   :  { %3554 = vmatprep.mubr.f32.mxu0 %v31422_v10 }
 0x39c   :  { %3560 = vmatmul.mubr.f32.gmra.mrb[14].mxu0 %v3559_v35 }
 0x39d   :  { %3670 = vmatprep.mubr.f32.mxu0 %v31422_v10 }
 0x3a0   :  { %3672 = vmatmul.mubr.f32.vlgmr.msra.gmra.mrb[8].mxu0 %v26144_v46 }
 0x3a1   :  { %22500 = vmatpush1.bf16.msra.mxu0 %v22499_v61  ;;  %3677 = vmatprep.mubr.f32.mxu0 %v31422_v10  ;;  %v7676_v61 = vld [vmem:[#allocation2 + $0xa0] sm:$0xff] }
 0x3a2   :  { %22502 = vmatprep.subr.bf16.mxu0 %v22501_v7  ;;  %v7731_v18 = vsel %vm738_vm2, %v7676_v61, 0 }
 0x3a4   :  { %3679 = vmatmul.mubr.f32.gmra.mrb[10].mxu0 %v26170_v59 }
 0x3a5   :  { %22504 = vmatpush1.bf16.msra.mxu0 %v22503_v0  ;;  %3684 = vmatprep.mubr.f32.mxu0 %v31422_v10 }
 0x3a6   :  { %22506 = vmatprep.subr.bf16.mxu0 %v26109_v50 }
 0x3a8   :  { %3686 = vmatmul.mubr.f32.gmra.mrb[12].mxu0 %v26200_v55 }
 0x3a9   :  { %3691 = vmatprep.mubr.f32.mxu0 %v31422_v10 }
 0x3ac   :  { %3693 = vmatmul.mubr.f32.gmra.mrb[14].mxu0 %v26227_v62 }
 0x3ad   :  { %3779 = vmatprep.mubr.f32.mxu0 %v31422_v10 }
 0x3b0   :  { %3782 = vmatmul.mubr.f32.vlgmr.msra.gmra.mrb[8].mxu0 %v26168_v58 }
 0x3b1   :  { %22508 = vmatpush1.bf16.msra.mxu0 %v26165_v13  ;;  %3787 = vmatprep.mubr.f32.mxu0 %v31422_v10 }
 0x3b2   :  { %22510 = vmatprep.subr.bf16.mxu0 %v26179_v12 }
 0x3b4   :  { %3790 = vmatmul.mubr.f32.gmra.mrb[10].mxu0 %v26188_v57 }
 0x3b5   :  { %22512 = vmatpush1.bf16.msra.mxu0 %v26193_v29  ;;  %3795 = vmatprep.mubr.f32.mxu0 %v31422_v10 }
 0x3b6   :  { %22514 = vmatprep.subr.bf16.mxu0 %v22513_v28 }
 0x3b8   :  { %3798 = vmatmul.mubr.f32.gmra.mrb[12].mxu0 %v26225_v27  ;;  %v7675_v27 = vld [vmem:[#allocation2 + $0x38] sm:$0xff] }
 0x3b9   :  { %3803 = vmatprep.mubr.f32.mxu0 %v31422_v10 }
 0x3bc   :  { %3806 = vmatmul.mubr.f32.gmra.mrb[14].mxu0 %v26242_v19  ;;  %v31464_v19 = vand.u32 4294901760, %v26191_v63 }
 0x3bd   :  { %3884 = vmatprep.mubr.f32.mxu0 %v31422_v10 }
 0x3be   :  { %v22519_v43 = vpack.c.bf16 %v31464_v19, %v3598_v56 }
 0x3c0   :  { %3888 = vmatmul.mubr.f32.vlgmr.msra.gmra.mrb[8].mxu0 %v31461_v33 }
 0x3c1   :  { %22516 = vmatpush1.bf16.msra.mxu0 %v22515_v26  ;;  %3893 = vmatprep.mubr.f32.mxu0 %v31422_v10 }
 0x3c2   :  { %22518 = vmatprep.subr.bf16.mxu0 %v22517_v54 }
 0x3c4   :  { %3897 = vmatmul.mubr.f32.gmra.mrb[10].mxu0 %v31465_v36 }
 0x3c5   :  { %22520 = vmatpush1.bf16.msra.mxu0 %v22519_v43  ;;  %3902 = vmatprep.mubr.f32.mxu0 %v31422_v10 }
 0x3c6   :  { %22522 = vmatprep.subr.bf16.mxu0 %v26109_v50 }
 0x3c8   :  { %3906 = vmatmul.mubr.f32.gmra.mrb[12].mxu0 %v3546_v20 }
 0x3c9   :  { %3911 = vmatprep.mubr.f32.mxu0 %v31422_v10 }
 0x3ca   :  { %v7680_v58 = vpop.permute.xlu1 %7679 }
 0x3cc   :  { %3915 = vmatmul.mubr.f32.gmra.mrb[14].mxu0 %v3557_v3 }
 0x3cd   :  { %4009 = vmatprep.mubr.f32.mxu0 %v31422_v10 }
 0x3ce   :  { %v7682_v16 = vpop.permute.xlu0 %7681 }
 0x3cf   :  { %v26310_v21 = vpop.permute.xlu1 %7687 }
 0x3d0   :  { %4011 = vmatmul.mubr.f32.vlgmr.msra.gmra.mrb[8].mxu0 %v26144_v46  ;;  %v7719_v50 = vsel %vm2689_vm3, %v7680_v58, %v26310_v21 }
 0x3d1   :  { %22524 = vmatpush1.bf16.msra.mxu0 %v26165_v13  ;;  %4016 = vmatprep.mubr.f32.mxu0 %v31422_v10  ;;  %v7739_v57 = vand.u32 4294901760, %v7719_v50 }
 0x3d2   :  { %22526 = vmatprep.subr.bf16.mxu0 %v26179_v12  ;;  %v26318_v63 = vpop.permute.xlu0 %7689 }
 0x3d3   :  { %v7720_v6 = vsel %vm2689_vm3, %v7682_v16, %v26318_v63  ;;  %v26324_v56 = vsub.f32 %v7719_v50, %v7739_v57 }
 0x3d4   :  { %4018 = vmatmul.mubr.f32.gmra.mrb[10].mxu0 %v26170_v59  ;;  %v7743_v13 = vand.u32 4294901760, %v7720_v6  ;;  %v26328_v1 = vpop.permute.xlu1 %7703 }
 0x3d5   :  { %22528 = vmatpush1.bf16.msra.mxu0 %v26193_v29  ;;  %4023 = vmatprep.mubr.f32.mxu0 %v31422_v10  ;;  %v7723_v20 = vsel %vm2689_vm3, %v26328_v1, %v7680_v58  ;;  %v7728_v29 = vsel %vm738_vm2, %v7675_v27, 0  ;;  %v31194_v9 = vand.u32 4294901760, %v26324_v56 }
 0x3d6   :  { %v26330_v12 = vsub.f32 %v7720_v6, %v7743_v13  ;;  %v26335_v38 = vpop.permute.xlu0 %7705  ;;  %v26337_v3 = vpack.c.bf16 %v7743_v13, %v7739_v57  ;;  %v7741_v30 = vand.u32 4294901760, %v7723_v20  ;;  %v26348_v42 = vand.u32 4294901760, %v7728_v29 }
 0x3d7   :  { %v7724_v53 = vsel %vm2689_vm3, %v26335_v38, %v7682_v16  ;;  %v7859_v28 = vsub.f32 %v26324_v56, %v31194_v9  ;;  %v26378_v16 = vand.u32 4294901760, %v7731_v18  ;;  %v7734_v57 = vsel %vm738_vm2, %v7677_v17, 0 }
 0x3d8   :  { %4025 = vmatmul.mubr.f32.gmra.mrb[12].mxu0 %v26200_v55  ;;  %22770 = vmatprep.subr.bf16.mxu0 %v26337_v3  ;;  %v7745_v31 = vand.u32 4294901760, %v7724_v53  ;;  %v7684_v35 = vpop.permute.xlu1 %7683  ;;  %v31193_v7 = vand.u32 4294901760, %v26330_v12  ;;  %v26355_v41 = vsub.f32 %v7723_v20, %v7741_v30  ;;  %v26373_v43 = vsub.f32 %v7728_v29, %v26348_v42 }
 0x3d9   :  { %4030 = vmatprep.mubr.f32.mxu0 %v31422_v10  ;;  %v7860_v6 = vand.u32 4294901760, %v7859_v28 }
 0x3da   :  { %v7686_v0 = vpop.permute.xlu0 %7685  ;;  %v26357_v22 = vpack.c.bf16 %v7745_v31, %v7741_v30  ;;  %v26359_v26 = vsub.f32 %v7724_v53, %v7745_v31  ;;  %v7871_v4 = vsub.f32 %v26330_v12, %v31193_v7  ;;  %v31201_v13 = vand.u32 4294901760, %v26355_v41  ;;  %v7678_v30 = vld [vmem:[#allocation2 + $0x170] sm:$0xff] }
 0x3db   :  { %v26400_v17 = vand.u32 4294901760, %v26373_v43 }
 0x3dc   :  { %4032 = vmatmul.mubr.f32.gmra.mrb[14].mxu0 %v26227_v62  ;;  %v26362_v33 = vpop.permute.xlu1 %7691  ;;  %v31204_v27 = vand.u32 4294901760, %v26359_v26  ;;  %v7872_v29 = vand.u32 4294901760, %v7871_v4  ;;  %v26406_v4 = vsub.f32 %v7731_v18, %v26378_v16 }
 0x3dd   :  { %4110 = vmatprep.mubr.f32.mxu0 %v31422_v10  ;;  %v7721_v54 = vsel %vm2689_vm3, %v7684_v35, %v26362_v33 }
 0x3de   :  { %v26370_v19 = vpop.permute.xlu0 %7693  ;;  %v7747_v36 = vand.u32 4294901760, %v7721_v54  ;;  %v7877_v18 = vsub.f32 %v26359_v26, %v31204_v27 }
 0x3df   :  { %v7722_v58 = vsel %vm2689_vm3, %v7686_v0, %v26370_v19 }
 0x3e0   :  { %4112 = vmatmul.mubr.f32.vlgmr.msra.gmra.mrb[8].mxu0 %v26144_v46  ;;  %v7751_v50 = vand.u32 4294901760, %v7722_v58  ;;  %v26384_v20 = vsub.f32 %v7721_v54, %v7747_v36  ;;  %v26387_v53 = vpop.permute.xlu1 %7707 }
 0x3e1   :  { %4117 = vmatprep.mubr.f32.mxu0 %v31422_v10  ;;  %22772 = vmatpush1.bf16.msra.mxu0 %v26357_v22  ;;  %v7725_v46 = vsel %vm2689_vm3, %v26387_v53, %v7684_v35 }
 0x3e2   :  { %v26390_v31 = vsub.f32 %v7722_v58, %v7751_v50  ;;  %v26395_v61 = vpop.permute.xlu0 %7709  ;;  %v26397_v28 = vpack.c.bf16 %v7751_v50, %v7747_v36  ;;  %v7749_v54 = vand.u32 4294901760, %v7725_v46  ;;  %v26412_v36 = vand.u32 4294901760, %v7734_v57 }
 0x3e3   :  { %v7726_v7 = vsel %vm2689_vm3, %v26395_v61, %v7686_v0  ;;  %v7737_v50 = vsel %vm738_vm2, %v7678_v30, 0  ;;  %v7865_v0 = vsub.f32 %v26355_v41, %v31201_v13  ;;  %v31466_v37 = vand.u32 4294901760, %v26384_v20 }
 0x3e4   :  { %4119 = vmatmul.mubr.f32.gmra.mrb[10].mxu0 %v26170_v59  ;;  %v7753_v35 = vand.u32 4294901760, %v7726_v7  ;;  %22774 = vmatprep.subr.bf16.mxu0 %v26397_v28  ;;  %v26421_v58 = vsub.f32 %v7725_v46, %v7749_v54  ;;  %v22777_v59 = vpack.c.bf16 %v7872_v29, %v7860_v6  ;;  %v31467_v49 = vand.u32 4294901760, %v26390_v31 }
 0x3e5   :  { %4124 = vmatprep.mubr.f32.mxu0 %v31422_v10  ;;  %v7883_v30 = vsub.f32 %v26384_v20, %v31466_v37  ;;  %v7815_v46 = vsub.f32 %v26373_v43, %v26400_v17  ;;  %v26443_v6 = vsub.f32 %v7734_v57, %v26412_v36  ;;  %v26445_v37 = vand.u32 4294901760, %v7737_v50 }
 0x3e6   :  { %v26424_v9 = vpack.c.bf16 %v7753_v35, %v7749_v54  ;;  %v26426_v32 = vsub.f32 %v7726_v7, %v7753_v35  ;;  %v7895_v13 = vsub.f32 %v26390_v31, %v31467_v49  ;;  %v31207_v45 = vand.u32 4294901760, %v26421_v58 }
 0x3e7   :  { %v26440_v7 = vand.u32 4294901760, %v26406_v4  ;;  %v7866_v29 = vand.u32 4294901760, %v7865_v0  ;;  %v7878_v54 = vand.u32 4294901760, %v7877_v18  ;;  %v7884_v35 = vand.u32 4294901760, %v7883_v30 }
 0x3e8   :  { %v31210_v27 = vand.u32 4294901760, %v26426_v32  ;;  %4126 = vmatmul.mubr.f32.gmra.mrb[12].mxu0 %v26200_v55  ;;  %v7889_v49 = vsub.f32 %v26421_v58, %v31207_v45  ;;  %v7896_v57 = vand.u32 4294901760, %v7895_v13  ;;  %v26456_v51 = vand.u32 4294901760, %v7815_v46 }
 0x3e9   :  { %4131 = vmatprep.mubr.f32.mxu0 %v31422_v10  ;;  %22776 = vmatpush1.bf16.msra.mxu0 %v26424_v9  ;;  %v7826_v45 = vsub.f32 %v26406_v4, %v26440_v7  ;;  %v26461_v14 = vand.u32 4294901760, %v26443_v6  ;;  %v26464_v0 = vsub.f32 %v7737_v50, %v26445_v37 }
 0x3ea   :  { %v7901_v55 = vsub.f32 %v26426_v32, %v31210_v27  ;;  %22778 = vmatprep.subr.bf16.mxu0 %v22777_v59  ;;  %v22779_v27 = vpack.c.bf16 %v7878_v54, %v7866_v29  ;;  %v7890_v59 = vand.u32 4294901760, %v7889_v49  ;;  %v22781_v30 = vpack.c.bf16 %v7896_v57, %v7884_v35 }
 0x3eb   :  { %v7837_v13 = vsub.f32 %v26443_v6, %v26461_v14  ;;  %v26473_v46 = vand.u32 4294901760, %v26464_v0  ;;  %v22785_v29 = vpack.c.bf16 %v26330_v12, %v26324_v56  ;;  %v22791_v35 = vpack.c.bf16 %v26426_v32, %v26421_v58 }
 0x3ec   :  { %4133 = vmatmul.mubr.f32.gmra.mrb[14].mxu0 %v26227_v62  ;;  %v7902_v18 = vand.u32 4294901760, %v7901_v55  ;;  %v26468_v62 = vand.u32 4294901760, %v7826_v45  ;;  %v22789_v55 = vpack.c.bf16 %v26390_v31, %v26384_v20  ;;  %v31468_v57 = vand.u32 4294901760, %v26324_v56 }
 0x3ed   :  { %7811 = vmatprep.mubr.f32.mxu0 %v31422_v10  ;;  %v26479_v49 = vand.u32 4294901760, %v7837_v13  ;;  %v7848_v45 = vsub.f32 %v26464_v0, %v26473_v46  ;;  %v31470_v56 = vand.u32 4294901760, %v26355_v41  ;;  %v31472_v13 = vand.u32 4294901760, %v26384_v20 }
 0x3ee   :  { %v22783_v50 = vpack.c.bf16 %v7902_v18, %v7890_v59  ;;  %v31469_v18 = vand.u32 4294901760, %v26330_v12  ;;  %v31471_v12 = vand.u32 4294901760, %v26359_v26 }
 0x3ef   :  { %v26485_v54 = vand.u32 4294901760, %v7848_v45  ;;  %v31474_v45 = vand.u32 4294901760, %v26421_v58 }
 0x3f0   :  { %7817 = vmatmul.mubr.f32.vlgmr.msra.gmra.mrb[16].mxu0 %v26456_v51  ;;  %v22801_v59 = vpack.c.bf16 %v31469_v18, %v31468_v57 }
 0x3f1   :  { %7822 = vmatprep.mubr.f32.mxu0 %v31422_v10  ;;  %22780 = vmatpush1.bf16.msra.mxu0 %v22779_v27  ;;  %v22787_v27 = vpack.c.bf16 %v26359_v26, %v26355_v41  ;;  %v7696_v41 = vpop.permute.xlu1 %7695  ;;  %v7698_v26 = vpop.permute.xlu0 %7697 }
 0x3f2   :  { %22782 = vmatprep.subr.bf16.mxu0 %v22781_v30  ;;  %v22803_v30 = vpack.c.bf16 %v31471_v12, %v31470_v56  ;;  %v7711_v20 = vsel %vm2689_vm3, %v7696_v41, %v26328_v1 }
 0x3f4   :  { %7828 = vmatmul.mubr.f32.gmra.mrb[18].mxu0 %v26468_v62 }
 0x3f5   :  { %7833 = vmatprep.mubr.f32.mxu0 %v31422_v10  ;;  %22784 = vmatpush1.bf16.msra.mxu0 %v22783_v50  ;;  %v31473_v50 = vand.u32 4294901760, %v26390_v31  ;;  %v8429_v31 = vand.u32 4294901760, %v7711_v20  ;;  %v7702_v57 = vpop.permute.xlu0 %7701 }
 0x3f6   :  { %22786 = vmatprep.subr.bf16.mxu0 %v22785_v29 }
 0x3f7   :  { %v22805_v29 = vpack.c.bf16 %v31473_v50, %v31472_v13  ;;  %v26551_v58 = vsub.f32 %v7711_v20, %v8429_v31 }
 0x3f8   :  { %7839 = vmatmul.mubr.f32.gmra.mrb[20].mxu0 %v26479_v49 }
 0x3f9   :  { %7844 = vmatprep.mubr.f32.mxu0 %v31422_v10  ;;  %v8548_v56 = vand.u32 4294901760, %v26551_v58 }
 0x3fc   :  { %7850 = vmatmul.mubr.f32.gmra.mrb[22].mxu0 %v26485_v54 }
 0x3fd   :  { %7960 = vmatprep.mubr.f32.mxu0 %v31422_v10 }
 0x400   :  { %7962 = vmatmul.mubr.f32.vlgmr.msra.gmra.mrb[16].mxu0 %v26348_v42 }
 0x401   :  { %7967 = vmatprep.mubr.f32.mxu0 %v31422_v10  ;;  %22788 = vmatpush1.bf16.msra.mxu0 %v22787_v27  ;;  %v31475_v27 = vand.u32 4294901760, %v26426_v32  ;;  %v7712_v32 = vsel %vm2689_vm3, %v7698_v26, %v26335_v38  ;;  %v7700_v38 = vpop.permute.xlu1 %7699 }
 0x402   :  { %22790 = vmatprep.subr.bf16.mxu0 %v22789_v55 }
 0x403   :  { %v22807_v55 = vpack.c.bf16 %v31475_v27, %v31474_v45 }
 0x404   :  { %7969 = vmatmul.mubr.f32.gmra.mrb[18].mxu0 %v26378_v16 }
 0x405   :  { %7974 = vmatprep.mubr.f32.mxu0 %v31422_v10  ;;  %22792 = vmatpush1.bf16.msra.mxu0 %v22791_v35 }
 0x406   :  { %22794 = vmatprep.subr.bf16.mxu0 %v26337_v3 }
 0x408   :  { %7976 = vmatmul.mubr.f32.gmra.mrb[20].mxu0 %v26412_v36 }
 0x409   :  { %7981 = vmatprep.mubr.f32.mxu0 %v31422_v10 }
 0x40c   :  { %7983 = vmatmul.mubr.f32.gmra.mrb[22].mxu0 %v26445_v37 }
 0x40d   :  { %8069 = vmatprep.mubr.f32.mxu0 %v31422_v10 }
 0x410   :  { %8072 = vmatmul.mubr.f32.vlgmr.msra.gmra.mrb[16].mxu0 %v26373_v43 }
 0x411   :  { %8077 = vmatprep.mubr.f32.mxu0 %v31422_v10  ;;  %22796 = vmatpush1.bf16.msra.mxu0 %v26357_v22 }
 0x412   :  { %22798 = vmatprep.subr.bf16.mxu0 %v26397_v28 }
 0x414   :  { %8080 = vmatmul.mubr.f32.gmra.mrb[18].mxu0 %v26406_v4 }
 0x415   :  { %8085 = vmatprep.mubr.f32.mxu0 %v31422_v10  ;;  %22800 = vmatpush1.bf16.msra.mxu0 %v26424_v9 }
 0x416   :  { %22802 = vmatprep.subr.bf16.mxu0 %v22801_v59  ;;  %v7713_v59 = vsel %vm2689_vm3, %v7700_v38, %v26387_v53  ;;  %v7718_v53 = vsel %vm2689_vm3, %v26370_v19, %v7702_v57 }
 0x418   :  { %8088 = vmatmul.mubr.f32.gmra.mrb[20].mxu0 %v26443_v6 }
 0x419   :  { %8093 = vmatprep.mubr.f32.mxu0 %v31422_v10 }
 0x41c   :  { %8096 = vmatmul.mubr.f32.gmra.mrb[22].mxu0 %v26464_v0 }
 0x41d   :  { %8174 = vmatprep.mubr.f32.mxu0 %v31422_v10 }
 0x420   :  { %8178 = vmatmul.mubr.f32.vlgmr.msra.gmra.mrb[16].mxu0 %v26400_v17 }
 0x421   :  { %8183 = vmatprep.mubr.f32.mxu0 %v31422_v10  ;;  %22804 = vmatpush1.bf16.msra.mxu0 %v22803_v30  ;;  %v8437_v30 = vand.u32 4294901760, %v7713_v59 }
 0x422   :  { %22806 = vmatprep.subr.bf16.mxu0 %v22805_v29 }
 0x423   :  { %v26597_v27 = vsub.f32 %v7713_v59, %v8437_v30 }
 0x424   :  { %8187 = vmatmul.mubr.f32.gmra.mrb[18].mxu0 %v26440_v7 }
 0x425   :  { %8192 = vmatprep.mubr.f32.mxu0 %v31422_v10  ;;  %22808 = vmatpush1.bf16.msra.mxu0 %v22807_v55  ;;  %v8443_v55 = vand.u32 4294901760, %v7718_v53 }
 0x426   :  { %22810 = vmatprep.subr.bf16.mxu0 %v26337_v3  ;;  %v8433_v3 = vand.u32 4294901760, %v7712_v32 }
 0x428   :  { %8196 = vmatmul.mubr.f32.gmra.mrb[20].mxu0 %v26461_v14  ;;  %v26553_v1 = vsub.f32 %v7712_v32, %v8433_v3  ;;  %v26555_v35 = vpack.c.bf16 %v8433_v3, %v8429_v31 }
 0x429   :  { %8201 = vmatprep.mubr.f32.mxu0 %v31422_v10 }
 0x42a   :  { %v8560_v18 = vand.u32 4294901760, %v26553_v1 }
 0x42c   :  { %8205 = vmatmul.mubr.f32.gmra.mrb[22].mxu0 %v26473_v46  ;;  %v8561_v50 = vsub.f32 %v26553_v1, %v8560_v18 }
 0x42d   :  { %8299 = vmatprep.mubr.f32.mxu0 %v31422_v10 }
 0x42e   :  { %v8562_v32 = vand.u32 4294901760, %v8561_v50 }
 0x430   :  { %8301 = vmatmul.mubr.f32.vlgmr.msra.gmra.mrb[16].mxu0 %v26348_v42 }
 0x431   :  { %8306 = vmatprep.mubr.f32.mxu0 %v31422_v10  ;;  %22812 = vmatpush1.bf16.msra.mxu0 %v26357_v22  ;;  %v7715_v22 = vsel %vm2689_vm3, %v26310_v21, %v7696_v41 }
 0x432   :  { %22814 = vmatprep.subr.bf16.mxu0 %v26397_v28  ;;  %v7716_v28 = vsel %vm2689_vm3, %v26318_v63, %v7698_v26  ;;  %v8431_v21 = vand.u32 4294901760, %v7715_v22  ;;  %v7717_v63 = vsel %vm2689_vm3, %v26362_v33, %v7700_v38 }
 0x433   :  { %v8435_v12 = vand.u32 4294901760, %v7716_v28  ;;  %v8439_v19 = vand.u32 4294901760, %v7717_v63 }
 0x434   :  { %8308 = vmatmul.mubr.f32.gmra.mrb[18].mxu0 %v26378_v16  ;;  %v26590_v29 = vsub.f32 %v7715_v22, %v8431_v21  ;;  %v26611_v22 = vsub.f32 %v7718_v53, %v8443_v55 }
 0x435   :  { %8313 = vmatprep.mubr.f32.mxu0 %v31422_v10  ;;  %22816 = vmatpush1.bf16.msra.mxu0 %v26424_v9  ;;  %v7714_v9 = vsel %vm2689_vm3, %v7702_v57, %v26395_v61  ;;  %v8549_v61 = vsub.f32 %v26551_v58, %v8548_v56  ;;  %v26592_v45 = vpack.c.bf16 %v8435_v12, %v8431_v21 }
 0x436   :  { %22818 = vmatprep.subr.bf16.mxu0 %v26555_v35  ;;  %v8441_v13 = vand.u32 4294901760, %v7714_v9  ;;  %v26595_v33 = vsub.f32 %v7716_v28, %v8435_v12  ;;  %v8554_v31 = vand.u32 4294901760, %v26590_v29  ;;  %v26607_v38 = vsub.f32 %v7717_v63, %v8439_v19 }
 0x437   :  { %v8550_v20 = vand.u32 4294901760, %v8549_v61  ;;  %v26609_v57 = vpack.c.bf16 %v8443_v55, %v8439_v19 }
 0x438   :  { %8315 = vmatmul.mubr.f32.gmra.mrb[20].mxu0 %v26412_v36  ;;  %v26599_v41 = vsub.f32 %v7714_v9, %v8441_v13  ;;  %v26601_v26 = vpack.c.bf16 %v8441_v13, %v8437_v30  ;;  %v8566_v3 = vand.u32 4294901760, %v26595_v33  ;;  %v31212_v9 = vand.u32 4294901760, %v26597_v27 }
 0x439   :  { %8320 = vmatprep.mubr.f32.mxu0 %v31422_v10  ;;  %v22825_v59 = vpack.c.bf16 %v8562_v32, %v8550_v20  ;;  %v8555_v21 = vsub.f32 %v26590_v29, %v8554_v31  ;;  %v31213_v63 = vand.u32 4294901760, %v26607_v38  ;;  %v8590_v30 = vand.u32 4294901760, %v26611_v22 }
 0x43a   :  { %v31211_v28 = vand.u32 4294901760, %v26599_v41  ;;  %v8567_v12 = vsub.f32 %v26595_v33, %v8566_v3  ;;  %v8573_v53 = vsub.f32 %v26597_v27, %v31212_v9 }
 0x43b   :  { %v8579_v50 = vsub.f32 %v26607_v38, %v31213_v63  ;;  %v8591_v19 = vsub.f32 %v26611_v22, %v8590_v30  ;;  %v8556_v55 = vand.u32 4294901760, %v8555_v21  ;;  %v22833_v21 = vpack.c.bf16 %v26553_v1, %v26551_v58 }
 0x43c   :  { %8322 = vmatmul.mubr.f32.gmra.mrb[22].mxu0 %v26445_v37  ;;  %v8585_v13 = vsub.f32 %v26599_v41, %v31211_v28  ;;  %v8568_v61 = vand.u32 4294901760, %v8567_v12  ;;  %v8574_v20 = vand.u32 4294901760, %v8573_v53  ;;  %v9135_v1 = vand.u32 4294901760, %v25998_v34 }
 0x43d   :  { %8400 = vmatprep.mubr.f32.mxu0 %v31422_v10  ;;  %v8580_v12 = vand.u32 4294901760, %v8579_v50 }
 0x43e   :  { %v8586_v32 = vand.u32 4294901760, %v8585_v13  ;;  %v22827_v28 = vpack.c.bf16 %v8568_v61, %v8556_v55 }
 0x440   :  { %8402 = vmatmul.mubr.f32.vlgmr.msra.gmra.mrb[16].mxu0 %v26348_v42  ;;  %v22829_v9 = vpack.c.bf16 %v8586_v32, %v8574_v20  ;;  %v7673_v20 = vld [vmem:[#allocation2 + $0x110] sm:$0xff] }
 0x441   :  { %8407 = vmatprep.mubr.f32.mxu0 %v31422_v10  ;;  %22820 = vmatpush1.bf16.msra.mxu0 %v26592_v45 }
 0x442   :  { %22822 = vmatprep.subr.bf16.mxu0 %v26601_v26 }
 0x444   :  { %8409 = vmatmul.mubr.f32.gmra.mrb[18].mxu0 %v26378_v16 }
 0x445   :  { %8414 = vmatprep.mubr.f32.mxu0 %v31422_v10  ;;  %22824 = vmatpush1.bf16.msra.mxu0 %v26609_v57 }
 0x446   :  { %22826 = vmatprep.subr.bf16.mxu0 %v22825_v59  ;;  %v8592_v59 = vand.u32 4294901760, %v8591_v19 }
 0x448   :  { %8416 = vmatmul.mubr.f32.gmra.mrb[20].mxu0 %v26412_v36  ;;  %v22831_v63 = vpack.c.bf16 %v8592_v59, %v8580_v12 }
 0x449   :  { %8421 = vmatprep.mubr.f32.mxu0 %v31422_v10 }
 0x44c   :  { %8423 = vmatmul.mubr.f32.gmra.mrb[22].mxu0 %v26445_v37 }
 0x44d   :  { %8501 = vmatprep.mubr.f32.mxu0 %v31422_v10 }
 0x450   :  { %8507 = vmatmul.mubr.f32.vlgmr.msra.gmra.mrb[24].mxu0 %v26456_v51  ;;  %v22835_v51 = vpack.c.bf16 %v26595_v33, %v26590_v29  ;;  %v9133_v29 = vand.u32 4294901760, %v25971_v23  ;;  %v9139_v33 = vand.u32 4294901760, %v26049_v8 }
 0x451   :  { %8512 = vmatprep.mubr.f32.mxu0 %v31422_v10  ;;  %22828 = vmatpush1.bf16.msra.mxu0 %v22827_v28  ;;  %v22837_v28 = vpack.c.bf16 %v26599_v41, %v26597_v27 }
 0x452   :  { %22830 = vmatprep.subr.bf16.mxu0 %v22829_v9  ;;  %v26756_v61 = vsub.f32 %v26049_v8, %v9139_v33 }
 0x454   :  { %8518 = vmatmul.mubr.f32.gmra.mrb[26].mxu0 %v26468_v62  ;;  %v22839_v62 = vpack.c.bf16 %v26611_v22, %v26607_v38  ;;  %v9145_v22 = vand.u32 4294901760, %v26041_v24 }
 0x455   :  { %8523 = vmatprep.mubr.f32.mxu0 %v31422_v10  ;;  %22832 = vmatpush1.bf16.msra.mxu0 %v22831_v63 }
 0x456   :  { %22834 = vmatprep.subr.bf16.mxu0 %v22833_v21 }
 0x458   :  { %8529 = vmatmul.mubr.f32.gmra.mrb[28].mxu0 %v26479_v49  ;;  %v22849_v49 = vpack.c.bf16 %v8560_v18, %v8548_v56 }
 0x459   :  { %8534 = vmatprep.mubr.f32.mxu0 %v31422_v10 }
 0x45c   :  { %8540 = vmatmul.mubr.f32.gmra.mrb[30].mxu0 %v26485_v54  ;;  %v31477_v54 = vand.u32 4294901760, %v26599_v41 }
 0x45d   :  { %8650 = vmatprep.mubr.f32.mxu0 %v31422_v10 }
 0x460   :  { %8652 = vmatmul.mubr.f32.vlgmr.msra.gmra.mrb[24].mxu0 %v26348_v42 }
 0x461   :  { %8657 = vmatprep.mubr.f32.mxu0 %v31422_v10  ;;  %22836 = vmatpush1.bf16.msra.mxu0 %v22835_v51 }
 0x462   :  { %22838 = vmatprep.subr.bf16.mxu0 %v22837_v28  ;;  %v26776_v28 = vsub.f32 %v26041_v24, %v9145_v22 }
 0x464   :  { %8659 = vmatmul.mubr.f32.gmra.mrb[26].mxu0 %v26378_v16 }
 0x465   :  { %8664 = vmatprep.mubr.f32.mxu0 %v31422_v10  ;;  %22840 = vmatpush1.bf16.msra.mxu0 %v22839_v62 }
 0x466   :  { %22842 = vmatprep.subr.bf16.mxu0 %v26555_v35 }
 0x468   :  { %8666 = vmatmul.mubr.f32.gmra.mrb[28].mxu0 %v26412_v36 }
 0x469   :  { %8671 = vmatprep.mubr.f32.mxu0 %v31422_v10 }
 0x46c   :  { %8673 = vmatmul.mubr.f32.gmra.mrb[30].mxu0 %v26445_v37 }
 0x46d   :  { %8759 = vmatprep.mubr.f32.mxu0 %v31422_v10 }
 0x470   :  { %8762 = vmatmul.mubr.f32.vlgmr.msra.gmra.mrb[24].mxu0 %v26373_v43  ;;  %v22851_v43 = vpack.c.bf16 %v8566_v3, %v8554_v31 }
 0x471   :  { %8767 = vmatprep.mubr.f32.mxu0 %v31422_v10  ;;  %22844 = vmatpush1.bf16.msra.mxu0 %v26592_v45 }
 0x472   :  { %22846 = vmatprep.subr.bf16.mxu0 %v26601_v26 }
 0x474   :  { %8770 = vmatmul.mubr.f32.gmra.mrb[26].mxu0 %v26406_v4  ;;  %v31476_v4 = vand.u32 4294901760, %v26597_v27  ;;  %v9143_v27 = vand.u32 4294901760, %v26058_v39 }
 0x475   :  { %8775 = vmatprep.mubr.f32.mxu0 %v31422_v10  ;;  %22848 = vmatpush1.bf16.msra.mxu0 %v26609_v57 }
 0x476   :  { %22850 = vmatprep.subr.bf16.mxu0 %v22849_v49  ;;  %v22853_v58 = vpack.c.bf16 %v31477_v54, %v31476_v4  ;;  %v26752_v53 = vpack.c.bf16 %v9143_v27, %v9139_v33  ;;  %v26759_v50 = vsub.f32 %v26058_v39, %v9143_v27  ;;  %v7674_v54 = vld [vmem:[#allocation2 + $0x178] sm:$0xff] }
 0x478   :  { %8778 = vmatmul.mubr.f32.gmra.mrb[28].mxu0 %v26443_v6  ;;  %v31478_v6 = vand.u32 4294901760, %v26607_v38  ;;  %v26740_v38 = vsub.f32 %v25971_v23, %v9133_v29  ;;  %v31216_v4 = vand.u32 4294901760, %v26759_v50 }
 0x479   :  { %8783 = vmatprep.mubr.f32.mxu0 %v31422_v10 }
 0x47a   :  { %v31219_v21 = vand.u32 4294901760, %v26740_v38  ;;  %v9287_v33 = vsub.f32 %v26759_v50, %v31216_v4 }
 0x47c   :  { %8786 = vmatmul.mubr.f32.gmra.mrb[30].mxu0 %v26464_v0  ;;  %v22855_v0 = vpack.c.bf16 %v8590_v30, %v31478_v6 }
 0x47d   :  { %8864 = vmatprep.mubr.f32.mxu0 %v31422_v10 }
 0x480   :  { %8868 = vmatmul.mubr.f32.vlgmr.msra.gmra.mrb[24].mxu0 %v26400_v17  ;;  %v9131_v17 = vand.u32 4294901760, %v25989_v2 }
 0x481   :  { %8873 = vmatprep.mubr.f32.mxu0 %v31422_v10  ;;  %22852 = vmatpush1.bf16.msra.mxu0 %v22851_v43  ;;  %v31217_v43 = vand.u32 4294901760, %v26756_v61 }
 0x482   :  { %22854 = vmatprep.subr.bf16.mxu0 %v22853_v58 }
 0x484   :  { %8877 = vmatmul.mubr.f32.gmra.mrb[26].mxu0 %v26440_v7  ;;  %v26711_v7 = vpack.c.bf16 %v9135_v1, %v9131_v17 }
 0x485   :  { %8882 = vmatprep.mubr.f32.mxu0 %v31422_v10  ;;  %22856 = vmatpush1.bf16.msra.mxu0 %v22855_v0 }
 0x486   :  { %22858 = vmatprep.subr.bf16.mxu0 %v26555_v35  ;;  %v7671_v35 = vld [vmem:[#allocation2 + $0x40] sm:$0xff] }
 0x487   :  { %v9120_v41 = vsel %vm738_vm2, %v7671_v35, 0 }
 0x488   :  { %8886 = vmatmul.mubr.f32.gmra.mrb[28].mxu0 %v26461_v14  ;;  %v26714_v14 = vsub.f32 %v25989_v2, %v9131_v17  ;;  %v26744_v9 = vand.u32 4294901760, %v9120_v41  ;;  %v9257_v17 = vsub.f32 %v26740_v38, %v31219_v21 }
 0x489   :  { %8891 = vmatprep.mubr.f32.mxu0 %v31422_v10 }
 0x48a   :  { %v31221_v18 = vand.u32 4294901760, %v26714_v14  ;;  %v26765_v59 = vsub.f32 %v9120_v41, %v26744_v9 }
 0x48c   :  { %8895 = vmatmul.mubr.f32.gmra.mrb[30].mxu0 %v26473_v46  ;;  %v26717_v46 = vsub.f32 %v25998_v34, %v9135_v1  ;;  %v9251_v31 = vsub.f32 %v26714_v14, %v31221_v18  ;;  %v26785_v58 = vand.u32 4294901760, %v26765_v59  ;;  %v9129_v1 = vsel %vm738_vm2, %v7674_v54, 0 }
 0x48d   :  { %8989 = vmatprep.mubr.f32.mxu0 %v31422_v10 }
 0x48e   :  { %v31220_v56 = vand.u32 4294901760, %v26717_v46  ;;  %v9252_v19 = vand.u32 4294901760, %v9251_v31  ;;  %v9207_v27 = vsub.f32 %v26765_v59, %v26785_v58  ;;  %v26818_v31 = vand.u32 4294901760, %v9129_v1 }
 0x490   :  { %8991 = vmatmul.mubr.f32.vlgmr.msra.gmra.mrb[24].mxu0 %v26348_v42  ;;  %v9263_v3 = vsub.f32 %v26717_v46, %v31220_v56 }
 0x491   :  { %8996 = vmatprep.mubr.f32.mxu0 %v31422_v10  ;;  %22860 = vmatpush1.bf16.msra.mxu0 %v26592_v45  ;;  %v9137_v45 = vand.u32 4294901760, %v25986_v11 }
 0x492   :  { %22862 = vmatprep.subr.bf16.mxu0 %v26601_v26  ;;  %v7672_v26 = vld [vmem:[#allocation2 + $0xa8] sm:$0xff]  ;;  %v9264_v55 = vand.u32 4294901760, %v9263_v3  ;;  %v9258_v3 = vand.u32 4294901760, %v9257_v17 }
 0x493   :  { %v26747_v63 = vpack.c.bf16 %v9137_v45, %v9133_v29  ;;  %v26750_v30 = vsub.f32 %v25986_v11, %v9137_v45  ;;  %v9123_v13 = vsel %vm738_vm2, %v7672_v26, 0  ;;  %v31214_v29 = vand.u32 4294901760, %v26776_v28 }
 0x494   :  { %8998 = vmatmul.mubr.f32.gmra.mrb[26].mxu0 %v26378_v16  ;;  %v26767_v12 = vand.u32 4294901760, %v9123_v13  ;;  %v22873_v49 = vpack.c.bf16 %v9264_v55, %v9252_v19  ;;  %v9275_v45 = vsub.f32 %v26756_v61, %v31217_v43  ;;  %v9288_v19 = vand.u32 4294901760, %v9287_v33 }
 0x495   :  { %9003 = vmatprep.mubr.f32.mxu0 %v31422_v10  ;;  %22864 = vmatpush1.bf16.msra.mxu0 %v26609_v57  ;;  %v9141_v57 = vand.u32 4294901760, %v26034_v52  ;;  %v31218_v62 = vand.u32 4294901760, %v26750_v30  ;;  %v26828_v55 = vand.u32 4294901760, %v9207_v27 }
 0x496   :  { %22866 = vmatprep.subr.bf16.mxu0 %v26711_v7  ;;  %v26788_v6 = vsub.f32 %v9123_v13, %v26767_v12  ;;  %v9276_v13 = vand.u32 4294901760, %v9275_v45 }
 0x497   :  { %v26762_v32 = vpack.c.bf16 %v9145_v22, %v9141_v57  ;;  %v26773_v51 = vsub.f32 %v26034_v52, %v9141_v57 }
 0x498   :  { %9005 = vmatmul.mubr.f32.gmra.mrb[28].mxu0 %v26412_v36  ;;  %v26813_v41 = vand.u32 4294901760, %v26788_v6  ;;  %v22877_v45 = vpack.c.bf16 %v9288_v19, %v9276_v13 }
 0x499   :  { %9010 = vmatprep.mubr.f32.mxu0 %v31422_v10  ;;  %v31215_v35 = vand.u32 4294901760, %v26773_v51 }
 0x49b   :  { %v9281_v22 = vsub.f32 %v26773_v51, %v31215_v35 }
 0x49c   :  { %9012 = vmatmul.mubr.f32.gmra.mrb[30].mxu0 %v26445_v37 }
 0x49d   :  { %9090 = vmatprep.mubr.f32.mxu0 %v31422_v10  ;;  %v9282_v17 = vand.u32 4294901760, %v9281_v22 }
 0x4a0   :  { %9092 = vmatmul.mubr.f32.vlgmr.msra.gmra.mrb[24].mxu0 %v26348_v42  ;;  %v9126_v42 = vsel %vm738_vm2, %v7673_v20, 0  ;;  %v9218_v20 = vsub.f32 %v26788_v6, %v26813_v41 }
 0x4a1   :  { %9097 = vmatprep.mubr.f32.mxu0 %v31422_v10  ;;  %22868 = vmatpush1.bf16.msra.mxu0 %v26747_v63  ;;  %v26790_v0 = vand.u32 4294901760, %v9126_v42 }
 0x4a2   :  { %22870 = vmatprep.subr.bf16.mxu0 %v26752_v53 }
 0x4a3   :  { %v26816_v26 = vsub.f32 %v9126_v42, %v26790_v0 }
 0x4a4   :  { %9099 = vmatmul.mubr.f32.gmra.mrb[26].mxu0 %v26378_v16  ;;  %v9269_v16 = vsub.f32 %v26750_v30, %v31218_v62 }
 0x4a5   :  { %9104 = vmatprep.mubr.f32.mxu0 %v31422_v10  ;;  %22872 = vmatpush1.bf16.msra.mxu0 %v26762_v32  ;;  %v26833_v42 = vand.u32 4294901760, %v26816_v26 }
 0x4a6   :  { %22874 = vmatprep.subr.bf16.mxu0 %v22873_v49  ;;  %v9270_v57 = vand.u32 4294901760, %v9269_v16  ;;  %v26836_v49 = vsub.f32 %v9129_v1, %v26818_v31 }
 0x4a7   :  { %v9229_v33 = vsub.f32 %v26816_v26, %v26833_v42 }
 0x4a8   :  { %9106 = vmatmul.mubr.f32.gmra.mrb[28].mxu0 %v26412_v36  ;;  %v9293_v36 = vsub.f32 %v26776_v28, %v31214_v29  ;;  %v22875_v54 = vpack.c.bf16 %v9270_v57, %v9258_v3  ;;  %v26845_v27 = vand.u32 4294901760, %v26836_v49  ;;  %v22881_v3 = vpack.c.bf16 %v26717_v46, %v26714_v14 }
 0x4a9   :  { %9111 = vmatprep.mubr.f32.mxu0 %v31422_v10  ;;  %v26852_v13 = vand.u32 4294901760, %v9229_v33 }
 0x4aa   :  { %v9294_v16 = vand.u32 4294901760, %v9293_v36  ;;  %v9240_v19 = vsub.f32 %v26836_v49, %v26845_v27 }
 0x4ab   :  { %31480 = vst [vmem:[#allocation35_spill] sm:$0xff] %v26852_v13 }
 0x4ac   :  { %9113 = vmatmul.mubr.f32.gmra.mrb[30].mxu0 %v26445_v37  ;;  %v26840_v37 = vand.u32 4294901760, %v9218_v20  ;;  %v22879_v1 = vpack.c.bf16 %v9294_v16, %v9282_v17  ;;  %v26864_v33 = vand.u32 4294901760, %v9240_v19 }
 0x4ad   :  { %9203 = vmatprep.mubr.f32.mxu0 %v31422_v10 }
 0x4ae   :  { %31479 = vst [vmem:[#allocation34_spill] sm:$0xff] %v26840_v37  ;;  %31481 = vst [vmem:[#allocation36_spill] sm:$0xff] %v26864_v33 }
 0x4b0   :  { %9209 = vmatmul.mubr.f32.vlgmr.msra.gmra.mrb[16].mxu0 %v26828_v55 }
 0x4b1   :  { %9214 = vmatprep.mubr.f32.mxu0 %v31422_v10  ;;  %22876 = vmatpush1.bf16.msra.mxu0 %v22875_v54 }
 0x4b2   :  { %22878 = vmatprep.subr.bf16.mxu0 %v22877_v45 }
 0x4b3   :  { %v4113_v57 = vpop.f32.mrb[8].mxu0 }
 0x4b4   :  { %v23833_v22 = vadd.f32 %v4113_v57, %v25919_v48  ;;  %v4115_v36 = vpop.f32.mrb[9].mxu0  ;;  %9220 = vmatmul.mubr.f32.gmra.mrb[18].mxu0 %v26840_v37 }
 0x4b5   :  { %v23834_v20 = vadd.f32 %v4115_v36, %v25919_v48  ;;  %9225 = vmatprep.mubr.f32.mxu0 %v31422_v10  ;;  %22880 = vmatpush1.bf16.msra.mxu0 %v22879_v1 }
 0x4b6   :  { %v26858_v54 = vmax.f32 %v23833_v22, 0.0  ;;  %22882 = vmatprep.subr.bf16.mxu0 %v22881_v3 }
 0x4b7   :  { %v26860_v17 = vmax.f32 %v23834_v20, 0.0  ;;  %v4120_v16 = vpop.f32.mrb[10].mxu0 }
 0x4b8   :  { %v23835_v45 = vadd.f32 %v4120_v16, %v25916_v47  ;;  %v4122_v57 = vpop.f32.mrb[11].mxu0  ;;  %9231 = vmatmul.mubr.f32.gmra.mrb[20].mxu0 %v26852_v13  ;;  %v4157_v1 = vand.u32 4294901760, %v26858_v54 }
 0x4b9   :  { %v23836_v29 = vadd.f32 %v4122_v57, %v25916_v47  ;;  %9236 = vmatprep.mubr.f32.mxu0 %v31422_v10  ;;  %v4155_v48 = vand.u32 4294901760, %v26860_v17 }
 0x4ba   :  { %v26870_v22 = vmax.f32 %v23835_v45, 0.0  ;;  %v22883_v45 = vpack.c.bf16 %v26750_v30, %v26740_v38  ;;  %v26886_v57 = vsub.f32 %v26858_v54, %v4157_v1 }
 0x4bb   :  { %v26872_v3 = vmax.f32 %v23836_v29, 0.0  ;;  %v4127_v36 = vpop.f32.mrb[12].mxu0  ;;  %v26875_v20 = vsub.f32 %v26860_v17, %v4155_v48 }
 0x4bc   :  { %v4161_v16 = vand.u32 4294901760, %v26870_v22  ;;  %v23837_v19 = vadd.f32 %v4127_v36, %v25927_v60  ;;  %v4129_v35 = vpop.f32.mrb[13].mxu0  ;;  %9242 = vmatmul.mubr.f32.gmra.mrb[22].mxu0 %v26864_v33  ;;  %v22885_v36 = vpack.c.bf16 %v26759_v50, %v26756_v61 }
 0x4bd   :  { %v23838_v47 = vadd.f32 %v4129_v35, %v25927_v60  ;;  %9352 = vmatprep.mubr.f32.mxu0 %v31422_v10  ;;  %v4159_v29 = vand.u32 4294901760, %v26872_v3 }
 0x4be   :  { %v26889_v4 = vsub.f32 %v26870_v22, %v4161_v16  ;;  %v26891_v43 = vmax.f32 %v23837_v19, 0.0  ;;  %v26906_v19 = vpack.c.bf16 %v4161_v16, %v4157_v1 }
 0x4bf   :  { %v26895_v62 = vmax.f32 %v23838_v47, 0.0  ;;  %v4134_v60 = vpop.f32.mrb[14].mxu0  ;;  %v26897_v35 = vpack.c.bf16 %v4159_v29, %v4155_v48  ;;  %v26900_v21 = vsub.f32 %v26872_v3, %v4159_v29  ;;  %v22887_v48 = vpack.c.bf16 %v26776_v28, %v26773_v51 }
 0x4c0   :  { %v4165_v18 = vand.u32 4294901760, %v26891_v43  ;;  %v23839_v25 = vadd.f32 %v4134_v60, %v25932_v15  ;;  %v4136_v52 = vpop.f32.mrb[15].mxu0  ;;  %9354 = vmatmul.mubr.f32.vlgmr.msra.gmra.mrb[16].mxu0 %v26744_v9 }
 0x4c1   :  { %v23840_v47 = vadd.f32 %v4136_v52, %v25932_v15  ;;  %22884 = vmatpush1.bf16.msra.mxu0 %v22883_v45  ;;  %22530 = vmatprep.subr.bf16.mxu1 %v26897_v35  ;;  %v4163_v29 = vand.u32 4294901760, %v26895_v62  ;;  %v31231_v52 = vand.u32 4294901760, %v26889_v4  ;;  %v31482_v45 = vand.u32 4294901760, %v26875_v20 }
 0x4c2   :  { %v26915_v24 = vsub.f32 %v26891_v43, %v4165_v18  ;;  %v26917_v60 = vmax.f32 %v23839_v25, 0.0  ;;  %22532 = vmatpush1.bf16.msra.mxu1 %v26906_v19  ;;  %9359 = vmatprep.mubr.f32.mxu0 %v31422_v10  ;;  %v31483_v25 = vand.u32 4294901760, %v26900_v21 }
 0x4c3   :  { %v26923_v1 = vmax.f32 %v23840_v47, 0.0  ;;  %22886 = vmatprep.subr.bf16.mxu0 %v22885_v36  ;;  %v26926_v16 = vsub.f32 %v26895_v62, %v4163_v29  ;;  %v4242_v56 = vsub.f32 %v26875_v20, %v31482_v45  ;;  %v4260_v47 = vsub.f32 %v26889_v4, %v31231_v52 }
 0x4c4   :  { %v4254_v8 = vsub.f32 %v26900_v21, %v31483_v25  ;;  %v4169_v39 = vand.u32 4294901760, %v26917_v60  ;;  %9361 = vmatmul.mubr.f32.gmra.mrb[18].mxu0 %v26767_v12  ;;  %v31484_v25 = vand.u32 4294901760, %v26886_v57  ;;  %v31236_v2 = vand.u32 4294901760, %v26915_v24 }
 0x4c5   :  { %22888 = vmatpush1.bf16.msra.mxu0 %v22887_v48  ;;  %9366 = vmatprep.mubr.f32.mxu0 %v31422_v10  ;;  %v4167_v36 = vand.u32 4294901760, %v26923_v1  ;;  %v4243_v34 = vand.u32 4294901760, %v4242_v56  ;;  %v4261_v45 = vand.u32 4294901760, %v4260_v47 }
 0x4c6   :  { %v4255_v15 = vand.u32 4294901760, %v4254_v8  ;;  %v26943_v23 = vsub.f32 %v26917_v60, %v4169_v39  ;;  %22890 = vmatprep.subr.bf16.mxu0 %v26711_v7  ;;  %v4248_v11 = vsub.f32 %v26886_v57, %v31484_v25  ;;  %v26956_v8 = vpack.c.bf16 %v4169_v39, %v4165_v18 }
 0x4c7   :  { %v26950_v52 = vpack.c.bf16 %v4167_v36, %v4163_v29  ;;  %v26953_v48 = vsub.f32 %v26923_v1, %v4167_v36  ;;  %v31485_v25 = vand.u32 4294901760, %v26926_v16  ;;  %v4272_v39 = vsub.f32 %v26915_v24, %v31236_v2 }
 0x4c8   :  { %9368 = vmatmul.mubr.f32.gmra.mrb[20].mxu0 %v26790_v0  ;;  %v31237_v33 = vand.u32 4294901760, %v26943_v23  ;;  %v22537_v13 = vpack.c.bf16 %v4255_v15, %v4243_v34  ;;  %v4249_v56 = vand.u32 4294901760, %v4248_v11 }
 0x4c9   :  { %22534 = vmatprep.subr.bf16.mxu1 %v26950_v52  ;;  %9373 = vmatprep.mubr.f32.mxu0 %v31422_v10  ;;  %v4266_v29 = vsub.f32 %v26926_v16, %v31485_v25  ;;  %v4277_v36 = vand.u32 4294901760, %v26953_v48  ;;  %v31486_v25 = vld [vmem:[#allocation10_spill] sm:$0xff]  ;;  %v4273_v2 = vand.u32 4294901760, %v4272_v39  ;;  %v22549_v39 = vpack.c.bf16 %v26953_v48, %v26926_v16 }
 0x4ca   :  { %22536 = vmatpush1.bf16.msra.mxu1 %v26956_v8  ;;  %v4284_v18 = vsub.f32 %v26943_v23, %v31237_v33  ;;  %v22539_v15 = vpack.c.bf16 %v4261_v45, %v4249_v56  ;;  %v22545_v45 = vpack.c.bf16 %v26900_v21, %v26875_v20 }
 0x4cb   :  { %22538 = vmatprep.subr.bf16.mxu1 %v22537_v13  ;;  %v4278_v34 = vsub.f32 %v26953_v48, %v4277_v36  ;;  %v4267_v11 = vand.u32 4294901760, %v4266_v29  ;;  %v31487_v29 = vand.u32 4294901760, %v26714_v14  ;;  %v22551_v14 = vpack.c.bf16 %v26943_v23, %v26915_v24 }
 0x4cc   :  { %9375 = vmatmul.mubr.f32.gmra.mrb[22].mxu0 %v26818_v31  ;;  %v4285_v47 = vand.u32 4294901760, %v4284_v18  ;;  %v24973_v18 = vld [vmem:[%s31146_s4] sm:$0xff]  ;;  %v27073_v48 = vmul.f32 %v26917_v60, %v26917_v60 }
 0x4cd   :  { %4233 = vmatmul.mubr.f32.vlgmr.msra.gmra.mrb[4].mxu1 %v31486_v25  ;;  %9461 = vmatprep.mubr.f32.mxu0 %v31422_v10  ;;  %v4279_v37 = vand.u32 4294901760, %v4278_v34  ;;  %v31490_v34 = vld [vmem:[#allocation8_spill] sm:$0xff] }
 0x4ce   :  { %22540 = vmatpush1.bf16.msra.mxu1 %v22539_v15  ;;  %4343 = vmatprep.mubr.f32.mxu1 %v31422_v10  ;;  %v22543_v13 = vpack.c.bf16 %v4285_v47, %v4273_v2  ;;  %v22547_v2 = vpack.c.bf16 %v26889_v4, %v26886_v57  ;;  %v31491_v15 = vand.u32 4294901760, %v26740_v38  ;;  %v31492_v47 = vand.u32 4294901760, %v26750_v30 }
 0x4cf   :  { %v22541_v33 = vpack.c.bf16 %v4279_v37, %v4267_v11  ;;  %v31488_v37 = vand.u32 4294901760, %v26717_v46  ;;  %v25046_v46 = vmov 4   ;;  %v27030_v30 = vmul.f32 %v26872_v3, %v26872_v3 }
 0x4d0   :  { %9464 = vmatmul.mubr.f32.vlgmr.msra.gmra.mrb[16].mxu0 %v26765_v59  ;;  %24905 = vset.pattern.permute.xlu1 %v25046_v46  ;;  %v22899_v11 = vpack.c.bf16 %v31492_v47, %v31491_v15  ;;  %v31501_v15 = vld [vmem:[#allocation9_spill] sm:$0xff]  ;;  %v31502_v47 = vand.u32 4294901760, %v26926_v16  ;;  %v27069_v16 = vmul.f32 %v26895_v62, %v26895_v62 }
 0x4d1   :  { %22892 = vmatpush1.bf16.msra.mxu0 %v26747_v63  ;;  %22542 = vmatprep.subr.bf16.mxu1 %v22541_v33  ;;  %v22897_v56 = vpack.c.bf16 %v31488_v37, %v31487_v29  ;;  %v31489_v33 = vmov 0.03125   ;;  %v31494_v29 = vand.u32 4294901760, %v26759_v50  ;;  %v31498_v50 = vand.u32 4294901760, %v26776_v28 }
 0x4d2   :  { %22894 = vmatprep.subr.bf16.mxu0 %v26752_v53  ;;  %22544 = vmatpush1.bf16.msra.mxu1 %v22543_v13  ;;  %v25047_v13 = vmov 5  }
 0x4d3   :  { %22546 = vmatprep.subr.bf16.mxu1 %v22545_v45  ;;  %9469 = vmatprep.mubr.f32.mxu0 %v31422_v10  ;;  %v31493_v45 = vand.u32 4294901760, %v26756_v61  ;;  %v31497_v61 = vand.u32 4294901760, %v26773_v51  ;;  %v31500_v51 = vand.u32 4294901760, %v26889_v4 }
 0x4d4   :  { %9472 = vmatmul.mubr.f32.gmra.mrb[18].mxu0 %v26788_v6  ;;  %5292 = vperm.xlu1 %24905, %v24973_v18  }
 0x4d5   :  { %22896 = vmatpush1.bf16.msra.mxu0 %v26762_v32  ;;  %22231 = vmatmul.mubr.msk.f32.vlgmr.msra.gmra.mrb[4].mxu1 %vm738_vm2, %v31489_v33  ;;  %v22901_v37 = vpack.c.bf16 %v31494_v29, %v31493_v45  ;;  %v4710_v45 = vand.u32 4294901760, %v27030_v30  ;;  %v27059_v29 = vmul.f32 %v26923_v1, %v26923_v1 }
 0x4d6   :  { %22898 = vmatprep.subr.bf16.mxu0 %v22897_v56  ;;  %22548 = vmatpush1.bf16.msra.mxu1 %v22547_v2  ;;  %v31495_v56 = vand.u32 4294901760, %v26875_v20  ;;  %v31496_v2 = vand.u32 4294901760, %v26900_v21  ;;  %v4699_v20 = vmul.f32 %v26860_v17, %v26860_v17  ;;  %v24974_v21 = vld [vmem:[%s31146_s4 + $0x8] sm:$0xff] }
 0x4d7   :  { %22550 = vmatprep.subr.bf16.mxu1 %v22549_v39  ;;  %9477 = vmatprep.mubr.f32.mxu0 %v31422_v10  ;;  %v22903_v39 = vpack.c.bf16 %v31498_v50, %v31497_v61  ;;  %v27089_v61 = vmul.f32 %v26891_v43, %v26891_v43 }
 0x4d8   :  { %9480 = vmatmul.mubr.f32.gmra.mrb[20].mxu0 %v26816_v26  ;;  %4431 = vmatprep.mubr.f32.mxu1 %v31422_v10  ;;  %v22561_v38 = vpack.c.bf16 %v31496_v2, %v31495_v56  ;;  %v4706_v4 = vand.u32 4294901760, %v4699_v20  ;;  %v27084_v2 = vsub.f32 %v27030_v30, %v4710_v45  ;;  %v4714_v30 = vand.u32 4294901760, %v27069_v16 }
 0x4d9   :  { %9485 = vmatprep.mubr.f32.mxu0 %v31422_v10  ;;  %24906 = vset.pattern.permute.xlu0 %v25046_v46 }
 0x4da   :  { %22552 = vmatpush1.bf16.msra.mxu1 %v22551_v14  ;;  %24907 = vset.pattern.permute.xlu1 %v25047_v13  ;;  %v27044_v14 = vmul.f32 %v26870_v22, %v26870_v22  ;;  %v27096_v50 = vsub.f32 %v4699_v20, %v4706_v4  ;;  %v31242_v20 = vand.u32 4294901760, %v27084_v2 }
 0x4db   :  { %22554 = vmatprep.subr.bf16.mxu1 %v26897_v35  ;;  %5316 = vperm.xlu1 %24907, %v24973_v18   ;;  %v31499_v18 = vand.u32 4294901760, %v26886_v57  ;;  %v27063_v57 = vmul.f32 %v26858_v54, %v26858_v54 }
 0x4dc   :  { %9488 = vmatmul.mubr.f32.gmra.mrb[22].mxu0 %v26836_v49  ;;  %5296 = vperm.xlu0 %24906, %v24974_v21   ;;  %v4712_v56 = vand.u32 4294901760, %v27044_v14 }
 0x4dd   :  { %4434 = vmatmul.mubr.f32.vlgmr.msra.gmra.mrb[4].mxu1 %v31490_v34  ;;  %9566 = vmatprep.mubr.f32.mxu0 %v31422_v10  ;;  %v22563_v28 = vpack.c.bf16 %v31500_v51, %v31499_v18  ;;  %v9821_v51 = vand.u32 4294901760, %v26011_v40 }
 0x4de   :  { %22556 = vmatpush1.bf16.msra.mxu1 %v26906_v19  ;;  %4512 = vmatprep.mubr.f32.mxu1 %v31422_v10 }
 0x4df   :  { %22558 = vmatprep.subr.bf16.mxu1 %v26950_v52  ;;  %5320 = vperm.xlu1 %24907, %v24974_v21   ;;  %v4720_v21 = vand.u32 4294901760, %v27073_v48 }
 0x4e0   :  { %9570 = vmatmul.mubr.f32.vlgmr.msra.gmra.mrb[16].mxu0 %v26785_v58 }
 0x4e1   :  { %22900 = vmatpush1.bf16.msra.mxu0 %v22899_v11  ;;  %9575 = vmatprep.mubr.f32.mxu0 %v31422_v10  ;;  %v22565_v11 = vpack.c.bf16 %v4277_v36, %v31502_v47  ;;  %v31503_v36 = vand.u32 4294901760, %v26915_v24  ;;  %v24975_v24 = vld [vmem:[%s31146_s4 + $0x10] sm:$0xff]  ;;  %v31244_v47 = vand.u32 4294901760, %v27096_v50 }
 0x4e2   :  { %22902 = vmatprep.subr.bf16.mxu0 %v22901_v37  ;;  %22560 = vmatpush1.bf16.msra.mxu1 %v26956_v8  ;;  %v31504_v37 = vand.u32 4294901760, %v26943_v23  ;;  %v4708_v23 = vand.u32 4294901760, %v27063_v57 }
 0x4e3   :  { %22562 = vmatprep.subr.bf16.mxu1 %v22561_v38  ;;  %v4718_v38 = vand.u32 4294901760, %v27059_v29  ;;  %24908 = vset.pattern.permute.xlu1 %v25046_v46  ;;  %v24976_v46 = vld [vmem:[%s31146_s4 + $0x18] sm:$0xff] }
 0x4e4   :  { %9579 = vmatmul.mubr.f32.gmra.mrb[18].mxu0 %v26813_v41  ;;  %5300 = vperm.xlu0 %24906, %v24975_v24   ;;  %v27117_v18 = vsub.f32 %v27063_v57, %v4708_v23  ;;  %v4805_v57 = vsub.f32 %v27084_v2, %v31242_v20 }
 0x4e5   :  { %22904 = vmatpush1.bf16.msra.mxu0 %v22903_v39  ;;  %4516 = vmatmul.mubr.f32.vlgmr.msra.gmra.mrb[4].mxu1 %v31501_v15  ;;  %v27104_v39 = vsub.f32 %v27044_v14, %v4712_v56  ;;  %v4716_v14 = vand.u32 4294901760, %v27089_v61 }
 0x4e6   :  { %22906 = vmatprep.subr.bf16.mxu0 %v26711_v7  ;;  %22564 = vmatpush1.bf16.msra.mxu1 %v22563_v28  ;;  %v22567_v7 = vpack.c.bf16 %v31504_v37, %v31503_v36  ;;  %v27123_v28 = vsub.f32 %v27069_v16, %v4714_v30  ;;  %v27162_v36 = vpack.c.bf16 %v4712_v56, %v4708_v23 }
 0x4e7   :  { %22566 = vmatprep.subr.bf16.mxu1 %v22565_v11  ;;  %9584 = vmatprep.mubr.f32.mxu0 %v31422_v10  ;;  %v27130_v11 = vsub.f32 %v27073_v48, %v4720_v21  ;;  %v27145_v48 = vsub.f32 %v27089_v61, %v4716_v14  ;;  %v27171_v61 = vpack.c.bf16 %v4718_v38, %v4714_v30 }
 0x4e8   :  { %9588 = vmatmul.mubr.f32.gmra.mrb[20].mxu0 %v26833_v42  ;;  %4610 = vmatprep.mubr.f32.mxu1 %v31422_v10 }
 0x4e9   :  { %9593 = vmatprep.mubr.f32.mxu0 %v31422_v10  ;;  %5304 = vperm.xlu1 %24908, %v24976_v46  }
 0x4ea   :  { %22568 = vmatpush1.bf16.msra.mxu1 %v22567_v7  ;;  %24909 = vset.pattern.permute.xlu0 %v25047_v13  ;;  %v31243_v7 = vand.u32 4294901760, %v27130_v11 }
 0x4eb   :  { %22570 = vmatprep.subr.bf16.mxu1 %v26897_v35  ;;  %v27111_v35 = vsub.f32 %v27059_v29, %v4718_v38  ;;  %v31239_v29 = vand.u32 4294901760, %v27104_v39  ;;  %5324 = vperm.xlu0 %24909, %v24975_v24   ;;  %v4806_v24 = vand.u32 4294901760, %v4805_v57 }
 0x4ec   :  { %9597 = vmatmul.mubr.f32.gmra.mrb[22].mxu0 %v26845_v27  ;;  %v4835_v57 = vsub.f32 %v27130_v11, %v31243_v7  ;;  %v31506_v7 = vld [vmem:[#allocation28_spill] sm:$0xff] }
 0x4ed   :  { %22232 = vmatmul.mubr.msk.f32.vlgmr.msra.gmra.mrb[4].mxu1 %vm738_vm2, %v31489_v33  ;;  %9691 = vmatprep.mubr.f32.mxu0 %v31422_v10  ;;  %v31238_v16 = vand.u32 4294901760, %v27111_v35  ;;  %v4811_v37 = vsub.f32 %v27104_v39, %v31239_v29 }
 0x4ee   :  { %22572 = vmatpush1.bf16.msra.mxu1 %v26906_v19  ;;  %4690 = vmatprep.mubr.f32.mxu1 %v31422_v10  ;;  %v9825_v19 = vand.u32 4294901760, %v26022_v5 }
 0x4ef   :  { %22574 = vmatprep.subr.bf16.mxu1 %v26950_v52  ;;  %24910 = vset.pattern.permute.xlu1 %v25047_v13  ;;  %v27135_v52 = vpack.c.bf16 %v4710_v45, %v4706_v4  ;;  %v31241_v13 = vand.u32 4294901760, %v27117_v18  ;;  %v27152_v45 = vsub.f32 %v26011_v40, %v9821_v51  ;;  %v4793_v4 = vsub.f32 %v27096_v50, %v31244_v47 }
 0x4f0   :  { %9693 = vmatmul.mubr.f32.vlgmr.msra.gmra.mrb[16].mxu0 %v26744_v9  ;;  %5328 = vperm.xlu1 %24910, %v24976_v46   ;;  %v4829_v56 = vsub.f32 %v27111_v35, %v31238_v16  ;;  %v9829_v47 = vand.u32 4294901760, %v31506_v7  ;;  %v31507_v16 = vld [vmem:[#allocation29_spill] sm:$0xff] }
 0x4f1   :  { %22908 = vmatpush1.bf16.msra.mxu0 %v26747_v63  ;;  %9698 = vmatprep.mubr.f32.mxu0 %v31422_v10  ;;  %v27149_v63 = vpack.c.bf16 %v9825_v19, %v9821_v51  ;;  %v4799_v23 = vsub.f32 %v27117_v18, %v31241_v13  ;;  %v4794_v38 = vand.u32 4294901760, %v4793_v4  ;;  %v31248_v46 = vand.u32 4294901760, %v27152_v45 }
 0x4f2   :  { %22910 = vmatprep.subr.bf16.mxu0 %v26752_v53  ;;  %22576 = vmatpush1.bf16.msra.mxu1 %v26956_v8  ;;  %v31240_v53 = vand.u32 4294901760, %v27123_v28  ;;  %v27160_v8 = vsub.f32 %v26022_v5, %v9825_v19  ;;  %v27189_v51 = vpack.c.bf16 %v4720_v21, %v4716_v14  ;;  %v4812_v19 = vand.u32 4294901760, %v4811_v37  ;;  %v31505_v21 = vld [vmem:[#allocation31_spill] sm:$0xff] }
 0x4f3   :  { %22578 = vmatprep.subr.bf16.mxu1 %v27135_v52  ;;  %v22585_v4 = vpack.c.bf16 %v4806_v24, %v4794_v38  ;;  %v4830_v29 = vand.u32 4294901760, %v4829_v56  ;;  %v9823_v13 = vand.u32 4294901760, %v26088_v44  ;;  %v9827_v14 = vand.u32 4294901760, %v31505_v21 }
 0x4f4   :  { %9700 = vmatmul.mubr.f32.gmra.mrb[18].mxu0 %v26767_v12  ;;  %v4817_v30 = vsub.f32 %v27123_v28, %v31240_v53  ;;  %v4800_v53 = vand.u32 4294901760, %v4799_v23  ;;  %v9833_v24 = vand.u32 4294901760, %v31507_v16  ;;  %v4836_v38 = vand.u32 4294901760, %v4835_v57 }
 0x4f5   :  { %22912 = vmatpush1.bf16.msra.mxu0 %v26762_v32  ;;  %22233 = vmatmul.mubr.msk.f32.vlgmr.msra.gmra.mrb[4].mxu1 %vm738_vm2, %v31489_v33  ;;  %v31247_v32 = vand.u32 4294901760, %v27145_v48  ;;  %v9941_v23 = vsub.f32 %v27152_v45, %v31248_v46  ;;  %v31508_v40 = vand.u32 4294901760, %v27160_v8 }
 0x4f6   :  { %22914 = vmatprep.subr.bf16.mxu0 %v27149_v63  ;;  %22580 = vmatpush1.bf16.msra.mxu1 %v27162_v36  ;;  %v4818_v20 = vand.u32 4294901760, %v4817_v30  ;;  %v22587_v56 = vpack.c.bf16 %v4812_v19, %v4800_v53  ;;  %v27214_v30 = vpack.c.bf16 %v9827_v14, %v9823_v13  ;;  %v27220_v53 = vsub.f32 %v31505_v21, %v9827_v14 }
 0x4f7   :  { %22582 = vmatprep.subr.bf16.mxu1 %v27171_v61  ;;  %9705 = vmatprep.mubr.f32.mxu0 %v31422_v10  ;;  %v4823_v37 = vsub.f32 %v27145_v48, %v31247_v32  ;;  %v9953_v5 = vsub.f32 %v27160_v8, %v31508_v40  ;;  %v27217_v32 = vsub.f32 %v26088_v44, %v9823_v13 }
 0x4f8   :  { %9707 = vmatmul.mubr.f32.gmra.mrb[20].mxu0 %v26790_v0  ;;  %4778 = vmatprep.mubr.f32.mxu1 %v31422_v10  ;;  %v27224_v40 = vsub.f32 %v31506_v7, %v9829_v47  ;;  %v27232_v13 = vpack.c.bf16 %v9833_v24, %v9829_v47 }
 0x4f9   :  { %9712 = vmatprep.mubr.f32.mxu0 %v31422_v10  ;;  %v4824_v19 = vand.u32 4294901760, %v4823_v37  ;;  %v9954_v37 = vand.u32 4294901760, %v9953_v5  ;;  %v31253_v7 = vand.u32 4294901760, %v27217_v32 }
 0x4fa   :  { %22584 = vmatpush1.bf16.msra.mxu1 %v27189_v51 }
 0x4fb   :  { %22586 = vmatprep.subr.bf16.mxu1 %v22585_v4  ;;  %v22589_v4 = vpack.c.bf16 %v4830_v29, %v4818_v20  ;;  %v27227_v20 = vsub.f32 %v31507_v16, %v9833_v24  ;;  %v31509_v29 = vld [vmem:[#allocation32_spill] sm:$0xff]  ;;  %v22591_v14 = vpack.c.bf16 %v4836_v38, %v4824_v19  ;;  %v31252_v24 = vand.u32 4294901760, %v27220_v53 }
 0x4fc   :  { %9714 = vmatmul.mubr.f32.gmra.mrb[22].mxu0 %v26818_v31  ;;  %v9831_v57 = vand.u32 4294901760, %v31509_v29  ;;  %v31256_v19 = vand.u32 4294901760, %v27224_v40 }
 0x4fd   :  { %4784 = vmatmul.mubr.f32.vlgmr.msra.gmra.mrb[6].mxu1 %v31486_v25  ;;  %9792 = vmatprep.mubr.f32.mxu0 %v31422_v10  ;;  %v9942_v25 = vand.u32 4294901760, %v9941_v23  ;;  %v22595_v23 = vpack.c.bf16 %v27104_v39, %v27117_v18 }
 0x4fe   :  { %22588 = vmatpush1.bf16.msra.mxu1 %v22587_v56  ;;  %4894 = vmatprep.mubr.f32.mxu1 %v31422_v10  ;;  %v31510_v56 = vld [vmem:[#allocation33_spill] sm:$0xff]  ;;  %v27243_v47 = vsub.f32 %v31509_v29, %v9831_v57 }
 0x4ff   :  { %22590 = vmatprep.subr.bf16.mxu1 %v22589_v4  ;;  %v9835_v46 = vand.u32 4294901760, %v31510_v56  ;;  %v22593_v4 = vpack.c.bf16 %v27084_v2, %v27096_v50  ;;  %v22921_v38 = vpack.c.bf16 %v9954_v37, %v9942_v25  ;;  %v9947_v25 = vsub.f32 %v27217_v32, %v31253_v7 }
 0x500   :  { %9794 = vmatmul.mubr.f32.vlgmr.msra.gmra.mrb[16].mxu0 %v26744_v9  ;;  %v31258_v37 = vand.u32 4294901760, %v27243_v47 }
 0x501   :  { %22916 = vmatpush1.bf16.msra.mxu0 %v27214_v30  ;;  %9799 = vmatprep.mubr.f32.mxu0 %v31422_v10  ;;  %v27240_v16 = vpack.c.bf16 %v9835_v46, %v9831_v57  ;;  %v27246_v5 = vsub.f32 %v31510_v56, %v9835_v46  ;;  %v22597_v46 = vpack.c.bf16 %v27111_v35, %v27123_v28 }
 0x502   :  { %22918 = vmatprep.subr.bf16.mxu0 %v27232_v13  ;;  %22592 = vmatpush1.bf16.msra.mxu1 %v22591_v14  ;;  %v31259_v14 = vand.u32 4294901760, %v27227_v20  ;;  %v9959_v57 = vsub.f32 %v27220_v53, %v31252_v24  ;;  %v9948_v24 = vand.u32 4294901760, %v9947_v25 }
 0x503   :  { %22594 = vmatprep.subr.bf16.mxu1 %v22593_v4  ;;  %v9971_v4 = vsub.f32 %v27243_v47, %v31258_v37  ;;  %v31511_v29 = vand.u32 4294901760, %v27246_v5 }
 0x504   :  { %9801 = vmatmul.mubr.f32.gmra.mrb[18].mxu0 %v26767_v12  ;;  %v9960_v7 = vand.u32 4294901760, %v9959_v57 }
 0x505   :  { %22920 = vmatpush1.bf16.msra.mxu0 %v27240_v16  ;;  %22234 = vmatmul.mubr.msk.f32.vlgmr.msra.gmra.mrb[6].mxu1 %vm738_vm2, %v31489_v33  ;;  %v9983_v56 = vsub.f32 %v27246_v5, %v31511_v29  ;;  %v9972_v57 = vand.u32 4294901760, %v9971_v4 }
 0x506   :  { %22922 = vmatprep.subr.bf16.mxu0 %v22921_v38  ;;  %22596 = vmatpush1.bf16.msra.mxu1 %v22595_v23  ;;  %v22599_v38 = vpack.c.bf16 %v27130_v11, %v27145_v48  ;;  %v9965_v23 = vsub.f32 %v27224_v40, %v31256_v19  ;;  %v22923_v25 = vpack.c.bf16 %v9960_v7, %v9948_v24 }
 0x507   :  { %22598 = vmatprep.subr.bf16.mxu1 %v22597_v46  ;;  %9806 = vmatprep.mubr.f32.mxu0 %v31422_v10  ;;  %v9977_v46 = vsub.f32 %v27227_v20, %v31259_v14  ;;  %v22929_v7 = vpack.c.bf16 %v27160_v8, %v27152_v45 }
 0x508   :  { %9808 = vmatmul.mubr.f32.gmra.mrb[20].mxu0 %v26790_v0  ;;  %4982 = vmatprep.mubr.f32.mxu1 %v31422_v10  ;;  %v9966_v19 = vand.u32 4294901760, %v9965_v23  ;;  %v31512_v23 = vand.u32 4294901760, %v27096_v50 }
 0x509   :  { %9813 = vmatprep.mubr.f32.mxu0 %v31422_v10  ;;  %v9978_v44 = vand.u32 4294901760, %v9977_v46  ;;  %v31513_v46 = vand.u32 4294901760, %v27084_v2  ;;  %v31517_v2 = vand.u32 4294901760, %v27123_v28  ;;  %v22931_v28 = vpack.c.bf16 %v27220_v53, %v27217_v32 }
 0x50a   :  { %22600 = vmatpush1.bf16.msra.mxu1 %v22599_v38  ;;  %v9984_v38 = vand.u32 4294901760, %v9983_v56  ;;  %v31518_v56 = vand.u32 4294901760, %v27111_v35  ;;  %v31522_v35 = vld [vmem:[#allocation36_spill] sm:$0xff] }
 0x50b   :  { %22602 = vmatprep.subr.bf16.mxu1 %v27135_v52  ;;  %v22925_v29 = vpack.c.bf16 %v9978_v44, %v9966_v19  ;;  %v22609_v37 = vpack.c.bf16 %v31513_v46, %v31512_v23  ;;  %v31515_v44 = vand.u32 4294901760, %v27117_v18  ;;  %v31520_v18 = vand.u32 4294901760, %v27145_v48  ;;  %v5350_v46 = vld [vmem:[#allocation2 + $0x160] sm:$0xff] }
 0x50c   :  { %9815 = vmatmul.mubr.f32.gmra.mrb[22].mxu0 %v26818_v31  ;;  %v22927_v14 = vpack.c.bf16 %v9984_v38, %v9972_v57  ;;  %v22613_v24 = vpack.c.bf16 %v31518_v56, %v31517_v2  ;;  %v31523_v48 = vand.u32 4294901760, %v27152_v45  ;;  %v5377_v2 = vsel %vm738_vm2, %v5350_v46, 0 }
 0x50d   :  { %4985 = vmatmul.mubr.f32.vlgmr.msra.gmra.mrb[6].mxu1 %v31490_v34  ;;  %9893 = vmatprep.mubr.f32.mxu0 %v31422_v10  ;;  %v31514_v34 = vld [vmem:[#allocation34_spill] sm:$0xff] }
 0x50e   :  { %22604 = vmatpush1.bf16.msra.mxu1 %v27162_v36  ;;  %5063 = vmatprep.mubr.f32.mxu1 %v31422_v10 }
 0x50f   :  { %22606 = vmatprep.subr.bf16.mxu1 %v27171_v61 }
 0x510   :  { %9899 = vmatmul.mubr.f32.vlgmr.msra.gmra.mrb[24].mxu0 %v26828_v55  ;;  %v31516_v55 = vand.u32 4294901760, %v27104_v39  ;;  %v31521_v39 = vand.u32 4294901760, %v27130_v11  ;;  %v22933_v11 = vpack.c.bf16 %v27227_v20, %v27224_v40 }
 0x511   :  { %22924 = vmatpush1.bf16.msra.mxu0 %v22923_v25  ;;  %9904 = vmatprep.mubr.f32.mxu0 %v31422_v10 }
 0x512   :  { %22926 = vmatprep.subr.bf16.mxu0 %v22925_v29  ;;  %22608 = vmatpush1.bf16.msra.mxu1 %v27189_v51  ;;  %v22611_v50 = vpack.c.bf16 %v31516_v55, %v31515_v44  ;;  %v22615_v19 = vpack.c.bf16 %v31521_v39, %v31520_v18  ;;  %v31531_v18 = vld [vmem:[#allocation12_spill] sm:$0xff] }
 0x513   :  { %22610 = vmatprep.subr.bf16.mxu1 %v22609_v37 }
 0x514   :  { %9910 = vmatmul.mubr.f32.gmra.mrb[26].mxu0 %v31514_v34  ;;  %v31519_v34 = vld [vmem:[#allocation35_spill] sm:$0xff] }
 0x515   :  { %22928 = vmatpush1.bf16.msra.mxu0 %v22927_v14  ;;  %5067 = vmatmul.mubr.f32.vlgmr.msra.gmra.mrb[6].mxu1 %v31501_v15 }
 0x516   :  { %22930 = vmatprep.subr.bf16.mxu0 %v22929_v7  ;;  %22612 = vmatpush1.bf16.msra.mxu1 %v22611_v50 }
 0x517   :  { %22614 = vmatprep.subr.bf16.mxu1 %v22613_v24  ;;  %9915 = vmatprep.mubr.f32.mxu0 %v31422_v10 }
 0x518   :  { %9921 = vmatmul.mubr.f32.gmra.mrb[28].mxu0 %v31519_v34  ;;  %5161 = vmatprep.mubr.f32.mxu1 %v31422_v10 }
 0x519   :  { %9926 = vmatprep.mubr.f32.mxu0 %v31422_v10 }
 0x51a   :  { %22616 = vmatpush1.bf16.msra.mxu1 %v22615_v19 }
 0x51b   :  { %22618 = vmatprep.subr.bf16.mxu1 %v27135_v52  ;;  %v22935_v52 = vpack.c.bf16 %v27246_v5, %v27243_v47 }
 0x51c   :  { %9932 = vmatmul.mubr.f32.gmra.mrb[30].mxu0 %v31522_v35  ;;  %v27431_v35 = vand.u32 4294901760, %v5377_v2 }
 0x51d   :  { %22235 = vmatmul.mubr.msk.f32.vlgmr.msra.gmra.mrb[6].mxu1 %vm738_vm2, %v31489_v33  ;;  %10042 = vmatprep.mubr.f32.mxu0 %v31422_v10 }
 0x51e   :  { %22620 = vmatpush1.bf16.msra.mxu1 %v27162_v36  ;;  %5241 = vmatprep.mubr.f32.mxu1 %v31422_v10  ;;  %v31524_v36 = vand.u32 4294901760, %v27160_v8  ;;  %v31527_v8 = vand.u32 4294901760, %v27224_v40 }
 0x51f   :  { %22622 = vmatprep.subr.bf16.mxu1 %v27171_v61 }
 0x520   :  { %10044 = vmatmul.mubr.f32.vlgmr.msra.gmra.mrb[24].mxu0 %v26744_v9  ;;  %v22945_v61 = vpack.c.bf16 %v31524_v36, %v31523_v48 }
 0x521   :  { %22932 = vmatpush1.bf16.msra.mxu0 %v22931_v28  ;;  %10049 = vmatprep.mubr.f32.mxu0 %v31422_v10 }
 0x522   :  { %22934 = vmatprep.subr.bf16.mxu0 %v22933_v11  ;;  %22624 = vmatpush1.bf16.msra.mxu1 %v27189_v51  ;;  %v31528_v51 = vand.u32 4294901760, %v27227_v20 }
 0x524   :  { %10051 = vmatmul.mubr.f32.gmra.mrb[26].mxu0 %v26767_v12  ;;  %v22949_v14 = vpack.c.bf16 %v31528_v51, %v31527_v8  ;;  %v27448_v8 = vsub.f32 %v5377_v2, %v27431_v35 }
 0x525   :  { %22936 = vmatpush1.bf16.msra.mxu0 %v22935_v52  ;;  %22236 = vmatmul.mubr.msk.f32.vlgmr.msra.gmra.mrb[6].mxu1 %vm738_vm2, %v31489_v33 }
 0x526   :  { %22938 = vmatprep.subr.bf16.mxu0 %v27149_v63  ;;  %10056 = vmatprep.mubr.f32.mxu0 %v31422_v10 }
 0x527   :  { %5451 = vmatprep.mubr.f32.mxu1 %v31422_v10 }
 0x528   :  { %10058 = vmatmul.mubr.f32.gmra.mrb[28].mxu0 %v26790_v0 }
 0x529   :  { %10063 = vmatprep.mubr.f32.mxu0 %v31422_v10 }
 0x52c   :  { %10065 = vmatmul.mubr.f32.gmra.mrb[30].mxu0 %v26818_v31 }
 0x52d   :  { %10151 = vmatprep.mubr.f32.mxu0 %v31422_v10 }
 0x530   :  { %10154 = vmatmul.mubr.f32.vlgmr.msra.gmra.mrb[24].mxu0 %v26765_v59  ;;  %v31525_v59 = vand.u32 4294901760, %v27217_v32 }
 0x531   :  { %22940 = vmatpush1.bf16.msra.mxu0 %v27214_v30  ;;  %10159 = vmatprep.mubr.f32.mxu0 %v31422_v10 }
 0x532   :  { %22942 = vmatprep.subr.bf16.mxu0 %v27232_v13 }
 0x534   :  { %10162 = vmatmul.mubr.f32.gmra.mrb[26].mxu0 %v26788_v6  ;;  %v31526_v6 = vand.u32 4294901760, %v27220_v53 }
 0x535   :  { %22944 = vmatpush1.bf16.msra.mxu0 %v27240_v16  ;;  %10167 = vmatprep.mubr.f32.mxu0 %v31422_v10 }
 0x536   :  { %22946 = vmatprep.subr.bf16.mxu0 %v22945_v61  ;;  %v22947_v45 = vpack.c.bf16 %v31526_v6, %v31525_v59 }
 0x538   :  { %10170 = vmatmul.mubr.f32.gmra.mrb[28].mxu0 %v26816_v26  ;;  %v31529_v26 = vand.u32 4294901760, %v27243_v47 }
 0x539   :  { %10175 = vmatprep.mubr.f32.mxu0 %v31422_v10 }
 0x53c   :  { %10178 = vmatmul.mubr.f32.gmra.mrb[30].mxu0 %v26836_v49  ;;  %v31530_v49 = vand.u32 4294901760, %v27246_v5 }
 0x53d   :  { %10256 = vmatprep.mubr.f32.mxu0 %v31422_v10 }
 0x53e   :  { %v22951_v37 = vpack.c.bf16 %v31530_v49, %v31529_v26 }
 0x540   :  { %10260 = vmatmul.mubr.f32.vlgmr.msra.gmra.mrb[24].mxu0 %v26785_v58 }
 0x541   :  { %22948 = vmatpush1.bf16.msra.mxu0 %v22947_v45  ;;  %10265 = vmatprep.mubr.f32.mxu0 %v31422_v10 }
 0x542   :  { %22950 = vmatprep.subr.bf16.mxu0 %v22949_v14 }
 0x544   :  { %10269 = vmatmul.mubr.f32.gmra.mrb[26].mxu0 %v26813_v41 }
 0x545   :  { %22952 = vmatpush1.bf16.msra.mxu0 %v22951_v37  ;;  %10274 = vmatprep.mubr.f32.mxu0 %v31422_v10 }
 0x546   :  { %22954 = vmatprep.subr.bf16.mxu0 %v27149_v63 }
 0x548   :  { %10278 = vmatmul.mubr.f32.gmra.mrb[28].mxu0 %v26833_v42  ;;  %v5347_v42 = vld [vmem:[#allocation2 + $0x28] sm:$0xff] }
 0x549   :  { %10283 = vmatprep.mubr.f32.mxu0 %v31422_v10 }
 0x54c   :  { %10287 = vmatmul.mubr.f32.gmra.mrb[30].mxu0 %v26845_v27  ;;  %v5368_v27 = vsel %vm738_vm2, %v5347_v42, 0 }
 0x54d   :  { %10381 = vmatprep.mubr.f32.mxu0 %v31422_v10  ;;  %v27404_v53 = vand.u32 4294901760, %v5368_v27 }
 0x54f   :  { %v27409_v4 = vsub.f32 %v5368_v27, %v27404_v53 }
 0x550   :  { %10383 = vmatmul.mubr.f32.vlgmr.msra.gmra.mrb[24].mxu0 %v26744_v9 }
 0x551   :  { %22956 = vmatpush1.bf16.msra.mxu0 %v27214_v30  ;;  %10388 = vmatprep.mubr.f32.mxu0 %v31422_v10  ;;  %v31263_v7 = vand.u32 4294901760, %v27409_v4 }
 0x552   :  { %22958 = vmatprep.subr.bf16.mxu0 %v27232_v13 }
 0x553   :  { %v27402_v63 = vpop.permute.xlu1 %5292  ;;  %v27426_v24 = vsub.f32 %v27409_v4, %v31263_v7 }
 0x554   :  { %10390 = vmatmul.mubr.f32.gmra.mrb[26].mxu0 %v26767_v12 }
 0x555   :  { %22960 = vmatpush1.bf16.msra.mxu0 %v27240_v16  ;;  %10395 = vmatprep.mubr.f32.mxu0 %v31422_v10  ;;  %v5456_v48 = vand.u32 4294901760, %v27426_v24  ;;  %v31535_v24 = vld [vmem:[#allocation20_spill] sm:$0xff] }
 0x558   :  { %10397 = vmatmul.mubr.f32.gmra.mrb[28].mxu0 %v26790_v0 }
 0x559   :  { %10402 = vmatprep.mubr.f32.mxu0 %v31422_v10 }
 0x55a   :  { %v5317_v38 = vpop.permute.xlu1 %5316 }
 0x55b   :  { %v5297_v55 = vpop.permute.xlu0 %5296 }
 0x55c   :  { %10404 = vmatmul.mubr.f32.gmra.mrb[30].mxu0 %v26818_v31 }
 0x55d   :  { %10482 = vmatprep.mubr.f32.mxu0 %v31422_v10 }
 0x55e   :  { %v5321_v56 = vpop.permute.xlu1 %5320 }
 0x560   :  { %10484 = vmatmul.mubr.f32.vlgmr.msra.gmra.mrb[24].mxu0 %v26744_v9  ;;  %v5348_v9 = vld [vmem:[#allocation2 + $0x90] sm:$0xff] }
 0x561   :  { %10489 = vmatprep.mubr.f32.mxu0 %v31422_v10 }
 0x563   :  { %v5301_v11 = vpop.permute.xlu0 %5300 }
 0x564   :  { %10491 = vmatmul.mubr.f32.gmra.mrb[26].mxu0 %v26767_v12  ;;  %v5349_v12 = vld [vmem:[#allocation2 + $0xf8] sm:$0xff] }
 0x565   :  { %10496 = vmatprep.mubr.f32.mxu0 %v31422_v10  ;;  %v5374_v13 = vsel %vm738_vm2, %v5349_v12, 0 }
 0x566   :  { %v27413_v29 = vand.u32 4294901760, %v5374_v13 }
 0x568   :  { %10498 = vmatmul.mubr.f32.gmra.mrb[28].mxu0 %v26790_v0  ;;  %v27420_v50 = vsub.f32 %v5374_v13, %v27413_v29  ;;  %v5305_v52 = vpop.permute.xlu1 %5304 }
 0x569   :  { %10503 = vmatprep.mubr.f32.mxu0 %v31422_v10 }
 0x56a   :  { %v31261_v19 = vand.u32 4294901760, %v27420_v50 }
 0x56c   :  { %10505 = vmatmul.mubr.f32.gmra.mrb[30].mxu0 %v26818_v31  ;;  %v5371_v31 = vsel %vm738_vm2, %v5348_v9, 0  ;;  %v27445_v45 = vsub.f32 %v27420_v50, %v31261_v19 }
 0x56d   :  { %10647 = vmatprep.mubr.f32.mxu0 %v31422_v10  ;;  %v27411_v25 = vand.u32 4294901760, %v5371_v31 }
 0x56f   :  { %v27417_v44 = vsub.f32 %v5371_v31, %v27411_v25 }
 0x571   :  { %v31262_v34 = vand.u32 4294901760, %v27417_v44 }
 0x573   :  { %v27438_v36 = vsub.f32 %v27417_v44, %v31262_v34 }
 0x5c8   :  { %v4693_v58 = vpop.f32.mrb[4].mxu1 }
 0x5c9   :  { %v4695_v41 = vpop.f32.mrb[5].mxu1  ;;  %v5249_v16 = vmul.f32 %v4693_v58, %v4693_v58  ;;  %v5258_v39 = vrot.slane %v4693_v58, %v31531_v18 }
 0x5ca   :  { %v5250_v32 = vmul.f32 %v4695_v41, %v4695_v41  ;;  %v5262_v28 = vrot.slane %v4695_v41, %v31531_v18 }
 0x5cb   :  { %v5263_v59 = vsub.f32 %v26858_v54, %v5258_v39  ;;  %v5265_v6 = vsub.f32 %v26870_v22, %v5258_v39  ;;  %v5267_v49 = vsub.f32 %v26891_v43, %v5258_v39  ;;  %v5269_v37 = vsub.f32 %v26917_v60, %v5258_v39  ;;  %v5325_v43 = vpop.permute.xlu0 %5324 }
 0x5cc   :  { %v5264_v26 = vsub.f32 %v26860_v17, %v5262_v28  ;;  %v5266_v22 = vsub.f32 %v26872_v3, %v5262_v28  ;;  %v5268_v58 = vsub.f32 %v26895_v62, %v5262_v28  ;;  %v5270_v41 = vsub.f32 %v26923_v1, %v5262_v28 }
 0x5f8   :  { %v5244_v30 = vpop.f32.mrb[6].mxu1 }
 0x5f9   :  { %v5251_v0 = vsub.f32 %v5244_v30, %v5249_v16  ;;  %v5246_v40 = vpop.f32.mrb[7].mxu1 }
 0x5fa   :  { %v5252_v20 = vsub.f32 %v5246_v40, %v5250_v32 }
 0x5fb   :  { %v5253_v47 = vmax.f32 %v5251_v0, 0.0  ;;  %v5329_v0 = vpop.permute.xlu1 %5328 }
 0x5fc   :  { %v5254_v5 = vmax.f32 %v5252_v20, 0.0 }
 0x5fd   :  { %v5271_v57 = vadd.f32 1e-05, %v5253_v47 }
 0x5fe   :  { %v5272_v23 = vadd.f32 1e-05, %v5254_v5 }
 0x5ff   :  { %24933 = vrsqrt.f32 %v5271_v57 }
 0x600   :  { %24935 = vrsqrt.f32 %v5272_v23 }
 0x609   :  { %v24934_v61 = vpop.eup %24933 }
 0x60a   :  { %v24936_v51 = vpop.eup %24935  ;;  %v5278_v14 = vrot.slane %v24934_v61, %v31531_v18  ;;  %v31532_v61 = vld [vmem:[#allocation14_spill] sm:$0xff] }
 0x60b   :  { %v5282_v54 = vrot.slane %v24936_v51, %v31531_v18 }
 0x60c   :  { %v5283_v42 = vmul.f32 %v5278_v14, %v5263_v59  ;;  %v5285_v27 = vmul.f32 %v5278_v14, %v5265_v6  ;;  %v5287_v9 = vmul.f32 %v5278_v14, %v5267_v49  ;;  %v5289_v16 = vmul.f32 %v5278_v14, %v5269_v37 }
 0x60d   :  { %v5284_v12 = vmul.f32 %v5282_v54, %v5264_v26  ;;  %v5286_v32 = vmul.f32 %v5282_v54, %v5266_v22  ;;  %v5288_v30 = vmul.f32 %v5282_v54, %v5268_v58  ;;  %v5290_v17 = vmul.f32 %v5282_v54, %v5270_v41 }
 0x60e   :  { %v5307_v60 = vmul.f32 %v27402_v63, %v5283_v42  ;;  %v5309_v40 = vmul.f32 %v5297_v55, %v5285_v27  ;;  %v5311_v31 = vmul.f32 %v5301_v11, %v5287_v9  ;;  %v5313_v20 = vmul.f32 %v5305_v52, %v5289_v16 }
 0x60f   :  { %v5308_v3 = vmul.f32 %v27402_v63, %v5284_v12  ;;  %v5310_v62 = vmul.f32 %v5297_v55, %v5286_v32  ;;  %v5312_v13 = vmul.f32 %v5301_v11, %v5288_v30  ;;  %v5314_v1 = vmul.f32 %v5305_v52, %v5290_v17  ;;  %v31533_v55 = vld [vmem:[#allocation13_spill] sm:$0xff] }
 0x610   :  { %v5331_v47 = vadd.f32 %v5317_v38, %v5307_v60  ;;  %v5333_v5 = vadd.f32 %v5321_v56, %v5309_v40  ;;  %v5337_v57 = vadd.f32 %v5329_v0, %v5313_v20  ;;  %v5335_v23 = vadd.f32 %v5325_v43, %v5311_v31 }
 0x611   :  { %v5332_v46 = vadd.f32 %v5317_v38, %v5308_v3  ;;  %v5334_v2 = vadd.f32 %v5321_v56, %v5310_v62  ;;  %v5338_v39 = vadd.f32 %v5329_v0, %v5314_v1  ;;  %v5336_v28 = vadd.f32 %v5325_v43, %v5312_v13 }
 0x612   :  { %v27461_v59 = vmul.f32 %v5331_v47, %v31532_v61  ;;  %v27464_v6 = vmul.f32 %v5333_v5, %v31532_v61  ;;  %v27467_v51 = vmul.f32 %v5337_v57, %v31532_v61  ;;  %v27470_v63 = vmul.f32 %v5335_v23, %v31532_v61 }
 0x613   :  { %v27473_v11 = vmul.f32 %v5332_v46, %v31533_v55  ;;  %v27476_v38 = vmul.f32 %v5334_v2, %v31533_v55  ;;  %v27479_v56 = vmul.f32 %v5338_v39, %v31533_v55  ;;  %v27482_v52 = vmul.f32 %v5336_v28, %v31533_v55 }
 0x614   :  { %6075 = vrot.lane.b32.xlu0 %v27464_v6, %s25042_s1  ;;  %6073 = vrot.lane.b32.xlu1 %v27461_v59, %s25042_s1  ;;  %v5381_v14 = vand.u32 4294901760, %v27461_v59  ;;  %v5385_v26 = vand.u32 4294901760, %v27464_v6  ;;  %v5389_v49 = vand.u32 4294901760, %v27470_v63  ;;  %v5393_v37 = vand.u32 4294901760, %v27467_v51 }
 0x615   :  { %v5379_v54 = vand.u32 4294901760, %v27473_v11  ;;  %v5383_v22 = vand.u32 4294901760, %v27476_v38  ;;  %v5387_v58 = vand.u32 4294901760, %v27482_v52  ;;  %v5391_v41 = vand.u32 4294901760, %v27479_v56 }
 0x616   :  { %v27496_v42 = vpack.c.bf16 %v5385_v26, %v5381_v14  ;;  %v27499_v27 = vsub.f32 %v27461_v59, %v5381_v14  ;;  %v27502_v9 = vsub.f32 %v27464_v6, %v5385_v26  ;;  %v27504_v16 = vpack.c.bf16 %v5393_v37, %v5389_v49 }
 0x617   :  { %v27506_v12 = vpack.c.bf16 %v5383_v22, %v5379_v54  ;;  %v27509_v32 = vsub.f32 %v27473_v11, %v5379_v54  ;;  %v27512_v30 = vsub.f32 %v27476_v38, %v5383_v22  ;;  %v27514_v17 = vpack.c.bf16 %v5391_v41, %v5387_v58 }
 0x618   :  { %6079 = vrot.lane.b32.xlu0 %v27467_v51, %s25042_s1  ;;  %6077 = vrot.lane.b32.xlu1 %v27470_v63, %s25042_s1  ;;  %v27521_v0 = vsub.f32 %v27482_v52, %v5387_v58  ;;  %v27524_v43 = vsub.f32 %v27479_v56, %v5391_v41  ;;  %v27527_v60 = vsub.f32 %v27470_v63, %v5389_v49  ;;  %v5504_v40 = vand.u32 4294901760, %v27499_v27 }
 0x619   :  { %22626 = vmatprep.subr.bf16.mxu1 %v27506_v12  ;;  %v27532_v31 = vsub.f32 %v27467_v51, %v5393_v37  ;;  %v5498_v20 = vand.u32 4294901760, %v27509_v32  ;;  %v5510_v3 = vand.u32 4294901760, %v27512_v30  ;;  %v5516_v62 = vand.u32 4294901760, %v27502_v9 }
 0x61a   :  { %22628 = vmatpush1.bf16.msra.mxu1 %v27496_v42  ;;  %v5505_v13 = vsub.f32 %v27499_v27, %v5504_v40  ;;  %v5522_v1 = vand.u32 4294901760, %v27521_v0  ;;  %v5534_v47 = vand.u32 4294901760, %v27524_v43  ;;  %v5528_v5 = vand.u32 4294901760, %v27527_v60 }
 0x61b   :  { %22630 = vmatprep.subr.bf16.mxu1 %v27514_v17  ;;  %v5499_v57 = vsub.f32 %v27509_v32, %v5498_v20  ;;  %v5511_v23 = vsub.f32 %v27512_v30, %v5510_v3  ;;  %v5517_v46 = vsub.f32 %v27502_v9, %v5516_v62  ;;  %v5540_v2 = vand.u32 4294901760, %v27532_v31 }
 0x61c   :  { %6083 = vrot.lane.b32.xlu0 %v27476_v38, %s25042_s1  ;;  %6081 = vrot.lane.b32.xlu1 %v27473_v11, %s25042_s1  ;;  %v5506_v39 = vand.u32 4294901760, %v5505_v13  ;;  %v5523_v28 = vsub.f32 %v27521_v0, %v5522_v1  ;;  %v5535_v61 = vsub.f32 %v27524_v43, %v5534_v47  ;;  %v5529_v55 = vsub.f32 %v27527_v60, %v5528_v5 }
 0x61d   :  { %v5500_v14 = vand.u32 4294901760, %v5499_v57  ;;  %v5512_v26 = vand.u32 4294901760, %v5511_v23  ;;  %v5518_v49 = vand.u32 4294901760, %v5517_v46  ;;  %v5541_v37 = vsub.f32 %v27532_v31, %v5540_v2 }
 0x61e   :  { %22632 = vmatpush1.bf16.msra.mxu1 %v27504_v16  ;;  %v5524_v54 = vand.u32 4294901760, %v5523_v28  ;;  %v5536_v22 = vand.u32 4294901760, %v5535_v61  ;;  %v5530_v58 = vand.u32 4294901760, %v5529_v55  ;;  %v22641_v41 = vpack.c.bf16 %v27512_v30, %v27509_v32 }
 0x61f   :  { %v22633_v13 = vpack.c.bf16 %v5512_v26, %v5500_v14  ;;  %v22635_v19 = vpack.c.bf16 %v5518_v49, %v5506_v39  ;;  %v5542_v34 = vand.u32 4294901760, %v5541_v37  ;;  %v22643_v7 = vpack.c.bf16 %v27502_v9, %v27499_v27  ;;  %v10511_v14 = vld [vmem:[#allocation2 + $0x48] sm:$0xff] }
 0x620   :  { %6087 = vrot.lane.b32.xlu0 %v27479_v56, %s25042_s1  ;;  %6085 = vrot.lane.b32.xlu1 %v27482_v52, %s25042_s1  ;;  %v22637_v57 = vpack.c.bf16 %v5536_v22, %v5524_v54  ;;  %v5467_v23 = vand.u32 4294901760, %v27438_v36  ;;  %v22645_v46 = vpack.c.bf16 %v27524_v43, %v27521_v0  ;;  %v22647_v32 = vpack.c.bf16 %v27532_v31, %v27527_v60  ;;  %v31534_v0 = vld [vmem:[#allocation21_spill] sm:$0xff]  ;;  %v31538_v60 = vld [vmem:[#allocation18_spill] sm:$0xff] }
 0x621   :  { %5457 = vmatmul.mubr.f32.vlgmr.msra.gmra.mrb[8].mxu1 %v5456_v48  ;;  %22634 = vmatprep.subr.bf16.mxu1 %v22633_v13  ;;  %v22639_v27 = vpack.c.bf16 %v5542_v34, %v5530_v58  ;;  %v5487_v9 = vand.u32 4294901760, %v27448_v8  ;;  %v22657_v30 = vpack.c.bf16 %v5510_v3, %v5498_v20  ;;  %v27572_v39 = vpack.c.bf16 %v5516_v62, %v5504_v40  ;;  %v31536_v48 = vld [vmem:[#allocation30_spill] sm:$0xff]  ;;  %v31539_v40 = vld [vmem:[#allocation27_spill] sm:$0xff]  ;;  %v31541_v31 = vld [vmem:[#allocation33_spill] sm:$0xff] }
 0x622   :  { %22636 = vmatpush1.bf16.msra.mxu1 %v22635_v19  ;;  %5462 = vmatprep.mubr.f32.mxu1 %v31422_v10  ;;  %v27575_v36 = vpack.c.bf16 %v5534_v47, %v5522_v1  ;;  %v27577_v28 = vpack.c.bf16 %v5540_v2, %v5528_v5  ;;  %v5478_v34 = vand.u32 4294901760, %v27445_v45  ;;  %v31537_v45 = vld [vmem:[#allocation19_spill] sm:$0xff]  ;;  %v31542_v20 = vld [vmem:[#allocation32_spill] sm:$0xff]  ;;  %v31543_v3 = vld [vmem:[#allocation25_spill] sm:$0xff] }
 0x623   :  { %22638 = vmatprep.subr.bf16.mxu1 %v22637_v57  ;;  %v5488_v19 = vsub.f32 %v27448_v8, %v5487_v9 }
 0x624   :  { %10525 = vrot.lane.b32.xlu0 %v31534_v0, %s25043_s27  ;;  %10523 = vrot.lane.b32.xlu1 %v31535_v24, %s25043_s27 }
 0x625   :  { %5468 = vmatmul.mubr.f32.gmra.mrb[10].mxu1 %v5467_v23  ;;  %v5489_v43 = vand.u32 4294901760, %v5488_v19 }
 0x626   :  { %22640 = vmatpush1.bf16.msra.mxu1 %v22639_v27  ;;  %5473 = vmatprep.mubr.f32.mxu1 %v31422_v10 }
 0x627   :  { %22642 = vmatprep.subr.bf16.mxu1 %v22641_v41  ;;  %v27722_v41 = vsel %vm738_vm2, %v10511_v14, 0 }
 0x628   :  { %10533 = vrot.lane.b32.xlu0 %v31505_v21, %s25043_s27  ;;  %10531 = vrot.lane.b32.xlu1 %v31536_v48, %s25043_s27  ;;  %v31540_v21 = vld [vmem:[#allocation26_spill] sm:$0xff] }
 0x629   :  { %5479 = vmatmul.mubr.f32.gmra.mrb[12].mxu1 %v5478_v34 }
 0x62a   :  { %5484 = vmatprep.mubr.f32.mxu1 %v31422_v10 }
 0x62c   :  { %10517 = vrot.lane.b32.xlu0 %v31537_v45, %s25043_s27  ;;  %10515 = vrot.lane.b32.xlu1 %v31538_v60, %s25043_s27  ;;  %v27751_v60 = vand.u32 4294901760, %v27722_v41 }
 0x62d   :  { %5490 = vmatmul.mubr.f32.gmra.mrb[14].mxu1 %v5489_v43 }
 0x62e   :  { %5600 = vmatprep.mubr.f32.mxu1 %v31422_v10  ;;  %31557 = vst [vmem:[#allocation14_spill] sm:$0xff] %v27751_v60 }
 0x630   :  { %10529 = vrot.lane.b32.xlu0 %v31539_v40, %s25043_s27  ;;  %10527 = vrot.lane.b32.xlu1 %v31540_v21, %s25043_s27 }
 0x631   :  { %5602 = vmatmul.mubr.f32.vlgmr.msra.gmra.mrb[8].mxu1 %v27404_v53 }
 0x632   :  { %22644 = vmatpush1.bf16.msra.mxu1 %v22643_v7  ;;  %5607 = vmatprep.mubr.f32.mxu1 %v31422_v10  ;;  %v31544_v7 = vld [vmem:[#allocation24_spill] sm:$0xff] }
 0x633   :  { %22646 = vmatprep.subr.bf16.mxu1 %v22645_v46 }
 0x634   :  { %10537 = vrot.lane.b32.xlu0 %v31541_v31, %s25043_s27  ;;  %10535 = vrot.lane.b32.xlu1 %v31542_v20, %s25043_s27 }
 0x635   :  { %5609 = vmatmul.mubr.f32.gmra.mrb[10].mxu1 %v27411_v25 }
 0x636   :  { %22648 = vmatpush1.bf16.msra.mxu1 %v22647_v32  ;;  %5614 = vmatprep.mubr.f32.mxu1 %v31422_v10 }
 0x637   :  { %22650 = vmatprep.subr.bf16.mxu1 %v27506_v12 }
 0x638   :  { %10521 = vrot.lane.b32.xlu0 %v31543_v3, %s25043_s27  ;;  %10519 = vrot.lane.b32.xlu1 %v31544_v7, %s25043_s27 }
 0x639   :  { %5616 = vmatmul.mubr.f32.gmra.mrb[12].mxu1 %v27413_v29 }
 0x63a   :  { %5621 = vmatprep.mubr.f32.mxu1 %v31422_v10 }
 0x63c   :  { %6813 = vrot.lane.b32.xlu0 %v27464_v6, %s25043_s27  ;;  %6811 = vrot.lane.b32.xlu1 %v27461_v59, %s25043_s27  ;;  %v31545_v59 = vld [vmem:[#allocation23_spill] sm:$0xff]  ;;  %v31546_v6 = vld [vmem:[#allocation22_spill] sm:$0xff] }
 0x63d   :  { %5623 = vmatmul.mubr.f32.gmra.mrb[14].mxu1 %v27431_v35 }
 0x63e   :  { %5709 = vmatprep.mubr.f32.mxu1 %v31422_v10 }
 0x640   :  { %6817 = vrot.lane.b32.xlu0 %v27467_v51, %s25043_s27  ;;  %6815 = vrot.lane.b32.xlu1 %v27470_v63, %s25043_s27  ;;  %v31547_v51 = vld [vmem:[#allocation29_spill] sm:$0xff]  ;;  %v31548_v63 = vld [vmem:[#allocation28_spill] sm:$0xff] }
 0x641   :  { %5712 = vmatmul.mubr.f32.vlgmr.msra.gmra.mrb[8].mxu1 %v27409_v4 }
 0x642   :  { %22652 = vmatpush1.bf16.msra.mxu1 %v27496_v42  ;;  %5717 = vmatprep.mubr.f32.mxu1 %v31422_v10 }
 0x643   :  { %22654 = vmatprep.subr.bf16.mxu1 %v27514_v17 }
 0x644   :  { %6821 = vrot.lane.b32.xlu0 %v27476_v38, %s25043_s27  ;;  %6819 = vrot.lane.b32.xlu1 %v27473_v11, %s25043_s27  ;;  %v31549_v11 = vand.u32 4294901760, %v27409_v4  ;;  %v31550_v38 = vand.u32 4294901760, %v27417_v44  ;;  %v6069_v4 = vld [vmem:[#allocation2 + $0x20] sm:$0xff] }
 0x645   :  { %5720 = vmatmul.mubr.f32.gmra.mrb[10].mxu1 %v27417_v44  ;;  %v6098_v44 = vsel %vm738_vm2, %v6069_v4, 0 }
 0x646   :  { %22656 = vmatpush1.bf16.msra.mxu1 %v27504_v16  ;;  %5725 = vmatprep.mubr.f32.mxu1 %v31422_v10 }
 0x647   :  { %22658 = vmatprep.subr.bf16.mxu1 %v22657_v30 }
 0x648   :  { %6825 = vrot.lane.b32.xlu0 %v27479_v56, %s25043_s27  ;;  %6823 = vrot.lane.b32.xlu1 %v27482_v52, %s25043_s27  ;;  %v31551_v56 = vand.u32 4294901760, %v27420_v50 }
 0x649   :  { %5728 = vmatmul.mubr.f32.gmra.mrb[12].mxu1 %v27420_v50  ;;  %v6070_v50 = vld [vmem:[#allocation2 + $0x88] sm:$0xff] }
 0x64a   :  { %5733 = vmatprep.mubr.f32.mxu1 %v31422_v10  ;;  %v6101_v52 = vsel %vm738_vm2, %v6070_v50, 0 }
 0x64c   :  { %10541 = vrot.lane.b32.xlu0 %v31545_v59, %s25043_s27  ;;  %10539 = vrot.lane.b32.xlu1 %v31546_v6, %s25043_s27 }
 0x64d   :  { %5736 = vmatmul.mubr.f32.gmra.mrb[14].mxu1 %v27448_v8  ;;  %v6071_v8 = vld [vmem:[#allocation2 + $0xf0] sm:$0xff] }
 0x64e   :  { %5814 = vmatprep.mubr.f32.mxu1 %v31422_v10 }
 0x650   :  { %10545 = vrot.lane.b32.xlu0 %v31547_v51, %s25043_s27  ;;  %10543 = vrot.lane.b32.xlu1 %v31548_v63, %s25043_s27 }
 0x651   :  { %5818 = vmatmul.mubr.f32.vlgmr.msra.gmra.mrb[8].mxu1 %v31549_v11 }
 0x652   :  { %22660 = vmatpush1.bf16.msra.mxu1 %v27572_v39  ;;  %5823 = vmatprep.mubr.f32.mxu1 %v31422_v10 }
 0x653   :  { %22662 = vmatprep.subr.bf16.mxu1 %v27575_v36 }
 0x655   :  { %5827 = vmatmul.mubr.f32.gmra.mrb[10].mxu1 %v31550_v38 }
 0x656   :  { %22664 = vmatpush1.bf16.msra.mxu1 %v27577_v28  ;;  %5832 = vmatprep.mubr.f32.mxu1 %v31422_v10 }
 0x657   :  { %22666 = vmatprep.subr.bf16.mxu1 %v27506_v12 }
 0x659   :  { %5836 = vmatmul.mubr.f32.gmra.mrb[12].mxu1 %v31551_v56 }
 0x65a   :  { %5841 = vmatprep.mubr.f32.mxu1 %v31422_v10 }
 0x65d   :  { %5845 = vmatmul.mubr.f32.gmra.mrb[14].mxu1 %v5487_v9 }
 0x65e   :  { %5939 = vmatprep.mubr.f32.mxu1 %v31422_v10 }
 0x661   :  { %5941 = vmatmul.mubr.f32.vlgmr.msra.gmra.mrb[8].mxu1 %v27404_v53 }
 0x662   :  { %22668 = vmatpush1.bf16.msra.mxu1 %v27496_v42  ;;  %5946 = vmatprep.mubr.f32.mxu1 %v31422_v10  ;;  %v6072_v42 = vld [vmem:[#allocation2 + $0x158] sm:$0xff] }
 0x663   :  { %22670 = vmatprep.subr.bf16.mxu1 %v27514_v17  ;;  %v6107_v62 = vsel %vm738_vm2, %v6072_v42, 0 }
 0x664   :  { %v27709_v2 = vand.u32 4294901760, %v6107_v62 }
 0x665   :  { %5948 = vmatmul.mubr.f32.gmra.mrb[10].mxu1 %v27411_v25 }
 0x666   :  { %22672 = vmatpush1.bf16.msra.mxu1 %v27504_v16  ;;  %5953 = vmatprep.mubr.f32.mxu1 %v31422_v10  ;;  %v27697_v16 = vand.u32 4294901760, %v6101_v52  ;;  %31554 = vst [vmem:[#allocation35_spill] sm:$0xff] %v27709_v2  ;;  %v27719_v54 = vsub.f32 %v6107_v62, %v27709_v2 }
 0x668   :  { %v27704_v47 = vsub.f32 %v6101_v52, %v27697_v16  ;;  %31555 = vst [vmem:[#allocation36_spill] sm:$0xff] %v27719_v54  ;;  %v31272_v24 = vand.u32 4294901760, %v27719_v54 }
 0x669   :  { %5955 = vmatmul.mubr.f32.gmra.mrb[12].mxu1 %v27413_v29 }
 0x66a   :  { %5960 = vmatprep.mubr.f32.mxu1 %v31422_v10  ;;  %v31265_v49 = vand.u32 4294901760, %v27704_v47 }
 0x66c   :  { %v27736_v28 = vsub.f32 %v27704_v47, %v31265_v49 }
 0x66d   :  { %5962 = vmatmul.mubr.f32.gmra.mrb[14].mxu1 %v27431_v35 }
 0x66e   :  { %6040 = vmatprep.mubr.f32.mxu1 %v31422_v10 }
 0x671   :  { %6042 = vmatmul.mubr.f32.vlgmr.msra.gmra.mrb[8].mxu1 %v27404_v53  ;;  %v27690_v53 = vand.u32 4294901760, %v6098_v44 }
 0x672   :  { %6047 = vmatprep.mubr.f32.mxu1 %v31422_v10 }
 0x673   :  { %31552 = vst [vmem:[#allocation31_spill] sm:$0xff] %v27690_v53 }
 0x675   :  { %6049 = vmatmul.mubr.f32.gmra.mrb[10].mxu1 %v27411_v25  ;;  %v6104_v25 = vsel %vm738_vm2, %v6071_v8, 0 }
 0x676   :  { %6054 = vmatprep.mubr.f32.mxu1 %v31422_v10  ;;  %v27699_v12 = vand.u32 4294901760, %v6104_v25 }
 0x678   :  { %31553 = vst [vmem:[#allocation34_spill] sm:$0xff] %v27699_v12  ;;  %v27707_v5 = vsub.f32 %v6104_v25, %v27699_v12 }
 0x679   :  { %6056 = vmatmul.mubr.f32.gmra.mrb[12].mxu1 %v27413_v29  ;;  %v27695_v29 = vsub.f32 %v6098_v44, %v27690_v53 }
 0x67a   :  { %6061 = vmatprep.mubr.f32.mxu1 %v31422_v10  ;;  %v31264_v37 = vand.u32 4294901760, %v27707_v5 }
 0x67b   :  { %v31270_v1 = vand.u32 4294901760, %v27695_v29 }
 0x67c   :  { %v27741_v0 = vsub.f32 %v27707_v5, %v31264_v37 }
 0x67d   :  { %6063 = vmatmul.mubr.f32.gmra.mrb[14].mxu1 %v27431_v35  ;;  %v27714_v26 = vsub.f32 %v27695_v29, %v31270_v1 }
 0x67e   :  { %6181 = vmatprep.mubr.f32.mxu1 %v31422_v10 }
 0x67f   :  { %v6186_v36 = vand.u32 4294901760, %v27714_v26 }
 0x686   :  { %v6076_v35 = vpop.permute.xlu0 %6075  ;;  %v6074_v17 = vpop.permute.xlu1 %6073 }
 0x68a   :  { %v6080_v61 = vpop.permute.xlu0 %6079  ;;  %v6078_v55 = vpop.permute.xlu1 %6077 }
 0x68e   :  { %v6084_v22 = vpop.permute.xlu0 %6083  ;;  %v6082_v58 = vpop.permute.xlu1 %6081 }
 0x68f   :  { %v6090_v57 = vsel %vm2689_vm3, %v6076_v35, %v6084_v22  ;;  %v6094_v23 = vsel %vm2689_vm3, %v6084_v22, %v6076_v35  ;;  %v6089_v46 = vsel %vm2689_vm3, %v6074_v17, %v6082_v58  ;;  %v6093_v32 = vsel %vm2689_vm3, %v6082_v58, %v6074_v17 }
 0x690   :  { %v6113_v27 = vand.u32 4294901760, %v6090_v57  ;;  %v6115_v9 = vand.u32 4294901760, %v6094_v23  ;;  %v6109_v30 = vand.u32 4294901760, %v6089_v46  ;;  %v6111_v39 = vand.u32 4294901760, %v6093_v32 }
 0x692   :  { %v27744_v34 = vsub.f32 %v6090_v57, %v6113_v27  ;;  %v27746_v19 = vsub.f32 %v6094_v23, %v6115_v9  ;;  %v27748_v48 = vsub.f32 %v6089_v46, %v6109_v30  ;;  %v6088_v43 = vpop.permute.xlu0 %6087  ;;  %v6086_v45 = vpop.permute.xlu1 %6085  ;;  %v27753_v40 = vsub.f32 %v6093_v32, %v6111_v39  ;;  %v10512_v46 = vld [vmem:[#allocation2 + $0xb0] sm:$0xff] }
 0x693   :  { %v6092_v21 = vsel %vm2689_vm3, %v6080_v61, %v6088_v43  ;;  %v6096_v31 = vsel %vm2689_vm3, %v6088_v43, %v6080_v61  ;;  %v6091_v20 = vsel %vm2689_vm3, %v6078_v55, %v6086_v45  ;;  %v27762_v7 = vpack.c.bf16 %v6115_v9, %v6111_v39 }
 0x694   :  { %v31271_v3 = vand.u32 4294901760, %v27746_v19  ;;  %v31277_v59 = vand.u32 4294901760, %v27748_v48  ;;  %v6121_v6 = vand.u32 4294901760, %v6092_v21  ;;  %v31274_v51 = vand.u32 4294901760, %v27744_v34 }
 0x695   :  { %v31273_v63 = vand.u32 4294901760, %v27753_v40  ;;  %v6123_v11 = vand.u32 4294901760, %v6096_v31  ;;  %v6095_v38 = vsel %vm2689_vm3, %v6086_v45, %v6078_v55  ;;  %v6117_v44 = vand.u32 4294901760, %v6091_v20 }
 0x696   :  { %v6247_v56 = vsub.f32 %v27746_v19, %v31271_v3  ;;  %v27772_v4 = vsub.f32 %v6092_v21, %v6121_v6  ;;  %v6119_v50 = vand.u32 4294901760, %v6095_v38  ;;  %v10526_v8 = vpop.permute.xlu0 %10525  ;;  %v10524_v52 = vpop.permute.xlu1 %10523  ;;  %v27779_v35 = vpack.c.bf16 %v6113_v27, %v6109_v30 }
 0x697   :  { %v6235_v25 = vsub.f32 %v27753_v40, %v31273_v63  ;;  %v27777_v42 = vsub.f32 %v6096_v31, %v6123_v11  ;;  %v6229_v17 = vsub.f32 %v27748_v48, %v31277_v59  ;;  %v27787_v14 = vsub.f32 %v6091_v20, %v6117_v44 }
 0x698   :  { %v6248_v62 = vand.u32 4294901760, %v6247_v56  ;;  %v31267_v61 = vand.u32 4294901760, %v27772_v4  ;;  %v27785_v55 = vpack.c.bf16 %v6123_v11, %v6119_v50  ;;  %v27790_v57 = vsub.f32 %v6095_v38, %v6119_v50  ;;  %22674 = vmatprep.subr.bf16.mxu1 %v27779_v35 }
 0x699   :  { %v6236_v22 = vand.u32 4294901760, %v6235_v25  ;;  %v31266_v58 = vand.u32 4294901760, %v27777_v42  ;;  %v27793_v23 = vpack.c.bf16 %v6121_v6, %v6117_v44  ;;  %v31269_v32 = vand.u32 4294901760, %v27787_v14  ;;  %22676 = vmatpush1.bf16.msra.mxu1 %v27762_v7 }
 0x69a   :  { %v27797_v27 = vpop.permute.xlu0 %10533  ;;  %v27799_v9 = vpop.permute.xlu1 %10531  ;;  %v6230_v30 = vand.u32 4294901760, %v6229_v17  ;;  %v6241_v39 = vsub.f32 %v27744_v34, %v31274_v51  ;;  %v6265_v43 = vsub.f32 %v27772_v4, %v31267_v61  ;;  %v31268_v21 = vand.u32 4294901760, %v27790_v57 }
 0x69b   :  { %v6271_v45 = vsub.f32 %v27777_v42, %v31266_v58  ;;  %22678 = vmatprep.subr.bf16.mxu1 %v27793_v23  ;;  %v10552_v31 = vsel %vm3428_vm4, %v10526_v8, %v27797_v27  ;;  %v27817_v20 = vsub.f32 %v27722_v41, %v27751_v60  ;;  %v10551_v11 = vsel %vm3428_vm4, %v10524_v52, %v27799_v9 }
 0x69c   :  { %v10579_v6 = vand.u32 4294901760, %v10552_v31  ;;  %v6242_v38 = vand.u32 4294901760, %v6241_v39  ;;  %v10567_v56 = vsel %vm738_vm2, %v10512_v46, 0  ;;  %v6259_v50 = vsub.f32 %v27790_v57, %v31268_v21 }
 0x69d   :  { %31558 = vst [vmem:[#allocation13_spill] sm:$0xff] %v27817_v20  ;;  %v6272_v44 = vand.u32 4294901760, %v6271_v45  ;;  %v10575_v25 = vand.u32 4294901760, %v10551_v11  ;;  %v6253_v17 = vsub.f32 %v27787_v14, %v31269_v32  ;;  %22680 = vmatpush1.bf16.msra.mxu1 %v27785_v55  ;;  %v22683_v49 = vpack.c.bf16 %v6248_v62, %v6236_v22 }
 0x69e   :  { %v27830_v41 = vsub.f32 %v10552_v31, %v10579_v6  ;;  %v22681_v37 = vpack.c.bf16 %v6242_v38, %v6230_v30  ;;  %v27832_v58 = vpop.permute.xlu0 %10517  ;;  %v27834_v39 = vpop.permute.xlu1 %10515  ;;  %v6266_v46 = vand.u32 4294901760, %v6265_v43  ;;  %v6260_v45 = vand.u32 4294901760, %v6259_v50  ;;  %v10513_v31 = vld [vmem:[#allocation2 + $0x118] sm:$0xff] }
 0x69f   :  { %v27836_v61 = vsub.f32 %v10551_v11, %v10575_v25  ;;  %v10556_v21 = vsel %vm3428_vm4, %v27832_v58, %v10526_v8  ;;  %v10555_v32 = vsel %vm3428_vm4, %v27834_v39, %v10524_v52  ;;  %v6254_v22 = vand.u32 4294901760, %v6253_v17 }
 0x6a0   :  { %22682 = vmatprep.subr.bf16.mxu1 %v22681_v37  ;;  %v10581_v30 = vand.u32 4294901760, %v10556_v21  ;;  %v10577_v62 = vand.u32 4294901760, %v10555_v32  ;;  %v27844_v38 = vand.u32 4294901760, %v10567_v56  ;;  %6187 = vmatmul.mubr.f32.vlgmr.msra.gmra.mrb[8].mxu1 %v6186_v36  ;;  %v6197_v43 = vand.u32 4294901760, %v27736_v28 }
 0x6a1   :  { %v27849_v11 = vpack.c.bf16 %v10579_v6, %v10575_v25  ;;  %v22687_v50 = vpack.c.bf16 %v6272_v44, %v6260_v45  ;;  %22684 = vmatpush1.bf16.msra.mxu1 %v22683_v49  ;;  %6192 = vmatprep.mubr.f32.mxu1 %v31422_v10  ;;  %v10570_v3 = vsel %vm738_vm2, %v10513_v31, 0  ;;  %v31276_v26 = vand.u32 4294901760, %v27830_v41  ;;  %v10514_v49 = vld [vmem:[#allocation2 + $0x180] sm:$0xff] }
 0x6a2   :  { %31559 = vst [vmem:[#allocation21_spill] sm:$0xff] %v27844_v38  ;;  %v27851_v8 = vsub.f32 %v10556_v21, %v10581_v30  ;;  %v27853_v1 = vpack.c.bf16 %v10581_v30, %v10577_v62  ;;  %v27855_v52 = vsub.f32 %v10555_v32, %v10577_v62  ;;  %v10530_v37 = vpop.permute.xlu0 %10529  ;;  %v10528_v17 = vpop.permute.xlu1 %10527  ;;  %v31275_v36 = vand.u32 4294901760, %v27836_v61 }
 0x6a3   :  { %31560 = vst [vmem:[#allocation20_spill] sm:$0xff] %v27849_v11  ;;  %v22685_v28 = vpack.c.bf16 %v6266_v46, %v6254_v22  ;;  %22962 = vmatprep.subr.bf16.mxu0 %v27849_v11  ;;  %v6208_v21 = vand.u32 4294901760, %v27741_v0  ;;  %v6218_v32 = vsub.f32 %v27719_v54, %v31272_v24  ;;  %v27868_v6 = vand.u32 4294901760, %v27817_v20 }
 0x6a4   :  { %31561 = vst [vmem:[#allocation30_spill] sm:$0xff] %v27853_v1  ;;  %22964 = vmatpush1.bf16.msra.mxu0 %v27853_v1  ;;  %v27871_v44 = vsub.f32 %v10567_v56, %v27844_v38  ;;  %v31279_v25 = vand.u32 4294901760, %v27851_v8  ;;  %v31281_v46 = vand.u32 4294901760, %v27855_v52  ;;  %6198 = vmatmul.mubr.f32.gmra.mrb[10].mxu1 %v6197_v43  ;;  %v22689_v0 = vpack.c.bf16 %v27744_v34, %v27748_v48 }
 0x6a5   :  { %31562 = vst [vmem:[#allocation19_spill] sm:$0xff] %v27868_v6  ;;  %22686 = vmatprep.subr.bf16.mxu1 %v22685_v28  ;;  %v27877_v45 = vand.u32 4294901760, %v10570_v3  ;;  %6203 = vmatprep.mubr.f32.mxu1 %v31422_v10  ;;  %v10573_v56 = vsel %vm738_vm2, %v10514_v49, 0  ;;  %v10695_v43 = vsub.f32 %v27836_v61, %v31275_v36  ;;  %v6219_v49 = vand.u32 4294901760, %v6218_v32 }
 0x6a6   :  { %22688 = vmatpush1.bf16.msra.mxu1 %v22687_v50  ;;  %v27880_v31 = vpop.permute.xlu0 %10537  ;;  %v27882_v30 = vpop.permute.xlu1 %10535  ;;  %v10707_v50 = vsub.f32 %v27830_v41, %v31276_v26  ;;  %v10713_v63 = vsub.f32 %v27851_v8, %v31279_v25  ;;  %v10701_v51 = vsub.f32 %v27855_v52, %v31281_v46  ;;  %v27906_v36 = vand.u32 4294901760, %v27871_v44 }
 0x6a7   :  { %31563 = vst [vmem:[#allocation18_spill] sm:$0xff] %v27877_v45  ;;  %22690 = vmatprep.subr.bf16.mxu1 %v22689_v0  ;;  %v10554_v62 = vsel %vm3428_vm4, %v10530_v37, %v27880_v31  ;;  %v10553_v22 = vsel %vm3428_vm4, %v10528_v17, %v27882_v30  ;;  %v10651_v0 = vsub.f32 %v27817_v20, %v27868_v6  ;;  %v27922_v46 = vand.u32 4294901760, %v10573_v56 }
 0x6a8   :  { %v10587_v28 = vand.u32 4294901760, %v10554_v62  ;;  %v10583_v24 = vand.u32 4294901760, %v10553_v22  ;;  %6209 = vmatmul.mubr.f32.gmra.mrb[12].mxu1 %v6208_v21  ;;  %31564 = vst [vmem:[#allocation27_spill] sm:$0xff] %v27906_v36  ;;  %v27909_v26 = vsub.f32 %v10570_v3, %v27877_v45 }
 0x6a9   :  { %6214 = vmatprep.mubr.f32.mxu1 %v31422_v10  ;;  %v27933_v45 = vand.u32 4294901760, %v10651_v0 }
 0x6aa   :  { %v27911_v59 = vsub.f32 %v10554_v62, %v10587_v28  ;;  %v27913_v32 = vsub.f32 %v10553_v22, %v10583_v24  ;;  %v27916_v18 = vpop.permute.xlu0 %10521  ;;  %v27918_v25 = vpop.permute.xlu1 %10519  ;;  %v27920_v15 = vpack.c.bf16 %v10587_v28, %v10583_v24  ;;  %v10696_v62 = vand.u32 4294901760, %v10695_v43 }
 0x6ab   :  { %v10558_v21 = vsel %vm3428_vm4, %v27916_v18, %v10530_v37  ;;  %v10557_v3 = vsel %vm3428_vm4, %v27918_v25, %v10528_v17  ;;  %v10708_v22 = vand.u32 4294901760, %v10707_v50  ;;  %v10714_v24 = vand.u32 4294901760, %v10713_v63  ;;  %31565 = vst [vmem:[#allocation26_spill] sm:$0xff] %v27933_v45 }
 0x6ac   :  { %v31295_v6 = vand.u32 4294901760, %v27913_v32  ;;  %v10589_v1 = vand.u32 4294901760, %v10558_v21  ;;  %v10585_v20 = vand.u32 4294901760, %v10557_v3  ;;  %22966 = vmatprep.subr.bf16.mxu0 %v27920_v15  ;;  %v10702_v28 = vand.u32 4294901760, %v10701_v51  ;;  %6220 = vmatmul.mubr.f32.gmra.mrb[14].mxu1 %v6219_v49 }
 0x6ad   :  { %v10662_v37 = vsub.f32 %v27871_v44, %v27906_v36  ;;  %6330 = vmatprep.mubr.f32.mxu1 %v31422_v10  ;;  %v22969_v63 = vpack.c.bf16 %v10708_v22, %v10696_v62  ;;  %v31568_v49 = vand.u32 4294901760, %v27911_v59  ;;  %v22693_v22 = vpack.c.bf16 %v27772_v4, %v27787_v14 }
 0x6ae   :  { %v27937_v54 = vsub.f32 %v10558_v21, %v10589_v1  ;;  %v27939_v17 = vpack.c.bf16 %v10589_v1, %v10585_v20  ;;  %v27941_v43 = vsub.f32 %v10557_v3, %v10585_v20  ;;  %v27944_v50 = vpop.permute.xlu0 %6813  ;;  %v27946_v33 = vpop.permute.xlu1 %6811  ;;  %v10719_v51 = vsub.f32 %v27913_v32, %v31295_v6 }
 0x6af   :  { %31566 = vst [vmem:[#allocation33_spill] sm:$0xff] %v27944_v50  ;;  %31567 = vst [vmem:[#allocation32_spill] sm:$0xff] %v27946_v33  ;;  %v10731_v0 = vsub.f32 %v27911_v59, %v31568_v49  ;;  %v27955_v1 = vand.u32 4294901760, %v27909_v26  ;;  %v27958_v20 = vsub.f32 %v10573_v56, %v27922_v46  ;;  %v22691_v21 = vpack.c.bf16 %v27746_v19, %v27753_v40 }
 0x6b0   :  { %v31299_v3 = vand.u32 4294901760, %v27937_v54  ;;  %v31300_v36 = vand.u32 4294901760, %v27941_v43  ;;  %22968 = vmatpush1.bf16.msra.mxu0 %v27939_v17  ;;  %v10720_v62 = vand.u32 4294901760, %v10719_v51  ;;  %6332 = vmatmul.mubr.f32.vlgmr.msra.gmra.mrb[8].mxu1 %v27690_v53  ;;  %v22971_v53 = vpack.c.bf16 %v10714_v24, %v10702_v28 }
 0x6b1   :  { %31569 = vst [vmem:[#allocation25_spill] sm:$0xff] %v27955_v1  ;;  %22970 = vmatprep.subr.bf16.mxu0 %v22969_v63  ;;  %v10732_v49 = vand.u32 4294901760, %v10731_v0  ;;  %22692 = vmatpush1.bf16.msra.mxu1 %v22691_v21  ;;  %v27980_v0 = vand.u32 4294901760, %v10662_v37 }
 0x6b2   :  { %v10737_v56 = vsub.f32 %v27937_v54, %v31299_v3  ;;  %v10725_v6 = vsub.f32 %v27941_v43, %v31300_v36  ;;  %6337 = vmatprep.mubr.f32.mxu1 %v31422_v10  ;;  %v27975_v33 = vpop.permute.xlu0 %6817  ;;  %v27977_v51 = vpop.permute.xlu1 %6815  ;;  %22694 = vmatprep.subr.bf16.mxu1 %v22693_v22  ;;  %v10673_v3 = vsub.f32 %v27909_v26, %v27955_v1 }
 0x6b3   :  { %31570 = vst [vmem:[#allocation24_spill] sm:$0xff] %v27977_v51  ;;  %10653 = vmatmul.mubr.f32.vlgmr.msra.gmra.mrb[16].mxu0 %v27933_v45  ;;  %v22973_v63 = vpack.c.bf16 %v10732_v49, %v10720_v62  ;;  %31571 = vst [vmem:[#allocation23_spill] sm:$0xff] %v27980_v0  ;;  %v22695_v36 = vpack.c.bf16 %v27777_v42, %v27790_v57  ;;  %v27988_v51 = vand.u32 4294901760, %v27958_v20 }
 0x6b4   :  { %v10738_v21 = vand.u32 4294901760, %v10737_v56  ;;  %v10726_v50 = vand.u32 4294901760, %v10725_v6  ;;  %22972 = vmatpush1.bf16.msra.mxu0 %v22971_v53  ;;  %10658 = vmatprep.mubr.f32.mxu0 %v31422_v10  ;;  %v27998_v53 = vand.u32 4294901760, %v10673_v3 }
 0x6b5   :  { %31572 = vst [vmem:[#allocation22_spill] sm:$0xff] %v27988_v51  ;;  %6339 = vmatmul.mubr.f32.gmra.mrb[10].mxu1 %v27697_v16  ;;  %22974 = vmatprep.subr.bf16.mxu0 %v22973_v63  ;;  %v10684_v6 = vsub.f32 %v27958_v20, %v27988_v51 }
 0x6b6   :  { %22696 = vmatpush1.bf16.msra.mxu1 %v22695_v36  ;;  %6344 = vmatprep.mubr.f32.mxu1 %v31422_v10  ;;  %v27992_v24 = vpop.permute.xlu0 %6821  ;;  %v27994_v28 = vpop.permute.xlu1 %6819  ;;  %v22975_v37 = vpack.c.bf16 %v10738_v21, %v10726_v50  ;;  %31573 = vst [vmem:[#allocation29_spill] sm:$0xff] %v27998_v53  ;;  %v22977_v36 = vpack.c.bf16 %v27830_v41, %v27836_v61 }
 0x6b7   :  { %22698 = vmatprep.subr.bf16.mxu1 %v27779_v35  ;;  %10664 = vmatmul.mubr.f32.gmra.mrb[18].mxu0 %v27980_v0  ;;  %v28012_v3 = vand.u32 4294901760, %v10684_v6  ;;  %v31576_v0 = vand.u32 4294901760, %v27744_v34 }
 0x6b8   :  { %22976 = vmatpush1.bf16.msra.mxu0 %v22975_v37  ;;  %10669 = vmatprep.mubr.f32.mxu0 %v31422_v10  ;;  %v22979_v37 = vpack.c.bf16 %v27851_v8, %v27855_v52 }
 0x6b9   :  { %6346 = vmatmul.mubr.f32.gmra.mrb[12].mxu1 %v27699_v12  ;;  %22978 = vmatprep.subr.bf16.mxu0 %v22977_v36  ;;  %31574 = vst [vmem:[#allocation28_spill] sm:$0xff] %v28012_v3 }
 0x6ba   :  { %6351 = vmatprep.mubr.f32.mxu1 %v31422_v10  ;;  %v28006_v62 = vpop.permute.xlu0 %6825  ;;  %v28008_v50 = vpop.permute.xlu1 %6823 }
 0x6bb   :  { %10675 = vmatmul.mubr.f32.gmra.mrb[20].mxu0 %v27998_v53  ;;  %v31575_v53 = vand.u32 4294901760, %v27748_v48 }
 0x6bc   :  { %10680 = vmatprep.mubr.f32.mxu0 %v31422_v10 }
 0x6bd   :  { %6353 = vmatmul.mubr.f32.gmra.mrb[14].mxu1 %v27709_v2  ;;  %v22705_v45 = vpack.c.bf16 %v31576_v0, %v31575_v53 }
 0x6be   :  { %6439 = vmatprep.mubr.f32.mxu1 %v31422_v10  ;;  %v10542_v22 = vpop.permute.xlu0 %10541  ;;  %v10540_v56 = vpop.permute.xlu1 %10539 }
 0x6bf   :  { %v10548_v49 = vsel %vm3428_vm4, %v27797_v27, %v10542_v22  ;;  %10686 = vmatmul.mubr.f32.gmra.mrb[22].mxu0 %v28012_v3  ;;  %v10560_v27 = vsel %vm3428_vm4, %v10542_v22, %v27832_v58  ;;  %v10547_v6 = vsel %vm3428_vm4, %v27799_v9, %v10540_v56  ;;  %v10559_v36 = vsel %vm3428_vm4, %v10540_v56, %v27834_v39 }
 0x6c0   :  { %10796 = vmatprep.mubr.f32.mxu0 %v31422_v10  ;;  %v11271_v63 = vand.u32 4294901760, %v10548_v49  ;;  %v22981_v58 = vpack.c.bf16 %v27911_v59, %v27913_v32  ;;  %v11265_v22 = vand.u32 4294901760, %v10559_v36  ;;  %v11267_v51 = vand.u32 4294901760, %v10547_v6 }
 0x6c1   :  { %6442 = vmatmul.mubr.f32.vlgmr.msra.gmra.mrb[8].mxu1 %v27695_v29  ;;  %v11269_v34 = vand.u32 4294901760, %v10560_v27 }
 0x6c2   :  { %22700 = vmatpush1.bf16.msra.mxu1 %v27762_v7  ;;  %6447 = vmatprep.mubr.f32.mxu1 %v31422_v10  ;;  %v10546_v21 = vpop.permute.xlu0 %10545  ;;  %v28037_v3 = vsub.f32 %v10548_v49, %v11271_v63  ;;  %v10544_v39 = vpop.permute.xlu1 %10543  ;;  %v28056_v53 = vpack.c.bf16 %v11271_v63, %v11267_v51  ;;  %v28058_v49 = vsub.f32 %v10547_v6, %v11267_v51 }
 0x6c3   :  { %22702 = vmatprep.subr.bf16.mxu1 %v27793_v23  ;;  %10798 = vmatmul.mubr.f32.vlgmr.msra.gmra.mrb[16].mxu0 %v27751_v60  ;;  %v10550_v9 = vsel %vm3428_vm4, %v27880_v31, %v10546_v21  ;;  %v10562_v48 = vsel %vm3428_vm4, %v10546_v21, %v27916_v18  ;;  %v22983_v18 = vpack.c.bf16 %v27937_v54, %v27941_v43  ;;  %v31582_v60 = vld [vmem:[#allocation36_spill] sm:$0xff] }
 0x6c4   :  { %22980 = vmatpush1.bf16.msra.mxu0 %v22979_v37  ;;  %31577 = vst [vmem:[#allocation37_spill] sm:$0xff] %v28056_v53  ;;  %v11277_v56 = vand.u32 4294901760, %v10562_v48  ;;  %v11279_v31 = vand.u32 4294901760, %v10550_v9  ;;  %v10549_v21 = vsel %vm3428_vm4, %v27882_v30, %v10544_v39  ;;  %v10561_v37 = vsel %vm3428_vm4, %v10544_v39, %v27918_v25  ;;  %10803 = vmatprep.mubr.f32.mxu0 %v31422_v10 }
 0x6c5   :  { %6450 = vmatmul.mubr.f32.gmra.mrb[10].mxu1 %v27704_v47  ;;  %22982 = vmatprep.subr.bf16.mxu0 %v22981_v58  ;;  %v28069_v63 = vsub.f32 %v10559_v36, %v11265_v22  ;;  %v28078_v30 = vsub.f32 %v10560_v27, %v11269_v34  ;;  %v11273_v58 = vand.u32 4294901760, %v10561_v37  ;;  %v11275_v0 = vand.u32 4294901760, %v10549_v21 }
 0x6c6   :  { %22704 = vmatpush1.bf16.msra.mxu1 %v27785_v55  ;;  %6455 = vmatprep.mubr.f32.mxu1 %v31422_v10  ;;  %v28074_v6 = vsub.f32 %v10550_v9, %v11279_v31  ;;  %v31579_v25 = vand.u32 4294901760, %v28037_v3  ;;  %v28087_v39 = vsub.f32 %v10562_v48, %v11277_v56  ;;  %v31583_v48 = vld [vmem:[#allocation18_spill] sm:$0xff] }
 0x6c7   :  { %22706 = vmatprep.subr.bf16.mxu1 %v22705_v45  ;;  %v31314_v45 = vand.u32 4294901760, %v28058_v49  ;;  %10805 = vmatmul.mubr.f32.gmra.mrb[18].mxu0 %v27844_v38  ;;  %v28092_v27 = vpack.c.bf16 %v11279_v31, %v11275_v0  ;;  %v28094_v53 = vsub.f32 %v10561_v37, %v11273_v58  ;;  %v11396_v1 = vand.u32 4294901760, %v28078_v30 }
 0x6c8   :  { %31578 = vst [vmem:[#allocation38_spill] sm:$0xff] %v28074_v6  ;;  %22984 = vmatpush1.bf16.msra.mxu0 %v22983_v18  ;;  %v11403_v36 = vsub.f32 %v28037_v3, %v31579_v25  ;;  %v11426_v51 = vand.u32 4294901760, %v28074_v6  ;;  %10810 = vmatprep.mubr.f32.mxu0 %v31422_v10  ;;  %v28096_v18 = vsub.f32 %v10549_v21, %v11275_v0  ;;  %v11384_v25 = vand.u32 4294901760, %v28069_v63 }
 0x6c9   :  { %6458 = vmatmul.mubr.f32.gmra.mrb[12].mxu1 %v27707_v5  ;;  %v11391_v9 = vsub.f32 %v28058_v49, %v31314_v45  ;;  %22986 = vmatprep.subr.bf16.mxu0 %v27849_v11  ;;  %31580 = vst [vmem:[#allocation39_spill] sm:$0xff] %v28092_v27  ;;  %v28102_v45 = vpack.c.bf16 %v11269_v34, %v11265_v22  ;;  %v11420_v37 = vand.u32 4294901760, %v28087_v39  ;;  %v11408_v27 = vand.u32 4294901760, %v28094_v53 }
 0x6ca   :  { %6463 = vmatprep.mubr.f32.mxu1 %v31422_v10  ;;  %31581 = vst [vmem:[#allocation40_spill] sm:$0xff] %v28096_v18  ;;  %v11427_v38 = vsub.f32 %v28074_v6, %v11426_v51  ;;  %v11414_v2 = vand.u32 4294901760, %v28096_v18  ;;  %v11404_v0 = vand.u32 4294901760, %v11403_v36  ;;  %v31585_v34 = vand.u32 4294901760, %v27753_v40 }
 0x6cb   :  { %10812 = vmatmul.mubr.f32.gmra.mrb[20].mxu0 %v31583_v48  ;;  %31584 = vst [vmem:[#allocation36_spill] sm:$0xff] %v28102_v45  ;;  %v11392_v21 = vand.u32 4294901760, %v11391_v9  ;;  %v31586_v45 = vand.u32 4294901760, %v27746_v19  ;;  %v31587_v31 = vand.u32 4294901760, %v27695_v29  ;;  %v31588_v6 = vand.u32 4294901760, %v27787_v14 }
 0x6cc   :  { %10817 = vmatprep.mubr.f32.mxu0 %v31422_v10  ;;  %v11428_v48 = vand.u32 4294901760, %v11427_v38  ;;  %v11415_v22 = vsub.f32 %v28096_v18, %v11414_v2  ;;  %v31589_v36 = vand.u32 4294901760, %v27772_v4  ;;  %v28124_v12 = vpack.c.bf16 %v11277_v56, %v11273_v58 }
 0x6cd   :  { %6466 = vmatmul.mubr.f32.gmra.mrb[14].mxu1 %v31582_v60  ;;  %v22707_v11 = vpack.c.bf16 %v31586_v45, %v31585_v34  ;;  %v11385_v38 = vsub.f32 %v28069_v63, %v11384_v25  ;;  %v11397_v19 = vsub.f32 %v28078_v30, %v11396_v1  ;;  %v28130_v40 = vpack.c.bf16 %v11404_v0, %v11392_v21  ;;  %v31593_v0 = vld [vmem:[#allocation13_spill] sm:$0xff] }
 0x6ce   :  { %6544 = vmatprep.mubr.f32.mxu1 %v31422_v10  ;;  %v22709_v9 = vpack.c.bf16 %v31589_v36, %v31588_v6  ;;  %v11416_v18 = vand.u32 4294901760, %v11415_v22  ;;  %v11409_v4 = vsub.f32 %v28094_v53, %v11408_v27  ;;  %v11421_v14 = vsub.f32 %v28087_v39, %v11420_v37 }
 0x6cf   :  { %10819 = vmatmul.mubr.f32.gmra.mrb[22].mxu0 %v27922_v46  ;;  %v11386_v29 = vand.u32 4294901760, %v11385_v38  ;;  %v31590_v56 = vand.u32 4294901760, %v27790_v57  ;;  %v31591_v45 = vand.u32 4294901760, %v27777_v42  ;;  %v31592_v22 = vand.u32 4294901760, %v27704_v47  ;;  %v31594_v57 = vld [vmem:[#allocation30_spill] sm:$0xff] }
 0x6d0   :  { %10905 = vmatprep.mubr.f32.mxu0 %v31422_v10  ;;  %v28138_v58 = vpack.c.bf16 %v11428_v48, %v11416_v18  ;;  %v11410_v21 = vand.u32 4294901760, %v11409_v4  ;;  %v11422_v34 = vand.u32 4294901760, %v11421_v14  ;;  %v28154_v47 = vpack.c.bf16 %v11396_v1, %v11384_v25 }
 0x6d1   :  { %6548 = vmatmul.mubr.f32.vlgmr.msra.gmra.mrb[8].mxu1 %v31587_v31  ;;  %v22711_v6 = vpack.c.bf16 %v31591_v45, %v31590_v56  ;;  %v31595_v48 = vand.u32 4294901760, %v28058_v49  ;;  %v31598_v1 = vand.u32 4294901760, %v27836_v61  ;;  %v31599_v25 = vand.u32 4294901760, %v27830_v41  ;;  %v31618_v31 = vld [vmem:[#allocation14_spill] sm:$0xff] }
 0x6d2   :  { %22708 = vmatpush1.bf16.msra.mxu1 %v22707_v11  ;;  %6553 = vmatprep.mubr.f32.mxu1 %v31422_v10  ;;  %v11398_v11 = vand.u32 4294901760, %v11397_v19  ;;  %v28152_v18 = vpack.c.bf16 %v11422_v34, %v11410_v21  ;;  %v28164_v19 = vpack.c.bf16 %v11420_v37, %v11408_v27  ;;  %v31602_v27 = vld [vmem:[#allocation32_spill] sm:$0xff]  ;;  %v31604_v14 = vand.u32 4294901760, %v27855_v52 }
 0x6d3   :  { %22710 = vmatprep.subr.bf16.mxu1 %v22709_v9  ;;  %10908 = vmatmul.mubr.f32.vlgmr.msra.gmra.mrb[16].mxu0 %v31593_v0  ;;  %v31596_v9 = vand.u32 4294901760, %v28037_v3  ;;  %v22993_v4 = vpack.c.bf16 %v31599_v25, %v31598_v1  ;;  %v6831_v61 = vsel %vm3428_vm4, %v27994_v28, %v31602_v27  ;;  %v31605_v56 = vand.u32 4294901760, %v27851_v8  ;;  %v31611_v25 = vld [vmem:[#allocation24_spill] sm:$0xff] }
 0x6d4   :  { %v28148_v42 = vpack.c.bf16 %v11398_v11, %v11386_v29  ;;  %22988 = vmatpush1.bf16.msra.mxu0 %v31594_v57  ;;  %10913 = vmatprep.mubr.f32.mxu0 %v31422_v10  ;;  %v28166_v29 = vpack.c.bf16 %v11426_v51, %v11414_v2  ;;  %v31600_v2 = vand.u32 4294901760, %v31582_v60  ;;  %v6847_v37 = vand.u32 4294901760, %v6831_v61  ;;  %v31603_v60 = vld [vmem:[#allocation31_spill] sm:$0xff] }
 0x6d5   :  { %6557 = vmatmul.mubr.f32.gmra.mrb[10].mxu1 %v31592_v22  ;;  %22990 = vmatprep.subr.bf16.mxu0 %v27920_v15  ;;  %v28162_v38 = vpack.c.bf16 %v31596_v9, %v31595_v48  ;;  %v22995_v45 = vpack.c.bf16 %v31605_v56, %v31604_v14  ;;  %v31608_v8 = vand.u32 4294901760, %v27911_v59  ;;  %v31609_v59 = vand.u32 4294901760, %v27941_v43  ;;  %v31613_v43 = vld [vmem:[#allocation27_spill] sm:$0xff] }
 0x6d6   :  { %22712 = vmatpush1.bf16.msra.mxu1 %v22711_v6  ;;  %6562 = vmatprep.mubr.f32.mxu1 %v31422_v10  ;;  %v6807_v6 = vld [vmem:[#allocation2 + $0x30] sm:$0xff]  ;;  %v28203_v22 = vsub.f32 %v6831_v61, %v6847_v37  ;;  %v6829_v56 = vsel %vm3428_vm4, %v31611_v25, %v28008_v50 }
 0x6d7   :  { %22714 = vmatprep.subr.bf16.mxu1 %v27779_v35  ;;  %v31597_v35 = vand.u32 4294901760, %v27707_v5  ;;  %10916 = vmatmul.mubr.f32.gmra.mrb[18].mxu0 %v27871_v44  ;;  %v31601_v5 = vld [vmem:[#allocation33_spill] sm:$0xff]  ;;  %v6836_v34 = vsel %vm738_vm2, %v6807_v6, 0 }
 0x6d8   :  { %10921 = vmatprep.mubr.f32.mxu0 %v31422_v10  ;;  %22992 = vmatpush1.bf16.msra.mxu0 %v27939_v17  ;;  %v6832_v51 = vsel %vm3428_vm4, %v27992_v24, %v31601_v5  ;;  %v6828_v48 = vsel %vm3428_vm4, %v31601_v5, %v27992_v24  ;;  %v31327_v1 = vand.u32 4294901760, %v28203_v22  ;;  %v6834_v24 = vsel %vm3428_vm4, %v28006_v62, %v27975_v33  ;;  %v31616_v6 = vld [vmem:[#allocation25_spill] sm:$0xff] }
 0x6d9   :  { %6566 = vmatmul.mubr.f32.gmra.mrb[12].mxu1 %v31597_v35  ;;  %22994 = vmatprep.subr.bf16.mxu0 %v22993_v4  ;;  %v6851_v41 = vand.u32 4294901760, %v6832_v51  ;;  %v31612_v4 = vld [vmem:[#allocation34_spill] sm:$0xff]  ;;  %v6853_v5 = vand.u32 4294901760, %v6828_v48  ;;  %v6859_v61 = vand.u32 4294901760, %v6834_v24 }
 0x6da   :  { %6571 = vmatprep.mubr.f32.mxu1 %v31422_v10 }
 0x6db   :  { %10924 = vmatmul.mubr.f32.gmra.mrb[20].mxu0 %v27909_v26  ;;  %v28201_v11 = vsub.f32 %v6832_v51, %v6851_v41  ;;  %v28206_v21 = vpack.c.bf16 %v6851_v41, %v6847_v37  ;;  %v31614_v37 = vld [vmem:[#allocation20_spill] sm:$0xff] }
 0x6dc   :  { %10929 = vmatprep.mubr.f32.mxu0 %v31422_v10 }
 0x6dd   :  { %6575 = vmatmul.mubr.f32.gmra.mrb[14].mxu1 %v31600_v2  ;;  %v31326_v35 = vand.u32 4294901760, %v28201_v11  ;;  %v28244_v2 = vand.u32 4294901760, %v6836_v34 }
 0x6de   :  { %6669 = vmatprep.mubr.f32.mxu1 %v31422_v10 }
 0x6df   :  { %10932 = vmatmul.mubr.f32.gmra.mrb[22].mxu0 %v27958_v20 }
 0x6e0   :  { %11010 = vmatprep.mubr.f32.mxu0 %v31422_v10 }
 0x6e1   :  { %6671 = vmatmul.mubr.f32.vlgmr.msra.gmra.mrb[8].mxu1 %v31603_v60 }
 0x6e2   :  { %22716 = vmatpush1.bf16.msra.mxu1 %v27762_v7  ;;  %6676 = vmatprep.mubr.f32.mxu1 %v31422_v10  ;;  %v31606_v7 = vld [vmem:[#allocation19_spill] sm:$0xff] }
 0x6e3   :  { %22718 = vmatprep.subr.bf16.mxu1 %v27793_v23  ;;  %11014 = vmatmul.mubr.f32.vlgmr.msra.gmra.mrb[16].mxu0 %v31606_v7  ;;  %v31607_v23 = vand.u32 4294901760, %v27913_v32  ;;  %v31610_v32 = vand.u32 4294901760, %v27937_v54  ;;  %v6808_v54 = vld [vmem:[#allocation2 + $0x98] sm:$0xff] }
 0x6e4   :  { %22996 = vmatpush1.bf16.msra.mxu0 %v22995_v45  ;;  %11019 = vmatprep.mubr.f32.mxu0 %v31422_v10  ;;  %v6839_v14 = vsel %vm738_vm2, %v6808_v54, 0  ;;  %v31615_v45 = vld [vmem:[#allocation35_spill] sm:$0xff]  ;;  %v6857_v54 = vand.u32 4294901760, %v6829_v56 }
 0x6e5   :  { %6678 = vmatmul.mubr.f32.gmra.mrb[10].mxu1 %v27697_v16  ;;  %v22997_v52 = vpack.c.bf16 %v31608_v8, %v31607_v23  ;;  %v22999_v9 = vpack.c.bf16 %v31610_v32, %v31609_v59  ;;  %v6967_v23 = vsub.f32 %v28203_v22, %v31327_v1  ;;  %v28275_v59 = vand.u32 4294901760, %v6839_v14  ;;  %v6809_v32 = vld [vmem:[#allocation2 + $0x100] sm:$0xff] }
 0x6e6   :  { %22720 = vmatpush1.bf16.msra.mxu1 %v27785_v55  ;;  %6683 = vmatprep.mubr.f32.mxu1 %v31422_v10  ;;  %v6827_v55 = vsel %vm3428_vm4, %v31602_v27, %v27994_v28  ;;  %v6833_v28 = vsel %vm3428_vm4, %v28008_v50, %v31611_v25  ;;  %v6830_v27 = vsel %vm3428_vm4, %v27975_v33, %v28006_v62 }
 0x6e7   :  { %22722 = vmatprep.subr.bf16.mxu1 %v28206_v21  ;;  %22998 = vmatprep.subr.bf16.mxu0 %v22997_v52  ;;  %v6849_v51 = vand.u32 4294901760, %v6827_v55  ;;  %v6855_v41 = vand.u32 4294901760, %v6833_v28  ;;  %v6979_v33 = vsub.f32 %v28201_v11, %v31326_v35  ;;  %v28267_v62 = vsub.f32 %v6836_v34, %v28244_v2  ;;  %v31617_v34 = vld [vmem:[#allocation22_spill] sm:$0xff] }
 0x6e8   :  { %11023 = vmatmul.mubr.f32.gmra.mrb[18].mxu0 %v31613_v43  ;;  %v28269_v50 = vsub.f32 %v6828_v48, %v6853_v5  ;;  %v28277_v25 = vsub.f32 %v6834_v24, %v6859_v61  ;;  %v6968_v48 = vand.u32 4294901760, %v6967_v23 }
 0x6e9   :  { %6685 = vmatmul.mubr.f32.gmra.mrb[12].mxu1 %v31612_v4  ;;  %11028 = vmatprep.mubr.f32.mxu0 %v31422_v10  ;;  %v28271_v8 = vpack.c.bf16 %v6853_v5, %v6849_v51  ;;  %v28273_v52 = vsub.f32 %v6827_v55, %v6849_v51  ;;  %v28282_v36 = vpack.c.bf16 %v6859_v61, %v6855_v41  ;;  %v6980_v5 = vand.u32 4294901760, %v6979_v33  ;;  %v6810_v51 = vld [vmem:[#allocation2 + $0x168] sm:$0xff] }
 0x6ea   :  { %6690 = vmatprep.mubr.f32.mxu1 %v31422_v10  ;;  %23000 = vmatpush1.bf16.msra.mxu0 %v22999_v9  ;;  %v6861_v9 = vand.u32 4294901760, %v6830_v27  ;;  %v6842_v55 = vsel %vm738_vm2, %v6809_v32, 0  ;;  %v28300_v33 = vsub.f32 %v6829_v56, %v6857_v54  ;;  %v25048_v32 = vmov 8  }
 0x6eb   :  { %23002 = vmatprep.subr.bf16.mxu0 %v31614_v37  ;;  %v28279_v37 = vsub.f32 %v6833_v28, %v6855_v41  ;;  %v28293_v28 = vsub.f32 %v6839_v14, %v28275_v59  ;;  %v31331_v61 = vand.u32 4294901760, %v28273_v52  ;;  %24911 = vset.pattern.permute.xlu1 %v25048_v32  ;;  %v31329_v35 = vand.u32 4294901760, %v28277_v25 }
 0x6ec   :  { %11032 = vmatmul.mubr.f32.gmra.mrb[20].mxu0 %v31616_v6  ;;  %v28296_v41 = vsub.f32 %v6830_v27, %v6861_v9  ;;  %v28298_v23 = vpack.c.bf16 %v6861_v9, %v6857_v54  ;;  %24912 = vset.pattern.permute.xlu0 %v25048_v32  ;;  %v22729_v14 = vpack.c.bf16 %v6980_v5, %v6968_v48  ;;  %v28306_v24 = vand.u32 4294901760, %v6842_v55 }
 0x6ed   :  { %6692 = vmatmul.mubr.f32.gmra.mrb[14].mxu1 %v31615_v45  ;;  %11037 = vmatprep.mubr.f32.mxu0 %v31422_v10  ;;  %v31330_v1 = vand.u32 4294901760, %v28279_v37  ;;  %v6845_v27 = vsel %vm738_vm2, %v6810_v51, 0  ;;  %v31619_v9 = vand.u32 4294901760, %v28269_v50  ;;  %v6973_v48 = vsub.f32 %v28273_v52, %v31331_v61 }
 0x6ee   :  { %6770 = vmatprep.mubr.f32.mxu1 %v31422_v10  ;;  %v31334_v5 = vand.u32 4294901760, %v28296_v41  ;;  %v31337_v51 = vand.u32 4294901760, %v28300_v33 }
 0x6ef   :  { %v6985_v54 = vsub.f32 %v28269_v50, %v31619_v9  ;;  %v6991_v32 = vsub.f32 %v28279_v37, %v31330_v1  ;;  %v28335_v9 = vsub.f32 %v6842_v55, %v28306_v24  ;;  %v6974_v1 = vand.u32 4294901760, %v6973_v48 }
 0x6f0   :  { %11041 = vmatmul.mubr.f32.gmra.mrb[22].mxu0 %v31617_v34  ;;  %v7009_v61 = vsub.f32 %v28296_v41, %v31334_v5 }
 0x6f1   :  { %6772 = vmatmul.mubr.f32.vlgmr.msra.gmra.mrb[8].mxu1 %v31603_v60  ;;  %11135 = vmatprep.mubr.f32.mxu0 %v31422_v10  ;;  %v31328_v60 = vand.u32 4294901760, %v28267_v62  ;;  %v6986_v55 = vand.u32 4294901760, %v6985_v54  ;;  %v31624_v54 = vld [vmem:[#allocation18_spill] sm:$0xff]  ;;  %v6992_v48 = vand.u32 4294901760, %v6991_v32  ;;  %v6944_v5 = vand.u32 4294901760, %v28335_v9 }
 0x6f2   :  { %22724 = vmatpush1.bf16.msra.mxu1 %v28271_v8  ;;  %6777 = vmatprep.mubr.f32.mxu1 %v31422_v10 }
 0x6f3   :  { %22726 = vmatprep.subr.bf16.mxu1 %v28282_v36  ;;  %v6923_v56 = vsub.f32 %v28267_v62, %v31328_v60  ;;  %v28337_v60 = vand.u32 4294901760, %v6845_v27  ;;  %v22731_v32 = vpack.c.bf16 %v6986_v55, %v6974_v1  ;;  %v6945_v34 = vsub.f32 %v28335_v9, %v6944_v5 }
 0x6f4   :  { %11137 = vmatmul.mubr.f32.vlgmr.msra.gmra.mrb[16].mxu0 %v31618_v31  ;;  %v22737_v1 = vpack.c.bf16 %v28201_v11, %v28203_v22 }
 0x6f5   :  { %6779 = vmatmul.mubr.f32.gmra.mrb[10].mxu1 %v27697_v16  ;;  %23004 = vmatpush1.bf16.msra.mxu0 %v31594_v57  ;;  %v31332_v16 = vand.u32 4294901760, %v28293_v28  ;;  %v31620_v57 = vld [vmem:[#allocation21_spill] sm:$0xff] }
 0x6f6   :  { %22728 = vmatpush1.bf16.msra.mxu1 %v28298_v23  ;;  %6784 = vmatprep.mubr.f32.mxu1 %v31422_v10 }
 0x6f7   :  { %22730 = vmatprep.subr.bf16.mxu1 %v22729_v14  ;;  %23006 = vmatprep.subr.bf16.mxu0 %v27920_v15  ;;  %v7003_v14 = vsub.f32 %v28277_v25, %v31329_v35  ;;  %v6924_v15 = vand.u32 4294901760, %v6923_v56  ;;  %v28348_v35 = vld [vmem:[%s31146_s4] sm:$0xff] }
 0x6f8   :  { %11142 = vmatprep.mubr.f32.mxu0 %v31422_v10  ;;  %31621 = vst [vmem:[#allocation13_spill] sm:$0xff] %v28348_v35  ;;  %5352 = vperm.xlu1 %24911, %v28348_v35   ;;  %v31622_v56 = vld [vmem:[#allocation36_spill] sm:$0xff]  ;;  %v28368_v35 = vsub.f32 %v6845_v27, %v28337_v60 }
 0x6f9   :  { %6786 = vmatmul.mubr.f32.gmra.mrb[12].mxu1 %v31612_v4  ;;  %11144 = vmatmul.mubr.f32.gmra.mrb[18].mxu0 %v31620_v57  ;;  %v6934_v4 = vsub.f32 %v28293_v28, %v31332_v16  ;;  %v28361_v16 = vld [vmem:[%s31146_s4 + $0x8] sm:$0xff]  ;;  %v7004_v13 = vand.u32 4294901760, %v7003_v14 }
 0x6fa   :  { %6791 = vmatprep.mubr.f32.mxu1 %v31422_v10  ;;  %11149 = vmatprep.mubr.f32.mxu0 %v31422_v10  ;;  %31623 = vst [vmem:[#allocation30_spill] sm:$0xff] %v28361_v16  ;;  %v6955_v6 = vand.u32 4294901760, %v28368_v35 }
 0x6fb   :  { %23008 = vmatpush1.bf16.msra.mxu0 %v27939_v17  ;;  %v6997_v17 = vsub.f32 %v28300_v33, %v31337_v51  ;;  %5356 = vperm.xlu0 %24912, %v28361_v16   ;;  %v28375_v51 = vld [vmem:[%s31146_s4 + $0x10] sm:$0xff]  ;;  %v22733_v14 = vpack.c.bf16 %v7004_v13, %v6992_v48  ;;  %v6935_v27 = vand.u32 4294901760, %v6934_v4  ;;  %v28388_v13 = vld [vmem:[%s31146_s4 + $0x18] sm:$0xff]  ;;  %v22741_v48 = vpack.c.bf16 %v28277_v25, %v28279_v37 }
 0x6fc   :  { %23010 = vmatprep.subr.bf16.mxu0 %v31622_v56  ;;  %5360 = vperm.xlu1 %24911, %v28375_v51   ;;  %v6956_v4 = vsub.f32 %v28368_v35, %v6955_v6 }
 0x6fd   :  { %6793 = vmatmul.mubr.f32.gmra.mrb[14].mxu1 %v31615_v45  ;;  %11151 = vmatmul.mubr.f32.gmra.mrb[20].mxu0 %v31624_v54  ;;  %v7010_v45 = vand.u32 4294901760, %v7009_v61  ;;  %v6998_v16 = vand.u32 4294901760, %v6997_v17  ;;  %v22739_v17 = vpack.c.bf16 %v28269_v50, %v28273_v52 }
 0x6fe   :  { %6919 = vmatprep.mubr.f32.mxu1 %v31422_v10  ;;  %11156 = vmatprep.mubr.f32.mxu0 %v31422_v10  ;;  %v6957_v55 = vand.u32 4294901760, %v6956_v4  ;;  %v31643_v4 = vand.u32 4294901760, %v28277_v25 }
 0x6ff   :  { %v22735_v61 = vpack.c.bf16 %v7010_v45, %v6998_v16  ;;  %v31625_v16 = vld [vmem:[#allocation37_spill] sm:$0xff]  ;;  %v31627_v45 = vld [vmem:[#allocation26_spill] sm:$0xff] }
 0x700   :  { %5364 = vperm.xlu1 %24911, %v28388_v13  }
 0x701   :  { %6925 = vmatmul.mubr.f32.vlgmr.msra.gmra.mrb[8].mxu1 %v6924_v15  ;;  %11158 = vmatmul.mubr.f32.gmra.mrb[22].mxu0 %v27922_v46  ;;  %v6946_v15 = vand.u32 4294901760, %v6945_v34  ;;  %v31626_v34 = vld [vmem:[#allocation39_spill] sm:$0xff] }
 0x702   :  { %22732 = vmatpush1.bf16.msra.mxu1 %v22731_v32  ;;  %6930 = vmatprep.mubr.f32.mxu1 %v31422_v10  ;;  %v31628_v32 = vld [vmem:[#allocation23_spill] sm:$0xff] }
 0x703   :  { %22734 = vmatprep.subr.bf16.mxu1 %v22733_v14  ;;  %11236 = vmatprep.mubr.f32.mxu0 %v31422_v10  ;;  %v31629_v14 = vpack.c.bf16 %v28078_v30, %v28069_v63  ;;  %v31632_v63 = vand.u32 4294901760, %v28203_v22  ;;  %v31633_v30 = vand.u32 4294901760, %v28201_v11  ;;  %v31636_v11 = vld [vmem:[#allocation38_spill] sm:$0xff]  ;;  %v31637_v22 = vld [vmem:[#allocation40_spill] sm:$0xff] }
 0x705   :  { %6936 = vmatmul.mubr.f32.gmra.mrb[10].mxu1 %v6935_v27  ;;  %11238 = vmatmul.mubr.f32.vlgmr.msra.gmra.mrb[16].mxu0 %v31618_v31  ;;  %v31634_v27 = vpack.c.bf16 %v28037_v3, %v28058_v49  ;;  %v31639_v3 = vand.u32 4294901760, %v28273_v52  ;;  %v31644_v52 = vand.u32 4294901760, %v28300_v33 }
 0x706   :  { %22736 = vmatpush1.bf16.msra.mxu1 %v22735_v61  ;;  %6941 = vmatprep.mubr.f32.mxu1 %v31422_v10  ;;  %v31635_v61 = vpack.c.bf16 %v28087_v39, %v28094_v53  ;;  %v31640_v53 = vand.u32 4294901760, %v28269_v50  ;;  %v31641_v39 = vand.u32 4294901760, %v28267_v62  ;;  %v31645_v50 = vand.u32 4294901760, %v28296_v41 }
 0x707   :  { %22738 = vmatprep.subr.bf16.mxu1 %v22737_v1  ;;  %23012 = vmatpush1.bf16.msra.mxu0 %v31625_v16  ;;  %v31638_v1 = vpack.c.bf16 %v31636_v11, %v31637_v22 }
 0x708   :  { %23014 = vmatprep.subr.bf16.mxu0 %v28124_v12  ;;  %11243 = vmatprep.mubr.f32.mxu0 %v31422_v10  ;;  %v22755_v49 = vpack.c.bf16 %v31640_v53, %v31639_v3 }
 0x709   :  { %6947 = vmatmul.mubr.f32.gmra.mrb[12].mxu1 %v6946_v15  ;;  %11245 = vmatmul.mubr.f32.gmra.mrb[18].mxu0 %v31620_v57  ;;  %v31642_v15 = vand.u32 4294901760, %v28279_v37 }
 0x70a   :  { %6952 = vmatprep.mubr.f32.mxu1 %v31422_v10  ;;  %11250 = vmatprep.mubr.f32.mxu0 %v31422_v10 }
 0x70b   :  { %23016 = vmatpush1.bf16.msra.mxu0 %v31626_v34 }
 0x70c   :  { %23018 = vmatprep.subr.bf16.mxu0 %v28148_v42  ;;  %v22743_v42 = vpack.c.bf16 %v28296_v41, %v28300_v33 }
 0x70d   :  { %6958 = vmatmul.mubr.f32.gmra.mrb[14].mxu1 %v6957_v55  ;;  %11252 = vmatmul.mubr.f32.gmra.mrb[20].mxu0 %v31624_v54  ;;  %v22757_v55 = vpack.c.bf16 %v31643_v4, %v31642_v15 }
 0x70e   :  { %7068 = vmatprep.mubr.f32.mxu1 %v31422_v10  ;;  %11257 = vmatprep.mubr.f32.mxu0 %v31422_v10 }
 0x711   :  { %7070 = vmatmul.mubr.f32.vlgmr.msra.gmra.mrb[8].mxu1 %v28244_v2  ;;  %11259 = vmatmul.mubr.f32.gmra.mrb[22].mxu0 %v27922_v46 }
 0x712   :  { %22740 = vmatpush1.bf16.msra.mxu1 %v22739_v17  ;;  %7075 = vmatprep.mubr.f32.mxu1 %v31422_v10  ;;  %v22759_v17 = vpack.c.bf16 %v31645_v50, %v31644_v52 }
 0x713   :  { %22742 = vmatprep.subr.bf16.mxu1 %v22741_v48  ;;  %11337 = vmatprep.mubr.f32.mxu0 %v31422_v10 }
 0x715   :  { %7077 = vmatmul.mubr.f32.gmra.mrb[10].mxu1 %v28275_v59  ;;  %11343 = vmatmul.mubr.f32.vlgmr.msra.gmra.mrb[24].mxu0 %v31627_v45 }
 0x716   :  { %22744 = vmatpush1.bf16.msra.mxu1 %v22743_v42  ;;  %7082 = vmatprep.mubr.f32.mxu1 %v31422_v10 }
 0x717   :  { %22746 = vmatprep.subr.bf16.mxu1 %v28206_v21  ;;  %23020 = vmatpush1.bf16.msra.mxu0 %v28130_v40  ;;  %v31630_v40 = vld [vmem:[#allocation29_spill] sm:$0xff] }
 0x718   :  { %23022 = vmatprep.subr.bf16.mxu0 %v28152_v18  ;;  %11348 = vmatprep.mubr.f32.mxu0 %v31422_v10  ;;  %v31631_v18 = vld [vmem:[#allocation28_spill] sm:$0xff] }
 0x719   :  { %7084 = vmatmul.mubr.f32.gmra.mrb[12].mxu1 %v28306_v24  ;;  %11354 = vmatmul.mubr.f32.gmra.mrb[26].mxu0 %v31628_v32 }
 0x71a   :  { %7089 = vmatprep.mubr.f32.mxu1 %v31422_v10  ;;  %11359 = vmatprep.mubr.f32.mxu0 %v31422_v10 }
 0x71b   :  { %23024 = vmatpush1.bf16.msra.mxu0 %v28138_v58  ;;  %v22753_v58 = vpack.c.bf16 %v31633_v30, %v31632_v63 }
 0x71c   :  { %23026 = vmatprep.subr.bf16.mxu0 %v31629_v14 }
 0x71d   :  { %7091 = vmatmul.mubr.f32.gmra.mrb[14].mxu1 %v28337_v60  ;;  %11365 = vmatmul.mubr.f32.gmra.mrb[28].mxu0 %v31630_v40 }
 0x71e   :  { %7177 = vmatprep.mubr.f32.mxu1 %v31422_v10  ;;  %11370 = vmatprep.mubr.f32.mxu0 %v31422_v10 }
 0x721   :  { %7180 = vmatmul.mubr.f32.vlgmr.msra.gmra.mrb[8].mxu1 %v28267_v62  ;;  %11376 = vmatmul.mubr.f32.gmra.mrb[30].mxu0 %v31631_v18  ;;  %v31646_v62 = vand.u32 4294901760, %v28293_v28 }
 0x722   :  { %22748 = vmatpush1.bf16.msra.mxu1 %v28271_v8  ;;  %7185 = vmatprep.mubr.f32.mxu1 %v31422_v10 }
 0x723   :  { %22750 = vmatprep.subr.bf16.mxu1 %v28282_v36  ;;  %11486 = vmatprep.mubr.f32.mxu0 %v31422_v10 }
 0x725   :  { %7188 = vmatmul.mubr.f32.gmra.mrb[10].mxu1 %v28293_v28  ;;  %11488 = vmatmul.mubr.f32.vlgmr.msra.gmra.mrb[24].mxu0 %v31618_v31 }
 0x726   :  { %22752 = vmatpush1.bf16.msra.mxu1 %v28298_v23  ;;  %7193 = vmatprep.mubr.f32.mxu1 %v31422_v10 }
 0x727   :  { %22754 = vmatprep.subr.bf16.mxu1 %v22753_v58  ;;  %23028 = vmatpush1.bf16.msra.mxu0 %v31634_v27 }
 0x728   :  { %23030 = vmatprep.subr.bf16.mxu0 %v31635_v61  ;;  %11493 = vmatprep.mubr.f32.mxu0 %v31422_v10 }
 0x729   :  { %7196 = vmatmul.mubr.f32.gmra.mrb[12].mxu1 %v28335_v9  ;;  %11495 = vmatmul.mubr.f32.gmra.mrb[26].mxu0 %v31620_v57 }
 0x72a   :  { %7201 = vmatprep.mubr.f32.mxu1 %v31422_v10  ;;  %11500 = vmatprep.mubr.f32.mxu0 %v31422_v10 }
 0x72b   :  { %23032 = vmatpush1.bf16.msra.mxu0 %v31638_v1 }
 0x72c   :  { %23034 = vmatprep.subr.bf16.mxu0 %v31622_v56 }
 0x72d   :  { %7204 = vmatmul.mubr.f32.gmra.mrb[14].mxu1 %v28368_v35  ;;  %11502 = vmatmul.mubr.f32.gmra.mrb[28].mxu0 %v31624_v54 }
 0x72e   :  { %7282 = vmatprep.mubr.f32.mxu1 %v31422_v10  ;;  %11507 = vmatprep.mubr.f32.mxu0 %v31422_v10 }
 0x731   :  { %7286 = vmatmul.mubr.f32.vlgmr.msra.gmra.mrb[8].mxu1 %v31641_v39  ;;  %11509 = vmatmul.mubr.f32.gmra.mrb[30].mxu0 %v27922_v46 }
 0x732   :  { %22756 = vmatpush1.bf16.msra.mxu1 %v22755_v49  ;;  %7291 = vmatprep.mubr.f32.mxu1 %v31422_v10 }
 0x733   :  { %22758 = vmatprep.subr.bf16.mxu1 %v22757_v55  ;;  %11595 = vmatprep.mubr.f32.mxu0 %v31422_v10 }
 0x735   :  { %7295 = vmatmul.mubr.f32.gmra.mrb[10].mxu1 %v31646_v62  ;;  %11598 = vmatmul.mubr.f32.vlgmr.msra.gmra.mrb[24].mxu0 %v31593_v0 }
 0x736   :  { %22760 = vmatpush1.bf16.msra.mxu1 %v22759_v17  ;;  %7300 = vmatprep.mubr.f32.mxu1 %v31422_v10 }
 0x737   :  { %22762 = vmatprep.subr.bf16.mxu1 %v28206_v21  ;;  %23036 = vmatpush1.bf16.msra.mxu0 %v31625_v16 }
 0x738   :  { %23038 = vmatprep.subr.bf16.mxu0 %v28124_v12  ;;  %11603 = vmatprep.mubr.f32.mxu0 %v31422_v10 }
 0x739   :  { %7304 = vmatmul.mubr.f32.gmra.mrb[12].mxu1 %v6944_v5  ;;  %11606 = vmatmul.mubr.f32.gmra.mrb[26].mxu0 %v27871_v44  ;;  %v31648_v44 = vld [vmem:[#allocation22_spill] sm:$0xff] }
 0x73a   :  { %7309 = vmatprep.mubr.f32.mxu1 %v31422_v10  ;;  %11611 = vmatprep.mubr.f32.mxu0 %v31422_v10 }
 0x73b   :  { %23040 = vmatpush1.bf16.msra.mxu0 %v31626_v34 }
 0x73c   :  { %23042 = vmatprep.subr.bf16.mxu0 %v28154_v47 }
 0x73d   :  { %7313 = vmatmul.mubr.f32.gmra.mrb[14].mxu1 %v6955_v6  ;;  %11614 = vmatmul.mubr.f32.gmra.mrb[28].mxu0 %v27909_v26  ;;  %v31647_v26 = vld [vmem:[#allocation25_spill] sm:$0xff] }
 0x73e   :  { %7407 = vmatprep.mubr.f32.mxu1 %v31422_v10  ;;  %11619 = vmatprep.mubr.f32.mxu0 %v31422_v10 }
 0x741   :  { %7409 = vmatmul.mubr.f32.vlgmr.msra.gmra.mrb[8].mxu1 %v28244_v2  ;;  %11622 = vmatmul.mubr.f32.gmra.mrb[30].mxu0 %v27958_v20 }
 0x742   :  { %22764 = vmatpush1.bf16.msra.mxu1 %v28271_v8  ;;  %7414 = vmatprep.mubr.f32.mxu1 %v31422_v10 }
 0x743   :  { %22766 = vmatprep.subr.bf16.mxu1 %v28282_v36  ;;  %11700 = vmatprep.mubr.f32.mxu0 %v31422_v10 }
 0x745   :  { %7416 = vmatmul.mubr.f32.gmra.mrb[10].mxu1 %v28275_v59  ;;  %11704 = vmatmul.mubr.f32.vlgmr.msra.gmra.mrb[24].mxu0 %v31606_v7 }
 0x746   :  { %22768 = vmatpush1.bf16.msra.mxu1 %v28298_v23  ;;  %7421 = vmatprep.mubr.f32.mxu1 %v31422_v10 }
 0x747   :  { %23044 = vmatpush1.bf16.msra.mxu0 %v28162_v38  ;;  %11709 = vmatprep.mubr.f32.mxu0 %v31422_v10 }
 0x748   :  { %23046 = vmatprep.subr.bf16.mxu0 %v28164_v19 }
 0x749   :  { %7423 = vmatmul.mubr.f32.gmra.mrb[12].mxu1 %v28306_v24  ;;  %11713 = vmatmul.mubr.f32.gmra.mrb[26].mxu0 %v31613_v43 }
 0x74a   :  { %7428 = vmatprep.mubr.f32.mxu1 %v31422_v10  ;;  %11718 = vmatprep.mubr.f32.mxu0 %v31422_v10 }
 0x74b   :  { %23048 = vmatpush1.bf16.msra.mxu0 %v28166_v29 }
 0x74c   :  { %23050 = vmatprep.subr.bf16.mxu0 %v31622_v56 }
 0x74d   :  { %7430 = vmatmul.mubr.f32.gmra.mrb[14].mxu1 %v28337_v60  ;;  %11722 = vmatmul.mubr.f32.gmra.mrb[28].mxu0 %v31647_v26 }
 0x74e   :  { %7508 = vmatprep.mubr.f32.mxu1 %v31422_v10  ;;  %11727 = vmatprep.mubr.f32.mxu0 %v31422_v10 }
 0x751   :  { %7510 = vmatmul.mubr.f32.vlgmr.msra.gmra.mrb[8].mxu1 %v28244_v2  ;;  %11731 = vmatmul.mubr.f32.gmra.mrb[30].mxu0 %v31648_v44 }
 0x752   :  { %7515 = vmatprep.mubr.f32.mxu1 %v31422_v10  ;;  %11825 = vmatprep.mubr.f32.mxu0 %v31422_v10 }
 0x755   :  { %7517 = vmatmul.mubr.f32.gmra.mrb[10].mxu1 %v28275_v59  ;;  %11827 = vmatmul.mubr.f32.vlgmr.msra.gmra.mrb[24].mxu0 %v31618_v31 }
 0x756   :  { %7522 = vmatprep.mubr.f32.mxu1 %v31422_v10  ;;  %23052 = vmatpush1.bf16.msra.mxu0 %v31625_v16 }
 0x757   :  { %23054 = vmatprep.subr.bf16.mxu0 %v28124_v12  ;;  %11832 = vmatprep.mubr.f32.mxu0 %v31422_v10 }
 0x759   :  { %7524 = vmatmul.mubr.f32.gmra.mrb[12].mxu1 %v28306_v24  ;;  %11834 = vmatmul.mubr.f32.gmra.mrb[26].mxu0 %v31620_v57 }
 0x75a   :  { %7529 = vmatprep.mubr.f32.mxu1 %v31422_v10  ;;  %23056 = vmatpush1.bf16.msra.mxu0 %v31626_v34 }
 0x75b   :  { %11839 = vmatprep.mubr.f32.mxu0 %v31422_v10 }
 0x75d   :  { %7531 = vmatmul.mubr.f32.gmra.mrb[14].mxu1 %v28337_v60  ;;  %11841 = vmatmul.mubr.f32.gmra.mrb[28].mxu0 %v31624_v54 }
 0x75e   :  { %11846 = vmatprep.mubr.f32.mxu0 %v31422_v10  ;;  %12075 = vmatprep.mubr.f32.mxu1 %v31422_v10 }
 0x761   :  { %11848 = vmatmul.mubr.f32.gmra.mrb[30].mxu0 %v27922_v46 }
 0x762   :  { %11926 = vmatprep.mubr.f32.mxu0 %v31422_v10 }
 0x765   :  { %11928 = vmatmul.mubr.f32.vlgmr.msra.gmra.mrb[24].mxu0 %v31618_v31 }
 0x766   :  { %11933 = vmatprep.mubr.f32.mxu0 %v31422_v10 }
 0x769   :  { %11935 = vmatmul.mubr.f32.gmra.mrb[26].mxu0 %v31620_v57 }
 0x76a   :  { %11940 = vmatprep.mubr.f32.mxu0 %v31422_v10 }
 0x76d   :  { %11942 = vmatmul.mubr.f32.gmra.mrb[28].mxu0 %v31624_v54 }
 0x76e   :  { %11947 = vmatprep.mubr.f32.mxu0 %v31422_v10 }
 0x771   :  { %11949 = vmatmul.mubr.f32.gmra.mrb[30].mxu0 %v27922_v46 }
 0x772   :  { %18775 = vmatprep.mubr.f32.mxu0 %v31422_v10 }
 0x777   :  { %v5353_v29 = vpop.permute.xlu1 %5352 }
 0x77a   :  { %v5357_v2 = vpop.permute.xlu0 %5356 }
 0x77b   :  { %v5361_v28 = vpop.permute.xlu1 %5360 }
 0x77f   :  { %v5365_v14 = vpop.permute.xlu1 %5364 }
 0x7d8   :  { %v11239_v12 = vpop.f32.mrb[16].mxu0 }
 0x7d9   :  { %v11241_v20 = vpop.f32.mrb[17].mxu0 }
 0x7dc   :  { %v11246_v0 = vpop.f32.mrb[18].mxu0 }
 0x7dd   :  { %v11248_v36 = vpop.f32.mrb[19].mxu0 }
 0x7e0   :  { %v11253_v47 = vpop.f32.mrb[20].mxu0 }
 0x7e1   :  { %v11255_v31 = vpop.f32.mrb[21].mxu0 }
 0x7e4   :  { %v11260_v38 = vpop.f32.mrb[22].mxu0 }
 0x7e5   :  { %v11262_v19 = vpop.f32.mrb[23].mxu0 }
 0x824   :  { %v7511_v21 = vpop.f32.mrb[8].mxu1 }
 0x825   :  { %v23841_v7 = vadd.f32 %v7511_v21, %v5353_v29  ;;  %v7513_v35 = vpop.f32.mrb[9].mxu1 }
 0x826   :  { %v28560_v43 = vadd.f32 %v7513_v35, %v5353_v29 }
 0x827   :  { %v11971_v6 = vadd.f32 %v23841_v7, %v11239_v12 }
 0x828   :  { %v11972_v46 = vadd.f32 %v28560_v43, %v11241_v20  ;;  %v7518_v8 = vpop.f32.mrb[10].mxu1 }
 0x829   :  { %v28563_v59 = vmax.f32 %v11971_v6, 0.0  ;;  %v28565_v25 = vadd.f32 %v7518_v8, %v5357_v2  ;;  %v7520_v37 = vpop.f32.mrb[11].mxu1 }
 0x82a   :  { %v28567_v24 = vmax.f32 %v11972_v46, 0.0  ;;  %v28569_v60 = vadd.f32 %v7520_v37, %v5357_v2 }
 0x82b   :  { %v11975_v41 = vadd.f32 %v28565_v25, %v11246_v0  ;;  %v12005_v57 = vand.u32 4294901760, %v28563_v59 }
 0x82c   :  { %v11976_v23 = vadd.f32 %v28569_v60, %v11248_v36  ;;  %v7525_v33 = vpop.f32.mrb[12].mxu1  ;;  %v12003_v5 = vand.u32 4294901760, %v28567_v24 }
 0x82d   :  { %v28575_v9 = vmax.f32 %v11975_v41, 0.0  ;;  %v28577_v56 = vadd.f32 %v7525_v33, %v5361_v28  ;;  %v7527_v54 = vpop.f32.mrb[13].mxu1  ;;  %v28591_v63 = vsub.f32 %v28563_v59, %v12005_v57 }
 0x82e   :  { %v28579_v16 = vmax.f32 %v11976_v23, 0.0  ;;  %v28581_v34 = vadd.f32 %v7527_v54, %v5361_v28  ;;  %v28584_v48 = vsub.f32 %v28567_v24, %v12003_v5 }
 0x82f   :  { %v11979_v42 = vadd.f32 %v28577_v56, %v11253_v47  ;;  %v12009_v45 = vand.u32 4294901760, %v28575_v9  ;;  %v12095_v62 = vand.u32 4294901760, %v28591_v63 }
 0x830   :  { %v11980_v32 = vadd.f32 %v28581_v34, %v11255_v31  ;;  %v7532_v40 = vpop.f32.mrb[14].mxu1  ;;  %v12007_v18 = vand.u32 4294901760, %v28579_v16  ;;  %v12089_v11 = vand.u32 4294901760, %v28584_v48 }
 0x831   :  { %v28593_v30 = vmax.f32 %v11979_v42, 0.0  ;;  %v28595_v58 = vadd.f32 %v7532_v40, %v5365_v14  ;;  %v7534_v27 = vpop.f32.mrb[15].mxu1  ;;  %v28598_v61 = vsub.f32 %v28575_v9, %v12009_v45  ;;  %v28611_v39 = vpack.c.bf16 %v12009_v45, %v12005_v57 }
 0x832   :  { %v28601_v22 = vmax.f32 %v11980_v32, 0.0  ;;  %v28603_v1 = vadd.f32 %v7534_v27, %v5365_v14  ;;  %v28605_v3 = vpack.c.bf16 %v12007_v18, %v12003_v5  ;;  %v28608_v53 = vsub.f32 %v28579_v16, %v12007_v18 }
 0x833   :  { %v11983_v49 = vadd.f32 %v28595_v58, %v11260_v38  ;;  %v12013_v15 = vand.u32 4294901760, %v28593_v30  ;;  %v12107_v26 = vand.u32 4294901760, %v28598_v61  ;;  %v12090_v20 = vsub.f32 %v28584_v48, %v12089_v11 }
 0x834   :  { %v11984_v4 = vadd.f32 %v28603_v1, %v11262_v19  ;;  %23058 = vmatprep.subr.bf16.mxu1 %v28605_v3  ;;  %v12011_v55 = vand.u32 4294901760, %v28601_v22  ;;  %v12101_v52 = vand.u32 4294901760, %v28608_v53  ;;  %v12096_v6 = vsub.f32 %v28591_v63, %v12095_v62 }
 0x835   :  { %v28618_v50 = vmax.f32 %v11983_v49, 0.0  ;;  %23060 = vmatpush1.bf16.msra.mxu1 %v28611_v39  ;;  %v28622_v17 = vsub.f32 %v28593_v30, %v12013_v15  ;;  %v12108_v47 = vsub.f32 %v28598_v61, %v12107_v26  ;;  %v12091_v41 = vand.u32 4294901760, %v12090_v20 }
 0x836   :  { %v28626_v44 = vmax.f32 %v11984_v4, 0.0  ;;  %v28629_v12 = vsub.f32 %v28601_v22, %v12011_v55  ;;  %v12102_v0 = vsub.f32 %v28608_v53, %v12101_v52  ;;  %v12097_v32 = vand.u32 4294901760, %v12096_v6 }
 0x837   :  { %v12017_v36 = vand.u32 4294901760, %v28618_v50  ;;  %v12119_v46 = vand.u32 4294901760, %v28622_v17  ;;  %v12109_v23 = vand.u32 4294901760, %v12108_v47 }
 0x838   :  { %v11929_v31 = vpop.f32.mrb[24].mxu0  ;;  %v12015_v38 = vand.u32 4294901760, %v28626_v44  ;;  %v12103_v19 = vand.u32 4294901760, %v12102_v0  ;;  %v12113_v29 = vand.u32 4294901760, %v28629_v12 }
 0x839   :  { %v28643_v21 = vadd.f32 %v23841_v7, %v11929_v31  ;;  %v11931_v35 = vpop.f32.mrb[25].mxu0  ;;  %v28646_v2 = vsub.f32 %v28618_v50, %v12017_v36  ;;  %v28658_v7 = vpack.c.bf16 %v12017_v36, %v12013_v15  ;;  %v12120_v14 = vsub.f32 %v28622_v17, %v12119_v46  ;;  %v31649_v15 = vld [vmem:[#allocation10_spill] sm:$0xff] }
 0x83a   :  { %v11974_v8 = vadd.f32 %v28560_v43, %v11931_v35  ;;  %v28653_v37 = vpack.c.bf16 %v12015_v38, %v12011_v55  ;;  %v28656_v28 = vsub.f32 %v28626_v44, %v12015_v38  ;;  %v23065_v33 = vpack.c.bf16 %v12103_v19, %v12091_v41 }
 0x83b   :  { %v12114_v57 = vsub.f32 %v28629_v12, %v12113_v29  ;;  %v12131_v43 = vand.u32 4294901760, %v28646_v2  ;;  %v23067_v49 = vpack.c.bf16 %v12109_v23, %v12097_v32  ;;  %v12121_v47 = vand.u32 4294901760, %v12120_v14 }
 0x83c   :  { %23062 = vmatprep.subr.bf16.mxu1 %v28653_v37  ;;  %v11936_v5 = vpop.f32.mrb[26].mxu0  ;;  %v12125_v54 = vand.u32 4294901760, %v28656_v28  ;;  %v23073_v19 = vpack.c.bf16 %v28608_v53, %v28584_v48  ;;  %v23075_v23 = vpack.c.bf16 %v28598_v61, %v28591_v63  ;;  %v23091_v32 = vpack.c.bf16 %v12107_v26, %v12095_v62 }
 0x83d   :  { %23064 = vmatpush1.bf16.msra.mxu1 %v28658_v7  ;;  %v11977_v42 = vadd.f32 %v28565_v25, %v11936_v5  ;;  %v11938_v45 = vpop.f32.mrb[27].mxu0  ;;  %v12132_v27 = vsub.f32 %v28646_v2, %v12131_v43  ;;  %v12115_v25 = vand.u32 4294901760, %v12114_v57  ;;  %v28705_v57 = vmax.f32 %v11974_v8, 0.0 }
 0x83e   :  { %23066 = vmatprep.subr.bf16.mxu1 %v23065_v33  ;;  %v11978_v40 = vadd.f32 %v28569_v60, %v11938_v45  ;;  %v12126_v18 = vsub.f32 %v28656_v28, %v12125_v54  ;;  %v31650_v33 = vmov 0.03125   ;;  %v23093_v48 = vpack.c.bf16 %v12125_v54, %v12113_v29 }
 0x83f   :  { %v12133_v20 = vand.u32 4294901760, %v12132_v27  ;;  %v28707_v45 = vmax.f32 %v11977_v42, 0.0  ;;  %v28720_v53 = vmax.f32 %v28643_v21, 0.0  ;;  %v12546_v63 = vand.u32 4294901760, %v28705_v57 }
 0x840   :  { %12081 = vmatmul.mubr.f32.vlgmr.msra.gmra.mrb[16].mxu1 %v31649_v15  ;;  %v11943_v4 = vpop.f32.mrb[28].mxu0  ;;  %v12127_v55 = vand.u32 4294901760, %v12126_v18  ;;  %v28698_v5 = vmax.f32 %v11978_v40, 0.0  ;;  %v31652_v40 = vld [vmem:[#allocation9_spill] sm:$0xff]  ;;  %v23095_v26 = vpack.c.bf16 %v12131_v43, %v12119_v46 }
 0x841   :  { %23068 = vmatpush1.bf16.msra.mxu1 %v23067_v49  ;;  %v11981_v0 = vadd.f32 %v28577_v56, %v11943_v4  ;;  %v11945_v36 = vpop.f32.mrb[29].mxu0  ;;  %12191 = vmatprep.mubr.f32.mxu1 %v31422_v10  ;;  %v23071_v38 = vpack.c.bf16 %v12133_v20, %v12121_v47  ;;  %v12552_v61 = vand.u32 4294901760, %v28707_v45  ;;  %v12548_v21 = vand.u32 4294901760, %v28720_v53 }
 0x842   :  { %v11982_v60 = vadd.f32 %v28581_v34, %v11945_v36  ;;  %v23069_v31 = vpack.c.bf16 %v12127_v55, %v12115_v25  ;;  %v23077_v34 = vpack.c.bf16 %v28656_v28, %v28629_v12  ;;  %v23089_v28 = vpack.c.bf16 %v12101_v52, %v12089_v11 }
 0x843   :  { %v12550_v11 = vand.u32 4294901760, %v28698_v5  ;;  %v28738_v8 = vmax.f32 %v11981_v0, 0.0  ;;  %v28742_v54 = vsub.f32 %v28705_v57, %v12546_v63 }
 0x844   :  { %23070 = vmatprep.subr.bf16.mxu1 %v23069_v31  ;;  %v11950_v35 = vpop.f32.mrb[30].mxu0  ;;  %v28723_v52 = vmax.f32 %v11982_v60, 0.0  ;;  %v28786_v60 = vpack.c.bf16 %v12552_v61, %v12548_v21 }
 0x845   :  { %23072 = vmatpush1.bf16.msra.mxu1 %v23071_v38  ;;  %v11985_v6 = vadd.f32 %v28595_v58, %v11950_v35  ;;  %v11952_v41 = vpop.f32.mrb[31].mxu0  ;;  %v23079_v58 = vpack.c.bf16 %v28646_v2, %v28622_v17  ;;  %v28734_v12 = vsub.f32 %v28698_v5, %v12550_v11  ;;  %v28746_v2 = vsub.f32 %v28707_v45, %v12552_v61 }
 0x846   :  { %23074 = vmatprep.subr.bf16.mxu1 %v23073_v19  ;;  %v11986_v56 = vadd.f32 %v28603_v1, %v11952_v41  ;;  %v31651_v1 = vld [vmem:[#allocation8_spill] sm:$0xff]  ;;  %v12554_v17 = vand.u32 4294901760, %v28723_v52  ;;  %v12556_v18 = vand.u32 4294901760, %v28738_v8  ;;  %v12632_v49 = vand.u32 4294901760, %v28742_v54 }
 0x847   :  { %v28727_v62 = vmax.f32 %v11985_v6, 0.0  ;;  %v12644_v42 = vand.u32 4294901760, %v28734_v12  ;;  %v12650_v25 = vand.u32 4294901760, %v28746_v2  ;;  %v28770_v55 = vpack.c.bf16 %v12550_v11, %v12546_v63 }
 0x848   :  { %22237 = vmatmul.mubr.msk.f32.vlgmr.msra.gmra.mrb[16].mxu1 %vm738_vm2, %v31650_v33  ;;  %v28713_v14 = vmax.f32 %v11986_v56, 0.0  ;;  %v28763_v27 = vsub.f32 %v28723_v52, %v12554_v17  ;;  %v12633_v36 = vsub.f32 %v28742_v54, %v12632_v49 }
 0x849   :  { %23076 = vmatpush1.bf16.msra.mxu1 %v23075_v23  ;;  %12279 = vmatprep.mubr.f32.mxu1 %v31422_v10  ;;  %v12560_v46 = vand.u32 4294901760, %v28727_v62  ;;  %v12651_v31 = vsub.f32 %v28746_v2, %v12650_v25 }
 0x84a   :  { %23078 = vmatprep.subr.bf16.mxu1 %v23077_v34  ;;  %v12558_v29 = vand.u32 4294901760, %v28713_v14  ;;  %v12656_v47 = vand.u32 4294901760, %v28763_v27  ;;  %v12634_v56 = vand.u32 4294901760, %v12633_v36 }
 0x84b   :  { %v28767_v4 = vsub.f32 %v28727_v62, %v12560_v46  ;;  %v28809_v34 = vpack.c.bf16 %v12560_v46, %v12556_v18 }
 0x84c   :  { %v28752_v43 = vsub.f32 %v28713_v14, %v12558_v29  ;;  %v12657_v23 = vsub.f32 %v28763_v27, %v12656_v47 }
 0x84d   :  { %23080 = vmatpush1.bf16.msra.mxu1 %v23079_v58  ;;  %v12674_v38 = vand.u32 4294901760, %v28767_v4  ;;  %v12652_v58 = vand.u32 4294901760, %v12651_v31  ;;  %v25049_v31 = vmov 9  }
 0x84e   :  { %23082 = vmatprep.subr.bf16.mxu1 %v28605_v3  ;;  %v12668_v20 = vand.u32 4294901760, %v28752_v43  ;;  %v12658_v61 = vand.u32 4294901760, %v12657_v23  ;;  %v23125_v36 = vpack.c.bf16 %v28752_v43, %v28763_v27  ;;  %24914 = vset.pattern.permute.xlu1 %v25049_v31  ;;  %v23137_v23 = vpack.c.bf16 %v12644_v42, %v12632_v49 }
 0x84f   :  { %24913 = vset.pattern.permute.xlu0 %v25049_v31  ;;  %v13102_v49 = vmul.f32 %v28626_v44, %v28626_v44 }
 0x850   :  { %12282 = vmatmul.mubr.f32.vlgmr.msra.gmra.mrb[16].mxu1 %v31651_v1  ;;  %v12669_v35 = vsub.f32 %v28752_v43, %v12668_v20  ;;  %v13101_v43 = vmul.f32 %v28618_v50, %v28618_v50 }
 0x851   :  { %23084 = vmatpush1.bf16.msra.mxu1 %v28611_v39  ;;  %12360 = vmatprep.mubr.f32.mxu1 %v31422_v10 }
 0x852   :  { %23086 = vmatprep.subr.bf16.mxu1 %v28653_v37 }
 0x855   :  { %23088 = vmatpush1.bf16.msra.mxu1 %v28658_v7 }
 0x856   :  { %23090 = vmatprep.subr.bf16.mxu1 %v23089_v28  ;;  %v12675_v28 = vsub.f32 %v28767_v4, %v12674_v38 }
 0x858   :  { %12364 = vmatmul.mubr.f32.vlgmr.msra.gmra.mrb[16].mxu1 %v31652_v40 }
 0x859   :  { %23092 = vmatpush1.bf16.msra.mxu1 %v23091_v32  ;;  %12458 = vmatprep.mubr.f32.mxu1 %v31422_v10 }
 0x85a   :  { %23094 = vmatprep.subr.bf16.mxu1 %v23093_v48  ;;  %v12670_v48 = vand.u32 4294901760, %v12669_v35  ;;  %v31653_v35 = vld [vmem:[#allocation30_spill] sm:$0xff] }
 0x85b   :  { %14280 = vperm.xlu1 %24914, %v31653_v35  }
 0x85d   :  { %23096 = vmatpush1.bf16.msra.mxu1 %v23095_v26 }
 0x85e   :  { %23098 = vmatprep.subr.bf16.mxu1 %v28605_v3  ;;  %v28756_v3 = vsub.f32 %v28720_v53, %v12548_v21  ;;  %v23117_v21 = vpack.c.bf16 %v12670_v48, %v12658_v61  ;;  %v13089_v48 = vmul.f32 %v28563_v59, %v28563_v59 }
 0x860   :  { %22238 = vmatmul.mubr.msk.f32.vlgmr.msra.gmra.mrb[16].mxu1 %vm738_vm2, %v31650_v33  ;;  %v12638_v0 = vand.u32 4294901760, %v28756_v3 }
 0x861   :  { %23100 = vmatpush1.bf16.msra.mxu1 %v28611_v39  ;;  %12538 = vmatprep.mubr.f32.mxu1 %v31422_v10  ;;  %v12645_v39 = vsub.f32 %v28734_v12, %v12644_v42 }
 0x862   :  { %23102 = vmatprep.subr.bf16.mxu1 %v28653_v37  ;;  %v28777_v37 = vsub.f32 %v28738_v8, %v12556_v18  ;;  %v12639_v6 = vsub.f32 %v28756_v3, %v12638_v0  ;;  %v23121_v18 = vpack.c.bf16 %v28734_v12, %v28742_v54  ;;  %v23139_v12 = vpack.c.bf16 %v12650_v25, %v12638_v0 }
 0x863   :  { %v12646_v19 = vand.u32 4294901760, %v12645_v39  ;;  %v23123_v39 = vpack.c.bf16 %v28746_v2, %v28756_v3  ;;  %v23141_v54 = vpack.c.bf16 %v12668_v20, %v12656_v47  ;;  %v13117_v20 = vand.u32 4294901760, %v13102_v49 }
 0x864   :  { %v12662_v41 = vand.u32 4294901760, %v28777_v37  ;;  %v12640_v11 = vand.u32 4294901760, %v12639_v6  ;;  %v31654_v6 = vld [vmem:[#allocation13_spill] sm:$0xff]  ;;  %v13097_v0 = vmul.f32 %v28593_v30, %v28593_v30  ;;  %v13107_v47 = vand.u32 4294901760, %v13089_v48 }
 0x865   :  { %23104 = vmatpush1.bf16.msra.mxu1 %v28658_v7  ;;  %v28794_v7 = vpack.c.bf16 %v12558_v29, %v12554_v17  ;;  %v23113_v32 = vpack.c.bf16 %v12646_v19, %v12634_v56  ;;  %v12676_v29 = vand.u32 4294901760, %v12675_v28  ;;  %v23127_v19 = vpack.c.bf16 %v28767_v4, %v28777_v37  ;;  %14276 = vperm.xlu0 %24913, %v31654_v6  }
 0x866   :  { %23106 = vmatprep.subr.bf16.mxu1 %v28770_v55  ;;  %v12663_v63 = vsub.f32 %v28777_v37, %v12662_v41  ;;  %v23115_v26 = vpack.c.bf16 %v12652_v58, %v12640_v11  ;;  %v25050_v56 = vmov 10   ;;  %v13094_v58 = vmul.f32 %v28579_v16, %v28579_v16 }
 0x867   :  { %24915 = vset.pattern.permute.xlu1 %v25050_v56  ;;  %v13090_v28 = vmul.f32 %v28567_v24, %v28567_v24  ;;  %v23143_v3 = vpack.c.bf16 %v12674_v38, %v12662_v41  ;;  %v13119_v37 = vand.u32 4294901760, %v13101_v43  ;;  %v28888_v4 = vsub.f32 %v13102_v49, %v13117_v20 }
 0x868   :  { %22239 = vmatmul.mubr.msk.f32.vlgmr.msra.gmra.mrb[16].mxu1 %vm738_vm2, %v31650_v33  ;;  %v12664_v17 = vand.u32 4294901760, %v12663_v63  ;;  %14308 = vperm.xlu1 %24915, %v31654_v6   ;;  %v13109_v42 = vand.u32 4294901760, %v13094_v58  ;;  %v13115_v41 = vand.u32 4294901760, %v13097_v0 }
 0x869   :  { %23108 = vmatpush1.bf16.msra.mxu1 %v28786_v60  ;;  %12618 = vmatprep.mubr.f32.mxu1 %v31422_v10  ;;  %v13105_v2 = vand.u32 4294901760, %v13090_v28 }
 0x86a   :  { %23110 = vmatprep.subr.bf16.mxu1 %v28794_v7  ;;  %v23119_v46 = vpack.c.bf16 %v12676_v29, %v12664_v17  ;;  %24916 = vset.pattern.permute.xlu0 %v25050_v56  ;;  %v28876_v25 = vsub.f32 %v13094_v58, %v13109_v42  ;;  %v28899_v29 = vsub.f32 %v13101_v43, %v13119_v37 }
 0x86b   :  { %14312 = vperm.xlu0 %24916, %v31653_v35   ;;  %v28881_v11 = vsub.f32 %v13090_v28, %v13105_v2  ;;  %v28902_v17 = vpack.c.bf16 %v13109_v42, %v13105_v2 }
 0x86c   :  { %24917 = vset.pattern.permute.xlu1 %v25049_v31  ;;  %v13203_v38 = vand.u32 4294901760, %v28876_v25  ;;  %v13233_v35 = vand.u32 4294901760, %v28899_v29 }
 0x86d   :  { %23112 = vmatpush1.bf16.msra.mxu1 %v28809_v34  ;;  %14284 = vperm.xlu1 %24917, %v28375_v51  }
 0x86e   :  { %23114 = vmatprep.subr.bf16.mxu1 %v23113_v32  ;;  %v13093_v32 = vmul.f32 %v28575_v9, %v28575_v9  ;;  %v13234_v42 = vsub.f32 %v28899_v29, %v13233_v35 }
 0x86f   :  { %14316 = vperm.xlu0 %24916, %v28375_v51   ;;  %v13098_v51 = vmul.f32 %v28601_v22, %v28601_v22 }
 0x870   :  { %12624 = vmatmul.mubr.f32.vlgmr.msra.gmra.mrb[18].mxu1 %v31649_v15  ;;  %v13111_v27 = vand.u32 4294901760, %v13093_v32 }
 0x871   :  { %23116 = vmatpush1.bf16.msra.mxu1 %v23115_v26  ;;  %12734 = vmatprep.mubr.f32.mxu1 %v31422_v10  ;;  %v13113_v63 = vand.u32 4294901760, %v13098_v51 }
 0x872   :  { %23118 = vmatprep.subr.bf16.mxu1 %v23117_v21  ;;  %14288 = vperm.xlu1 %24917, %v28388_v13   ;;  %v28883_v61 = vsub.f32 %v13093_v32, %v13111_v27  ;;  %v28915_v31 = vpack.c.bf16 %v13111_v27, %v13107_v47  ;;  %v13235_v27 = vand.u32 4294901760, %v13234_v42 }
 0x873   :  { %v28896_v26 = vsub.f32 %v13098_v51, %v13113_v63 }
 0x874   :  { %v13209_v21 = vand.u32 4294901760, %v28883_v61 }
 0x875   :  { %23120 = vmatpush1.bf16.msra.mxu1 %v23119_v46  ;;  %v13227_v46 = vand.u32 4294901760, %v28888_v4 }
 0x876   :  { %23122 = vmatprep.subr.bf16.mxu1 %v23121_v18  ;;  %24918 = vset.pattern.permute.xlu1 %v25050_v56  ;;  %v28909_v18 = vsub.f32 %v13097_v0, %v13115_v41 }
 0x877   :  { %14320 = vperm.xlu1 %24918, %v28388_v13   ;;  %v13191_v13 = vand.u32 4294901760, %v28881_v11  ;;  %v13228_v56 = vsub.f32 %v28888_v4, %v13227_v46 }
 0x878   :  { %22240 = vmatmul.mubr.msk.f32.vlgmr.msra.gmra.mrb[18].mxu1 %vm738_vm2, %v31650_v33  ;;  %v13221_v58 = vand.u32 4294901760, %v28909_v18 }
 0x879   :  { %23124 = vmatpush1.bf16.msra.mxu1 %v23123_v39  ;;  %12822 = vmatprep.mubr.f32.mxu1 %v31422_v10  ;;  %v13192_v39 = vsub.f32 %v28881_v11, %v13191_v13 }
 0x87a   :  { %23126 = vmatprep.subr.bf16.mxu1 %v23125_v36  ;;  %v13215_v36 = vand.u32 4294901760, %v28896_v26  ;;  %v13222_v51 = vsub.f32 %v28909_v18, %v13221_v58 }
 0x87b   :  { %v13193_v28 = vand.u32 4294901760, %v13192_v39 }
 0x87c   :  { %v13216_v32 = vsub.f32 %v28896_v26, %v13215_v36  ;;  %v13223_v0 = vand.u32 4294901760, %v13222_v51 }
 0x87d   :  { %23128 = vmatpush1.bf16.msra.mxu1 %v23127_v19  ;;  %v13210_v19 = vsub.f32 %v28883_v61, %v13209_v21 }
 0x87e   :  { %23130 = vmatprep.subr.bf16.mxu1 %v28770_v55  ;;  %v13217_v43 = vand.u32 4294901760, %v13216_v32 }
 0x880   :  { %12825 = vmatmul.mubr.f32.vlgmr.msra.gmra.mrb[18].mxu1 %v31651_v1 }
 0x881   :  { %23132 = vmatpush1.bf16.msra.mxu1 %v28786_v60  ;;  %12903 = vmatprep.mubr.f32.mxu1 %v31422_v10 }
 0x882   :  { %23134 = vmatprep.subr.bf16.mxu1 %v28794_v7 }
 0x885   :  { %23136 = vmatpush1.bf16.msra.mxu1 %v28809_v34 }
 0x886   :  { %23138 = vmatprep.subr.bf16.mxu1 %v23137_v23 }
 0x888   :  { %12907 = vmatmul.mubr.f32.vlgmr.msra.gmra.mrb[18].mxu1 %v31652_v40 }
 0x889   :  { %23140 = vmatpush1.bf16.msra.mxu1 %v23139_v12  ;;  %13001 = vmatprep.mubr.f32.mxu1 %v31422_v10  ;;  %v28934_v12 = vpack.c.bf16 %v13119_v37, %v13115_v41  ;;  %v23173_v41 = vpack.c.bf16 %v28888_v4, %v28896_v26  ;;  %v13092_v26 = vmul.f32 %v28705_v57, %v28705_v57 }
 0x88a   :  { %23142 = vmatprep.subr.bf16.mxu1 %v23141_v54  ;;  %v13211_v54 = vand.u32 4294901760, %v13210_v19  ;;  %v13091_v19 = vmul.f32 %v28720_v53, %v28720_v53  ;;  %v23191_v4 = vpack.c.bf16 %v13233_v35, %v13221_v58 }
 0x88d   :  { %23144 = vmatpush1.bf16.msra.mxu1 %v23143_v3 }
 0x88e   :  { %23146 = vmatprep.subr.bf16.mxu1 %v28770_v55  ;;  %v28893_v55 = vsub.f32 %v13089_v48, %v13107_v47  ;;  %v13229_v48 = vand.u32 4294901760, %v13228_v56  ;;  %v23167_v47 = vpack.c.bf16 %v13235_v27, %v13223_v0  ;;  %v13099_v56 = vmul.f32 %v28738_v8, %v28738_v8 }
 0x890   :  { %22241 = vmatmul.mubr.msk.f32.vlgmr.msra.gmra.mrb[18].mxu1 %vm738_vm2, %v31650_v33  ;;  %v23171_v37 = vpack.c.bf16 %v28883_v61, %v28893_v55  ;;  %v13100_v61 = vmul.f32 %v28723_v52, %v28723_v52 }
 0x891   :  { %23148 = vmatpush1.bf16.msra.mxu1 %v28786_v60  ;;  %13081 = vmatprep.mubr.f32.mxu1 %v31422_v10  ;;  %v13204_v60 = vsub.f32 %v28876_v25, %v13203_v38 }
 0x892   :  { %23150 = vmatprep.subr.bf16.mxu1 %v28794_v7  ;;  %v13197_v7 = vand.u32 4294901760, %v28893_v55  ;;  %v13656_v32 = vand.u32 4294901760, %v13100_v61 }
 0x893   :  { %v13205_v6 = vand.u32 4294901760, %v13204_v60  ;;  %v23175_v60 = vpack.c.bf16 %v28899_v29, %v28909_v18  ;;  %v13095_v18 = vmul.f32 %v28707_v45, %v28707_v45 }
 0x894   :  { %v13198_v23 = vsub.f32 %v28893_v55, %v13197_v7  ;;  %v13096_v55 = vmul.f32 %v28698_v5, %v28698_v5  ;;  %v23187_v39 = vpack.c.bf16 %v13209_v21, %v13197_v7  ;;  %v13103_v21 = vmul.f32 %v28727_v62, %v28727_v62 }
 0x895   :  { %23152 = vmatpush1.bf16.msra.mxu1 %v28809_v34  ;;  %v28923_v34 = vpack.c.bf16 %v13117_v20, %v13113_v63  ;;  %v23161_v49 = vpack.c.bf16 %v13205_v6, %v13193_v28  ;;  %v23165_v20 = vpack.c.bf16 %v13229_v48, %v13217_v43  ;;  %v23169_v63 = vpack.c.bf16 %v28876_v25, %v28881_v11 }
 0x896   :  { %23154 = vmatprep.subr.bf16.mxu1 %v28902_v17  ;;  %v13199_v2 = vand.u32 4294901760, %v13198_v23  ;;  %v23185_v11 = vpack.c.bf16 %v13203_v38, %v13191_v13  ;;  %v23189_v25 = vpack.c.bf16 %v13227_v46, %v13215_v36  ;;  %v13652_v38 = vand.u32 4294901760, %v13096_v55 }
 0x897   :  { %v13104_v13 = vmul.f32 %v28713_v14, %v28713_v14  ;;  %v13648_v6 = vand.u32 4294901760, %v13092_v26  ;;  %v13654_v46 = vand.u32 4294901760, %v13095_v18  ;;  %v13650_v23 = vand.u32 4294901760, %v13091_v19 }
 0x898   :  { %22242 = vmatmul.mubr.msk.f32.vlgmr.msra.gmra.mrb[18].mxu1 %vm738_vm2, %v31650_v33  ;;  %v23163_v3 = vpack.c.bf16 %v13211_v54, %v13199_v2  ;;  %v28984_v7 = vsub.f32 %v13096_v55, %v13652_v38  ;;  %v13662_v42 = vand.u32 4294901760, %v13103_v21 }
 0x899   :  { %23156 = vmatpush1.bf16.msra.mxu1 %v28915_v31  ;;  %13177 = vmatprep.mubr.f32.mxu1 %v31422_v10  ;;  %v13660_v36 = vand.u32 4294901760, %v13104_v13  ;;  %v28989_v28 = vsub.f32 %v13092_v26, %v13648_v6  ;;  %v28991_v54 = vsub.f32 %v13095_v18, %v13654_v46  ;;  %v29000_v58 = vsub.f32 %v13091_v19, %v13650_v23 }
 0x89a   :  { %23158 = vmatprep.subr.bf16.mxu1 %v28923_v34  ;;  %v13746_v35 = vand.u32 4294901760, %v28984_v7  ;;  %v29006_v2 = vsub.f32 %v13103_v21, %v13662_v42  ;;  %v29009_v43 = vpack.c.bf16 %v13652_v38, %v13648_v6 }
 0x89b   :  { %v28995_v29 = vsub.f32 %v13104_v13, %v13660_v36  ;;  %v13734_v48 = vand.u32 4294901760, %v28989_v28  ;;  %v13752_v51 = vand.u32 4294901760, %v28991_v54 }
 0x89d   :  { %23160 = vmatpush1.bf16.msra.mxu1 %v28934_v12 }
 0x89e   :  { %23162 = vmatprep.subr.bf16.mxu1 %v23161_v49  ;;  %v29003_v49 = vsub.f32 %v13100_v61, %v13656_v32 }
 0x8a0   :  { %13183 = vmatmul.mubr.f32.vlgmr.msra.gmra.mrb[20].mxu1 %v31649_v15  ;;  %v13758_v0 = vand.u32 4294901760, %v29003_v49 }
 0x8a1   :  { %23164 = vmatpush1.bf16.msra.mxu1 %v23163_v3  ;;  %13293 = vmatprep.mubr.f32.mxu1 %v31422_v10  ;;  %v13770_v3 = vand.u32 4294901760, %v28995_v29 }
 0x8a2   :  { %23166 = vmatprep.subr.bf16.mxu1 %v23165_v20  ;;  %v13735_v20 = vsub.f32 %v28989_v28, %v13734_v48  ;;  %v13759_v18 = vsub.f32 %v29003_v49, %v13758_v0 }
 0x8a4   :  { %v13736_v26 = vand.u32 4294901760, %v13735_v20  ;;  %v13760_v21 = vand.u32 4294901760, %v13759_v18 }
 0x8a5   :  { %23168 = vmatpush1.bf16.msra.mxu1 %v23167_v47  ;;  %v23203_v47 = vpack.c.bf16 %v13654_v46, %v13650_v23 }
 0x8a6   :  { %23170 = vmatprep.subr.bf16.mxu1 %v23169_v63  ;;  %v13753_v63 = vsub.f32 %v28991_v54, %v13752_v51 }
 0x8a8   :  { %22243 = vmatmul.mubr.msk.f32.vlgmr.msra.gmra.mrb[20].mxu1 %vm738_vm2, %v31650_v33 }
 0x8a9   :  { %23172 = vmatpush1.bf16.msra.mxu1 %v23171_v37  ;;  %13381 = vmatprep.mubr.f32.mxu1 %v31422_v10  ;;  %v13776_v37 = vand.u32 4294901760, %v29006_v2 }
 0x8aa   :  { %23174 = vmatprep.subr.bf16.mxu1 %v23173_v41  ;;  %v23205_v41 = vpack.c.bf16 %v13660_v36, %v13656_v32  ;;  %v23217_v32 = vpack.c.bf16 %v28984_v7, %v28989_v28  ;;  %v23233_v28 = vpack.c.bf16 %v13746_v35, %v13734_v48 }
 0x8ab   :  { %v13777_v38 = vsub.f32 %v29006_v2, %v13776_v37 }
 0x8ad   :  { %23176 = vmatpush1.bf16.msra.mxu1 %v23175_v60  ;;  %v13771_v60 = vsub.f32 %v28995_v29, %v13770_v3  ;;  %v13778_v46 = vand.u32 4294901760, %v13777_v38 }
 0x8ae   :  { %23178 = vmatprep.subr.bf16.mxu1 %v28902_v17 }
 0x8af   :  { %v13772_v19 = vand.u32 4294901760, %v13771_v60 }
 0x8b0   :  { %13384 = vmatmul.mubr.f32.vlgmr.msra.gmra.mrb[20].mxu1 %v31651_v1 }
 0x8b1   :  { %23180 = vmatpush1.bf16.msra.mxu1 %v28915_v31  ;;  %13462 = vmatprep.mubr.f32.mxu1 %v31422_v10  ;;  %v23213_v36 = vpack.c.bf16 %v13772_v19, %v13760_v21 }
 0x8b2   :  { %23182 = vmatprep.subr.bf16.mxu1 %v28923_v34 }
 0x8b5   :  { %23184 = vmatpush1.bf16.msra.mxu1 %v28934_v12 }
 0x8b6   :  { %23186 = vmatprep.subr.bf16.mxu1 %v23185_v11 }
 0x8b8   :  { %13466 = vmatmul.mubr.f32.vlgmr.msra.gmra.mrb[20].mxu1 %v31652_v40 }
 0x8b9   :  { %23188 = vmatpush1.bf16.msra.mxu1 %v23187_v39  ;;  %13560 = vmatprep.mubr.f32.mxu1 %v31422_v10 }
 0x8ba   :  { %23190 = vmatprep.subr.bf16.mxu1 %v23189_v25  ;;  %v13754_v25 = vand.u32 4294901760, %v13753_v63 }
 0x8bd   :  { %23192 = vmatpush1.bf16.msra.mxu1 %v23191_v4 }
 0x8be   :  { %23194 = vmatprep.subr.bf16.mxu1 %v28902_v17  ;;  %v13658_v17 = vand.u32 4294901760, %v13099_v56 }
 0x8c0   :  { %22244 = vmatmul.mubr.msk.f32.vlgmr.msra.gmra.mrb[20].mxu1 %vm738_vm2, %v31650_v33  ;;  %v29016_v27 = vsub.f32 %v13099_v56, %v13658_v17  ;;  %v23207_v39 = vpack.c.bf16 %v13662_v42, %v13658_v17  ;;  %v23219_v42 = vpack.c.bf16 %v28991_v54, %v29000_v58  ;;  %v23221_v17 = vpack.c.bf16 %v28995_v29, %v29003_v49 }
 0x8c1   :  { %23196 = vmatpush1.bf16.msra.mxu1 %v28915_v31  ;;  %13640 = vmatprep.mubr.f32.mxu1 %v31422_v10  ;;  %v13747_v31 = vsub.f32 %v28984_v7, %v13746_v35  ;;  %v23237_v29 = vpack.c.bf16 %v13770_v3, %v13758_v0 }
 0x8c2   :  { %23198 = vmatprep.subr.bf16.mxu1 %v28923_v34  ;;  %v13740_v34 = vand.u32 4294901760, %v29000_v58  ;;  %v13764_v55 = vand.u32 4294901760, %v29016_v27 }
 0x8c4   :  { %v13741_v11 = vsub.f32 %v29000_v58, %v13740_v34  ;;  %v13765_v61 = vsub.f32 %v29016_v27, %v13764_v55  ;;  %v23235_v54 = vpack.c.bf16 %v13752_v51, %v13740_v34  ;;  %v23239_v58 = vpack.c.bf16 %v13776_v37, %v13764_v55 }
 0x8c5   :  { %23200 = vmatpush1.bf16.msra.mxu1 %v28934_v12  ;;  %v13748_v12 = vand.u32 4294901760, %v13747_v31  ;;  %v23223_v31 = vpack.c.bf16 %v29006_v2, %v29016_v27  ;;  %v14355_v2 = vld [vmem:[#allocation2 + $0x58] sm:$0xff] }
 0x8c6   :  { %23202 = vmatprep.subr.bf16.mxu1 %v29009_v43  ;;  %v13742_v6 = vand.u32 4294901760, %v13741_v11  ;;  %v13766_v56 = vand.u32 4294901760, %v13765_v61  ;;  %v14376_v3 = vsel %vm738_vm2, %v14355_v2, 0 }
 0x8c7   :  { %v23209_v13 = vpack.c.bf16 %v13748_v12, %v13736_v26  ;;  %v29067_v37 = vand.u32 4294901760, %v14376_v3  ;;  %v14357_v26 = vld [vmem:[#allocation2 + $0x128] sm:$0xff] }
 0x8c8   :  { %22245 = vmatmul.mubr.msk.f32.vlgmr.msra.gmra.mrb[20].mxu1 %vm738_vm2, %v31650_v33  ;;  %v23211_v4 = vpack.c.bf16 %v13754_v25, %v13742_v6  ;;  %v23215_v23 = vpack.c.bf16 %v13778_v46, %v13766_v56  ;;  %v14382_v38 = vsel %vm738_vm2, %v14357_v26, 0  ;;  %v14358_v6 = vld [vmem:[#allocation2 + $0x190] sm:$0xff]  ;;  %v31658_v46 = vld [vmem:[#allocation12_spill] sm:$0xff] }
 0x8c9   :  { %23204 = vmatpush1.bf16.msra.mxu1 %v23203_v47  ;;  %13720 = vmatprep.mubr.f32.mxu1 %v31422_v10  ;;  %v14385_v56 = vsel %vm738_vm2, %v14358_v6, 0 }
 0x8ca   :  { %23206 = vmatprep.subr.bf16.mxu1 %v23205_v41 }
 0x8cd   :  { %23208 = vmatpush1.bf16.msra.mxu1 %v23207_v39 }
 0x8ce   :  { %23210 = vmatprep.subr.bf16.mxu1 %v23209_v13 }
 0x8d0   :  { %13726 = vmatmul.mubr.f32.vlgmr.msra.gmra.mrb[22].mxu1 %v31649_v15 }
 0x8d1   :  { %23212 = vmatpush1.bf16.msra.mxu1 %v23211_v4  ;;  %13836 = vmatprep.mubr.f32.mxu1 %v31422_v10  ;;  %v29088_v4 = vand.u32 4294901760, %v14382_v38 }
 0x8d2   :  { %23214 = vmatprep.subr.bf16.mxu1 %v23213_v36 }
 0x8d5   :  { %23216 = vmatpush1.bf16.msra.mxu1 %v23215_v23 }
 0x8d6   :  { %23218 = vmatprep.subr.bf16.mxu1 %v23217_v32 }
 0x8d8   :  { %22246 = vmatmul.mubr.msk.f32.vlgmr.msra.gmra.mrb[22].mxu1 %vm738_vm2, %v31650_v33 }
 0x8d9   :  { %23220 = vmatpush1.bf16.msra.mxu1 %v23219_v42  ;;  %13924 = vmatprep.mubr.f32.mxu1 %v31422_v10 }
 0x8da   :  { %23222 = vmatprep.subr.bf16.mxu1 %v23221_v17  ;;  %v29064_v51 = vpop.permute.xlu1 %14280 }
 0x8dd   :  { %23224 = vmatpush1.bf16.msra.mxu1 %v23223_v31 }
 0x8de   :  { %23226 = vmatprep.subr.bf16.mxu1 %v29009_v43 }
 0x8e0   :  { %13927 = vmatmul.mubr.f32.vlgmr.msra.gmra.mrb[22].mxu1 %v31651_v1 }
 0x8e1   :  { %23228 = vmatpush1.bf16.msra.mxu1 %v23203_v47  ;;  %14005 = vmatprep.mubr.f32.mxu1 %v31422_v10 }
 0x8e2   :  { %23230 = vmatprep.subr.bf16.mxu1 %v23205_v41 }
 0x8e4   :  { %v29078_v13 = vpop.permute.xlu0 %14276 }
 0x8e5   :  { %23232 = vmatpush1.bf16.msra.mxu1 %v23207_v39 }
 0x8e6   :  { %23234 = vmatprep.subr.bf16.mxu1 %v23233_v28  ;;  %v29103_v28 = vsub.f32 %v14382_v38, %v29088_v4 }
 0x8e7   :  { %v29069_v12 = vpop.permute.xlu1 %14308 }
 0x8e8   :  { %14009 = vmatmul.mubr.f32.vlgmr.msra.gmra.mrb[22].mxu1 %v31652_v40  ;;  %31659 = vst [vmem:[#allocation19_spill] sm:$0xff] %v29103_v28 }
 0x8e9   :  { %23236 = vmatpush1.bf16.msra.mxu1 %v23235_v54  ;;  %14103 = vmatprep.mubr.f32.mxu1 %v31422_v10  ;;  %v29105_v54 = vand.u32 4294901760, %v14385_v56 }
 0x8ea   :  { %23238 = vmatprep.subr.bf16.mxu1 %v23237_v29  ;;  %v29095_v42 = vpop.permute.xlu0 %14312 }
 0x8ec   :  { %v29080_v19 = vpop.permute.xlu1 %14284 }
 0x8ed   :  { %23240 = vmatpush1.bf16.msra.mxu1 %v23239_v58 }
 0x8ee   :  { %23242 = vmatprep.subr.bf16.mxu1 %v29009_v43 }
 0x8f0   :  { %22247 = vmatmul.mubr.msk.f32.vlgmr.msra.gmra.mrb[22].mxu1 %vm738_vm2, %v31650_v33 }
 0x8f1   :  { %23244 = vmatpush1.bf16.msra.mxu1 %v23203_v47  ;;  %14183 = vmatprep.mubr.f32.mxu1 %v31422_v10  ;;  %v14356_v47 = vld [vmem:[#allocation2 + $0xc0] sm:$0xff]  ;;  %v29097_v17 = vpop.permute.xlu1 %14288 }
 0x8f2   :  { %23246 = vmatprep.subr.bf16.mxu1 %v23205_v41  ;;  %v14379_v11 = vsel %vm738_vm2, %v14356_v47, 0 }
 0x8f3   :  { %v29075_v25 = vand.u32 4294901760, %v14379_v11 }
 0x8f5   :  { %23248 = vmatpush1.bf16.msra.mxu1 %v23207_v39  ;;  %v29073_v39 = vsub.f32 %v14376_v3, %v29067_v37  ;;  %v29086_v21 = vsub.f32 %v14379_v11, %v29075_v25 }
 0x8f6   :  { %v29129_v26 = vpop.permute.xlu1 %14320 }
 0x8f7   :  { %31655 = vst [vmem:[#allocation33_spill] sm:$0xff] %v29073_v39  ;;  %v29083_v61 = vand.u32 4294901760, %v29073_v39  ;;  %31657 = vst [vmem:[#allocation31_spill] sm:$0xff] %v29086_v21  ;;  %v29100_v31 = vand.u32 4294901760, %v29086_v21 }
 0x8f8   :  { %22248 = vmatmul.mubr.msk.f32.vlgmr.msra.gmra.mrb[22].mxu1 %vm738_vm2, %v31650_v33 }
 0x8f9   :  { %14459 = vmatprep.mubr.f32.mxu1 %v31422_v10  ;;  %31656 = vst [vmem:[#allocation32_spill] sm:$0xff] %v29083_v61  ;;  %v14463_v32 = vsub.f32 %v29073_v39, %v29083_v61 }
 0x8fb   :  { %v29116_v47 = vand.u32 4294901760, %v14463_v32 }
 0x8fd   :  { %31660 = vst [vmem:[#allocation24_spill] sm:$0xff] %v29116_v47 }
 0x93b   :  { %v12541_v7 = vpop.f32.mrb[16].mxu1 }
 0x93c   :  { %v12543_v35 = vpop.f32.mrb[17].mxu1  ;;  %v14191_v43 = vmul.f32 %v12541_v7, %v12541_v7  ;;  %v14206_v36 = vrot.slane %v12541_v7, %v31658_v46 }
 0x93d   :  { %v14192_v27 = vmul.f32 %v12543_v35, %v12543_v35  ;;  %v14210_v23 = vrot.slane %v12543_v35, %v31658_v46 }
 0x93e   :  { %v14223_v29 = vsub.f32 %v28575_v9, %v14206_v36  ;;  %v14219_v58 = vsub.f32 %v28563_v59, %v14206_v36  ;;  %v14231_v3 = vsub.f32 %v28618_v50, %v14206_v36 }
 0x93f   :  { %v14224_v35 = vsub.f32 %v28579_v16, %v14210_v23  ;;  %v14220_v2 = vsub.f32 %v28567_v24, %v14210_v23  ;;  %v29122_v24 = vand.u32 4294901760, %v29103_v28  ;;  %v29125_v16 = vsub.f32 %v14385_v56, %v29105_v54 }
 0x941   :  { %31661 = vst [vmem:[#allocation34_spill] sm:$0xff] %v29125_v16 }
 0x96b   :  { %v29060_v49 = vpop.f32.mrb[18].mxu1 }
 0x96c   :  { %v29062_v48 = vpop.f32.mrb[19].mxu1 }
 0x99b   :  { %v13643_v34 = vpop.f32.mrb[20].mxu1 }
 0x99c   :  { %v14195_v20 = vsub.f32 %v13643_v34, %v14191_v43  ;;  %v13645_v0 = vpop.f32.mrb[21].mxu1  ;;  %v14227_v43 = vsub.f32 %v28593_v30, %v14206_v36 }
 0x99d   :  { %v14196_v63 = vsub.f32 %v13645_v0, %v14192_v27  ;;  %v14232_v0 = vsub.f32 %v28626_v44, %v14210_v23 }
 0x99e   :  { %v14199_v41 = vmax.f32 %v14195_v20, 0.0  ;;  %v14228_v20 = vsub.f32 %v28601_v22, %v14210_v23 }
 0x99f   :  { %v14200_v60 = vmax.f32 %v14196_v63, 0.0 }
 0x9a0   :  { %v14235_v55 = vadd.f32 1e-05, %v14199_v41 }
 0x9a1   :  { %v14236_v18 = vadd.f32 1e-05, %v14200_v60 }
 0x9a2   :  { %24937 = vrsqrt.f32 %v14235_v55  ;;  %v29127_v55 = vpop.permute.xlu0 %14316 }
 0x9a3   :  { %24939 = vrsqrt.f32 %v14236_v18 }
 0x9ac   :  { %v24938_v7 = vpop.eup %24937 }
 0x9ad   :  { %v24940_v27 = vpop.eup %24939  ;;  %v14246_v34 = vrot.slane %v24938_v7, %v31658_v46 }
 0x9ae   :  { %v14250_v59 = vrot.slane %v24940_v27, %v31658_v46 }
 0x9af   :  { %v14263_v30 = vmul.f32 %v14246_v34, %v14223_v29  ;;  %v14259_v50 = vmul.f32 %v14246_v34, %v14219_v58  ;;  %v14267_v63 = vmul.f32 %v14246_v34, %v14227_v43  ;;  %v14271_v41 = vmul.f32 %v14246_v34, %v14231_v3 }
 0x9b0   :  { %v14264_v22 = vmul.f32 %v14250_v59, %v14224_v35  ;;  %v14260_v60 = vmul.f32 %v14250_v59, %v14220_v2  ;;  %v14268_v44 = vmul.f32 %v14250_v59, %v14228_v20  ;;  %v14272_v11 = vmul.f32 %v14250_v59, %v14232_v0  ;;  %v31662_v20 = vld [vmem:[#allocation16_spill] sm:$0xff] }
 0x9b1   :  { %v14295_v18 = vmul.f32 %v29064_v51, %v14263_v30  ;;  %v14291_v38 = vmul.f32 %v29078_v13, %v14259_v50  ;;  %v14299_v6 = vmul.f32 %v29080_v19, %v14267_v63  ;;  %v14303_v36 = vmul.f32 %v29097_v17, %v14271_v41  ;;  %v31667_v63 = vld [vmem:[#allocation17_spill] sm:$0xff] }
 0x9b2   :  { %v14296_v56 = vmul.f32 %v29064_v51, %v14264_v22  ;;  %v14292_v23 = vmul.f32 %v29078_v13, %v14260_v60  ;;  %v14300_v32 = vmul.f32 %v29080_v19, %v14268_v44  ;;  %v14304_v29 = vmul.f32 %v29097_v17, %v14272_v11 }
 0x9b3   :  { %v14323_v58 = vadd.f32 %v29069_v12, %v14291_v38  ;;  %v14327_v7 = vadd.f32 %v29095_v42, %v14295_v18  ;;  %v14331_v35 = vadd.f32 %v29127_v55, %v14299_v6  ;;  %v14335_v2 = vadd.f32 %v29129_v26, %v14303_v36 }
 0x9b4   :  { %v14324_v43 = vadd.f32 %v29069_v12, %v14292_v23  ;;  %v14328_v3 = vadd.f32 %v29095_v42, %v14296_v56  ;;  %v14332_v27 = vadd.f32 %v29127_v55, %v14300_v32  ;;  %v14336_v34 = vadd.f32 %v29129_v26, %v14304_v29 }
 0x9b5   :  { %v29148_v0 = vmul.f32 %v14327_v7, %v31662_v20  ;;  %v29151_v59 = vmul.f32 %v14323_v58, %v31662_v20  ;;  %v29154_v30 = vmul.f32 %v14335_v2, %v31662_v20  ;;  %v29157_v50 = vmul.f32 %v14331_v35, %v31662_v20 }
 0x9b6   :  { %v29160_v41 = vmul.f32 %v14324_v43, %v31667_v63  ;;  %v29163_v22 = vmul.f32 %v14328_v3, %v31667_v63  ;;  %v29166_v60 = vmul.f32 %v14332_v27, %v31667_v63  ;;  %v29169_v44 = vmul.f32 %v14336_v34, %v31667_v63 }
 0x9b7   :  { %31663 = vst [vmem:[#allocation27_spill] sm:$0xff] %v29148_v0  ;;  %31664 = vst [vmem:[#allocation20_spill] sm:$0xff] %v29151_v59  ;;  %15773 = vrot.lane.b32.xlu1 %v29148_v0, %s25042_s1  ;;  %15771 = vrot.lane.b32.xlu0 %v29151_v59, %s25042_s1  ;;  %v14389_v11 = vand.u32 4294901760, %v29151_v59  ;;  %v14393_v18 = vand.u32 4294901760, %v29148_v0  ;;  %v14397_v38 = vand.u32 4294901760, %v29157_v50  ;;  %v14401_v6 = vand.u32 4294901760, %v29154_v30 }
 0x9b8   :  { %31665 = vst [vmem:[#allocation35_spill] sm:$0xff] %v29154_v30  ;;  %31666 = vst [vmem:[#allocation14_spill] sm:$0xff] %v29157_v50  ;;  %v14387_v36 = vand.u32 4294901760, %v29160_v41  ;;  %v14391_v56 = vand.u32 4294901760, %v29163_v22  ;;  %v14395_v23 = vand.u32 4294901760, %v29166_v60  ;;  %v14399_v32 = vand.u32 4294901760, %v29169_v44 }
 0x9b9   :  { %31668 = vst [vmem:[#allocation21_spill] sm:$0xff] %v29160_v41  ;;  %31669 = vst [vmem:[#allocation36_spill] sm:$0xff] %v29163_v22  ;;  %v29183_v29 = vpack.c.bf16 %v14393_v18, %v14389_v11  ;;  %v29186_v58 = vsub.f32 %v29151_v59, %v14389_v11  ;;  %v29189_v7 = vsub.f32 %v29148_v0, %v14393_v18 }
 0x9ba   :  { %v29191_v35 = vpack.c.bf16 %v14401_v6, %v14397_v38  ;;  %v29193_v2 = vpack.c.bf16 %v14391_v56, %v14387_v36  ;;  %v29196_v43 = vsub.f32 %v29160_v41, %v14387_v36  ;;  %v29199_v3 = vsub.f32 %v29163_v22, %v14391_v56 }
 0x9bb   :  { %v29201_v27 = vpack.c.bf16 %v14399_v32, %v14395_v23  ;;  %15777 = vrot.lane.b32.xlu1 %v29154_v30, %s25042_s1  ;;  %15775 = vrot.lane.b32.xlu0 %v29157_v50, %s25042_s1  ;;  %v29208_v34 = vsub.f32 %v29166_v60, %v14395_v23  ;;  %v29211_v11 = vsub.f32 %v29169_v44, %v14399_v32  ;;  %v31344_v36 = vand.u32 4294901760, %v29186_v58 }
 0x9bc   :  { %v29214_v18 = vsub.f32 %v29157_v50, %v14397_v38  ;;  %23250 = vmatprep.subr.bf16.mxu1 %v29193_v2  ;;  %v29219_v56 = vsub.f32 %v29154_v30, %v14401_v6  ;;  %v31345_v9 = vand.u32 4294901760, %v29196_v43  ;;  %v31347_v40 = vand.u32 4294901760, %v29199_v3 }
 0x9bd   :  { %23252 = vmatpush1.bf16.msra.mxu1 %v29183_v29  ;;  %v14513_v38 = vsub.f32 %v29186_v58, %v31344_v36  ;;  %v31670_v15 = vand.u32 4294901760, %v29189_v7  ;;  %v31671_v1 = vand.u32 4294901760, %v29208_v34  ;;  %v31672_v50 = vand.u32 4294901760, %v29211_v11 }
 0x9be   :  { %23254 = vmatprep.subr.bf16.mxu1 %v29201_v27  ;;  %v14507_v6 = vsub.f32 %v29196_v43, %v31345_v9  ;;  %v14519_v23 = vsub.f32 %v29199_v3, %v31347_v40  ;;  %v31673_v30 = vand.u32 4294901760, %v29214_v18 }
 0x9bf   :  { %v14525_v36 = vsub.f32 %v29189_v7, %v31670_v15  ;;  %15781 = vrot.lane.b32.xlu1 %v29163_v22, %s25042_s1  ;;  %15779 = vrot.lane.b32.xlu0 %v29160_v41, %s25042_s1  ;;  %v14514_v33 = vand.u32 4294901760, %v14513_v38  ;;  %v14531_v9 = vsub.f32 %v29208_v34, %v31671_v1  ;;  %v14543_v40 = vsub.f32 %v29211_v11, %v31672_v50 }
 0x9c0   :  { %v14537_v15 = vsub.f32 %v29214_v18, %v31673_v30  ;;  %v14508_v32 = vand.u32 4294901760, %v14507_v6  ;;  %v14520_v59 = vand.u32 4294901760, %v14519_v23  ;;  %v31674_v22 = vand.u32 4294901760, %v29219_v56 }
 0x9c1   :  { %v14526_v0 = vand.u32 4294901760, %v14525_v36  ;;  %23256 = vmatpush1.bf16.msra.mxu1 %v29191_v35  ;;  %v14532_v38 = vand.u32 4294901760, %v14531_v9  ;;  %v14544_v61 = vand.u32 4294901760, %v14543_v40  ;;  %v14485_v40 = vsub.f32 %v29103_v28, %v29122_v24 }
 0x9c2   :  { %v14549_v41 = vsub.f32 %v29219_v56, %v31674_v22  ;;  %v23257_v1 = vpack.c.bf16 %v14520_v59, %v14508_v32  ;;  %v14538_v30 = vand.u32 4294901760, %v14537_v15  ;;  %v31675_v22 = vsub.f32 %v29086_v21, %v29100_v31 }
 0x9c3   :  { %15785 = vrot.lane.b32.xlu1 %v29169_v44, %s25042_s1  ;;  %15783 = vrot.lane.b32.xlu0 %v29166_v60, %s25042_s1  ;;  %v23259_v50 = vpack.c.bf16 %v14526_v0, %v14514_v33  ;;  %v23261_v36 = vpack.c.bf16 %v14544_v61, %v14532_v38  ;;  %v29272_v9 = vand.u32 4294901760, %v29125_v16  ;;  %v23265_v61 = vpack.c.bf16 %v29199_v3, %v29196_v43 }
 0x9c4   :  { %v14550_v6 = vand.u32 4294901760, %v14549_v41  ;;  %14465 = vmatmul.mubr.f32.vlgmr.msra.gmra.mrb[24].mxu1 %v29116_v47  ;;  %23258 = vmatprep.subr.bf16.mxu1 %v23257_v1  ;;  %v29267_v23 = vand.u32 4294901760, %v31675_v22  ;;  %v29278_v0 = vand.u32 4294901760, %v14485_v40  ;;  %v14193_v41 = vmul.f32 %v29060_v49, %v29060_v49 }
 0x9c5   :  { %23260 = vmatpush1.bf16.msra.mxu1 %v23259_v50  ;;  %14470 = vmatprep.mubr.f32.mxu1 %v31422_v10  ;;  %v14496_v59 = vsub.f32 %v29125_v16, %v29272_v9  ;;  %v14194_v32 = vmul.f32 %v29062_v48, %v29062_v48 }
 0x9c6   :  { %31676 = vst [vmem:[#allocation18_spill] sm:$0xff] %v29267_v23  ;;  %23262 = vmatprep.subr.bf16.mxu1 %v23261_v36  ;;  %v23263_v33 = vpack.c.bf16 %v14550_v6, %v14538_v30  ;;  %31677 = vst [vmem:[#allocation37_spill] sm:$0xff] %v29278_v0 }
 0x9c7   :  { %v29288_v50 = vand.u32 4294901760, %v14496_v59  ;;  %v14214_v59 = vrot.slane %v29060_v49, %v31658_v46 }
 0x9c8   :  { %14476 = vmatmul.mubr.f32.gmra.mrb[26].mxu1 %v29267_v23 }
 0x9c9   :  { %23264 = vmatpush1.bf16.msra.mxu1 %v23263_v33  ;;  %14481 = vmatprep.mubr.f32.mxu1 %v31422_v10  ;;  %31678 = vst [vmem:[#allocation39_spill] sm:$0xff] %v29288_v50  ;;  %v23267_v33 = vpack.c.bf16 %v29189_v7, %v29186_v58  ;;  %v14229_v49 = vsub.f32 %v28738_v8, %v14214_v59  ;;  %v31679_v8 = vand.u32 4294901760, %v29196_v43 }
 0x9ca   :  { %23266 = vmatprep.subr.bf16.mxu1 %v23265_v61  ;;  %v23269_v61 = vpack.c.bf16 %v29211_v11, %v29208_v34 }
 0x9cb   :  { %v14186_v15 = vpop.f32.mrb[22].mxu1 }
 0x9cc   :  { %v14197_v38 = vsub.f32 %v14186_v15, %v14193_v41  ;;  %v14188_v1 = vpop.f32.mrb[23].mxu1  ;;  %14487 = vmatmul.mubr.f32.gmra.mrb[28].mxu1 %v29278_v0  ;;  %v23271_v41 = vpack.c.bf16 %v29219_v56, %v29214_v18  ;;  %v14221_v15 = vsub.f32 %v28720_v53, %v14214_v59 }
 0x9cd   :  { %v14198_v30 = vsub.f32 %v14188_v1, %v14194_v32  ;;  %14492 = vmatprep.mubr.f32.mxu1 %v31422_v10  ;;  %v14218_v32 = vrot.slane %v29062_v48, %v31658_v46  ;;  %v14225_v1 = vsub.f32 %v28707_v45, %v14214_v59 }
 0x9ce   :  { %v14201_v6 = vmax.f32 %v14197_v38, 0.0 }
 0x9cf   :  { %v14202_v36 = vmax.f32 %v14198_v30, 0.0  ;;  %v14233_v30 = vsub.f32 %v28727_v62, %v14214_v59  ;;  %v31680_v62 = vand.u32 4294901760, %v29199_v3 }
 0x9d0   :  { %v14237_v22 = vadd.f32 1e-05, %v14201_v6  ;;  %14498 = vmatmul.mubr.f32.gmra.mrb[30].mxu1 %v29288_v50  ;;  %v14222_v6 = vsub.f32 %v28705_v57, %v14218_v32 }
 0x9d1   :  { %v14238_v40 = vadd.f32 1e-05, %v14202_v36  ;;  %14608 = vmatprep.mubr.f32.mxu1 %v31422_v10  ;;  %v14226_v36 = vsub.f32 %v28698_v5, %v14218_v32  ;;  %v23281_v57 = vpack.c.bf16 %v31680_v62, %v31679_v8 }
 0x9d2   :  { %24941 = vrsqrt.f32 %v14237_v22  ;;  %v14230_v22 = vsub.f32 %v28723_v52, %v14218_v32  ;;  %v31683_v52 = vand.u32 4294901760, %v29208_v34 }
 0x9d3   :  { %24943 = vrsqrt.f32 %v14238_v40  ;;  %v14234_v40 = vsub.f32 %v28713_v14, %v14218_v32  ;;  %v31684_v14 = vand.u32 4294901760, %v29211_v11 }
 0x9d4   :  { %14610 = vmatmul.mubr.f32.vlgmr.msra.gmra.mrb[24].mxu1 %v29067_v37 }
 0x9d5   :  { %23268 = vmatpush1.bf16.msra.mxu1 %v23267_v33  ;;  %14615 = vmatprep.mubr.f32.mxu1 %v31422_v10  ;;  %v31681_v33 = vand.u32 4294901760, %v29186_v58  ;;  %v29334_v59 = vpack.c.bf16 %v31684_v14, %v31683_v52 }
 0x9d6   :  { %23270 = vmatprep.subr.bf16.mxu1 %v23269_v61  ;;  %v31682_v61 = vand.u32 4294901760, %v29189_v7 }
 0x9d8   :  { %14617 = vmatmul.mubr.f32.gmra.mrb[26].mxu1 %v29075_v25  ;;  %v29328_v5 = vpack.c.bf16 %v31682_v61, %v31681_v33 }
 0x9d9   :  { %23272 = vmatpush1.bf16.msra.mxu1 %v23271_v41  ;;  %14622 = vmatprep.mubr.f32.mxu1 %v31422_v10 }
 0x9da   :  { %23274 = vmatprep.subr.bf16.mxu1 %v29193_v2 }
 0x9dc   :  { %v24942_v38 = vpop.eup %24941  ;;  %14624 = vmatmul.mubr.f32.gmra.mrb[28].mxu1 %v29088_v4 }
 0x9dd   :  { %v24944_v48 = vpop.eup %24943  ;;  %v14254_v53 = vrot.slane %v24942_v38, %v31658_v46  ;;  %14629 = vmatprep.mubr.f32.mxu1 %v31422_v10 }
 0x9de   :  { %v14258_v45 = vrot.slane %v24944_v48, %v31658_v46 }
 0x9df   :  { %v14265_v41 = vmul.f32 %v14254_v53, %v14225_v1  ;;  %v14261_v32 = vmul.f32 %v14254_v53, %v14221_v15  ;;  %v14273_v38 = vmul.f32 %v14254_v53, %v14233_v30  ;;  %v14269_v48 = vmul.f32 %v14254_v53, %v14229_v49 }
 0x9e0   :  { %14631 = vmatmul.mubr.f32.gmra.mrb[30].mxu1 %v29105_v54  ;;  %v14266_v43 = vmul.f32 %v14258_v45, %v14226_v36  ;;  %v14262_v3 = vmul.f32 %v14258_v45, %v14222_v6  ;;  %v14274_v8 = vmul.f32 %v14258_v45, %v14234_v40  ;;  %v14270_v58 = vmul.f32 %v14258_v45, %v14230_v22 }
 0x9e1   :  { %14717 = vmatprep.mubr.f32.mxu1 %v31422_v10  ;;  %v14297_v7 = vmul.f32 %v29064_v51, %v14265_v41  ;;  %v14293_v34 = vmul.f32 %v29078_v13, %v14261_v32  ;;  %v14305_v11 = vmul.f32 %v29097_v17, %v14273_v38  ;;  %v14301_v62 = vmul.f32 %v29080_v19, %v14269_v48 }
 0x9e2   :  { %v14298_v15 = vmul.f32 %v29064_v51, %v14266_v43  ;;  %v14294_v1 = vmul.f32 %v29078_v13, %v14262_v3  ;;  %v14306_v49 = vmul.f32 %v29097_v17, %v14274_v8  ;;  %v14302_v30 = vmul.f32 %v29080_v19, %v14270_v58 }
 0x9e3   :  { %v14329_v6 = vadd.f32 %v29095_v42, %v14297_v7  ;;  %v14325_v36 = vadd.f32 %v29069_v12, %v14293_v34  ;;  %v14337_v22 = vadd.f32 %v29129_v26, %v14305_v11  ;;  %v14333_v40 = vadd.f32 %v29127_v55, %v14301_v62 }
 0x9e4   :  { %14720 = vmatmul.mubr.f32.vlgmr.msra.gmra.mrb[24].mxu1 %v29073_v39  ;;  %v14330_v53 = vadd.f32 %v29095_v42, %v14298_v15  ;;  %v14326_v51 = vadd.f32 %v29069_v12, %v14294_v1  ;;  %v14338_v13 = vadd.f32 %v29129_v26, %v14306_v49  ;;  %v14334_v17 = vadd.f32 %v29127_v55, %v14302_v30 }
 0x9e5   :  { %23276 = vmatpush1.bf16.msra.mxu1 %v29183_v29  ;;  %14725 = vmatprep.mubr.f32.mxu1 %v31422_v10  ;;  %v29358_v19 = vmul.f32 %v14329_v6, %v31662_v20  ;;  %v29361_v45 = vmul.f32 %v14325_v36, %v31662_v20  ;;  %v29364_v33 = vmul.f32 %v14337_v22, %v31662_v20 }
 0x9e6   :  { %23278 = vmatprep.subr.bf16.mxu1 %v29201_v27  ;;  %v29368_v12 = vmul.f32 %v14330_v53, %v31667_v63  ;;  %v29371_v42 = vmul.f32 %v14326_v51, %v31667_v63  ;;  %v29374_v55 = vmul.f32 %v14338_v13, %v31667_v63  ;;  %v29377_v26 = vmul.f32 %v14334_v17, %v31667_v63 }
 0x9e7   :  { %v29380_v61 = vmul.f32 %v14333_v40, %v31662_v20  ;;  %v15079_v52 = vand.u32 4294901760, %v29361_v45  ;;  %v15083_v14 = vand.u32 4294901760, %v29358_v19  ;;  %v15091_v41 = vand.u32 4294901760, %v29364_v33 }
 0x9e8   :  { %14728 = vmatmul.mubr.f32.gmra.mrb[26].mxu1 %v29086_v21  ;;  %15797 = vrot.lane.b32.xlu1 %v29368_v12, %s25042_s1  ;;  %v15077_v32 = vand.u32 4294901760, %v29371_v42  ;;  %v15081_v38 = vand.u32 4294901760, %v29368_v12  ;;  %v15085_v48 = vand.u32 4294901760, %v29377_v26  ;;  %v15089_v43 = vand.u32 4294901760, %v29374_v55 }
 0x9e9   :  { %23280 = vmatpush1.bf16.msra.mxu1 %v29191_v35  ;;  %15795 = vrot.lane.b32.xlu0 %v29371_v42, %s25042_s1  ;;  %v29395_v3 = vpack.c.bf16 %v15083_v14, %v15079_v52  ;;  %v29398_v8 = vsub.f32 %v29361_v45, %v15079_v52  ;;  %v29401_v58 = vsub.f32 %v29358_v19, %v15083_v14  ;;  %v15087_v7 = vand.u32 4294901760, %v29380_v61 }
 0x9ea   :  { %23282 = vmatprep.subr.bf16.mxu1 %v23281_v57  ;;  %14733 = vmatprep.mubr.f32.mxu1 %v31422_v10  ;;  %v29405_v34 = vpack.c.bf16 %v15081_v38, %v15077_v32  ;;  %v29408_v11 = vsub.f32 %v29371_v42, %v15077_v32  ;;  %v29411_v62 = vsub.f32 %v29368_v12, %v15081_v38 }
 0x9eb   :  { %v29413_v15 = vpack.c.bf16 %v15089_v43, %v15085_v48  ;;  %v29416_v1 = vsub.f32 %v29377_v26, %v15085_v48  ;;  %v29419_v49 = vsub.f32 %v29374_v55, %v15089_v43  ;;  %v29421_v30 = vpack.c.bf16 %v15091_v41, %v15087_v7 }
 0x9ec   :  { %14736 = vmatmul.mubr.f32.gmra.mrb[28].mxu1 %v29103_v28  ;;  %15801 = vrot.lane.b32.xlu1 %v29374_v55, %s25042_s1  ;;  %v29427_v57 = vsub.f32 %v29380_v61, %v15087_v7  ;;  %v29430_v6 = vsub.f32 %v29364_v33, %v15091_v41  ;;  %v15196_v36 = vand.u32 4294901760, %v29408_v11  ;;  %v15208_v22 = vand.u32 4294901760, %v29411_v62 }
 0x9ed   :  { %31685 = vst [vmem:[#allocation26_spill] sm:$0xff] %v29421_v30  ;;  %15799 = vrot.lane.b32.xlu0 %v29377_v26, %s25042_s1  ;;  %14741 = vmatprep.mubr.f32.mxu1 %v31422_v10  ;;  %v15202_v40 = vand.u32 4294901760, %v29398_v8  ;;  %v15214_v53 = vand.u32 4294901760, %v29401_v58  ;;  %v15220_v51 = vand.u32 4294901760, %v29416_v1  ;;  %v15232_v13 = vand.u32 4294901760, %v29419_v49 }
 0x9ee   :  { %v15197_v17 = vsub.f32 %v29408_v11, %v15196_v36  ;;  %v15209_v52 = vsub.f32 %v29411_v62, %v15208_v22  ;;  %v15226_v14 = vand.u32 4294901760, %v29427_v57  ;;  %v15238_v41 = vand.u32 4294901760, %v29430_v6 }
 0x9ef   :  { %v15203_v32 = vsub.f32 %v29398_v8, %v15202_v40  ;;  %v15215_v38 = vsub.f32 %v29401_v58, %v15214_v53  ;;  %v15221_v48 = vsub.f32 %v29416_v1, %v15220_v51  ;;  %v15233_v43 = vsub.f32 %v29419_v49, %v15232_v13 }
 0x9f0   :  { %14744 = vmatmul.mubr.f32.gmra.mrb[30].mxu1 %v29125_v16  ;;  %15789 = vrot.lane.b32.xlu1 %v29358_v19, %s25042_s1  ;;  %v15198_v7 = vand.u32 4294901760, %v15197_v17  ;;  %v15210_v63 = vand.u32 4294901760, %v15209_v52  ;;  %v15227_v20 = vsub.f32 %v29427_v57, %v15226_v14  ;;  %v15239_v46 = vsub.f32 %v29430_v6, %v15238_v41 }
 0x9f1   :  { %15787 = vrot.lane.b32.xlu0 %v29361_v45, %s25042_s1  ;;  %14822 = vmatprep.mubr.f32.mxu1 %v31422_v10  ;;  %v15204_v28 = vand.u32 4294901760, %v15203_v32  ;;  %v15216_v21 = vand.u32 4294901760, %v15215_v38  ;;  %v15222_v39 = vand.u32 4294901760, %v15221_v48  ;;  %v15234_v50 = vand.u32 4294901760, %v15233_v43  ;;  %v31686_v38 = vld [vmem:[#allocation32_spill] sm:$0xff] }
 0x9f2   :  { %v29457_v0 = vpack.c.bf16 %v15210_v63, %v15198_v7  ;;  %v15228_v16 = vand.u32 4294901760, %v15227_v20  ;;  %v15240_v23 = vand.u32 4294901760, %v15239_v46  ;;  %v23313_v17 = vpack.c.bf16 %v29411_v62, %v29408_v11  ;;  %v15770_v48 = vld [vmem:[#allocation2 + $0x188] sm:$0xff] }
 0x9f3   :  { %v29461_v52 = vpack.c.bf16 %v15216_v21, %v15204_v28  ;;  %v29463_v47 = vpack.c.bf16 %v15234_v50, %v15222_v39  ;;  %v23315_v30 = vpack.c.bf16 %v29401_v58, %v29398_v8  ;;  %v23317_v32 = vpack.c.bf16 %v29419_v49, %v29416_v1  ;;  %v15767_v8 = vld [vmem:[#allocation2 + $0x50] sm:$0xff] }
 0x9f4   :  { %14826 = vmatmul.mubr.f32.vlgmr.msra.gmra.mrb[24].mxu1 %v31686_v38  ;;  %15793 = vrot.lane.b32.xlu1 %v29364_v33, %s25042_s1  ;;  %v29472_v20 = vpack.c.bf16 %v15240_v23, %v15228_v16  ;;  %v23319_v46 = vpack.c.bf16 %v29430_v6, %v29427_v57  ;;  %v29476_v21 = vpack.c.bf16 %v15208_v22, %v15196_v36  ;;  %v31687_v16 = vand.u32 4294901760, %v29214_v18  ;;  %v31690_v36 = vld [vmem:[#allocation21_spill] sm:$0xff]  ;;  %v31691_v18 = vld [vmem:[#allocation27_spill] sm:$0xff] }
 0x9f5   :  { %23284 = vmatpush1.bf16.msra.mxu1 %v29328_v5  ;;  %15791 = vrot.lane.b32.xlu0 %v29380_v61, %s25042_s1  ;;  %v29481_v39 = vpack.c.bf16 %v15214_v53, %v15202_v40  ;;  %v29483_v28 = vpack.c.bf16 %v15232_v13, %v15220_v51  ;;  %v29485_v63 = vpack.c.bf16 %v15238_v41, %v15226_v14  ;;  %v31688_v23 = vand.u32 4294901760, %v29219_v56  ;;  %v31689_v5 = vld [vmem:[#allocation36_spill] sm:$0xff]  ;;  %v15768_v22 = vld [vmem:[#allocation2 + $0xb8] sm:$0xff] }
 0x9f6   :  { %23286 = vmatprep.subr.bf16.mxu1 %v29334_v59  ;;  %14831 = vmatprep.mubr.f32.mxu1 %v31422_v10  ;;  %v31692_v56 = vld [vmem:[#allocation20_spill] sm:$0xff]  ;;  %v31700_v59 = vld [vmem:[#allocation33_spill] sm:$0xff] }
 0x9f7   :  { %v23287_v50 = vpack.c.bf16 %v31688_v23, %v31687_v16  ;;  %v15769_v40 = vld [vmem:[#allocation2 + $0x120] sm:$0xff] }
 0x9f8   :  { %14835 = vmatmul.mubr.f32.gmra.mrb[26].mxu1 %v29100_v31  ;;  %17241 = vrot.lane.b32.xlu1 %v31689_v5, %s25043_s27  ;;  %v15826_v41 = vsel %vm738_vm2, %v15769_v40, 0 }
 0x9f9   :  { %23288 = vmatpush1.bf16.msra.mxu1 %v23287_v50  ;;  %17239 = vrot.lane.b32.xlu0 %v31690_v36, %s25043_s27 }
 0x9fa   :  { %23290 = vmatprep.subr.bf16.mxu1 %v29193_v2  ;;  %14840 = vmatprep.mubr.f32.mxu1 %v31422_v10  ;;  %v31697_v2 = vld [vmem:[#allocation18_spill] sm:$0xff] }
 0x9fc   :  { %14844 = vmatmul.mubr.f32.gmra.mrb[28].mxu1 %v29122_v24  ;;  %17249 = vrot.lane.b32.xlu1 %v29358_v19, %s25043_s27 }
 0x9fd   :  { %17247 = vrot.lane.b32.xlu0 %v29361_v45, %s25043_s27  ;;  %14849 = vmatprep.mubr.f32.mxu1 %v31422_v10  ;;  %v31701_v45 = vld [vmem:[#allocation31_spill] sm:$0xff] }
 0xa00   :  { %14853 = vmatmul.mubr.f32.gmra.mrb[30].mxu1 %v29272_v9  ;;  %17233 = vrot.lane.b32.xlu1 %v31691_v18, %s25043_s27 }
 0xa01   :  { %17231 = vrot.lane.b32.xlu0 %v31692_v56, %s25043_s27  ;;  %14947 = vmatprep.mubr.f32.mxu1 %v31422_v10 }
 0xa04   :  { %14949 = vmatmul.mubr.f32.vlgmr.msra.gmra.mrb[24].mxu1 %v29067_v37  ;;  %17245 = vrot.lane.b32.xlu1 %v29169_v44, %s25043_s27  ;;  %v31694_v44 = vld [vmem:[#allocation14_spill] sm:$0xff] }
 0xa05   :  { %23292 = vmatpush1.bf16.msra.mxu1 %v29183_v29  ;;  %17243 = vrot.lane.b32.xlu0 %v29166_v60, %s25043_s27  ;;  %v31693_v60 = vld [vmem:[#allocation35_spill] sm:$0xff]  ;;  %v31695_v29 = vld [vmem:[#allocation26_spill] sm:$0xff] }
 0xa06   :  { %23294 = vmatprep.subr.bf16.mxu1 %v29201_v27  ;;  %14954 = vmatprep.mubr.f32.mxu1 %v31422_v10  ;;  %v31698_v27 = vld [vmem:[#allocation37_spill] sm:$0xff] }
 0xa08   :  { %14956 = vmatmul.mubr.f32.gmra.mrb[26].mxu1 %v29075_v25  ;;  %17253 = vrot.lane.b32.xlu1 %v29364_v33, %s25043_s27 }
 0xa09   :  { %23296 = vmatpush1.bf16.msra.mxu1 %v29191_v35  ;;  %17251 = vrot.lane.b32.xlu0 %v29380_v61, %s25043_s27  ;;  %v31696_v35 = vld [vmem:[#allocation24_spill] sm:$0xff] }
 0xa0a   :  { %23298 = vmatprep.subr.bf16.mxu1 %v29405_v34  ;;  %14961 = vmatprep.mubr.f32.mxu1 %v31422_v10 }
 0xa0c   :  { %14963 = vmatmul.mubr.f32.gmra.mrb[28].mxu1 %v29088_v4  ;;  %17237 = vrot.lane.b32.xlu1 %v31693_v60, %s25043_s27 }
 0xa0d   :  { %17235 = vrot.lane.b32.xlu0 %v31694_v44, %s25043_s27  ;;  %14968 = vmatprep.mubr.f32.mxu1 %v31422_v10 }
 0xa10   :  { %14970 = vmatmul.mubr.f32.gmra.mrb[30].mxu1 %v29105_v54  ;;  %17257 = vrot.lane.b32.xlu1 %v29368_v12, %s25043_s27 }
 0xa11   :  { %17255 = vrot.lane.b32.xlu0 %v29371_v42, %s25043_s27  ;;  %15048 = vmatprep.mubr.f32.mxu1 %v31422_v10  ;;  %v31702_v42 = vld [vmem:[#allocation19_spill] sm:$0xff] }
 0xa14   :  { %15050 = vmatmul.mubr.f32.vlgmr.msra.gmra.mrb[24].mxu1 %v29067_v37  ;;  %17261 = vrot.lane.b32.xlu1 %v29374_v55, %s25043_s27 }
 0xa15   :  { %17259 = vrot.lane.b32.xlu0 %v29377_v26, %s25043_s27  ;;  %23300 = vmatpush1.bf16.msra.mxu1 %v29395_v3  ;;  %v31703_v26 = vld [vmem:[#allocation34_spill] sm:$0xff] }
 0xa16   :  { %23302 = vmatprep.subr.bf16.mxu1 %v29413_v15  ;;  %15055 = vmatprep.mubr.f32.mxu1 %v31422_v10 }
 0xa18   :  { %15057 = vmatmul.mubr.f32.gmra.mrb[26].mxu1 %v29075_v25 }
 0xa19   :  { %23304 = vmatpush1.bf16.msra.mxu1 %v31695_v29  ;;  %15062 = vmatprep.mubr.f32.mxu1 %v31422_v10 }
 0xa1a   :  { %23306 = vmatprep.subr.bf16.mxu1 %v29457_v0  ;;  %v31699_v0 = vld [vmem:[#allocation39_spill] sm:$0xff] }
 0xa1c   :  { %15064 = vmatmul.mubr.f32.gmra.mrb[28].mxu1 %v29088_v4 }
 0xa1d   :  { %15069 = vmatprep.mubr.f32.mxu1 %v31422_v10 }
 0xa20   :  { %15071 = vmatmul.mubr.f32.gmra.mrb[30].mxu1 %v29105_v54 }
 0xa21   :  { %15149 = vmatprep.mubr.f32.mxu1 %v31422_v10 }
 0xa24   :  { %15155 = vmatmul.mubr.f32.vlgmr.msra.gmra.mrb[32].mxu1 %v31696_v35 }
 0xa25   :  { %23308 = vmatpush1.bf16.msra.mxu1 %v29461_v52  ;;  %15160 = vmatprep.mubr.f32.mxu1 %v31422_v10 }
 0xa26   :  { %23310 = vmatprep.subr.bf16.mxu1 %v29463_v47 }
 0xa28   :  { %15166 = vmatmul.mubr.f32.gmra.mrb[34].mxu1 %v31697_v2 }
 0xa29   :  { %23312 = vmatpush1.bf16.msra.mxu1 %v29472_v20  ;;  %15171 = vmatprep.mubr.f32.mxu1 %v31422_v10  ;;  %v29588_v47 = vpop.permute.xlu1 %15773  ;;  %v29591_v19 = vpop.permute.xlu0 %15771  ;;  %v29658_v20 = vand.u32 4294901760, %v15826_v41 }
 0xa2a   :  { %23314 = vmatprep.subr.bf16.mxu1 %v23313_v17 }
 0xa2b   :  { %v29683_v56 = vsub.f32 %v15826_v41, %v29658_v20 }
 0xa2c   :  { %15177 = vmatmul.mubr.f32.gmra.mrb[36].mxu1 %v31698_v27 }
 0xa2d   :  { %15182 = vmatprep.mubr.f32.mxu1 %v31422_v10  ;;  %v29599_v33 = vpop.permute.xlu1 %15777  ;;  %v29602_v12 = vpop.permute.xlu0 %15775 }
 0xa30   :  { %15188 = vmatmul.mubr.f32.gmra.mrb[38].mxu1 %v31699_v0 }
 0xa31   :  { %15298 = vmatprep.mubr.f32.mxu1 %v31422_v10  ;;  %v15782_v55 = vpop.permute.xlu1 %15781  ;;  %v29607_v61 = vpop.permute.xlu0 %15779 }
 0xa32   :  { %v15811_v11 = vsel %vm2689_vm3, %v29591_v19, %v29607_v61  ;;  %v15812_v49 = vsel %vm2689_vm3, %v29588_v47, %v15782_v55 }
 0xa33   :  { %v15831_v57 = vand.u32 4294901760, %v15811_v11  ;;  %v15835_v53 = vand.u32 4294901760, %v15812_v49 }
 0xa34   :  { %15300 = vmatmul.mubr.f32.vlgmr.msra.gmra.mrb[32].mxu1 %v29067_v37 }
 0xa35   :  { %23316 = vmatpush1.bf16.msra.mxu1 %v23315_v30  ;;  %15305 = vmatprep.mubr.f32.mxu1 %v31422_v10  ;;  %v29617_v62 = vpop.permute.xlu1 %15785  ;;  %v29620_v1 = vpop.permute.xlu0 %15783  ;;  %v15820_v30 = vsel %vm738_vm2, %v15767_v8, 0  ;;  %v29637_v14 = vsub.f32 %v15811_v11, %v15831_v57  ;;  %v29648_v17 = vsub.f32 %v15812_v49, %v15835_v53  ;;  %v29677_v36 = vpack.c.bf16 %v15835_v53, %v15831_v57 }
 0xa36   :  { %23318 = vmatprep.subr.bf16.mxu1 %v23317_v32  ;;  %v29630_v13 = vand.u32 4294901760, %v15820_v30  ;;  %v15813_v43 = vsel %vm2689_vm3, %v29602_v12, %v29620_v1 }
 0xa38   :  { %15307 = vmatmul.mubr.f32.gmra.mrb[34].mxu1 %v29075_v25  ;;  %v29653_v32 = vsub.f32 %v15820_v30, %v29630_v13 }
 0xa39   :  { %23320 = vmatpush1.bf16.msra.mxu1 %v23319_v46  ;;  %15312 = vmatprep.mubr.f32.mxu1 %v31422_v10  ;;  %v29661_v46 = vsel %vm738_vm2, %v15770_v48, 0 }
 0xa3a   :  { %23322 = vmatprep.subr.bf16.mxu1 %v29405_v34  ;;  %v29672_v50 = vand.u32 4294901760, %v29661_v46 }
 0xa3c   :  { %15314 = vmatmul.mubr.f32.gmra.mrb[36].mxu1 %v29088_v4 }
 0xa3d   :  { %15319 = vmatprep.mubr.f32.mxu1 %v31422_v10 }
 0xa40   :  { %15321 = vmatmul.mubr.f32.gmra.mrb[38].mxu1 %v29105_v54 }
 0xa41   :  { %15407 = vmatprep.mubr.f32.mxu1 %v31422_v10 }
 0xa44   :  { %15410 = vmatmul.mubr.f32.vlgmr.msra.gmra.mrb[32].mxu1 %v31700_v59 }
 0xa45   :  { %23324 = vmatpush1.bf16.msra.mxu1 %v29395_v3  ;;  %15415 = vmatprep.mubr.f32.mxu1 %v31422_v10 }
 0xa46   :  { %23326 = vmatprep.subr.bf16.mxu1 %v29413_v15 }
 0xa48   :  { %15418 = vmatmul.mubr.f32.gmra.mrb[34].mxu1 %v31701_v45 }
 0xa49   :  { %23328 = vmatpush1.bf16.msra.mxu1 %v31695_v29  ;;  %15423 = vmatprep.mubr.f32.mxu1 %v31422_v10 }
 0xa4a   :  { %23330 = vmatprep.subr.bf16.mxu1 %v29476_v21  ;;  %v31368_v21 = vand.u32 4294901760, %v29637_v14 }
 0xa4c   :  { %15426 = vmatmul.mubr.f32.gmra.mrb[36].mxu1 %v31702_v42  ;;  %v29694_v2 = vsub.f32 %v29637_v14, %v31368_v21 }
 0xa4d   :  { %15431 = vmatprep.mubr.f32.mxu1 %v31422_v10 }
 0xa50   :  { %15434 = vmatmul.mubr.f32.gmra.mrb[38].mxu1 %v31703_v26 }
 0xa51   :  { %15512 = vmatprep.mubr.f32.mxu1 %v31422_v10 }
 0xa54   :  { %15516 = vmatmul.mubr.f32.vlgmr.msra.gmra.mrb[32].mxu1 %v31686_v38 }
 0xa55   :  { %23332 = vmatpush1.bf16.msra.mxu1 %v29481_v39  ;;  %15521 = vmatprep.mubr.f32.mxu1 %v31422_v10  ;;  %v15839_v39 = vand.u32 4294901760, %v15813_v43 }
 0xa56   :  { %23334 = vmatprep.subr.bf16.mxu1 %v29483_v28 }
 0xa57   :  { %v29685_v60 = vsub.f32 %v15813_v43, %v15839_v39 }
 0xa58   :  { %15525 = vmatmul.mubr.f32.gmra.mrb[34].mxu1 %v29100_v31  ;;  %v15814_v31 = vsel %vm2689_vm3, %v29599_v33, %v29617_v62 }
 0xa59   :  { %23336 = vmatpush1.bf16.msra.mxu1 %v29485_v63  ;;  %15530 = vmatprep.mubr.f32.mxu1 %v31422_v10  ;;  %v15843_v52 = vand.u32 4294901760, %v15814_v31  ;;  %v31367_v63 = vand.u32 4294901760, %v29648_v17 }
 0xa5a   :  { %23338 = vmatprep.subr.bf16.mxu1 %v29405_v34  ;;  %v15798_v6 = vpop.permute.xlu1 %15797  ;;  %v15823_v34 = vsel %vm738_vm2, %v15768_v22, 0 }
 0xa5b   :  { %v15796_v51 = vpop.permute.xlu0 %15795  ;;  %v29656_v38 = vand.u32 4294901760, %v15823_v34  ;;  %v29666_v16 = vsub.f32 %v15814_v31, %v15843_v52  ;;  %v29689_v35 = vpack.c.bf16 %v15843_v52, %v15839_v39  ;;  %v15816_v27 = vsel %vm2689_vm3, %v15798_v6, %v29588_v47 }
 0xa5c   :  { %15534 = vmatmul.mubr.f32.gmra.mrb[36].mxu1 %v29122_v24  ;;  %v29717_v8 = vsub.f32 %v29648_v17, %v31367_v63  ;;  %v15815_v11 = vsel %vm2689_vm3, %v15796_v51, %v29591_v19  ;;  %v15837_v57 = vand.u32 4294901760, %v15816_v27 }
 0xa5d   :  { %15539 = vmatprep.mubr.f32.mxu1 %v31422_v10  ;;  %v29680_v18 = vsub.f32 %v15823_v34, %v29656_v38  ;;  %v15833_v31 = vand.u32 4294901760, %v15815_v11 }
 0xa5e   :  { %v29646_v7 = vpop.permute.xlu1 %15801 }
 0xa5f   :  { %v29650_v24 = vpop.permute.xlu0 %15799  ;;  %v29790_v39 = vsub.f32 %v15815_v11, %v15833_v31 }
 0xa60   :  { %15543 = vmatmul.mubr.f32.gmra.mrb[38].mxu1 %v29272_v9  ;;  %v29669_v9 = vand.u32 4294901760, %v29653_v32 }
 0xa61   :  { %15637 = vmatprep.mubr.f32.mxu1 %v31422_v10 }
 0xa62   :  { %v15790_v28 = vpop.permute.xlu1 %15789 }
 0xa63   :  { %v15788_v23 = vpop.permute.xlu0 %15787  ;;  %v15808_v5 = vsel %vm2689_vm3, %v15782_v55, %v15790_v28  ;;  %v29701_v0 = vsel %vm2689_vm3, %v15790_v28, %v15798_v6 }
 0xa64   :  { %15639 = vmatmul.mubr.f32.vlgmr.msra.gmra.mrb[32].mxu1 %v29067_v37  ;;  %v16527_v44 = vand.u32 4294901760, %v15808_v5  ;;  %v15807_v59 = vsel %vm2689_vm3, %v29607_v61, %v15788_v23  ;;  %v16525_v6 = vand.u32 4294901760, %v29701_v0 }
 0xa65   :  { %23340 = vmatpush1.bf16.msra.mxu1 %v29395_v3  ;;  %15644 = vmatprep.mubr.f32.mxu1 %v31422_v10  ;;  %v29705_v3 = vsel %vm2689_vm3, %v15788_v23, %v15796_v51  ;;  %v16523_v47 = vand.u32 4294901760, %v15807_v59  ;;  %v29759_v23 = vsub.f32 %v15816_v27, %v15837_v57 }
 0xa66   :  { %23342 = vmatprep.subr.bf16.mxu1 %v29413_v15  ;;  %v15794_v45 = vpop.permute.xlu1 %15793  ;;  %v29712_v55 = vsub.f32 %v15808_v5, %v16527_v44  ;;  %v16521_v61 = vand.u32 4294901760, %v29705_v3  ;;  %v29766_v5 = vsub.f32 %v29701_v0, %v16525_v6 }
 0xa67   :  { %v15792_v26 = vpop.permute.xlu0 %15791  ;;  %v15806_v15 = vsel %vm2689_vm3, %v15794_v45, %v29646_v7  ;;  %v15810_v49 = vsel %vm2689_vm3, %v29617_v62, %v15794_v45  ;;  %v29732_v22 = vpack.c.bf16 %v16527_v44, %v16523_v47  ;;  %v29737_v40 = vsub.f32 %v15807_v59, %v16523_v47 }
 0xa68   :  { %31705 = vst [vmem:[#allocation23_spill] sm:$0xff] %v29712_v55  ;;  %15646 = vmatmul.mubr.f32.gmra.mrb[34].mxu1 %v29075_v25  ;;  %v31370_v19 = vand.u32 4294901760, %v29712_v55  ;;  %v16535_v53 = vand.u32 4294901760, %v15810_v49  ;;  %v15805_v62 = vsel %vm2689_vm3, %v15792_v26, %v29650_v24  ;;  %v16533_v34 = vand.u32 4294901760, %v15806_v15 }
 0xa69   :  { %31706 = vst [vmem:[#allocation29_spill] sm:$0xff] %v29732_v22  ;;  %23344 = vmatpush1.bf16.msra.mxu1 %v31695_v29  ;;  %15651 = vmatprep.mubr.f32.mxu1 %v31422_v10  ;;  %31707 = vst [vmem:[#allocation28_spill] sm:$0xff] %v29737_v40  ;;  %v15809_v29 = vsel %vm2689_vm3, %v29620_v1, %v15792_v26  ;;  %v16529_v41 = vand.u32 4294901760, %v15805_v62  ;;  %v29751_v43 = vsub.f32 %v29705_v3, %v16521_v61 }
 0xa6a   :  { %23346 = vmatprep.subr.bf16.mxu1 %v29677_v36  ;;  %v29743_v51 = vpop.permute.xlu1 %17241  ;;  %v31371_v52 = vand.u32 4294901760, %v29737_v40  ;;  %v29756_v28 = vsub.f32 %v15810_v49, %v16535_v53  ;;  %v15818_v1 = vsel %vm2689_vm3, %v29646_v7, %v29599_v33  ;;  %v16531_v44 = vand.u32 4294901760, %v15809_v29 }
 0xa6b   :  { %31708 = vst [vmem:[#allocation38_spill] sm:$0xff] %v29743_v51  ;;  %v29748_v48 = vpop.permute.xlu0 %17239  ;;  %31710 = vst [vmem:[#allocation25_spill] sm:$0xff] %v29751_v43  ;;  %v16659_v3 = vsub.f32 %v29712_v55, %v31370_v19  ;;  %v29776_v45 = vsub.f32 %v15805_v62, %v16529_v41  ;;  %v29780_v33 = vpack.c.bf16 %v15837_v57, %v15833_v31  ;;  %v16640_v63 = vand.u32 4294901760, %v29751_v43 }
 0xa6c   :  { %31709 = vst [vmem:[#allocation40_spill] sm:$0xff] %v29748_v48  ;;  %31711 = vst [vmem:[#allocation22_spill] sm:$0xff] %v29756_v28  ;;  %15653 = vmatmul.mubr.f32.gmra.mrb[36].mxu1 %v29088_v4  ;;  %v16647_v27 = vsub.f32 %v29737_v40, %v31371_v52  ;;  %v31369_v59 = vand.u32 4294901760, %v29756_v28  ;;  %v29782_v7 = vsub.f32 %v15806_v15, %v16533_v34  ;;  %v15845_v57 = vand.u32 4294901760, %v15818_v1 }
 0xa6d   :  { %15658 = vmatprep.mubr.f32.mxu1 %v31422_v10  ;;  %31712 = vst [vmem:[#allocation30_spill] sm:$0xff] %v29776_v45  ;;  %v29784_v0 = vpack.c.bf16 %v16535_v53, %v16531_v44  ;;  %v29786_v26 = vsub.f32 %v15809_v29, %v16531_v44  ;;  %v15817_v62 = vsel %vm2689_vm3, %v29650_v24, %v29602_v12  ;;  %v16652_v53 = vand.u32 4294901760, %v29766_v5 }
 0xa6e   :  { %v29778_v47 = vpop.permute.xlu1 %17249  ;;  %31714 = vst [vmem:[#allocation32_spill] sm:$0xff] %v29782_v7  ;;  %v16683_v15 = vsub.f32 %v29756_v28, %v31369_v59  ;;  %v16660_v31 = vand.u32 4294901760, %v16659_v3  ;;  %v16648_v12 = vand.u32 4294901760, %v16647_v27  ;;  %v16664_v24 = vand.u32 4294901760, %v29776_v45 }
 0xa6f   :  { %31713 = vst [vmem:[#allocation13_spill] sm:$0xff] %v29778_v47  ;;  %31715 = vst [vmem:[#allocation36_spill] sm:$0xff] %v29784_v0  ;;  %v29788_v49 = vpop.permute.xlu0 %17247  ;;  %v16670_v29 = vand.u32 4294901760, %v29786_v26  ;;  %v29809_v21 = vpack.c.bf16 %v16525_v6, %v16521_v61  ;;  %v15841_v59 = vand.u32 4294901760, %v15817_v62  ;;  %v16676_v42 = vand.u32 4294901760, %v29782_v7 }
 0xa70   :  { %31716 = vst [vmem:[#allocation21_spill] sm:$0xff] %v29786_v26  ;;  %31717 = vst [vmem:[#allocation27_spill] sm:$0xff] %v29788_v49  ;;  %15660 = vmatmul.mubr.f32.gmra.mrb[38].mxu1 %v29105_v54  ;;  %v29815_v52 = vpack.c.bf16 %v16533_v34, %v16529_v41  ;;  %v16684_v11 = vand.u32 4294901760, %v16683_v15  ;;  %v15952_v3 = vand.u32 4294901760, %v29694_v2  ;;  %v15964_v27 = vand.u32 4294901760, %v29717_v8 }
 0xa71   :  { %15738 = vmatprep.mubr.f32.mxu1 %v31422_v10  ;;  %v16671_v30 = vsub.f32 %v29786_v26, %v16670_v29  ;;  %v16641_v51 = vsub.f32 %v29751_v43, %v16640_v63  ;;  %v16653_v34 = vsub.f32 %v29766_v5, %v16652_v53  ;;  %v29826_v41 = vsub.f32 %v15818_v1, %v15845_v57 }
 0xa72   :  { %v29807_v44 = vpop.permute.xlu1 %17233  ;;  %31720 = vst [vmem:[#allocation14_spill] sm:$0xff] %v29815_v52  ;;  %v29831_v8 = vpack.c.bf16 %v16660_v31, %v16648_v12  ;;  %v16665_v15 = vsub.f32 %v29776_v45, %v16664_v24  ;;  %v29834_v61 = vpack.c.bf16 %v15845_v57, %v15841_v59  ;;  %v16677_v0 = vsub.f32 %v29782_v7, %v16676_v42 }
 0xa73   :  { %31718 = vst [vmem:[#allocation20_spill] sm:$0xff] %v29807_v44  ;;  %v29813_v19 = vpop.permute.xlu0 %17231  ;;  %v16672_v48 = vand.u32 4294901760, %v16671_v30  ;;  %v16642_v2 = vand.u32 4294901760, %v16641_v51  ;;  %v29836_v30 = vsub.f32 %v15817_v62, %v15841_v59  ;;  %v16654_v26 = vand.u32 4294901760, %v16653_v34 }
 0xa74   :  { %31719 = vst [vmem:[#allocation35_spill] sm:$0xff] %v29813_v19  ;;  %15740 = vmatmul.mubr.f32.vlgmr.msra.gmra.mrb[32].mxu1 %v29067_v37  ;;  %v23353_v1 = vpack.c.bf16 %v15964_v27, %v15952_v3  ;;  %v16666_v52 = vand.u32 4294901760, %v16665_v15  ;;  %v31723_v31 = vand.u32 4294901760, %v29759_v23  ;;  %v29852_v59 = vand.u32 4294901760, %v29680_v18 }
 0xa75   :  { %23348 = vmatpush1.bf16.msra.mxu1 %v29780_v33  ;;  %15745 = vmatprep.mubr.f32.mxu1 %v31422_v10  ;;  %v29842_v22 = vpack.c.bf16 %v16684_v11, %v16672_v48  ;;  %v29854_v62 = vpack.c.bf16 %v16654_v26, %v16642_v2  ;;  %v31379_v48 = vand.u32 4294901760, %v29826_v41  ;;  %v29861_v3 = vpack.c.bf16 %v16652_v53, %v16640_v63 }
 0xa76   :  { %23350 = vmatprep.subr.bf16.mxu1 %v29689_v35  ;;  %v29829_v37 = vpop.permute.xlu1 %17245  ;;  %v15969_v57 = vsub.f32 %v29759_v23, %v31723_v31  ;;  %v31726_v27 = vand.u32 4294901760, %v29737_v40  ;;  %v31727_v34 = vand.u32 4294901760, %v29712_v55  ;;  %v31729_v26 = vand.u32 4294901760, %v29790_v39 }
 0xa77   :  { %31721 = vst [vmem:[#allocation26_spill] sm:$0xff] %v29829_v37  ;;  %v29838_v6 = vpop.permute.xlu0 %17243  ;;  %31725 = vst [vmem:[#allocation37_spill] sm:$0xff] %v29861_v3  ;;  %v29877_v51 = vpack.c.bf16 %v16676_v42, %v16664_v24  ;;  %v15907_v63 = vsub.f32 %v29653_v32, %v29669_v9  ;;  %v31732_v53 = vand.u32 4294901760, %v29685_v60  ;;  %v31734_v12 = vand.u32 4294901760, %v29756_v28 }
 0xa78   :  { %31722 = vst [vmem:[#allocation24_spill] sm:$0xff] %v29838_v6  ;;  %15747 = vmatmul.mubr.f32.gmra.mrb[34].mxu1 %v29075_v25  ;;  %v16678_v25 = vand.u32 4294901760, %v16677_v0  ;;  %v29867_v15 = vpack.c.bf16 %v31727_v34, %v31726_v27  ;;  %v15957_v0 = vsub.f32 %v29790_v39, %v31729_v26  ;;  %v31733_v34 = vand.u32 4294901760, %v29666_v16 }
 0xa79   :  { %23352 = vmatpush1.bf16.msra.mxu1 %v29834_v61  ;;  %15752 = vmatprep.mubr.f32.mxu1 %v31422_v10  ;;  %31731 = vst [vmem:[#allocation31_spill] sm:$0xff] %v29877_v51  ;;  %v15975_v27 = vsub.f32 %v29685_v60, %v31732_v53  ;;  %v29890_v2 = vpack.c.bf16 %v31734_v12, %v16670_v29  ;;  %v29901_v24 = vand.u32 4294901760, %v29683_v56  ;;  %v15970_v29 = vand.u32 4294901760, %v15969_v57 }
 0xa7a   :  { %23354 = vmatprep.subr.bf16.mxu1 %v23353_v1  ;;  %v29857_v11 = vpop.permute.xlu1 %17253  ;;  %31728 = vst [vmem:[#allocation39_spill] sm:$0xff] %v29867_v15  ;;  %v29875_v31 = vpack.c.bf16 %v16678_v25, %v16666_v52  ;;  %v15987_v26 = vsub.f32 %v29666_v16, %v31733_v34  ;;  %v15918_v52 = vsub.f32 %v29680_v18, %v29852_v59  ;;  %v15958_v12 = vand.u32 4294901760, %v15957_v0 }
 0xa7b   :  { %31724 = vst [vmem:[#allocation18_spill] sm:$0xff] %v29857_v11  ;;  %v29873_v1 = vpop.permute.xlu0 %17251  ;;  %31735 = vst [vmem:[#allocation19_spill] sm:$0xff] %v29890_v2  ;;  %v29905_v25 = vsub.f32 %v29661_v46, %v29672_v50  ;;  %v31737_v53 = vand.u32 4294901760, %v29836_v30  ;;  %v15976_v37 = vand.u32 4294901760, %v15975_v27  ;;  %v15929_v57 = vsub.f32 %v29683_v56, %v29901_v24 }
 0xa7c   :  { %31730 = vst [vmem:[#allocation33_spill] sm:$0xff] %v29873_v1  ;;  %15754 = vmatmul.mubr.f32.gmra.mrb[36].mxu1 %v29088_v4  ;;  %v15993_v4 = vsub.f32 %v29826_v41, %v31379_v48  ;;  %v29913_v48 = vand.u32 4294901760, %v15907_v63  ;;  %v15988_v2 = vand.u32 4294901760, %v15987_v26  ;;  %v29916_v46 = vand.u32 4294901760, %v15918_v52 }
 0xa7d   :  { %15759 = vmatprep.mubr.f32.mxu1 %v31422_v10  ;;  %v15981_v34 = vsub.f32 %v29836_v30, %v31737_v53  ;;  %v29921_v0 = vand.u32 4294901760, %v29905_v25  ;;  %v23355_v26 = vpack.c.bf16 %v15970_v29, %v15958_v12  ;;  %v23363_v40 = vpack.c.bf16 %v29759_v23, %v29790_v39 }
 0xa7e   :  { %v29896_v42 = vpop.permute.xlu1 %17237  ;;  %v15994_v51 = vand.u32 4294901760, %v15993_v4  ;;  %v23357_v28 = vpack.c.bf16 %v15988_v2, %v15976_v37 }
 0xa7f   :  { %31736 = vst [vmem:[#allocation34_spill] sm:$0xff] %v29896_v42  ;;  %v29910_v6 = vpop.permute.xlu0 %17235  ;;  %v15982_v53 = vand.u32 4294901760, %v15981_v34 }
 0xa80   :  { %31738 = vst [vmem:[#allocation41_spill] sm:$0xff] %v29910_v6  ;;  %15761 = vmatmul.mubr.f32.gmra.mrb[38].mxu1 %v29105_v54 }
 0xa81   :  { %15903 = vmatprep.mubr.f32.mxu1 %v31422_v10  ;;  %v23359_v2 = vpack.c.bf16 %v15994_v51, %v15982_v53 }
 0xa82   :  { %v17258_v15 = vpop.permute.xlu1 %17257 }
 0xa83   :  { %v17264_v54 = vsel %vm3428_vm4, %v29778_v47, %v17258_v15  ;;  %v17276_v63 = vsel %vm3428_vm4, %v17258_v15, %v29807_v44  ;;  %v17256_v27 = vpop.permute.xlu0 %17255  ;;  %v15940_v44 = vsub.f32 %v29905_v25, %v29921_v0 }
 0xa84   :  { %v17985_v4 = vand.u32 4294901760, %v17276_v63  ;;  %v17987_v52 = vand.u32 4294901760, %v17264_v54  ;;  %v17263_v3 = vsel %vm3428_vm4, %v29788_v49, %v17256_v27  ;;  %15909 = vmatmul.mubr.f32.vlgmr.msra.gmra.mrb[24].mxu1 %v29913_v48  ;;  %v17275_v34 = vsel %vm3428_vm4, %v17256_v27, %v29813_v19 }
 0xa85   :  { %v17983_v47 = vand.u32 4294901760, %v17263_v3  ;;  %23356 = vmatpush1.bf16.msra.mxu1 %v23355_v26  ;;  %15914 = vmatprep.mubr.f32.mxu1 %v31422_v10  ;;  %v17981_v29 = vand.u32 4294901760, %v17275_v34  ;;  %v29954_v19 = vand.u32 4294901760, %v15929_v57 }
 0xa86   :  { %v29937_v15 = vsub.f32 %v17264_v54, %v17987_v52  ;;  %23358 = vmatprep.subr.bf16.mxu1 %v23357_v28  ;;  %v17262_v12 = vpop.permute.xlu1 %17261  ;;  %v29948_v27 = vsub.f32 %v17276_v63, %v17985_v4  ;;  %v23361_v28 = vpack.c.bf16 %v29648_v17, %v29637_v14 }
 0xa87   :  { %v29941_v49 = vpack.c.bf16 %v17987_v52, %v17983_v47  ;;  %v29943_v45 = vsub.f32 %v17263_v3, %v17983_v47  ;;  %v17266_v37 = vsel %vm3428_vm4, %v29857_v11, %v17262_v12  ;;  %v17260_v26 = vpop.permute.xlu0 %17259  ;;  %31742 = vst [vmem:[#allocation45_spill] sm:$0xff] %v29954_v19  ;;  %v29956_v52 = vsub.f32 %v17275_v34, %v17981_v29 }
 0xa88   :  { %31739 = vst [vmem:[#allocation42_spill] sm:$0xff] %v29937_v15  ;;  %v18118_v54 = vand.u32 4294901760, %v29937_v15  ;;  %15920 = vmatmul.mubr.f32.gmra.mrb[26].mxu1 %v29916_v46  ;;  %v17278_v51 = vsel %vm3428_vm4, %v17262_v12, %v29896_v42  ;;  %v17265_v34 = vsel %vm3428_vm4, %v29873_v1, %v17260_v26  ;;  %v17277_v3 = vsel %vm3428_vm4, %v17260_v26, %v29910_v6 }
 0xa89   :  { %31740 = vst [vmem:[#allocation43_spill] sm:$0xff] %v29941_v49  ;;  %31741 = vst [vmem:[#allocation44_spill] sm:$0xff] %v29943_v45  ;;  %v18106_v47 = vand.u32 4294901760, %v29943_v45  ;;  %23360 = vmatpush1.bf16.msra.mxu1 %v23359_v2  ;;  %15925 = vmatprep.mubr.f32.mxu1 %v31422_v10  ;;  %v17993_v63 = vand.u32 4294901760, %v17278_v51  ;;  %v17995_v49 = vand.u32 4294901760, %v17266_v37  ;;  %v17989_v2 = vand.u32 4294901760, %v17277_v3 }
 0xa8a   :  { %31743 = vst [vmem:[#allocation46_spill] sm:$0xff] %v29956_v52  ;;  %v18119_v53 = vsub.f32 %v29937_v15, %v18118_v54  ;;  %23362 = vmatprep.subr.bf16.mxu1 %v23361_v28  ;;  %v29978_v15 = vand.u32 4294901760, %v15940_v44  ;;  %v18112_v28 = vand.u32 4294901760, %v29948_v27  ;;  %v17991_v42 = vand.u32 4294901760, %v17265_v34 }
 0xa8b   :  { %v18107_v57 = vsub.f32 %v29943_v45, %v18106_v47  ;;  %v29973_v11 = vsub.f32 %v17278_v51, %v17993_v63  ;;  %v29975_v12 = vsub.f32 %v17266_v37, %v17995_v49  ;;  %v18100_v45 = vand.u32 4294901760, %v29956_v52 }
 0xa8c   :  { %15931 = vmatmul.mubr.f32.gmra.mrb[28].mxu1 %v29954_v19  ;;  %31745 = vst [vmem:[#allocation48_spill] sm:$0xff] %v29978_v15  ;;  %v18120_v1 = vand.u32 4294901760, %v18119_v53  ;;  %v29984_v51 = vsub.f32 %v17277_v3, %v17989_v2  ;;  %v29987_v6 = vpack.c.bf16 %v17995_v49, %v17991_v42  ;;  %v29989_v58 = vsub.f32 %v17265_v34, %v17991_v42 }
 0xa8d   :  { %31744 = vst [vmem:[#allocation47_spill] sm:$0xff] %v29975_v12  ;;  %15936 = vmatprep.mubr.f32.mxu1 %v31422_v10  ;;  %v18108_v7 = vand.u32 4294901760, %v18107_v57  ;;  %v18142_v26 = vand.u32 4294901760, %v29975_v12  ;;  %v18136_v37 = vand.u32 4294901760, %v29973_v11  ;;  %v23365_v44 = vpack.c.bf16 %v29666_v16, %v29685_v60 }
 0xa8e   :  { %31746 = vst [vmem:[#allocation49_spill] sm:$0xff] %v29987_v6  ;;  %31747 = vst [vmem:[#allocation50_spill] sm:$0xff] %v29989_v58  ;;  %v18124_v53 = vand.u32 4294901760, %v29984_v51  ;;  %v29998_v3 = vpack.c.bf16 %v17985_v4, %v17981_v29  ;;  %v18130_v57 = vand.u32 4294901760, %v29989_v58  ;;  %v30004_v42 = vpack.c.bf16 %v17993_v63, %v17989_v2 }
 0xa8f   :  { %v18143_v55 = vsub.f32 %v29975_v12, %v18142_v26  ;;  %v18101_v34 = vsub.f32 %v29956_v52, %v18100_v45  ;;  %v18113_v19 = vsub.f32 %v29948_v27, %v18112_v28  ;;  %v30008_v43 = vpack.c.bf16 %v18120_v1, %v18108_v7 }
 0xa90   :  { %15942 = vmatmul.mubr.f32.gmra.mrb[30].mxu1 %v29978_v15  ;;  %31748 = vst [vmem:[#allocation51_spill] sm:$0xff] %v29998_v3  ;;  %v18125_v15 = vsub.f32 %v29984_v51, %v18124_v53  ;;  %v18131_v4 = vsub.f32 %v29989_v58, %v18130_v57  ;;  %v18137_v3 = vsub.f32 %v29973_v11, %v18136_v37 }
 0xa91   :  { %16052 = vmatprep.mubr.f32.mxu1 %v31422_v10  ;;  %v18144_v6 = vand.u32 4294901760, %v18143_v55  ;;  %v18102_v29 = vand.u32 4294901760, %v18101_v34  ;;  %v18114_v63 = vand.u32 4294901760, %v18113_v19  ;;  %v23509_v55 = vpack.c.bf16 %v29973_v11, %v29984_v51 }
 0xa92   :  { %v18126_v2 = vand.u32 4294901760, %v18125_v15  ;;  %v30018_v12 = vpack.c.bf16 %v18112_v28, %v18100_v45  ;;  %v18132_v7 = vand.u32 4294901760, %v18131_v4  ;;  %v18138_v1 = vand.u32 4294901760, %v18137_v3 }
 0xa93   :  { %v30021_v34 = vpack.c.bf16 %v18118_v54, %v18106_v47  ;;  %v30023_v58 = vpack.c.bf16 %v18136_v37, %v18124_v53  ;;  %v30025_v49 = vpack.c.bf16 %v18114_v63, %v18102_v29  ;;  %v30027_v52 = vpack.c.bf16 %v18142_v26, %v18130_v57  ;;  %v31776_v57 = vld [vmem:[#allocation19_spill] sm:$0xff]  ;;  %v31780_v29 = vld [vmem:[#allocation13_spill] sm:$0xff]  ;;  %v31781_v63 = vld [vmem:[#allocation38_spill] sm:$0xff] }
 0xa94   :  { %16054 = vmatmul.mubr.f32.vlgmr.msra.gmra.mrb[24].mxu1 %v29630_v13  ;;  %v23367_v19 = vpack.c.bf16 %v29826_v41, %v29836_v30  ;;  %v30031_v15 = vpack.c.bf16 %v18138_v1, %v18126_v2  ;;  %v30033_v45 = vpack.c.bf16 %v18144_v6, %v18132_v7  ;;  %v31750_v6 = vand.u32 4294901760, %v29648_v17  ;;  %v17227_v1 = vld [vmem:[#allocation2 + $0x60] sm:$0xff] }
 0xa95   :  { %23364 = vmatpush1.bf16.msra.mxu1 %v23363_v40  ;;  %16059 = vmatprep.mubr.f32.mxu1 %v31422_v10  ;;  %v31749_v40 = vand.u32 4294901760, %v29637_v14  ;;  %v31751_v47 = vand.u32 4294901760, %v29790_v39  ;;  %v31752_v14 = vand.u32 4294901760, %v29759_v23  ;;  %v31753_v17 = vand.u32 4294901760, %v29685_v60  ;;  %v31759_v60 = vld [vmem:[#allocation36_spill] sm:$0xff]  ;;  %v31762_v23 = vld [vmem:[#allocation45_spill] sm:$0xff] }
 0xa96   :  { %23366 = vmatprep.subr.bf16.mxu1 %v23365_v44  ;;  %v31754_v26 = vand.u32 4294901760, %v29666_v16  ;;  %v31755_v44 = vand.u32 4294901760, %v29836_v30  ;;  %v31756_v53 = vand.u32 4294901760, %v29826_v41  ;;  %v31757_v16 = vld [vmem:[#allocation29_spill] sm:$0xff]  ;;  %v31765_v41 = vld [vmem:[#allocation28_spill] sm:$0xff]  ;;  %v31768_v30 = vld [vmem:[#allocation30_spill] sm:$0xff] }
 0xa97   :  { %v23377_v54 = vpack.c.bf16 %v31750_v6, %v31749_v40  ;;  %v23379_v28 = vpack.c.bf16 %v31752_v14, %v31751_v47  ;;  %v31782_v40 = vld [vmem:[#allocation20_spill] sm:$0xff]  ;;  %v31784_v14 = vld [vmem:[#allocation18_spill] sm:$0xff] }
 0xa98   :  { %16061 = vmatmul.mubr.f32.gmra.mrb[26].mxu1 %v29656_v38  ;;  %v23381_v37 = vpack.c.bf16 %v31754_v26, %v31753_v17  ;;  %v23383_v3 = vpack.c.bf16 %v31756_v53, %v31755_v44  ;;  %v17272_v6 = vsel %vm3428_vm4, %v31782_v40, %v31781_v63  ;;  %v31787_v44 = vld [vmem:[#allocation24_spill] sm:$0xff] }
 0xa99   :  { %23368 = vmatpush1.bf16.msra.mxu1 %v23367_v19  ;;  %16066 = vmatprep.mubr.f32.mxu1 %v31422_v10 }
 0xa9a   :  { %23370 = vmatprep.subr.bf16.mxu1 %v29677_v36 }
 0xa9c   :  { %16068 = vmatmul.mubr.f32.gmra.mrb[28].mxu1 %v29658_v20 }
 0xa9d   :  { %16073 = vmatprep.mubr.f32.mxu1 %v31422_v10 }
 0xaa0   :  { %16075 = vmatmul.mubr.f32.gmra.mrb[30].mxu1 %v29672_v50 }
 0xaa1   :  { %16161 = vmatprep.mubr.f32.mxu1 %v31422_v10 }
 0xaa4   :  { %16164 = vmatmul.mubr.f32.vlgmr.msra.gmra.mrb[24].mxu1 %v29653_v32 }
 0xaa5   :  { %23372 = vmatpush1.bf16.msra.mxu1 %v29780_v33  ;;  %16169 = vmatprep.mubr.f32.mxu1 %v31422_v10 }
 0xaa6   :  { %23374 = vmatprep.subr.bf16.mxu1 %v29689_v35 }
 0xaa8   :  { %16172 = vmatmul.mubr.f32.gmra.mrb[26].mxu1 %v29680_v18 }
 0xaa9   :  { %23376 = vmatpush1.bf16.msra.mxu1 %v29834_v61  ;;  %16177 = vmatprep.mubr.f32.mxu1 %v31422_v10 }
 0xaaa   :  { %23378 = vmatprep.subr.bf16.mxu1 %v23377_v54  ;;  %v31783_v54 = vld [vmem:[#allocation35_spill] sm:$0xff] }
 0xaac   :  { %16180 = vmatmul.mubr.f32.gmra.mrb[28].mxu1 %v29683_v56 }
 0xaad   :  { %16185 = vmatprep.mubr.f32.mxu1 %v31422_v10 }
 0xab0   :  { %16188 = vmatmul.mubr.f32.gmra.mrb[30].mxu1 %v29905_v25 }
 0xab1   :  { %16266 = vmatprep.mubr.f32.mxu1 %v31422_v10 }
 0xab4   :  { %16270 = vmatmul.mubr.f32.vlgmr.msra.gmra.mrb[24].mxu1 %v29669_v9 }
 0xab5   :  { %23380 = vmatpush1.bf16.msra.mxu1 %v23379_v28  ;;  %16275 = vmatprep.mubr.f32.mxu1 %v31422_v10  ;;  %v31785_v28 = vld [vmem:[#allocation26_spill] sm:$0xff] }
 0xab6   :  { %23382 = vmatprep.subr.bf16.mxu1 %v23381_v37  ;;  %v17270_v17 = vsel %vm3428_vm4, %v31785_v28, %v31784_v14  ;;  %v31786_v37 = vld [vmem:[#allocation33_spill] sm:$0xff] }
 0xab7   :  { %v17269_v53 = vsel %vm3428_vm4, %v31787_v44, %v31786_v37 }
 0xab8   :  { %16279 = vmatmul.mubr.f32.gmra.mrb[26].mxu1 %v29852_v59 }
 0xab9   :  { %23384 = vmatpush1.bf16.msra.mxu1 %v23383_v3  ;;  %16284 = vmatprep.mubr.f32.mxu1 %v31422_v10  ;;  %v17280_v3 = vsel %vm738_vm2, %v17227_v1, 0 }
 0xaba   :  { %23386 = vmatprep.subr.bf16.mxu1 %v29677_v36  ;;  %v31758_v36 = vld [vmem:[#allocation14_spill] sm:$0xff] }
 0xabc   :  { %16288 = vmatmul.mubr.f32.gmra.mrb[28].mxu1 %v29901_v24 }
 0xabd   :  { %16293 = vmatprep.mubr.f32.mxu1 %v31422_v10 }
 0xac0   :  { %16297 = vmatmul.mubr.f32.gmra.mrb[30].mxu1 %v29921_v0 }
 0xac1   :  { %16391 = vmatprep.mubr.f32.mxu1 %v31422_v10 }
 0xac4   :  { %16393 = vmatmul.mubr.f32.vlgmr.msra.gmra.mrb[24].mxu1 %v29630_v13 }
 0xac5   :  { %23388 = vmatpush1.bf16.msra.mxu1 %v29780_v33  ;;  %16398 = vmatprep.mubr.f32.mxu1 %v31422_v10  ;;  %v31763_v33 = vld [vmem:[#allocation48_spill] sm:$0xff] }
 0xac6   :  { %23390 = vmatprep.subr.bf16.mxu1 %v29689_v35  ;;  %v31760_v35 = vld [vmem:[#allocation25_spill] sm:$0xff] }
 0xac7   :  { %v31761_v39 = vpack.c.bf16 %v29766_v5, %v31760_v35  ;;  %v17228_v35 = vld [vmem:[#allocation2 + $0xc8] sm:$0xff] }
 0xac8   :  { %16400 = vmatmul.mubr.f32.gmra.mrb[26].mxu1 %v29656_v38 }
 0xac9   :  { %23392 = vmatpush1.bf16.msra.mxu1 %v29834_v61  ;;  %16405 = vmatprep.mubr.f32.mxu1 %v31422_v10  ;;  %v31764_v61 = vld [vmem:[#allocation23_spill] sm:$0xff] }
 0xaca   :  { %23394 = vmatprep.subr.bf16.mxu1 %v29809_v21 }
 0xacc   :  { %16407 = vmatmul.mubr.f32.gmra.mrb[28].mxu1 %v29658_v20 }
 0xacd   :  { %16412 = vmatprep.mubr.f32.mxu1 %v31422_v10 }
 0xad0   :  { %16414 = vmatmul.mubr.f32.gmra.mrb[30].mxu1 %v29672_v50 }
 0xad1   :  { %16492 = vmatprep.mubr.f32.mxu1 %v31422_v10 }
 0xad4   :  { %16494 = vmatmul.mubr.f32.vlgmr.msra.gmra.mrb[24].mxu1 %v29630_v13 }
 0xad5   :  { %23396 = vmatpush1.bf16.msra.mxu1 %v31757_v16  ;;  %16499 = vmatprep.mubr.f32.mxu1 %v31422_v10 }
 0xad6   :  { %23398 = vmatprep.subr.bf16.mxu1 %v31758_v36 }
 0xad8   :  { %16501 = vmatmul.mubr.f32.gmra.mrb[26].mxu1 %v29656_v38 }
 0xad9   :  { %23400 = vmatpush1.bf16.msra.mxu1 %v31759_v60  ;;  %16506 = vmatprep.mubr.f32.mxu1 %v31422_v10 }
 0xada   :  { %23402 = vmatprep.subr.bf16.mxu1 %v29854_v62  ;;  %v31770_v62 = vld [vmem:[#allocation22_spill] sm:$0xff] }
 0xadc   :  { %16508 = vmatmul.mubr.f32.gmra.mrb[28].mxu1 %v29658_v20 }
 0xadd   :  { %16513 = vmatprep.mubr.f32.mxu1 %v31422_v10 }
 0xae0   :  { %16515 = vmatmul.mubr.f32.gmra.mrb[30].mxu1 %v29672_v50 }
 0xae1   :  { %16593 = vmatprep.mubr.f32.mxu1 %v31422_v10 }
 0xae4   :  { %16599 = vmatmul.mubr.f32.vlgmr.msra.gmra.mrb[32].mxu1 %v29913_v48  ;;  %v31771_v48 = vld [vmem:[#allocation21_spill] sm:$0xff] }
 0xae5   :  { %23404 = vmatpush1.bf16.msra.mxu1 %v29831_v8  ;;  %16604 = vmatprep.mubr.f32.mxu1 %v31422_v10  ;;  %v31766_v8 = vpack.c.bf16 %v31764_v61, %v31765_v41  ;;  %v31789_v41 = vld [vmem:[#allocation41_spill] sm:$0xff] }
 0xae6   :  { %23406 = vmatprep.subr.bf16.mxu1 %v29875_v31  ;;  %v31772_v31 = vpack.c.bf16 %v31770_v62, %v31771_v48 }
 0xae8   :  { %16610 = vmatmul.mubr.f32.gmra.mrb[34].mxu1 %v29916_v46  ;;  %v31773_v46 = vld [vmem:[#allocation37_spill] sm:$0xff] }
 0xae9   :  { %23408 = vmatpush1.bf16.msra.mxu1 %v29842_v22  ;;  %16615 = vmatprep.mubr.f32.mxu1 %v31422_v10  ;;  %v31767_v22 = vld [vmem:[#allocation32_spill] sm:$0xff] }
 0xaea   :  { %23410 = vmatprep.subr.bf16.mxu1 %v31761_v39  ;;  %v31769_v5 = vpack.c.bf16 %v31767_v22, %v31768_v30  ;;  %v17299_v39 = vand.u32 4294901760, %v17269_v53  ;;  %v30216_v30 = vand.u32 4294901760, %v17280_v3 }
 0xaec   :  { %16621 = vmatmul.mubr.f32.gmra.mrb[36].mxu1 %v31762_v23 }
 0xaed   :  { %16626 = vmatprep.mubr.f32.mxu1 %v31422_v10 }
 0xaf0   :  { %16632 = vmatmul.mubr.f32.gmra.mrb[38].mxu1 %v31763_v33  ;;  %v31788_v33 = vld [vmem:[#allocation34_spill] sm:$0xff] }
 0xaf1   :  { %16742 = vmatprep.mubr.f32.mxu1 %v31422_v10  ;;  %v17274_v61 = vsel %vm3428_vm4, %v31788_v33, %v31785_v28 }
 0xaf4   :  { %16744 = vmatmul.mubr.f32.vlgmr.msra.gmra.mrb[32].mxu1 %v29630_v13 }
 0xaf5   :  { %23412 = vmatpush1.bf16.msra.mxu1 %v31766_v8  ;;  %16749 = vmatprep.mubr.f32.mxu1 %v31422_v10  ;;  %v17273_v8 = vsel %vm3428_vm4, %v31789_v41, %v31787_v44 }
 0xaf6   :  { %23414 = vmatprep.subr.bf16.mxu1 %v31769_v5  ;;  %v17283_v5 = vsel %vm738_vm2, %v17228_v35, 0 }
 0xaf8   :  { %16751 = vmatmul.mubr.f32.gmra.mrb[34].mxu1 %v29656_v38 }
 0xaf9   :  { %23416 = vmatpush1.bf16.msra.mxu1 %v31772_v31  ;;  %16756 = vmatprep.mubr.f32.mxu1 %v31422_v10 }
 0xafa   :  { %23418 = vmatprep.subr.bf16.mxu1 %v29809_v21 }
 0xafc   :  { %16758 = vmatmul.mubr.f32.gmra.mrb[36].mxu1 %v29658_v20 }
 0xafd   :  { %16763 = vmatprep.mubr.f32.mxu1 %v31422_v10 }
 0xb00   :  { %16765 = vmatmul.mubr.f32.gmra.mrb[38].mxu1 %v29672_v50 }
 0xb01   :  { %16851 = vmatprep.mubr.f32.mxu1 %v31422_v10 }
 0xb04   :  { %16854 = vmatmul.mubr.f32.vlgmr.msra.gmra.mrb[32].mxu1 %v29653_v32  ;;  %v31774_v32 = vld [vmem:[#allocation39_spill] sm:$0xff] }
 0xb05   :  { %23420 = vmatpush1.bf16.msra.mxu1 %v31757_v16  ;;  %16859 = vmatprep.mubr.f32.mxu1 %v31422_v10 }
 0xb06   :  { %23422 = vmatprep.subr.bf16.mxu1 %v31758_v36 }
 0xb08   :  { %16862 = vmatmul.mubr.f32.gmra.mrb[34].mxu1 %v29680_v18  ;;  %v31775_v18 = vld [vmem:[#allocation31_spill] sm:$0xff] }
 0xb09   :  { %23424 = vmatpush1.bf16.msra.mxu1 %v31759_v60  ;;  %16867 = vmatprep.mubr.f32.mxu1 %v31422_v10 }
 0xb0a   :  { %23426 = vmatprep.subr.bf16.mxu1 %v31773_v46 }
 0xb0c   :  { %16870 = vmatmul.mubr.f32.gmra.mrb[36].mxu1 %v29683_v56  ;;  %v31777_v56 = vld [vmem:[#allocation27_spill] sm:$0xff] }
 0xb0d   :  { %16875 = vmatprep.mubr.f32.mxu1 %v31422_v10 }
 0xb10   :  { %16878 = vmatmul.mubr.f32.gmra.mrb[38].mxu1 %v29905_v25 }
 0xb11   :  { %16956 = vmatprep.mubr.f32.mxu1 %v31422_v10 }
 0xb14   :  { %16960 = vmatmul.mubr.f32.vlgmr.msra.gmra.mrb[32].mxu1 %v29669_v9  ;;  %v31778_v9 = vld [vmem:[#allocation40_spill] sm:$0xff] }
 0xb15   :  { %23428 = vmatpush1.bf16.msra.mxu1 %v31774_v32  ;;  %16965 = vmatprep.mubr.f32.mxu1 %v31422_v10  ;;  %v17267_v4 = vsel %vm3428_vm4, %v31778_v9, %v31777_v56  ;;  %v17271_v47 = vsel %vm3428_vm4, %v31783_v54, %v31778_v9  ;;  %v17229_v32 = vld [vmem:[#allocation2 + $0x130] sm:$0xff]  ;;  %v17301_v56 = vand.u32 4294901760, %v17273_v8 }
 0xb16   :  { %23430 = vmatprep.subr.bf16.mxu1 %v31775_v18  ;;  %v17291_v2 = vand.u32 4294901760, %v17267_v4  ;;  %v30228_v18 = vsub.f32 %v17269_v53, %v17299_v39 }
 0xb18   :  { %16969 = vmatmul.mubr.f32.gmra.mrb[34].mxu1 %v29852_v59  ;;  %v17268_v59 = vsel %vm3428_vm4, %v31781_v63, %v31780_v29  ;;  %v30234_v29 = vsub.f32 %v17280_v3, %v30216_v30  ;;  %v30236_v63 = vand.u32 4294901760, %v17283_v5  ;;  %v17434_v40 = vand.u32 4294901760, %v30228_v18 }
 0xb19   :  { %23432 = vmatpush1.bf16.msra.mxu1 %v31776_v57  ;;  %16974 = vmatprep.mubr.f32.mxu1 %v31422_v10  ;;  %v17305_v57 = vand.u32 4294901760, %v17274_v61 }
 0xb1a   :  { %23434 = vmatprep.subr.bf16.mxu1 %v29809_v21  ;;  %v17295_v21 = vand.u32 4294901760, %v17268_v59  ;;  %v30254_v28 = vand.u32 4294901760, %v30234_v29 }
 0xb1b   :  { %v30248_v54 = vpack.c.bf16 %v17305_v57, %v17301_v56 }
 0xb1c   :  { %16978 = vmatmul.mubr.f32.gmra.mrb[36].mxu1 %v29901_v24  ;;  %v30170_v24 = vsub.f32 %v17267_v4, %v17291_v2  ;;  %v30175_v7 = vpack.c.bf16 %v17295_v21, %v17291_v2  ;;  %v17367_v35 = vsub.f32 %v30234_v29, %v30254_v28 }
 0xb1d   :  { %16983 = vmatprep.mubr.f32.mxu1 %v31422_v10 }
 0xb1e   :  { %v17410_v19 = vand.u32 4294901760, %v30170_v24 }
 0xb20   :  { %16987 = vmatmul.mubr.f32.gmra.mrb[38].mxu1 %v29921_v0  ;;  %v30172_v0 = vsub.f32 %v17268_v59, %v17295_v21  ;;  %v17411_v23 = vsub.f32 %v30170_v24, %v17410_v19  ;;  %v17286_v59 = vsel %vm738_vm2, %v17229_v32, 0  ;;  %v30297_v32 = vand.u32 4294901760, %v17367_v35 }
 0xb21   :  { %17081 = vmatprep.mubr.f32.mxu1 %v31422_v10  ;;  %v30259_v37 = vand.u32 4294901760, %v17286_v59 }
 0xb22   :  { %v17422_v26 = vand.u32 4294901760, %v30172_v0  ;;  %v17412_v25 = vand.u32 4294901760, %v17411_v23 }
 0xb23   :  { %v30285_v23 = vsub.f32 %v17286_v59, %v30259_v37 }
 0xb24   :  { %17083 = vmatmul.mubr.f32.vlgmr.msra.gmra.mrb[32].mxu1 %v29630_v13  ;;  %v17423_v22 = vsub.f32 %v30172_v0, %v17422_v26 }
 0xb25   :  { %23436 = vmatpush1.bf16.msra.mxu1 %v31757_v16  ;;  %17088 = vmatprep.mubr.f32.mxu1 %v31422_v10  ;;  %v17297_v16 = vand.u32 4294901760, %v17272_v6 }
 0xb26   :  { %23438 = vmatprep.subr.bf16.mxu1 %v31758_v36  ;;  %v17293_v36 = vand.u32 4294901760, %v17271_v47  ;;  %v17424_v4 = vand.u32 4294901760, %v17423_v22 }
 0xb27   :  { %v30220_v62 = vsub.f32 %v17272_v6, %v17297_v16  ;;  %v30246_v6 = vsub.f32 %v17274_v61, %v17305_v57 }
 0xb28   :  { %17090 = vmatmul.mubr.f32.gmra.mrb[34].mxu1 %v29656_v38  ;;  %v30222_v48 = vpack.c.bf16 %v17297_v16, %v17293_v36  ;;  %v30224_v31 = vsub.f32 %v17271_v47, %v17293_v36  ;;  %v30250_v47 = vsub.f32 %v17273_v8, %v17301_v56  ;;  %v23449_v14 = vpack.c.bf16 %v17424_v4, %v17412_v25 }
 0xb29   :  { %23440 = vmatpush1.bf16.msra.mxu1 %v31759_v60  ;;  %17095 = vmatprep.mubr.f32.mxu1 %v31422_v10  ;;  %v17303_v60 = vand.u32 4294901760, %v17270_v17  ;;  %v17428_v2 = vand.u32 4294901760, %v30220_v62  ;;  %v17452_v3 = vand.u32 4294901760, %v30246_v6  ;;  %v17435_v36 = vsub.f32 %v30228_v18, %v17434_v40 }
 0xb2a   :  { %23442 = vmatprep.subr.bf16.mxu1 %v30175_v7  ;;  %v17416_v21 = vand.u32 4294901760, %v30224_v31  ;;  %v17440_v16 = vand.u32 4294901760, %v30250_v47  ;;  %v30302_v56 = vand.u32 4294901760, %v30285_v23 }
 0xb2b   :  { %v30226_v46 = vsub.f32 %v17270_v17, %v17303_v60  ;;  %v30230_v9 = vpack.c.bf16 %v17303_v60, %v17299_v39  ;;  %v30257_v17 = vsub.f32 %v17283_v5, %v30236_v63  ;;  %v17429_v53 = vsub.f32 %v30220_v62, %v17428_v2 }
 0xb2c   :  { %17097 = vmatmul.mubr.f32.gmra.mrb[36].mxu1 %v29658_v20  ;;  %v17453_v8 = vsub.f32 %v30246_v6, %v17452_v3  ;;  %v17436_v22 = vand.u32 4294901760, %v17435_v36  ;;  %v23457_v36 = vpack.c.bf16 %v30172_v0, %v30170_v24  ;;  %v30373_v24 = vld [vmem:[%s31146_s4 + $0x18] sm:$0xff]  ;;  %v30380_v0 = vld [vmem:[%s31146_s4 + $0x10] sm:$0xff] }
 0xb2d   :  { %17102 = vmatprep.mubr.f32.mxu1 %v31422_v10  ;;  %v17446_v1 = vand.u32 4294901760, %v30226_v46  ;;  %v30282_v39 = vand.u32 4294901760, %v30257_v17  ;;  %v17430_v61 = vand.u32 4294901760, %v17429_v53  ;;  %v17389_v53 = vsub.f32 %v30285_v23, %v30302_v56 }
 0xb2e   :  { %v17454_v4 = vand.u32 4294901760, %v17453_v8  ;;  %v23461_v8 = vpack.c.bf16 %v30226_v46, %v30228_v18 }
 0xb2f   :  { %v17447_v60 = vsub.f32 %v30226_v46, %v17446_v1  ;;  %v17378_v57 = vsub.f32 %v30257_v17, %v30282_v39 }
 0xb30   :  { %17104 = vmatmul.mubr.f32.gmra.mrb[38].mxu1 %v29672_v50 }
 0xb31   :  { %17182 = vmatprep.mubr.f32.mxu1 %v31422_v10  ;;  %v17448_v5 = vand.u32 4294901760, %v17447_v60  ;;  %v30320_v60 = vand.u32 4294901760, %v17389_v53 }
 0xb34   :  { %17184 = vmatmul.mubr.f32.vlgmr.msra.gmra.mrb[32].mxu1 %v29630_v13  ;;  %v17230_v13 = vld [vmem:[#allocation2 + $0x198] sm:$0xff] }
 0xb35   :  { %23444 = vmatpush1.bf16.msra.mxu1 %v30222_v48  ;;  %17189 = vmatprep.mubr.f32.mxu1 %v31422_v10  ;;  %v17289_v44 = vsel %vm738_vm2, %v17230_v13, 0 }
 0xb36   :  { %23446 = vmatprep.subr.bf16.mxu1 %v30230_v9  ;;  %v30287_v33 = vand.u32 4294901760, %v17289_v44 }
 0xb38   :  { %17191 = vmatmul.mubr.f32.gmra.mrb[34].mxu1 %v29656_v38  ;;  %v17417_v38 = vsub.f32 %v30224_v31, %v17416_v21  ;;  %v30305_v25 = vsub.f32 %v17289_v44, %v30287_v33 }
 0xb39   :  { %23448 = vmatpush1.bf16.msra.mxu1 %v30248_v54  ;;  %17196 = vmatprep.mubr.f32.mxu1 %v31422_v10 }
 0xb3a   :  { %23450 = vmatprep.subr.bf16.mxu1 %v23449_v14  ;;  %v17418_v41 = vand.u32 4294901760, %v17417_v38  ;;  %v23453_v14 = vpack.c.bf16 %v17448_v5, %v17436_v22  ;;  %v30314_v38 = vand.u32 4294901760, %v30305_v25  ;;  %v25051_v22 = vmov 11  }
 0xb3b   :  { %24919 = vset.pattern.permute.xlu0 %v25051_v22  ;;  %24920 = vset.pattern.permute.xlu1 %v25051_v22  ;;  %v23473_v5 = vpack.c.bf16 %v17422_v26, %v17410_v19  ;;  %v23475_v19 = vpack.c.bf16 %v17428_v2, %v17416_v21  ;;  %v23477_v26 = vpack.c.bf16 %v17446_v1, %v17434_v40 }
 0xb3c   :  { %17198 = vmatmul.mubr.f32.gmra.mrb[36].mxu1 %v29658_v20  ;;  %v17441_v20 = vsub.f32 %v30250_v47, %v17440_v16  ;;  %v23451_v13 = vpack.c.bf16 %v17430_v61, %v17418_v41  ;;  %v17400_v35 = vsub.f32 %v30305_v25, %v30314_v38  ;;  %v23459_v41 = vpack.c.bf16 %v30220_v62, %v30224_v31  ;;  %v31791_v62 = vld [vmem:[#allocation43_spill] sm:$0xff] }
 0xb3d   :  { %17203 = vmatprep.mubr.f32.mxu1 %v31422_v10 }
 0xb3e   :  { %v17442_v59 = vand.u32 4294901760, %v17441_v20  ;;  %v30326_v61 = vand.u32 4294901760, %v17400_v35  ;;  %v23463_v20 = vpack.c.bf16 %v30246_v6, %v30250_v47 }
 0xb40   :  { %17205 = vmatmul.mubr.f32.gmra.mrb[38].mxu1 %v29672_v50  ;;  %v30309_v50 = vand.u32 4294901760, %v17378_v57  ;;  %v23455_v44 = vpack.c.bf16 %v17454_v4, %v17442_v59  ;;  %v30358_v57 = vld [vmem:[%s31146_s4] sm:$0xff]  ;;  %v30366_v4 = vld [vmem:[%s31146_s4 + $0x8] sm:$0xff]  ;;  %v23479_v59 = vpack.c.bf16 %v17452_v3, %v17440_v16 }
 0xb41   :  { %17363 = vmatprep.mubr.f32.mxu1 %v31422_v10  ;;  %14360 = vperm.xlu0 %24919, %v30358_v57  }
 0xb42   :  { %14364 = vperm.xlu1 %24920, %v30366_v4  }
 0xb44   :  { %17369 = vmatmul.mubr.f32.vlgmr.msra.gmra.mrb[24].mxu1 %v30297_v32 }
 0xb45   :  { %23452 = vmatpush1.bf16.msra.mxu1 %v23451_v13  ;;  %17374 = vmatprep.mubr.f32.mxu1 %v31422_v10 }
 0xb46   :  { %23454 = vmatprep.subr.bf16.mxu1 %v23453_v14  ;;  %14372 = vperm.xlu0 %24919, %v30373_v24  }
 0xb47   :  { %14368 = vperm.xlu1 %24920, %v30380_v0  }
 0xb48   :  { %17380 = vmatmul.mubr.f32.gmra.mrb[26].mxu1 %v30309_v50 }
 0xb49   :  { %23456 = vmatpush1.bf16.msra.mxu1 %v23455_v44  ;;  %17385 = vmatprep.mubr.f32.mxu1 %v31422_v10 }
 0xb4a   :  { %23458 = vmatprep.subr.bf16.mxu1 %v23457_v36 }
 0xb4c   :  { %17391 = vmatmul.mubr.f32.gmra.mrb[28].mxu1 %v30320_v60 }
 0xb4d   :  { %17396 = vmatprep.mubr.f32.mxu1 %v31422_v10 }
 0xb50   :  { %17402 = vmatmul.mubr.f32.gmra.mrb[30].mxu1 %v30326_v61 }
 0xb51   :  { %17512 = vmatprep.mubr.f32.mxu1 %v31422_v10 }
 0xb54   :  { %17514 = vmatmul.mubr.f32.vlgmr.msra.gmra.mrb[24].mxu1 %v30216_v30 }
 0xb55   :  { %23460 = vmatpush1.bf16.msra.mxu1 %v23459_v41  ;;  %17519 = vmatprep.mubr.f32.mxu1 %v31422_v10 }
 0xb56   :  { %23462 = vmatprep.subr.bf16.mxu1 %v23461_v8 }
 0xb58   :  { %17521 = vmatmul.mubr.f32.gmra.mrb[26].mxu1 %v30236_v63 }
 0xb59   :  { %23464 = vmatpush1.bf16.msra.mxu1 %v23463_v20  ;;  %17526 = vmatprep.mubr.f32.mxu1 %v31422_v10 }
 0xb5a   :  { %23466 = vmatprep.subr.bf16.mxu1 %v30175_v7 }
 0xb5c   :  { %17528 = vmatmul.mubr.f32.gmra.mrb[28].mxu1 %v30259_v37 }
 0xb5d   :  { %17533 = vmatprep.mubr.f32.mxu1 %v31422_v10 }
 0xb60   :  { %17535 = vmatmul.mubr.f32.gmra.mrb[30].mxu1 %v30287_v33 }
 0xb61   :  { %17621 = vmatprep.mubr.f32.mxu1 %v31422_v10 }
 0xb64   :  { %17624 = vmatmul.mubr.f32.vlgmr.msra.gmra.mrb[24].mxu1 %v30234_v29 }
 0xb65   :  { %23468 = vmatpush1.bf16.msra.mxu1 %v30222_v48  ;;  %17629 = vmatprep.mubr.f32.mxu1 %v31422_v10 }
 0xb66   :  { %23470 = vmatprep.subr.bf16.mxu1 %v30230_v9 }
 0xb68   :  { %17632 = vmatmul.mubr.f32.gmra.mrb[26].mxu1 %v30257_v17 }
 0xb69   :  { %23472 = vmatpush1.bf16.msra.mxu1 %v30248_v54  ;;  %17637 = vmatprep.mubr.f32.mxu1 %v31422_v10 }
 0xb6a   :  { %23474 = vmatprep.subr.bf16.mxu1 %v23473_v5 }
 0xb6c   :  { %17640 = vmatmul.mubr.f32.gmra.mrb[28].mxu1 %v30285_v23 }
 0xb6d   :  { %17645 = vmatprep.mubr.f32.mxu1 %v31422_v10 }
 0xb70   :  { %17648 = vmatmul.mubr.f32.gmra.mrb[30].mxu1 %v30305_v25 }
 0xb71   :  { %17726 = vmatprep.mubr.f32.mxu1 %v31422_v10 }
 0xb74   :  { %17730 = vmatmul.mubr.f32.vlgmr.msra.gmra.mrb[24].mxu1 %v30254_v28 }
 0xb75   :  { %23476 = vmatpush1.bf16.msra.mxu1 %v23475_v19  ;;  %17735 = vmatprep.mubr.f32.mxu1 %v31422_v10 }
 0xb76   :  { %23478 = vmatprep.subr.bf16.mxu1 %v23477_v26 }
 0xb78   :  { %17739 = vmatmul.mubr.f32.gmra.mrb[26].mxu1 %v30282_v39 }
 0xb79   :  { %23480 = vmatpush1.bf16.msra.mxu1 %v23479_v59  ;;  %17744 = vmatprep.mubr.f32.mxu1 %v31422_v10 }
 0xb7a   :  { %23482 = vmatprep.subr.bf16.mxu1 %v30175_v7  ;;  %v31790_v7 = vld [vmem:[#allocation51_spill] sm:$0xff] }
 0xb7c   :  { %17748 = vmatmul.mubr.f32.gmra.mrb[28].mxu1 %v30302_v56 }
 0xb7d   :  { %17753 = vmatprep.mubr.f32.mxu1 %v31422_v10 }
 0xb80   :  { %17757 = vmatmul.mubr.f32.gmra.mrb[30].mxu1 %v30314_v38 }
 0xb81   :  { %17851 = vmatprep.mubr.f32.mxu1 %v31422_v10 }
 0xb84   :  { %17853 = vmatmul.mubr.f32.vlgmr.msra.gmra.mrb[24].mxu1 %v30216_v30 }
 0xb85   :  { %23484 = vmatpush1.bf16.msra.mxu1 %v30222_v48  ;;  %17858 = vmatprep.mubr.f32.mxu1 %v31422_v10  ;;  %v31792_v48 = vld [vmem:[#allocation49_spill] sm:$0xff] }
 0xb86   :  { %23486 = vmatprep.subr.bf16.mxu1 %v30230_v9 }
 0xb88   :  { %17860 = vmatmul.mubr.f32.gmra.mrb[26].mxu1 %v30236_v63 }
 0xb89   :  { %23488 = vmatpush1.bf16.msra.mxu1 %v30248_v54  ;;  %17865 = vmatprep.mubr.f32.mxu1 %v31422_v10 }
 0xb8a   :  { %23490 = vmatprep.subr.bf16.mxu1 %v31790_v7 }
 0xb8c   :  { %17867 = vmatmul.mubr.f32.gmra.mrb[28].mxu1 %v30259_v37 }
 0xb8d   :  { %17872 = vmatprep.mubr.f32.mxu1 %v31422_v10 }
 0xb90   :  { %17874 = vmatmul.mubr.f32.gmra.mrb[30].mxu1 %v30287_v33 }
 0xb91   :  { %17952 = vmatprep.mubr.f32.mxu1 %v31422_v10 }
 0xb94   :  { %17954 = vmatmul.mubr.f32.vlgmr.msra.gmra.mrb[24].mxu1 %v30216_v30 }
 0xb95   :  { %23492 = vmatpush1.bf16.msra.mxu1 %v31791_v62  ;;  %17959 = vmatprep.mubr.f32.mxu1 %v31422_v10 }
 0xb96   :  { %23494 = vmatprep.subr.bf16.mxu1 %v30004_v42 }
 0xb98   :  { %17961 = vmatmul.mubr.f32.gmra.mrb[26].mxu1 %v30236_v63 }
 0xb99   :  { %23496 = vmatpush1.bf16.msra.mxu1 %v31792_v48  ;;  %17966 = vmatprep.mubr.f32.mxu1 %v31422_v10 }
 0xb9a   :  { %23498 = vmatprep.subr.bf16.mxu1 %v30025_v49  ;;  %v31793_v49 = vld [vmem:[#allocation46_spill] sm:$0xff] }
 0xb9b   :  { %v31794_v31 = vpack.c.bf16 %v29948_v27, %v31793_v49  ;;  %v31798_v27 = vld [vmem:[#allocation47_spill] sm:$0xff] }
 0xb9c   :  { %17968 = vmatmul.mubr.f32.gmra.mrb[28].mxu1 %v30259_v37 }
 0xb9d   :  { %17973 = vmatprep.mubr.f32.mxu1 %v31422_v10 }
 0xba0   :  { %17975 = vmatmul.mubr.f32.gmra.mrb[30].mxu1 %v30287_v33 }
 0xba1   :  { %18053 = vmatprep.mubr.f32.mxu1 %v31422_v10 }
 0xba4   :  { %18059 = vmatmul.mubr.f32.vlgmr.msra.gmra.mrb[32].mxu1 %v30297_v32 }
 0xba5   :  { %23500 = vmatpush1.bf16.msra.mxu1 %v30008_v43  ;;  %18064 = vmatprep.mubr.f32.mxu1 %v31422_v10  ;;  %v31795_v43 = vld [vmem:[#allocation42_spill] sm:$0xff] }
 0xba6   :  { %23502 = vmatprep.subr.bf16.mxu1 %v30031_v15  ;;  %v31796_v15 = vld [vmem:[#allocation44_spill] sm:$0xff] }
 0xba7   :  { %v31797_v46 = vpack.c.bf16 %v31795_v43, %v31796_v15 }
 0xba8   :  { %18070 = vmatmul.mubr.f32.gmra.mrb[34].mxu1 %v30309_v50 }
 0xba9   :  { %23504 = vmatpush1.bf16.msra.mxu1 %v30033_v45  ;;  %18075 = vmatprep.mubr.f32.mxu1 %v31422_v10  ;;  %v31799_v45 = vld [vmem:[#allocation50_spill] sm:$0xff] }
 0xbaa   :  { %23506 = vmatprep.subr.bf16.mxu1 %v31794_v31  ;;  %v31800_v18 = vpack.c.bf16 %v31798_v27, %v31799_v45 }
 0xbac   :  { %18081 = vmatmul.mubr.f32.gmra.mrb[36].mxu1 %v30320_v60 }
 0xbad   :  { %18086 = vmatprep.mubr.f32.mxu1 %v31422_v10 }
 0xbb0   :  { %18092 = vmatmul.mubr.f32.gmra.mrb[38].mxu1 %v30326_v61 }
 0xbb1   :  { %18202 = vmatprep.mubr.f32.mxu1 %v31422_v10 }
 0xbb4   :  { %18204 = vmatmul.mubr.f32.vlgmr.msra.gmra.mrb[32].mxu1 %v30216_v30 }
 0xbb5   :  { %23508 = vmatpush1.bf16.msra.mxu1 %v31797_v46  ;;  %18209 = vmatprep.mubr.f32.mxu1 %v31422_v10 }
 0xbb6   :  { %23510 = vmatprep.subr.bf16.mxu1 %v23509_v55 }
 0xbb8   :  { %18211 = vmatmul.mubr.f32.gmra.mrb[34].mxu1 %v30236_v63 }
 0xbb9   :  { %23512 = vmatpush1.bf16.msra.mxu1 %v31800_v18  ;;  %18216 = vmatprep.mubr.f32.mxu1 %v31422_v10 }
 0xbba   :  { %23514 = vmatprep.subr.bf16.mxu1 %v31790_v7 }
 0xbbc   :  { %18218 = vmatmul.mubr.f32.gmra.mrb[36].mxu1 %v30259_v37 }
 0xbbd   :  { %18223 = vmatprep.mubr.f32.mxu1 %v31422_v10 }
 0xbc0   :  { %18225 = vmatmul.mubr.f32.gmra.mrb[38].mxu1 %v30287_v33 }
 0xbc1   :  { %18311 = vmatprep.mubr.f32.mxu1 %v31422_v10 }
 0xbc4   :  { %18314 = vmatmul.mubr.f32.vlgmr.msra.gmra.mrb[32].mxu1 %v30234_v29 }
 0xbc5   :  { %23516 = vmatpush1.bf16.msra.mxu1 %v31791_v62  ;;  %18319 = vmatprep.mubr.f32.mxu1 %v31422_v10 }
 0xbc6   :  { %23518 = vmatprep.subr.bf16.mxu1 %v30004_v42 }
 0xbc8   :  { %18322 = vmatmul.mubr.f32.gmra.mrb[34].mxu1 %v30257_v17 }
 0xbc9   :  { %23520 = vmatpush1.bf16.msra.mxu1 %v31792_v48  ;;  %18327 = vmatprep.mubr.f32.mxu1 %v31422_v10 }
 0xbca   :  { %23522 = vmatprep.subr.bf16.mxu1 %v30018_v12 }
 0xbcc   :  { %18330 = vmatmul.mubr.f32.gmra.mrb[36].mxu1 %v30285_v23 }
 0xbcd   :  { %18335 = vmatprep.mubr.f32.mxu1 %v31422_v10 }
 0xbd0   :  { %18338 = vmatmul.mubr.f32.gmra.mrb[38].mxu1 %v30305_v25 }
 0xbd1   :  { %18416 = vmatprep.mubr.f32.mxu1 %v31422_v10 }
 0xbd4   :  { %18420 = vmatmul.mubr.f32.vlgmr.msra.gmra.mrb[32].mxu1 %v30254_v28 }
 0xbd5   :  { %23524 = vmatpush1.bf16.msra.mxu1 %v30021_v34  ;;  %18425 = vmatprep.mubr.f32.mxu1 %v31422_v10 }
 0xbd6   :  { %23526 = vmatprep.subr.bf16.mxu1 %v30023_v58  ;;  %v30504_v58 = vpop.permute.xlu0 %14360 }
 0xbd8   :  { %18429 = vmatmul.mubr.f32.gmra.mrb[34].mxu1 %v30282_v39 }
 0xbd9   :  { %23528 = vmatpush1.bf16.msra.mxu1 %v30027_v52  ;;  %18434 = vmatprep.mubr.f32.mxu1 %v31422_v10  ;;  %v30506_v52 = vpop.permute.xlu1 %14364 }
 0xbda   :  { %23530 = vmatprep.subr.bf16.mxu1 %v31790_v7  ;;  %v30530_v16 = vpop.permute.xlu0 %14372 }
 0xbdc   :  { %18438 = vmatmul.mubr.f32.gmra.mrb[36].mxu1 %v30302_v56 }
 0xbdd   :  { %18443 = vmatprep.mubr.f32.mxu1 %v31422_v10  ;;  %v30516_v2 = vpop.permute.xlu1 %14368 }
 0xbe0   :  { %18447 = vmatmul.mubr.f32.gmra.mrb[38].mxu1 %v30314_v38 }
 0xbe1   :  { %18541 = vmatprep.mubr.f32.mxu1 %v31422_v10 }
 0xbe4   :  { %18543 = vmatmul.mubr.f32.vlgmr.msra.gmra.mrb[32].mxu1 %v30216_v30 }
 0xbe5   :  { %23532 = vmatpush1.bf16.msra.mxu1 %v31791_v62  ;;  %18548 = vmatprep.mubr.f32.mxu1 %v31422_v10 }
 0xbe6   :  { %23534 = vmatprep.subr.bf16.mxu1 %v30004_v42 }
 0xbe8   :  { %18550 = vmatmul.mubr.f32.gmra.mrb[34].mxu1 %v30236_v63 }
 0xbe9   :  { %23536 = vmatpush1.bf16.msra.mxu1 %v31792_v48  ;;  %18555 = vmatprep.mubr.f32.mxu1 %v31422_v10 }
 0xbec   :  { %18557 = vmatmul.mubr.f32.gmra.mrb[36].mxu1 %v30259_v37 }
 0xbed   :  { %18562 = vmatprep.mubr.f32.mxu1 %v31422_v10 }
 0xbf0   :  { %18564 = vmatmul.mubr.f32.gmra.mrb[38].mxu1 %v30287_v33 }
 0xbf1   :  { %18642 = vmatprep.mubr.f32.mxu1 %v31422_v10 }
 0xbf4   :  { %18644 = vmatmul.mubr.f32.vlgmr.msra.gmra.mrb[32].mxu1 %v30216_v30 }
 0xbf5   :  { %18649 = vmatprep.mubr.f32.mxu1 %v31422_v10 }
 0xbf8   :  { %18651 = vmatmul.mubr.f32.gmra.mrb[34].mxu1 %v30236_v63 }
 0xbf9   :  { %18656 = vmatprep.mubr.f32.mxu1 %v31422_v10 }
 0xbfc   :  { %18658 = vmatmul.mubr.f32.gmra.mrb[36].mxu1 %v30259_v37 }
 0xbfd   :  { %18663 = vmatprep.mubr.f32.mxu1 %v31422_v10 }
 0xc00   :  { %18665 = vmatmul.mubr.f32.gmra.mrb[38].mxu1 %v30287_v33 }
 0xc67   :  { %v17955_v11 = vpop.f32.mrb[24].mxu1 }
 0xc68   :  { %v23849_v12 = vadd.f32 %v17955_v11, %v30504_v58  ;;  %v17957_v51 = vpop.f32.mrb[25].mxu1 }
 0xc69   :  { %v23850_v42 = vadd.f32 %v17957_v51, %v30504_v58 }
 0xc6a   :  { %v30510_v55 = vmax.f32 %v23849_v12, 0.0 }
 0xc6b   :  { %v30512_v34 = vmax.f32 %v23850_v42, 0.0  ;;  %v17962_v30 = vpop.f32.mrb[26].mxu1 }
 0xc6c   :  { %v23851_v9 = vadd.f32 %v17962_v30, %v30506_v52  ;;  %v17964_v29 = vpop.f32.mrb[27].mxu1  ;;  %v18705_v1 = vand.u32 4294901760, %v30510_v55 }
 0xc6d   :  { %v23852_v63 = vadd.f32 %v17964_v29, %v30506_v52  ;;  %v18703_v21 = vand.u32 4294901760, %v30512_v34 }
 0xc6e   :  { %v30520_v40 = vmax.f32 %v23851_v9, 0.0  ;;  %v30534_v23 = vsub.f32 %v30510_v55, %v18705_v1 }
 0xc6f   :  { %v30522_v6 = vmax.f32 %v23852_v63, 0.0  ;;  %v17969_v54 = vpop.f32.mrb[28].mxu1  ;;  %v30525_v47 = vsub.f32 %v30512_v34, %v18703_v21 }
 0xc70   :  { %v18709_v28 = vand.u32 4294901760, %v30520_v40  ;;  %v23853_v17 = vadd.f32 %v17969_v54, %v30516_v2  ;;  %v17971_v37 = vpop.f32.mrb[29].mxu1  ;;  %v18795_v20 = vand.u32 4294901760, %v30534_v23 }
 0xc71   :  { %v23854_v3 = vadd.f32 %v17971_v37, %v30516_v2  ;;  %v18707_v39 = vand.u32 4294901760, %v30522_v6  ;;  %v18789_v50 = vand.u32 4294901760, %v30525_v47 }
 0xc72   :  { %v30537_v33 = vsub.f32 %v30520_v40, %v18709_v28  ;;  %v30539_v32 = vmax.f32 %v23853_v17, 0.0  ;;  %v30551_v36 = vpack.c.bf16 %v18709_v28, %v18705_v1  ;;  %v18796_v15 = vsub.f32 %v30534_v23, %v18795_v20  ;;  %v31801_v17 = vld [vmem:[#allocation10_spill] sm:$0xff] }
 0xc73   :  { %v30541_v56 = vmax.f32 %v23854_v3, 0.0  ;;  %v17976_v25 = vpop.f32.mrb[30].mxu1  ;;  %v30543_v13 = vpack.c.bf16 %v18707_v39, %v18703_v21  ;;  %v30546_v14 = vsub.f32 %v30522_v6, %v18707_v39  ;;  %v18790_v26 = vsub.f32 %v30525_v47, %v18789_v50 }
 0xc74   :  { %v18713_v53 = vand.u32 4294901760, %v30539_v32  ;;  %v23855_v38 = vadd.f32 %v17976_v25, %v30530_v16  ;;  %v17978_v44 = vpop.f32.mrb[31].mxu1  ;;  %v18807_v22 = vand.u32 4294901760, %v30537_v33  ;;  %v18797_v29 = vand.u32 4294901760, %v18796_v15 }
 0xc75   :  { %v23856_v60 = vadd.f32 %v17978_v44, %v30530_v16  ;;  %23538 = vmatprep.subr.bf16.mxu0 %v30543_v13  ;;  %v18711_v35 = vand.u32 4294901760, %v30541_v56  ;;  %v18801_v61 = vand.u32 4294901760, %v30546_v14  ;;  %v18791_v18 = vand.u32 4294901760, %v18790_v26 }
 0xc76   :  { %v30558_v41 = vsub.f32 %v30539_v32, %v18713_v53  ;;  %v30560_v8 = vmax.f32 %v23855_v38, 0.0  ;;  %23540 = vmatpush1.bf16.msra.mxu0 %v30551_v36  ;;  %v18808_v62 = vsub.f32 %v30537_v33, %v18807_v22  ;;  %v23553_v38 = vpack.c.bf16 %v30546_v14, %v30525_v47 }
 0xc77   :  { %v30565_v5 = vmax.f32 %v23856_v60, 0.0  ;;  %v18812_v19 = vsub.f32 %v30541_v56, %v18711_v35  ;;  %v18802_v59 = vsub.f32 %v30546_v14, %v18801_v61  ;;  %v23555_v44 = vpack.c.bf16 %v30537_v33, %v30534_v23  ;;  %v31804_v14 = vld [vmem:[#allocation9_spill] sm:$0xff] }
 0xc78   :  { %v18717_v7 = vand.u32 4294901760, %v30560_v8  ;;  %v18819_v46 = vand.u32 4294901760, %v30558_v41  ;;  %v18809_v12 = vand.u32 4294901760, %v18808_v62  ;;  %v31802_v60 = vmov 0.03125  }
 0xc79   :  { %v18715_v48 = vand.u32 4294901760, %v30565_v5  ;;  %v18803_v49 = vand.u32 4294901760, %v18802_v59  ;;  %v18813_v31 = vand.u32 4294901760, %v18812_v19  ;;  %v31803_v59 = vld [vmem:[#allocation8_spill] sm:$0xff]  ;;  %v23569_v23 = vpack.c.bf16 %v18801_v61, %v18789_v50 }
 0xc7a   :  { %v18830_v43 = vsub.f32 %v30560_v8, %v18717_v7  ;;  %v23543_v11 = vpack.c.bf16 %v18717_v7, %v18713_v53  ;;  %v18820_v63 = vsub.f32 %v30558_v41, %v18819_v46  ;;  %v23547_v54 = vpack.c.bf16 %v18809_v12, %v18797_v29 }
 0xc7b   :  { %v23541_v27 = vpack.c.bf16 %v18715_v48, %v18711_v35  ;;  %v18824_v45 = vsub.f32 %v30565_v5, %v18715_v48  ;;  %v23545_v42 = vpack.c.bf16 %v18803_v49, %v18791_v18  ;;  %v18814_v30 = vsub.f32 %v18812_v19, %v18813_v31 }
 0xc7c   :  { %v18831_v51 = vand.u32 4294901760, %v18830_v43  ;;  %v18821_v39 = vand.u32 4294901760, %v18820_v63  ;;  %v23559_v26 = vpack.c.bf16 %v18830_v43, %v30558_v41  ;;  %v23571_v33 = vpack.c.bf16 %v18807_v22, %v18795_v20 }
 0xc7d   :  { %23542 = vmatprep.subr.bf16.mxu0 %v23541_v27  ;;  %v18825_v9 = vand.u32 4294901760, %v18824_v45  ;;  %v18815_v37 = vand.u32 4294901760, %v18814_v30  ;;  %v23557_v35 = vpack.c.bf16 %v18824_v45, %v18812_v19 }
 0xc7e   :  { %23544 = vmatpush1.bf16.msra.mxu0 %v23543_v11  ;;  %v18832_v21 = vsub.f32 %v18830_v43, %v18831_v51  ;;  %v23575_v41 = vpack.c.bf16 %v18831_v51, %v18819_v46 }
 0xc7f   :  { %23546 = vmatprep.subr.bf16.mxu0 %v23545_v42  ;;  %v18826_v1 = vsub.f32 %v18824_v45, %v18825_v9  ;;  %v23573_v19 = vpack.c.bf16 %v18825_v9, %v18813_v31 }
 0xc80   :  { %v18833_v28 = vand.u32 4294901760, %v18832_v21 }
 0xc81   :  { %18781 = vmatmul.mubr.f32.vlgmr.msra.gmra.mrb[32].mxu0 %v31801_v17  ;;  %v18827_v3 = vand.u32 4294901760, %v18826_v1 }
 0xc82   :  { %23548 = vmatpush1.bf16.msra.mxu0 %v23547_v54  ;;  %18891 = vmatprep.mubr.f32.mxu0 %v31422_v10  ;;  %v23551_v53 = vpack.c.bf16 %v18833_v28, %v18821_v39 }
 0xc83   :  { %v23549_v25 = vpack.c.bf16 %v18827_v3, %v18815_v37 }
 0xc85   :  { %23550 = vmatprep.subr.bf16.mxu0 %v23549_v25 }
 0xc86   :  { %23552 = vmatpush1.bf16.msra.mxu0 %v23551_v53 }
 0xc87   :  { %23554 = vmatprep.subr.bf16.mxu0 %v23553_v38 }
 0xc89   :  { %22249 = vmatmul.mubr.msk.f32.vlgmr.msra.gmra.mrb[32].mxu0 %vm738_vm2, %v31802_v60 }
 0xc8a   :  { %23556 = vmatpush1.bf16.msra.mxu0 %v23555_v44  ;;  %18979 = vmatprep.mubr.f32.mxu0 %v31422_v10 }
 0xc8b   :  { %23558 = vmatprep.subr.bf16.mxu0 %v23557_v35 }
 0xc8e   :  { %23560 = vmatpush1.bf16.msra.mxu0 %v23559_v26 }
 0xc8f   :  { %23562 = vmatprep.subr.bf16.mxu0 %v30543_v13 }
 0xc91   :  { %18982 = vmatmul.mubr.f32.vlgmr.msra.gmra.mrb[32].mxu0 %v31803_v59 }
 0xc92   :  { %23564 = vmatpush1.bf16.msra.mxu0 %v30551_v36  ;;  %19060 = vmatprep.mubr.f32.mxu0 %v31422_v10 }
 0xc93   :  { %23566 = vmatprep.subr.bf16.mxu0 %v23541_v27 }
 0xc96   :  { %23568 = vmatpush1.bf16.msra.mxu0 %v23543_v11 }
 0xc97   :  { %23570 = vmatprep.subr.bf16.mxu0 %v23569_v23 }
 0xc99   :  { %19064 = vmatmul.mubr.f32.vlgmr.msra.gmra.mrb[32].mxu0 %v31804_v14 }
 0xc9a   :  { %23572 = vmatpush1.bf16.msra.mxu0 %v23571_v33  ;;  %19158 = vmatprep.mubr.f32.mxu0 %v31422_v10 }
 0xc9b   :  { %23574 = vmatprep.subr.bf16.mxu0 %v23573_v19 }
 0xc9e   :  { %23576 = vmatpush1.bf16.msra.mxu0 %v23575_v41 }
 0xc9f   :  { %23578 = vmatprep.subr.bf16.mxu0 %v30543_v13 }
 0xca1   :  { %22250 = vmatmul.mubr.msk.f32.vlgmr.msra.gmra.mrb[32].mxu0 %vm738_vm2, %v31802_v60 }
 0xca2   :  { %23580 = vmatpush1.bf16.msra.mxu0 %v30551_v36  ;;  %19238 = vmatprep.mubr.f32.mxu0 %v31422_v10 }
 0xca3   :  { %23582 = vmatprep.subr.bf16.mxu0 %v23541_v27 }
 0xca6   :  { %23584 = vmatpush1.bf16.msra.mxu0 %v23543_v11 }
 0xca9   :  { %22251 = vmatmul.mubr.msk.f32.vlgmr.msra.gmra.mrb[32].mxu0 %vm738_vm2, %v31802_v60 }
 0xcaa   :  { %19318 = vmatprep.mubr.f32.mxu0 %v31422_v10 }
 0xcc7   :  { %v18645_v47 = vpop.f32.mrb[32].mxu1 }
 0xcc8   :  { %v23857_v50 = vadd.f32 %v18645_v47, %v30504_v58  ;;  %v18647_v61 = vpop.f32.mrb[33].mxu1 }
 0xcc9   :  { %v23858_v13 = vadd.f32 %v18647_v61, %v30504_v58 }
 0xcca   :  { %v30608_v20 = vmax.f32 %v23857_v50, 0.0 }
 0xccb   :  { %v30610_v22 = vmax.f32 %v23858_v13, 0.0  ;;  %v18652_v36 = vpop.f32.mrb[34].mxu1 }
 0xccc   :  { %v23859_v7 = vadd.f32 %v18652_v36, %v30506_v52  ;;  %v18654_v62 = vpop.f32.mrb[35].mxu1  ;;  %v19248_v31 = vand.u32 4294901760, %v30608_v20 }
 0xccd   :  { %v23860_v48 = vadd.f32 %v18654_v62, %v30506_v52  ;;  %v19246_v49 = vand.u32 4294901760, %v30610_v22 }
 0xcce   :  { %v30616_v43 = vmax.f32 %v23859_v7, 0.0  ;;  %v30628_v12 = vsub.f32 %v30608_v20, %v19248_v31 }
 0xccf   :  { %v30618_v15 = vmax.f32 %v23860_v48, 0.0  ;;  %v18659_v46 = vpop.f32.mrb[36].mxu1  ;;  %v30621_v58 = vsub.f32 %v30610_v22, %v19246_v49 }
 0xcd0   :  { %v19252_v27 = vand.u32 4294901760, %v30616_v43  ;;  %v23861_v45 = vadd.f32 %v18659_v46, %v30516_v2  ;;  %v18661_v18 = vpop.f32.mrb[37].mxu1  ;;  %v19338_v38 = vand.u32 4294901760, %v30628_v12 }
 0xcd1   :  { %v23862_v11 = vadd.f32 %v18661_v18, %v30516_v2  ;;  %v19250_v52 = vand.u32 4294901760, %v30618_v15  ;;  %v19332_v2 = vand.u32 4294901760, %v30621_v58 }
 0xcd2   :  { %v30631_v51 = vsub.f32 %v30616_v43, %v19252_v27  ;;  %v30633_v42 = vmax.f32 %v23861_v45, 0.0  ;;  %v30645_v28 = vpack.c.bf16 %v19252_v27, %v19248_v31  ;;  %v19339_v13 = vsub.f32 %v30628_v12, %v19338_v38 }
 0xcd3   :  { %v30635_v30 = vmax.f32 %v23862_v11, 0.0  ;;  %v18666_v9 = vpop.f32.mrb[38].mxu1  ;;  %v30637_v29 = vpack.c.bf16 %v19250_v52, %v19246_v49  ;;  %v30640_v63 = vsub.f32 %v30618_v15, %v19250_v52  ;;  %v19333_v26 = vsub.f32 %v30621_v58, %v19332_v2 }
 0xcd4   :  { %v19256_v21 = vand.u32 4294901760, %v30633_v42  ;;  %v23863_v1 = vadd.f32 %v18666_v9, %v30530_v16  ;;  %v18668_v54 = vpop.f32.mrb[39].mxu1  ;;  %v19350_v44 = vand.u32 4294901760, %v30631_v51  ;;  %v19340_v11 = vand.u32 4294901760, %v19339_v13 }
 0xcd5   :  { %v23864_v37 = vadd.f32 %v18668_v54, %v30530_v16  ;;  %23586 = vmatprep.subr.bf16.mxu0 %v30637_v29  ;;  %v19254_v3 = vand.u32 4294901760, %v30635_v30  ;;  %v19344_v39 = vand.u32 4294901760, %v30640_v63  ;;  %v19334_v48 = vand.u32 4294901760, %v19333_v26 }
 0xcd6   :  { %v30652_v25 = vsub.f32 %v30633_v42, %v19256_v21  ;;  %v30654_v53 = vmax.f32 %v23863_v1, 0.0  ;;  %23588 = vmatpush1.bf16.msra.mxu0 %v30645_v28  ;;  %v19351_v19 = vsub.f32 %v30631_v51, %v19350_v44 }
 0xcd7   :  { %v30659_v35 = vmax.f32 %v23864_v37, 0.0  ;;  %v30662_v16 = vsub.f32 %v30635_v30, %v19254_v3  ;;  %v19345_v23 = vsub.f32 %v30640_v63, %v19344_v39 }
 0xcd8   :  { %v19260_v33 = vand.u32 4294901760, %v30654_v53  ;;  %v19362_v36 = vand.u32 4294901760, %v30652_v25  ;;  %v19352_v31 = vand.u32 4294901760, %v19351_v19  ;;  %v23601_v19 = vpack.c.bf16 %v30640_v63, %v30621_v58 }
 0xcd9   :  { %v19258_v41 = vand.u32 4294901760, %v30659_v35  ;;  %v19346_v47 = vand.u32 4294901760, %v19345_v23  ;;  %v19356_v50 = vand.u32 4294901760, %v30662_v16  ;;  %v19794_v63 = vmul.f32 %v30522_v6, %v30522_v6 }
 0xcda   :  { %v30673_v61 = vsub.f32 %v30654_v53, %v19260_v33  ;;  %v30682_v49 = vpack.c.bf16 %v19260_v33, %v19256_v21  ;;  %v19363_v52 = vsub.f32 %v30652_v25, %v19362_v36  ;;  %v23595_v21 = vpack.c.bf16 %v19352_v31, %v19340_v11 }
 0xcdb   :  { %v30679_v7 = vpack.c.bf16 %v19258_v41, %v19254_v3  ;;  %v19367_v62 = vsub.f32 %v30659_v35, %v19258_v41  ;;  %v23593_v27 = vpack.c.bf16 %v19346_v47, %v19334_v48  ;;  %v19357_v45 = vsub.f32 %v30662_v16, %v19356_v50 }
 0xcdc   :  { %v19374_v46 = vand.u32 4294901760, %v30673_v61  ;;  %v19364_v26 = vand.u32 4294901760, %v19363_v52  ;;  %v23603_v41 = vpack.c.bf16 %v30631_v51, %v30628_v12  ;;  %v23607_v13 = vpack.c.bf16 %v30673_v61, %v30652_v25 }
 0xcdd   :  { %23590 = vmatprep.subr.bf16.mxu0 %v30679_v7  ;;  %v19368_v18 = vand.u32 4294901760, %v19367_v62  ;;  %v19358_v37 = vand.u32 4294901760, %v19357_v45  ;;  %v23605_v47 = vpack.c.bf16 %v19367_v62, %v30662_v16  ;;  %v23617_v51 = vpack.c.bf16 %v19344_v39, %v19332_v2 }
 0xcde   :  { %23592 = vmatpush1.bf16.msra.mxu0 %v30682_v49  ;;  %v19375_v9 = vsub.f32 %v30673_v61, %v19374_v46  ;;  %v19790_v25 = vmul.f32 %v30512_v34, %v30512_v34  ;;  %v19793_v16 = vmul.f32 %v30520_v40, %v30520_v40  ;;  %v23619_v61 = vpack.c.bf16 %v19350_v44, %v19338_v38 }
 0xcdf   :  { %23594 = vmatprep.subr.bf16.mxu0 %v23593_v27  ;;  %v19369_v1 = vsub.f32 %v19367_v62, %v19368_v18  ;;  %v23621_v62 = vpack.c.bf16 %v19368_v18, %v19356_v50  ;;  %v19809_v58 = vand.u32 4294901760, %v19794_v63  ;;  %v19802_v2 = vmul.f32 %v30565_v5, %v30565_v5 }
 0xce0   :  { %v19376_v54 = vand.u32 4294901760, %v19375_v9  ;;  %v19789_v39 = vmul.f32 %v30510_v55, %v30510_v55  ;;  %v19805_v48 = vand.u32 4294901760, %v19790_v25  ;;  %v19798_v31 = vmul.f32 %v30541_v56, %v30541_v56 }
 0xce1   :  { %19324 = vmatmul.mubr.f32.vlgmr.msra.gmra.mrb[34].mxu0 %v31801_v17  ;;  %v19370_v3 = vand.u32 4294901760, %v19369_v1  ;;  %v19801_v12 = vmul.f32 %v30560_v8, %v30560_v8  ;;  %v23623_v38 = vpack.c.bf16 %v19374_v46, %v19362_v36  ;;  %v19811_v44 = vand.u32 4294901760, %v19793_v16 }
 0xce2   :  { %23596 = vmatpush1.bf16.msra.mxu0 %v23595_v21  ;;  %19434 = vmatprep.mubr.f32.mxu0 %v31422_v10  ;;  %v23599_v33 = vpack.c.bf16 %v19376_v54, %v19364_v26  ;;  %v30728_v50 = vsub.f32 %v19794_v63, %v19809_v58  ;;  %v19817_v27 = vand.u32 4294901760, %v19802_v2  ;;  %v19797_v45 = vmul.f32 %v30539_v32, %v30539_v32 }
 0xce3   :  { %v23597_v23 = vpack.c.bf16 %v19370_v3, %v19358_v37  ;;  %v19807_v18 = vand.u32 4294901760, %v19789_v39  ;;  %v30733_v11 = vsub.f32 %v19790_v25, %v19805_v48  ;;  %v19813_v52 = vand.u32 4294901760, %v19798_v31 }
 0xce4   :  { %v25052_v9 = vmov 12   ;;  %v30735_v1 = vsub.f32 %v19793_v16, %v19811_v44  ;;  %v19819_v21 = vand.u32 4294901760, %v19801_v12  ;;  %v30740_v36 = vsub.f32 %v19802_v2, %v19817_v27 }
 0xce5   :  { %23598 = vmatprep.subr.bf16.mxu0 %v23597_v23  ;;  %24921 = vset.pattern.permute.xlu1 %v25052_v9  ;;  %v19903_v46 = vand.u32 4294901760, %v30728_v50  ;;  %v19815_v54 = vand.u32 4294901760, %v19797_v45  ;;  %v30749_v37 = vsub.f32 %v19798_v31, %v19813_v52  ;;  %v19891_v3 = vand.u32 4294901760, %v30733_v11 }
 0xce6   :  { %23600 = vmatpush1.bf16.msra.mxu0 %v23599_v33  ;;  %20976 = vperm.xlu1 %24921, %v30358_v57   ;;  %v30752_v26 = vsub.f32 %v19801_v12, %v19819_v21  ;;  %v19909_v23 = vand.u32 4294901760, %v30735_v1  ;;  %v25053_v33 = vmov 13   ;;  %v30772_v63 = vpack.c.bf16 %v19811_v44, %v19807_v18 }
 0xce7   :  { %23602 = vmatprep.subr.bf16.mxu0 %v23601_v19  ;;  %24922 = vset.pattern.permute.xlu0 %v25052_v9  ;;  %v30755_v19 = vpack.c.bf16 %v19809_v58, %v19805_v48  ;;  %v30780_v25 = vpack.c.bf16 %v19817_v27, %v19813_v52  ;;  %v30796_v48 = vpack.c.bf16 %v19819_v21, %v19815_v54 }
 0xce8   :  { %20980 = vperm.xlu0 %24922, %v30366_v4  }
 0xce9   :  { %22252 = vmatmul.mubr.msk.f32.vlgmr.msra.gmra.mrb[34].mxu0 %vm738_vm2, %v31802_v60 }
 0xcea   :  { %23604 = vmatpush1.bf16.msra.mxu0 %v23603_v41  ;;  %19522 = vmatprep.mubr.f32.mxu0 %v31422_v10  ;;  %v19927_v41 = vand.u32 4294901760, %v30740_v36 }
 0xceb   :  { %23606 = vmatprep.subr.bf16.mxu0 %v23605_v47  ;;  %24923 = vset.pattern.permute.xlu1 %v25053_v33 }
 0xcec   :  { %21008 = vperm.xlu1 %24923, %v30358_v57   ;;  %20984 = vperm.xlu0 %24922, %v30380_v0   ;;  %v19910_v57 = vsub.f32 %v30735_v1, %v19909_v23 }
 0xcee   :  { %23608 = vmatpush1.bf16.msra.mxu0 %v23607_v13  ;;  %v19892_v13 = vsub.f32 %v30733_v11, %v19891_v3 }
 0xcef   :  { %23610 = vmatprep.subr.bf16.mxu0 %v30637_v29 }
 0xcf0   :  { %21012 = vperm.xlu1 %24923, %v30366_v4   ;;  %v19893_v2 = vand.u32 4294901760, %v19892_v13  ;;  %24925 = vset.pattern.permute.xlu0 %v25053_v33  ;;  %v19911_v4 = vand.u32 4294901760, %v19910_v57  ;;  %v23653_v13 = vpack.c.bf16 %v30740_v36, %v30749_v37  ;;  %v19796_v57 = vmul.f32 %v30618_v15, %v30618_v15 }
 0xcf1   :  { %19525 = vmatmul.mubr.f32.vlgmr.msra.gmra.mrb[34].mxu0 %v31803_v59  ;;  %21016 = vperm.xlu0 %24925, %v30380_v0  }
 0xcf2   :  { %23612 = vmatpush1.bf16.msra.mxu0 %v30645_v28  ;;  %19603 = vmatprep.mubr.f32.mxu0 %v31422_v10 }
 0xcf3   :  { %23614 = vmatprep.subr.bf16.mxu0 %v30679_v7 }
 0xcf4   :  { %24924 = vset.pattern.permute.xlu1 %v25052_v9 }
 0xcf5   :  { %20988 = vperm.xlu1 %24924, %v30373_v24  }
 0xcf6   :  { %23616 = vmatpush1.bf16.msra.mxu0 %v30682_v49 }
 0xcf7   :  { %23618 = vmatprep.subr.bf16.mxu0 %v23617_v51  ;;  %v19915_v51 = vand.u32 4294901760, %v30749_v37 }
 0xcf9   :  { %19607 = vmatmul.mubr.f32.vlgmr.msra.gmra.mrb[34].mxu0 %v31804_v14  ;;  %24926 = vset.pattern.permute.xlu1 %v25053_v33  ;;  %v23665_v33 = vpack.c.bf16 %v19903_v46, %v19891_v3  ;;  %v19804_v3 = vmul.f32 %v30659_v35, %v30659_v35 }
 0xcfa   :  { %23620 = vmatpush1.bf16.msra.mxu0 %v23619_v61  ;;  %19701 = vmatprep.mubr.f32.mxu0 %v31422_v10  ;;  %v19928_v61 = vsub.f32 %v30740_v36, %v19927_v41 }
 0xcfb   :  { %23622 = vmatprep.subr.bf16.mxu0 %v23621_v62  ;;  %21020 = vperm.xlu1 %24926, %v30373_v24  }
 0xcfe   :  { %23624 = vmatpush1.bf16.msra.mxu0 %v23623_v38  ;;  %v19929_v38 = vand.u32 4294901760, %v19928_v61  ;;  %v19795_v61 = vmul.f32 %v30616_v43, %v30616_v43 }
 0xcff   :  { %23626 = vmatprep.subr.bf16.mxu0 %v30637_v29  ;;  %v30746_v29 = vsub.f32 %v19789_v39, %v19807_v18  ;;  %v19916_v39 = vsub.f32 %v30749_v37, %v19915_v51  ;;  %v19803_v37 = vmul.f32 %v30654_v53, %v30654_v53 }
 0xd01   :  { %22253 = vmatmul.mubr.msk.f32.vlgmr.msra.gmra.mrb[34].mxu0 %vm738_vm2, %v31802_v60  ;;  %v19897_v47 = vand.u32 4294901760, %v30746_v29 }
 0xd02   :  { %23628 = vmatpush1.bf16.msra.mxu0 %v30645_v28  ;;  %19781 = vmatprep.mubr.f32.mxu0 %v31422_v10  ;;  %v19904_v28 = vsub.f32 %v30728_v50, %v19903_v46  ;;  %v20352_v46 = vand.u32 4294901760, %v19796_v57 }
 0xd03   :  { %23630 = vmatprep.subr.bf16.mxu0 %v30679_v7  ;;  %v30764_v7 = vsub.f32 %v19797_v45, %v19815_v54  ;;  %v19898_v62 = vsub.f32 %v30746_v29, %v19897_v47  ;;  %v19917_v45 = vand.u32 4294901760, %v19916_v39  ;;  %v23649_v54 = vpack.c.bf16 %v30728_v50, %v30733_v11 }
 0xd04   :  { %v19905_v16 = vand.u32 4294901760, %v19904_v28  ;;  %v23651_v28 = vpack.c.bf16 %v30735_v1, %v30746_v29  ;;  %v23667_v11 = vpack.c.bf16 %v19909_v23, %v19897_v47  ;;  %v23669_v50 = vpack.c.bf16 %v19927_v41, %v19915_v51 }
 0xd05   :  { %v19921_v58 = vand.u32 4294901760, %v30764_v7  ;;  %v19899_v44 = vand.u32 4294901760, %v19898_v62  ;;  %v23645_v21 = vpack.c.bf16 %v19929_v38, %v19917_v45  ;;  %v23655_v24 = vpack.c.bf16 %v30752_v26, %v30764_v7 }
 0xd06   :  { %23632 = vmatpush1.bf16.msra.mxu0 %v30682_v49  ;;  %v19933_v49 = vand.u32 4294901760, %v30752_v26  ;;  %v23641_v12 = vpack.c.bf16 %v19905_v16, %v19893_v2  ;;  %v19792_v16 = vmul.f32 %v30610_v22, %v30610_v22  ;;  %v19791_v62 = vmul.f32 %v30608_v20, %v30608_v20 }
 0xd07   :  { %23634 = vmatprep.subr.bf16.mxu0 %v30755_v19  ;;  %v19922_v27 = vsub.f32 %v30764_v7, %v19921_v58  ;;  %v23643_v18 = vpack.c.bf16 %v19911_v4, %v19899_v44  ;;  %v19800_v29 = vmul.f32 %v30635_v30, %v30635_v30  ;;  %v20354_v23 = vand.u32 4294901760, %v19795_v61 }
 0xd08   :  { %v19934_v31 = vsub.f32 %v30752_v26, %v19933_v49  ;;  %v20348_v1 = vand.u32 4294901760, %v19792_v16  ;;  %v23671_v36 = vpack.c.bf16 %v19933_v49, %v19921_v58  ;;  %v30859_v41 = vsub.f32 %v19796_v57, %v20352_v46 }
 0xd09   :  { %22254 = vmatmul.mubr.msk.f32.vlgmr.msra.gmra.mrb[34].mxu0 %vm738_vm2, %v31802_v60  ;;  %v19923_v0 = vand.u32 4294901760, %v19922_v27  ;;  %v20360_v47 = vand.u32 4294901760, %v19804_v3  ;;  %v19799_v51 = vmul.f32 %v30633_v42, %v30633_v42  ;;  %v20350_v2 = vand.u32 4294901760, %v19791_v62 }
 0xd0a   :  { %23636 = vmatpush1.bf16.msra.mxu0 %v30772_v63  ;;  %19877 = vmatprep.mubr.f32.mxu0 %v31422_v10  ;;  %v19935_v52 = vand.u32 4294901760, %v19934_v31  ;;  %v30864_v39 = vsub.f32 %v19792_v16, %v20348_v1  ;;  %v20356_v4 = vand.u32 4294901760, %v19800_v29  ;;  %v30866_v31 = vsub.f32 %v19795_v61, %v20354_v23 }
 0xd0b   :  { %23638 = vmatprep.subr.bf16.mxu0 %v30780_v25  ;;  %v20362_v7 = vand.u32 4294901760, %v19803_v37  ;;  %v30870_v26 = vsub.f32 %v19804_v3, %v20360_v47  ;;  %v20446_v49 = vand.u32 4294901760, %v30859_v41  ;;  %v30875_v58 = vsub.f32 %v19791_v62, %v20350_v2 }
 0xd0c   :  { %v23647_v9 = vpack.c.bf16 %v19935_v52, %v19923_v0  ;;  %v20434_v38 = vand.u32 4294901760, %v30864_v39  ;;  %v20452_v27 = vand.u32 4294901760, %v30866_v31  ;;  %v30884_v45 = vpack.c.bf16 %v20352_v46, %v20348_v1 }
 0xd0d   :  { %v30881_v44 = vsub.f32 %v19803_v37, %v20362_v7 }
 0xd0e   :  { %23640 = vmatpush1.bf16.msra.mxu0 %v30796_v48 }
 0xd0f   :  { %23642 = vmatprep.subr.bf16.mxu0 %v23641_v12  ;;  %v30878_v12 = vsub.f32 %v19800_v29, %v20356_v4 }
 0xd11   :  { %19883 = vmatmul.mubr.f32.vlgmr.msra.gmra.mrb[36].mxu0 %v31801_v17  ;;  %v20458_v0 = vand.u32 4294901760, %v30878_v12 }
 0xd12   :  { %23644 = vmatpush1.bf16.msra.mxu0 %v23643_v18  ;;  %19993 = vmatprep.mubr.f32.mxu0 %v31422_v10  ;;  %v20470_v18 = vand.u32 4294901760, %v30870_v26 }
 0xd13   :  { %23646 = vmatprep.subr.bf16.mxu0 %v23645_v21  ;;  %v20435_v21 = vsub.f32 %v30864_v39, %v20434_v38  ;;  %v20459_v61 = vsub.f32 %v30878_v12, %v20458_v0 }
 0xd15   :  { %v20436_v16 = vand.u32 4294901760, %v20435_v21  ;;  %v20460_v37 = vand.u32 4294901760, %v20459_v61 }
 0xd16   :  { %23648 = vmatpush1.bf16.msra.mxu0 %v23647_v9  ;;  %v23683_v9 = vpack.c.bf16 %v20354_v23, %v20350_v2 }
 0xd17   :  { %23650 = vmatprep.subr.bf16.mxu0 %v23649_v54  ;;  %v20453_v54 = vsub.f32 %v30866_v31, %v20452_v27 }
 0xd19   :  { %22255 = vmatmul.mubr.msk.f32.vlgmr.msra.gmra.mrb[36].mxu0 %vm738_vm2, %v31802_v60 }
 0xd1a   :  { %23652 = vmatpush1.bf16.msra.mxu0 %v23651_v28  ;;  %20081 = vmatprep.mubr.f32.mxu0 %v31422_v10  ;;  %v20476_v28 = vand.u32 4294901760, %v30881_v44 }
 0xd1b   :  { %23654 = vmatprep.subr.bf16.mxu0 %v23653_v13  ;;  %v23685_v13 = vpack.c.bf16 %v20360_v47, %v20356_v4  ;;  %v23697_v4 = vpack.c.bf16 %v30859_v41, %v30864_v39  ;;  %v23713_v39 = vpack.c.bf16 %v20446_v49, %v20434_v38  ;;  %v43_v38 = vld [vmem:[%s31147_s5] sm:$0x1]  ;;  %s25056_s5 = smov [#allocation5]  }
 0xd1c   :  { %v20477_v46 = vsub.f32 %v30881_v44, %v20476_v28  ;;  %s22216_s11 = sshll.u32 %s25056_s5, 4  ;;  %s22217_s11 = int_to_ptr.vmem [resolvable:$true] %s22216_s11 }
 0xd1d   :  { %s25007_s12 = scalar_lea.vmem %s22217_s11, 64  ;;  %p25012_p9 = scmp.lt.s32.totalorder %s22217_s11, %s22217_s11 }
 0xd1e   :  { %23656 = vmatpush1.bf16.msra.mxu0 %v23655_v24  ;;  %v20471_v24 = vsub.f32 %v30870_v26, %v20470_v18  ;;  %v20478_v23 = vand.u32 4294901760, %v20477_v46  ;;  %p25008_p8 = scmp.ne.s32.totalorder %s22217_s11, %s25007_s12  ;;  %p25013_p10 = scmp.lt.s32.totalorder %s25007_s12, %s25007_s12 }
 0xd1f   :  { %23658 = vmatprep.subr.bf16.mxu0 %v30755_v19 }
 0xd20   :  { %v20472_v62 = vand.u32 4294901760, %v20471_v24  ;;  %p25014_p11 = por %p25013_p10, %p25012_p9 }
 0xd21   :  { %20084 = vmatmul.mubr.f32.vlgmr.msra.gmra.mrb[36].mxu0 %v31803_v59 }
 0xd22   :  { %23660 = vmatpush1.bf16.msra.mxu0 %v30772_v63  ;;  %20162 = vmatprep.mubr.f32.mxu0 %v31422_v10  ;;  %v23693_v47 = vpack.c.bf16 %v20472_v62, %v20460_v37  ;;  %p25015_p12 = pnand %p25014_p11, %p25008_p8 }
 0xd23   :  { %23662 = vmatprep.subr.bf16.mxu0 %v30780_v25 }
 0xd26   :  { %23664 = vmatpush1.bf16.msra.mxu0 %v30796_v48 }
 0xd27   :  { %23666 = vmatprep.subr.bf16.mxu0 %v23665_v33 }
 0xd29   :  { %20166 = vmatmul.mubr.f32.vlgmr.msra.gmra.mrb[36].mxu0 %v31804_v14 }
 0xd2a   :  { %23668 = vmatpush1.bf16.msra.mxu0 %v23667_v11  ;;  %20260 = vmatprep.mubr.f32.mxu0 %v31422_v10 }
 0xd2b   :  { %23670 = vmatprep.subr.bf16.mxu0 %v23669_v50  ;;  %v20454_v50 = vand.u32 4294901760, %v20453_v54 }
 0xd2e   :  { %23672 = vmatpush1.bf16.msra.mxu0 %v23671_v36 }
 0xd2f   :  { %23674 = vmatprep.subr.bf16.mxu0 %v30755_v19  ;;  %v20358_v19 = vand.u32 4294901760, %v19799_v51 }
 0xd31   :  { %22256 = vmatmul.mubr.msk.f32.vlgmr.msra.gmra.mrb[36].mxu0 %vm738_vm2, %v31802_v60  ;;  %v30891_v52 = vsub.f32 %v19799_v51, %v20358_v19  ;;  %v23687_v11 = vpack.c.bf16 %v20362_v7, %v20358_v19  ;;  %v23699_v7 = vpack.c.bf16 %v30866_v31, %v30875_v58 }
 0xd32   :  { %23676 = vmatpush1.bf16.msra.mxu0 %v30772_v63  ;;  %20340 = vmatprep.mubr.f32.mxu0 %v31422_v10  ;;  %v20447_v63 = vsub.f32 %v30859_v41, %v20446_v49 }
 0xd33   :  { %23678 = vmatprep.subr.bf16.mxu0 %v30780_v25  ;;  %v20440_v25 = vand.u32 4294901760, %v30875_v58  ;;  %v20464_v57 = vand.u32 4294901760, %v30891_v52  ;;  %v23703_v19 = vpack.c.bf16 %v30881_v44, %v30891_v52 }
 0xd35   :  { %v20441_v33 = vsub.f32 %v30875_v58, %v20440_v25  ;;  %v20465_v29 = vsub.f32 %v30891_v52, %v20464_v57  ;;  %v23715_v31 = vpack.c.bf16 %v20452_v27, %v20440_v25  ;;  %v23719_v58 = vpack.c.bf16 %v20476_v28, %v20464_v57 }
 0xd36   :  { %23680 = vmatpush1.bf16.msra.mxu0 %v30796_v48  ;;  %v20448_v48 = vand.u32 4294901760, %v20447_v63  ;;  %v21064_v63 = vsel %vm738_vm2, %v43_v38, 0  ;;  %v25054_v25 = vmov 32  }
 0xd37   :  { %23682 = vmatprep.subr.bf16.mxu0 %v30884_v45  ;;  %v20442_v1 = vand.u32 4294901760, %v20441_v33  ;;  %v20466_v51 = vand.u32 4294901760, %v20465_v29  ;;  %24927 = vset.pattern.permute.xlu1 %v25054_v25 }
 0xd38   :  { %v23689_v3 = vpack.c.bf16 %v20448_v48, %v20436_v16  ;;  %24928 = vset.pattern.permute.xlu0 %v25054_v25  ;;  %21057 = vperm.xlu1 %24927, %v43_v38   ;;  %v31806_v16 = vld [vmem:[#allocation12_spill] sm:$0xff] }
 0xd39   :  { %22257 = vmatmul.mubr.msk.f32.vlgmr.msra.gmra.mrb[36].mxu0 %vm738_vm2, %v31802_v60  ;;  %v23691_v36 = vpack.c.bf16 %v20454_v50, %v20442_v1  ;;  %v23695_v2 = vpack.c.bf16 %v20478_v23, %v20466_v51 }
 0xd3a   :  { %23684 = vmatpush1.bf16.msra.mxu0 %v23683_v9  ;;  %20420 = vmatprep.mubr.f32.mxu0 %v31422_v10 }
 0xd3b   :  { %23686 = vmatprep.subr.bf16.mxu0 %v23685_v13 }
 0xd3e   :  { %23688 = vmatpush1.bf16.msra.mxu0 %v23687_v11 }
 0xd3f   :  { %23690 = vmatprep.subr.bf16.mxu0 %v23689_v3 }
 0xd41   :  { %20426 = vmatmul.mubr.f32.vlgmr.msra.gmra.mrb[38].mxu0 %v31801_v17  ;;  %v23701_v17 = vpack.c.bf16 %v30870_v26, %v30878_v12  ;;  %v23717_v26 = vpack.c.bf16 %v20470_v18, %v20458_v0 }
 0xd42   :  { %23692 = vmatpush1.bf16.msra.mxu0 %v23691_v36  ;;  %20536 = vmatprep.mubr.f32.mxu0 %v31422_v10 }
 0xd43   :  { %23694 = vmatprep.subr.bf16.mxu0 %v23693_v47 }
 0xd46   :  { %23696 = vmatpush1.bf16.msra.mxu0 %v23695_v2 }
 0xd47   :  { %23698 = vmatprep.subr.bf16.mxu0 %v23697_v4 }
 0xd49   :  { %22258 = vmatmul.mubr.msk.f32.vlgmr.msra.gmra.mrb[38].mxu0 %vm738_vm2, %v31802_v60 }
 0xd4a   :  { %23700 = vmatpush1.bf16.msra.mxu0 %v23699_v7  ;;  %20624 = vmatprep.mubr.f32.mxu0 %v31422_v10 }
 0xd4b   :  { %23702 = vmatprep.subr.bf16.mxu0 %v23701_v17 }
 0xd4e   :  { %23704 = vmatpush1.bf16.msra.mxu0 %v23703_v19 }
 0xd4f   :  { %23706 = vmatprep.subr.bf16.mxu0 %v30884_v45 }
 0xd51   :  { %20627 = vmatmul.mubr.f32.vlgmr.msra.gmra.mrb[38].mxu0 %v31803_v59 }
 0xd52   :  { %23708 = vmatpush1.bf16.msra.mxu0 %v23683_v9  ;;  %20705 = vmatprep.mubr.f32.mxu0 %v31422_v10 }
 0xd53   :  { %23710 = vmatprep.subr.bf16.mxu0 %v23685_v13 }
 0xd56   :  { %23712 = vmatpush1.bf16.msra.mxu0 %v23687_v11 }
 0xd57   :  { %23714 = vmatprep.subr.bf16.mxu0 %v23713_v39 }
 0xd59   :  { %20709 = vmatmul.mubr.f32.vlgmr.msra.gmra.mrb[38].mxu0 %v31804_v14 }
 0xd5a   :  { %23716 = vmatpush1.bf16.msra.mxu0 %v23715_v31  ;;  %20803 = vmatprep.mubr.f32.mxu0 %v31422_v10 }
 0xd5b   :  { %23718 = vmatprep.subr.bf16.mxu0 %v23717_v26 }
 0xd5e   :  { %23720 = vmatpush1.bf16.msra.mxu0 %v23719_v58 }
 0xd5f   :  { %23722 = vmatprep.subr.bf16.mxu0 %v30884_v45 }
 0xd61   :  { %22259 = vmatmul.mubr.msk.f32.vlgmr.msra.gmra.mrb[38].mxu0 %vm738_vm2, %v31802_v60 }
 0xd62   :  { %23724 = vmatpush1.bf16.msra.mxu0 %v23683_v9  ;;  %20883 = vmatprep.mubr.f32.mxu0 %v31422_v10  ;;  %v30947_v9 = vand.u32 4294901760, %v21064_v63 }
 0xd63   :  { %23726 = vmatprep.subr.bf16.mxu0 %v23685_v13 }
 0xd64   :  { %v30950_v48 = vsub.f32 %v21064_v63, %v30947_v9 }
 0xd65   :  { %v30939_v12 = vpop.permute.xlu1 %20976 }
 0xd66   :  { %23728 = vmatpush1.bf16.msra.mxu0 %v23687_v11  ;;  %v30957_v57 = vand.u32 4294901760, %v30950_v48 }
 0xd67   :  { %v30954_v33 = vpop.permute.xlu0 %20980 }
 0xd68   :  { %v21142_v3 = vsub.f32 %v30950_v48, %v30957_v57 }
 0xd69   :  { %22260 = vmatmul.mubr.msk.f32.vlgmr.msra.gmra.mrb[38].mxu0 %vm738_vm2, %v31802_v60 }
 0xd6a   :  { %21138 = vmatprep.mubr.f32.mxu0 %v31422_v10 }
 0xd6b   :  { %v30945_v0 = vpop.permute.xlu1 %21008  ;;  %v30963_v46 = vpop.permute.xlu0 %20984 }
 0xd6f   :  { %v30952_v24 = vpop.permute.xlu1 %21012 }
 0xd70   :  { %31805 = vst [vmem:[#allocation29_spill] sm:$0xff] %v30952_v24 }
 0xd74   :  { %v30961_v50 = vpop.permute.xlu1 %20988 }
 0xd7c   :  { %v19241_v59 = vpop.f32.mrb[32].mxu0 }
 0xd7d   :  { %v19243_v14 = vpop.f32.mrb[33].mxu0  ;;  %v20891_v44 = vmul.f32 %v19241_v59, %v19241_v59  ;;  %v20906_v61 = vrot.slane %v19241_v59, %v31806_v16 }
 0xd7e   :  { %v20892_v27 = vmul.f32 %v19243_v14, %v19243_v14  ;;  %v20910_v11 = vrot.slane %v19243_v14, %v31806_v16 }
 0xd7f   :  { %v20919_v1 = vsub.f32 %v30510_v55, %v20906_v61  ;;  %v20923_v29 = vsub.f32 %v30520_v40, %v20906_v61  ;;  %v20931_v37 = vsub.f32 %v30560_v8, %v20906_v61  ;;  %v20927_v2 = vsub.f32 %v30539_v32, %v20906_v61 }
 0xd80   :  { %v20920_v47 = vsub.f32 %v30512_v34, %v20910_v11  ;;  %v20924_v51 = vsub.f32 %v30522_v6, %v20910_v11  ;;  %v20932_v7 = vsub.f32 %v30565_v5, %v20910_v11  ;;  %v20928_v17 = vsub.f32 %v30541_v56, %v20910_v11  ;;  %v30979_v34 = vpop.permute.xlu1 %21020  ;;  %v30981_v6 = vpop.permute.xlu0 %21016 }
 0xd81   :  { %v30977_v55 = vand.u32 4294901760, %v21142_v3  ;;  %31807 = vst [vmem:[#allocation14_spill] sm:$0xff] %v30979_v34  ;;  %31808 = vst [vmem:[#allocation36_spill] sm:$0xff] %v30981_v6 }
 0xddc   :  { %v30935_v41 = vpop.f32.mrb[34].mxu0 }
 0xddd   :  { %v30937_v49 = vpop.f32.mrb[35].mxu0 }
 0xe0c   :  { %v20343_v45 = vpop.f32.mrb[36].mxu0 }
 0xe0d   :  { %v20895_v60 = vsub.f32 %v20343_v45, %v20891_v44  ;;  %v20345_v18 = vpop.f32.mrb[37].mxu0 }
 0xe0e   :  { %v20896_v52 = vsub.f32 %v20345_v18, %v20892_v27 }
 0xe0f   :  { %v20899_v21 = vmax.f32 %v20895_v60, 0.0 }
 0xe10   :  { %v20900_v54 = vmax.f32 %v20896_v52, 0.0 }
 0xe11   :  { %v20935_v28 = vadd.f32 1e-05, %v20899_v21 }
 0xe12   :  { %v20936_v13 = vadd.f32 1e-05, %v20900_v54 }
 0xe13   :  { %24945 = vrsqrt.f32 %v20935_v28 }
 0xe14   :  { %24947 = vrsqrt.f32 %v20936_v13  ;;  %v31809_v13 = vld [vmem:[#allocation16_spill] sm:$0xff] }
 0xe1d   :  { %v24946_v62 = vpop.eup %24945 }
 0xe1e   :  { %v24948_v36 = vpop.eup %24947  ;;  %v20946_v23 = vrot.slane %v24946_v62, %v31806_v16 }
 0xe1f   :  { %v20950_v4 = vrot.slane %v24948_v36, %v31806_v16 }
 0xe20   :  { %v20959_v40 = vmul.f32 %v20946_v23, %v20919_v1  ;;  %v20963_v19 = vmul.f32 %v20946_v23, %v20923_v29  ;;  %v20971_v8 = vmul.f32 %v20946_v23, %v20931_v37  ;;  %v20967_v39 = vmul.f32 %v20946_v23, %v20927_v2  ;;  %v31810_v1 = vld [vmem:[#allocation17_spill] sm:$0xff] }
 0xe21   :  { %v20960_v31 = vmul.f32 %v20950_v4, %v20920_v47  ;;  %v20964_v26 = vmul.f32 %v20950_v4, %v20924_v51  ;;  %v20972_v58 = vmul.f32 %v20950_v4, %v20932_v7  ;;  %v20968_v32 = vmul.f32 %v20950_v4, %v20928_v17 }
 0xe22   :  { %v20991_v59 = vmul.f32 %v30939_v12, %v20959_v40  ;;  %v20995_v5 = vmul.f32 %v30954_v33, %v20963_v19  ;;  %v21003_v56 = vmul.f32 %v30961_v50, %v20971_v8  ;;  %v20999_v14 = vmul.f32 %v30963_v46, %v20967_v39 }
 0xe23   :  { %v20992_v38 = vmul.f32 %v30939_v12, %v20960_v31  ;;  %v20996_v44 = vmul.f32 %v30954_v33, %v20964_v26  ;;  %v21004_v27 = vmul.f32 %v30961_v50, %v20972_v58  ;;  %v21000_v45 = vmul.f32 %v30963_v46, %v20968_v32 }
 0xe24   :  { %v21023_v63 = vadd.f32 %v30945_v0, %v20991_v59  ;;  %v21027_v60 = vadd.f32 %v30952_v24, %v20995_v5  ;;  %v21035_v18 = vadd.f32 %v30979_v34, %v21003_v56  ;;  %v21031_v52 = vadd.f32 %v30981_v6, %v20999_v14 }
 0xe25   :  { %v21024_v25 = vadd.f32 %v30945_v0, %v20992_v38  ;;  %v21028_v21 = vadd.f32 %v30952_v24, %v20996_v44  ;;  %v21036_v54 = vadd.f32 %v30979_v34, %v21004_v27  ;;  %v21032_v28 = vadd.f32 %v30981_v6, %v21000_v45 }
 0xe26   :  { %v21039_v61 = vmul.f32 %v21023_v63, %v31809_v13  ;;  %v21043_v11 = vmul.f32 %v21027_v60, %v31809_v13  ;;  %v21051_v3 = vmul.f32 %v21035_v18, %v31809_v13  ;;  %v21047_v62 = vmul.f32 %v21031_v52, %v31809_v13 }
 0xe27   :  { %v21040_v29 = vmul.f32 %v21024_v25, %v31810_v1  ;;  %v21052_v37 = vmul.f32 %v21036_v54, %v31810_v1  ;;  %v21048_v36 = vmul.f32 %v21032_v28, %v31810_v1  ;;  %v21044_v23 = vmul.f32 %v21028_v21, %v31810_v1 }
 0xe28   :  { %v21076_v47 = vand.u32 4294901760, %v21047_v62  ;;  %v21068_v51 = vand.u32 4294901760, %v21039_v61  ;;  %v21072_v2 = vand.u32 4294901760, %v21043_v11  ;;  %v21080_v4 = vand.u32 4294901760, %v21051_v3 }
 0xe29   :  { %v21066_v7 = vand.u32 4294901760, %v21040_v29  ;;  %v21070_v17 = vand.u32 4294901760, %v21044_v23  ;;  %v21074_v40 = vand.u32 4294901760, %v21048_v36  ;;  %v21078_v19 = vand.u32 4294901760, %v21052_v37 }
 0xe2a   :  { %v31007_v8 = vsub.f32 %v21047_v62, %v21076_v47  ;;  %v31009_v39 = vpack.c.bf16 %v21072_v2, %v21068_v51  ;;  %v31011_v31 = vsub.f32 %v21039_v61, %v21068_v51  ;;  %v31013_v26 = vsub.f32 %v21043_v11, %v21072_v2 }
 0xe2b   :  { %v31015_v58 = vpack.c.bf16 %v21070_v17, %v21066_v7  ;;  %v21151_v32 = vsub.f32 %v21040_v29, %v21066_v7  ;;  %v21163_v59 = vsub.f32 %v21044_v23, %v21070_v17  ;;  %v31017_v5 = vpack.c.bf16 %v21078_v19, %v21074_v40 }
 0xe2c   :  { %v21175_v56 = vsub.f32 %v21048_v36, %v21074_v40  ;;  %v21187_v14 = vsub.f32 %v21052_v37, %v21078_v19  ;;  %v31019_v38 = vpack.c.bf16 %v21080_v4, %v21076_v47  ;;  %v21193_v44 = vsub.f32 %v21051_v3, %v21080_v4 }
 0xe2d   :  { %23730 = vmatprep.subr.bf16.mxu0 %v31015_v58  ;;  %v21152_v27 = vand.u32 4294901760, %v21151_v32  ;;  %v21164_v45 = vand.u32 4294901760, %v21163_v59  ;;  %v21158_v63 = vand.u32 4294901760, %v31011_v31  ;;  %v21170_v60 = vand.u32 4294901760, %v31013_v26 }
 0xe2e   :  { %23732 = vmatpush1.bf16.msra.mxu0 %v31009_v39  ;;  %v21176_v18 = vand.u32 4294901760, %v21175_v56  ;;  %v21188_v52 = vand.u32 4294901760, %v21187_v14  ;;  %v21182_v25 = vand.u32 4294901760, %v31007_v8  ;;  %v21194_v21 = vand.u32 4294901760, %v21193_v44 }
 0xe2f   :  { %23734 = vmatprep.subr.bf16.mxu0 %v31017_v5  ;;  %v21153_v54 = vsub.f32 %v21151_v32, %v21152_v27  ;;  %v21165_v28 = vsub.f32 %v21163_v59, %v21164_v45  ;;  %v21159_v61 = vsub.f32 %v31011_v31, %v21158_v63  ;;  %v21171_v11 = vsub.f32 %v31013_v26, %v21170_v60 }
 0xe30   :  { %v21177_v3 = vsub.f32 %v21175_v56, %v21176_v18  ;;  %v21189_v62 = vsub.f32 %v21187_v14, %v21188_v52  ;;  %v21183_v29 = vsub.f32 %v31007_v8, %v21182_v25  ;;  %v21195_v37 = vsub.f32 %v21193_v44, %v21194_v21 }
 0xe31   :  { %v21154_v36 = vand.u32 4294901760, %v21153_v54  ;;  %v21166_v23 = vand.u32 4294901760, %v21165_v28  ;;  %v21160_v47 = vand.u32 4294901760, %v21159_v61  ;;  %v21172_v51 = vand.u32 4294901760, %v21171_v11 }
 0xe32   :  { %23736 = vmatpush1.bf16.msra.mxu0 %v31019_v38  ;;  %v21178_v2 = vand.u32 4294901760, %v21177_v3  ;;  %v21190_v4 = vand.u32 4294901760, %v21189_v62  ;;  %v21184_v7 = vand.u32 4294901760, %v21183_v29  ;;  %v21196_v17 = vand.u32 4294901760, %v21195_v37 }
 0xe33   :  { %v23737_v40 = vpack.c.bf16 %v21166_v23, %v21154_v36  ;;  %v23739_v19 = vpack.c.bf16 %v21172_v51, %v21160_v47  ;;  %v23745_v1 = vpack.c.bf16 %v21163_v59, %v21151_v32  ;;  %v23747_v13 = vpack.c.bf16 %v31013_v26, %v31011_v31 }
 0xe34   :  { %v23741_v34 = vpack.c.bf16 %v21190_v4, %v21178_v2  ;;  %v23743_v6 = vpack.c.bf16 %v21196_v17, %v21184_v7  ;;  %v23749_v24 = vpack.c.bf16 %v21187_v14, %v21175_v56  ;;  %v23751_v54 = vpack.c.bf16 %v21193_v44, %v31007_v8  ;;  %v31811_v17 = vld [vmem:[#allocation29_spill] sm:$0xff] }
 0xe35   :  { %21144 = vmatmul.mubr.f32.vlgmr.msra.gmra.mrb[40].mxu0 %v30977_v55  ;;  %23738 = vmatprep.subr.bf16.mxu0 %v23737_v40  ;;  %v23761_v28 = vpack.c.bf16 %v21164_v45, %v21152_v27  ;;  %v23763_v61 = vpack.c.bf16 %v21170_v60, %v21158_v63  ;;  %v23765_v11 = vpack.c.bf16 %v21188_v52, %v21176_v18 }
 0xe36   :  { %23740 = vmatpush1.bf16.msra.mxu0 %v23739_v19  ;;  %21254 = vmatprep.mubr.f32.mxu0 %v31422_v10  ;;  %v23767_v3 = vpack.c.bf16 %v21194_v21, %v21182_v25  ;;  %v20893_v31 = vmul.f32 %v30935_v41, %v30935_v41  ;;  %v20894_v26 = vmul.f32 %v30937_v49, %v30937_v49  ;;  %v31812_v19 = vld [vmem:[#allocation36_spill] sm:$0xff] }
 0xe37   :  { %23742 = vmatprep.subr.bf16.mxu0 %v23741_v34 }
 0xe3a   :  { %23744 = vmatpush1.bf16.msra.mxu0 %v23743_v6 }
 0xe3b   :  { %23746 = vmatprep.subr.bf16.mxu0 %v23745_v1 }
 0xe3c   :  { %v20886_v8 = vpop.f32.mrb[38].mxu0 }
 0xe3d   :  { %v20897_v32 = vsub.f32 %v20886_v8, %v20893_v31  ;;  %v20888_v59 = vpop.f32.mrb[39].mxu0  ;;  %21256 = vmatmul.mubr.f32.vlgmr.msra.gmra.mrb[40].mxu0 %v30947_v9 }
 0xe3e   :  { %v20898_v56 = vsub.f32 %v20888_v59, %v20894_v26  ;;  %23748 = vmatpush1.bf16.msra.mxu0 %v23747_v13  ;;  %21342 = vmatprep.mubr.f32.mxu0 %v31422_v10  ;;  %v20914_v13 = vrot.slane %v30935_v41, %v31806_v16  ;;  %v31815_v26 = vld [vmem:[#allocation17_spill] sm:$0xff] }
 0xe3f   :  { %v20901_v14 = vmax.f32 %v20897_v32, 0.0  ;;  %23750 = vmatprep.subr.bf16.mxu0 %v23749_v24  ;;  %v20918_v24 = vrot.slane %v30937_v49, %v31806_v16 }
 0xe40   :  { %v20902_v34 = vmax.f32 %v20898_v56, 0.0  ;;  %v20921_v27 = vsub.f32 %v30608_v20, %v20914_v13  ;;  %v20925_v45 = vsub.f32 %v30616_v43, %v20914_v13  ;;  %v20929_v63 = vsub.f32 %v30633_v42, %v20914_v13 }
 0xe41   :  { %v20937_v6 = vadd.f32 1e-05, %v20901_v14  ;;  %v20933_v18 = vsub.f32 %v30654_v53, %v20914_v13  ;;  %v20922_v41 = vsub.f32 %v30610_v22, %v20918_v24  ;;  %v20926_v49 = vsub.f32 %v30618_v15, %v20918_v24 }
 0xe42   :  { %v20938_v44 = vadd.f32 1e-05, %v20902_v34  ;;  %23752 = vmatpush1.bf16.msra.mxu0 %v23751_v54  ;;  %v20930_v20 = vsub.f32 %v30635_v30, %v20918_v24  ;;  %v20934_v43 = vsub.f32 %v30659_v35, %v20918_v24 }
 0xe43   :  { %24949 = vrsqrt.f32 %v20937_v6  ;;  %23754 = vmatprep.subr.bf16.mxu0 %v31015_v58 }
 0xe44   :  { %24951 = vrsqrt.f32 %v20938_v44 }
 0xe45   :  { %21345 = vmatmul.mubr.f32.vlgmr.msra.gmra.mrb[40].mxu0 %v30950_v48 }
 0xe46   :  { %23756 = vmatpush1.bf16.msra.mxu0 %v31009_v39  ;;  %21423 = vmatprep.mubr.f32.mxu0 %v31422_v10 }
 0xe47   :  { %23758 = vmatprep.subr.bf16.mxu0 %v31017_v5 }
 0xe4a   :  { %23760 = vmatpush1.bf16.msra.mxu0 %v31019_v38 }
 0xe4b   :  { %23762 = vmatprep.subr.bf16.mxu0 %v23761_v28  ;;  %v31813_v28 = vld [vmem:[#allocation14_spill] sm:$0xff] }
 0xe4d   :  { %v24950_v1 = vpop.eup %24949  ;;  %21427 = vmatmul.mubr.f32.vlgmr.msra.gmra.mrb[40].mxu0 %v30957_v57 }
 0xe4e   :  { %v24952_v60 = vpop.eup %24951  ;;  %v20954_v52 = vrot.slane %v24950_v1, %v31806_v16  ;;  %23764 = vmatpush1.bf16.msra.mxu0 %v23763_v61  ;;  %21521 = vmatprep.mubr.f32.mxu0 %v31422_v10 }
 0xe4f   :  { %v20958_v42 = vrot.slane %v24952_v60, %v31806_v16  ;;  %23766 = vmatprep.subr.bf16.mxu0 %v23765_v11 }
 0xe50   :  { %v20961_v25 = vmul.f32 %v20954_v52, %v20921_v27  ;;  %v20965_v21 = vmul.f32 %v20954_v52, %v20925_v45  ;;  %v20969_v62 = vmul.f32 %v20954_v52, %v20929_v63  ;;  %v20973_v53 = vmul.f32 %v20954_v52, %v20933_v18 }
 0xe51   :  { %v20962_v29 = vmul.f32 %v20958_v42, %v20922_v41  ;;  %v20966_v22 = vmul.f32 %v20958_v42, %v20926_v49  ;;  %v20970_v37 = vmul.f32 %v20958_v42, %v20930_v20  ;;  %v20974_v36 = vmul.f32 %v20958_v42, %v20934_v43 }
 0xe52   :  { %23768 = vmatpush1.bf16.msra.mxu0 %v23767_v3  ;;  %v20993_v23 = vmul.f32 %v30939_v12, %v20961_v25  ;;  %v20997_v15 = vmul.f32 %v30954_v33, %v20965_v21  ;;  %v21001_v30 = vmul.f32 %v30963_v46, %v20969_v62  ;;  %v21005_v35 = vmul.f32 %v30961_v50, %v20973_v53 }
 0xe53   :  { %23770 = vmatprep.subr.bf16.mxu0 %v31015_v58  ;;  %v20994_v47 = vmul.f32 %v30939_v12, %v20962_v29  ;;  %v20998_v51 = vmul.f32 %v30954_v33, %v20966_v22  ;;  %v21002_v2 = vmul.f32 %v30963_v46, %v20970_v37  ;;  %v21006_v4 = vmul.f32 %v30961_v50, %v20974_v36  ;;  %v31814_v50 = vld [vmem:[#allocation16_spill] sm:$0xff] }
 0xe54   :  { %v21025_v7 = vadd.f32 %v30945_v0, %v20993_v23  ;;  %v21029_v40 = vadd.f32 %v31811_v17, %v20997_v15  ;;  %v21033_v54 = vadd.f32 %v31812_v19, %v21001_v30  ;;  %v21037_v61 = vadd.f32 %v31813_v28, %v21005_v35 }
 0xe55   :  { %21523 = vmatmul.mubr.f32.vlgmr.msra.gmra.mrb[40].mxu0 %v30947_v9  ;;  %v21026_v58 = vadd.f32 %v30945_v0, %v20994_v47  ;;  %v21030_v12 = vadd.f32 %v31811_v17, %v20998_v51  ;;  %v21034_v33 = vadd.f32 %v31812_v19, %v21002_v2  ;;  %v21038_v46 = vadd.f32 %v31813_v28, %v21006_v4 }
 0xe56   :  { %23772 = vmatpush1.bf16.msra.mxu0 %v31009_v39  ;;  %21601 = vmatprep.mubr.f32.mxu0 %v31422_v10  ;;  %v21041_v11 = vmul.f32 %v21025_v7, %v31814_v50  ;;  %v21045_v3 = vmul.f32 %v21029_v40, %v31814_v50  ;;  %v21049_v31 = vmul.f32 %v21033_v54, %v31814_v50 }
 0xe57   :  { %23774 = vmatprep.subr.bf16.mxu0 %v31017_v5  ;;  %v21042_v0 = vmul.f32 %v21026_v58, %v31815_v26  ;;  %v21046_v8 = vmul.f32 %v21030_v12, %v31815_v26  ;;  %v21050_v32 = vmul.f32 %v21034_v33, %v31815_v26  ;;  %v21054_v59 = vmul.f32 %v21038_v46, %v31815_v26 }
 0xe58   :  { %v21611_v56 = vand.u32 4294901760, %v21041_v11  ;;  %v21615_v39 = vand.u32 4294901760, %v21045_v3  ;;  %v21053_v14 = vmul.f32 %v21037_v61, %v31814_v50  ;;  %v21619_v34 = vand.u32 4294901760, %v21049_v31 }
 0xe59   :  { %v21609_v6 = vand.u32 4294901760, %v21042_v0  ;;  %v21613_v44 = vand.u32 4294901760, %v21046_v8  ;;  %v21617_v13 = vand.u32 4294901760, %v21050_v32  ;;  %v21621_v24 = vand.u32 4294901760, %v21054_v59 }
 0xe5a   :  { %23776 = vmatpush1.bf16.msra.mxu0 %v31019_v38  ;;  %v31094_v5 = vpack.c.bf16 %v21615_v39, %v21611_v56  ;;  %v21700_v1 = vsub.f32 %v21041_v11, %v21611_v56  ;;  %v21712_v27 = vsub.f32 %v21045_v3, %v21615_v39  ;;  %v21623_v45 = vand.u32 4294901760, %v21053_v14 }
 0xe5b   :  { %v31096_v63 = vpack.c.bf16 %v21613_v44, %v21609_v6  ;;  %v21694_v60 = vsub.f32 %v21042_v0, %v21609_v6  ;;  %v21706_v18 = vsub.f32 %v21046_v8, %v21613_v44  ;;  %v31098_v41 = vpack.c.bf16 %v21621_v24, %v21617_v13 }
 0xe5c   :  { %v21718_v52 = vsub.f32 %v21050_v32, %v21617_v13  ;;  %v21730_v49 = vsub.f32 %v21054_v59, %v21621_v24  ;;  %v31100_v20 = vpack.c.bf16 %v21623_v45, %v21619_v34  ;;  %v21724_v43 = vsub.f32 %v21049_v31, %v21619_v34 }
 0xe5d   :  { %21603 = vmatmul.mubr.f32.vlgmr.msra.gmra.mrb[40].mxu0 %v30947_v9  ;;  %23778 = vmatprep.subr.bf16.mxu0 %v31096_v63  ;;  %v21736_v38 = vsub.f32 %v21053_v14, %v21623_v45  ;;  %v21695_v42 = vand.u32 4294901760, %v21694_v60  ;;  %v21707_v25 = vand.u32 4294901760, %v21706_v18  ;;  %v21701_v21 = vand.u32 4294901760, %v21700_v1 }
 0xe5e   :  { %23780 = vmatpush1.bf16.msra.mxu0 %v31094_v5  ;;  %21681 = vmatprep.mubr.f32.mxu0 %v31422_v10  ;;  %v21713_v62 = vand.u32 4294901760, %v21712_v27  ;;  %v21719_v53 = vand.u32 4294901760, %v21718_v52  ;;  %v21731_v29 = vand.u32 4294901760, %v21730_v49  ;;  %v21725_v22 = vand.u32 4294901760, %v21724_v43 }
 0xe5f   :  { %23782 = vmatprep.subr.bf16.mxu0 %v31098_v41  ;;  %v21696_v37 = vsub.f32 %v21694_v60, %v21695_v42  ;;  %v21708_v36 = vsub.f32 %v21706_v18, %v21707_v25  ;;  %v21702_v23 = vsub.f32 %v21700_v1, %v21701_v21  ;;  %v21737_v15 = vand.u32 4294901760, %v21736_v38 }
 0xe60   :  { %v21714_v30 = vsub.f32 %v21712_v27, %v21713_v62  ;;  %v21720_v35 = vsub.f32 %v21718_v52, %v21719_v53  ;;  %v21732_v47 = vsub.f32 %v21730_v49, %v21731_v29  ;;  %v21726_v51 = vsub.f32 %v21724_v43, %v21725_v22 }
 0xe61   :  { %v21697_v2 = vand.u32 4294901760, %v21696_v37  ;;  %v21709_v4 = vand.u32 4294901760, %v21708_v36  ;;  %v21703_v7 = vand.u32 4294901760, %v21702_v23  ;;  %v21738_v17 = vsub.f32 %v21736_v38, %v21737_v15 }
 0xe62   :  { %23784 = vmatpush1.bf16.msra.mxu0 %v31100_v20  ;;  %v21715_v40 = vand.u32 4294901760, %v21714_v30  ;;  %v21721_v19 = vand.u32 4294901760, %v21720_v35  ;;  %v21733_v54 = vand.u32 4294901760, %v21732_v47  ;;  %v21727_v28 = vand.u32 4294901760, %v21726_v51 }
 0xe63   :  { %v23785_v61 = vpack.c.bf16 %v21709_v4, %v21697_v2  ;;  %v21739_v58 = vand.u32 4294901760, %v21738_v17  ;;  %v23793_v12 = vpack.c.bf16 %v21706_v18, %v21694_v60  ;;  %v23795_v33 = vpack.c.bf16 %v21712_v27, %v21700_v1 }
 0xe64   :  { %v23787_v46 = vpack.c.bf16 %v21715_v40, %v21703_v7  ;;  %v23789_v50 = vpack.c.bf16 %v21733_v54, %v21721_v19  ;;  %v23797_v11 = vpack.c.bf16 %v21730_v49, %v21718_v52  ;;  %v23799_v3 = vpack.c.bf16 %v21736_v38, %v21724_v43 }
 0xe65   :  { %21687 = vmatmul.mubr.f32.vlgmr.msra.gmra.mrb[42].mxu0 %v30977_v55  ;;  %23786 = vmatprep.subr.bf16.mxu0 %v23785_v61  ;;  %v23791_v31 = vpack.c.bf16 %v21739_v58, %v21727_v28  ;;  %v23809_v26 = vpack.c.bf16 %v21707_v25, %v21695_v42  ;;  %v23811_v0 = vpack.c.bf16 %v21713_v62, %v21701_v21  ;;  %v31816_v25 = vld [vmem:[#allocation11_spill] sm:$0xff]  ;;  %v31817_v36 = vlaneseq }
 0xe66   :  { %23788 = vmatpush1.bf16.msra.mxu0 %v23787_v46  ;;  %21797 = vmatprep.mubr.f32.mxu0 %v31422_v10  ;;  %v23813_v8 = vpack.c.bf16 %v21731_v29, %v21719_v53  ;;  %v23815_v32 = vpack.c.bf16 %v21737_v15, %v21725_v22 }
 0xe67   :  { %23790 = vmatprep.subr.bf16.mxu0 %v23789_v50  ;;  %vm22207_vm5 = vcmp.lt.s32.totalorder %v31817_v36, 512 }
 0xe6a   :  { %23792 = vmatpush1.bf16.msra.mxu0 %v23791_v31 }
 0xe6b   :  { %23794 = vmatprep.subr.bf16.mxu0 %v23793_v12 }
 0xe6d   :  { %21799 = vmatmul.mubr.f32.vlgmr.msra.gmra.mrb[42].mxu0 %v30947_v9 }
 0xe6e   :  { %23796 = vmatpush1.bf16.msra.mxu0 %v23795_v33  ;;  %21885 = vmatprep.mubr.f32.mxu0 %v31422_v10 }
 0xe6f   :  { %23798 = vmatprep.subr.bf16.mxu0 %v23797_v11 }
 0xe72   :  { %23800 = vmatpush1.bf16.msra.mxu0 %v23799_v3 }
 0xe73   :  { %23802 = vmatprep.subr.bf16.mxu0 %v31096_v63 }
 0xe75   :  { %21888 = vmatmul.mubr.f32.vlgmr.msra.gmra.mrb[42].mxu0 %v30950_v48  ;;  %v21058_v48 = vpop.permute.xlu1 %21057 }
 0xe76   :  { %23804 = vmatpush1.bf16.msra.mxu0 %v31094_v5  ;;  %21966 = vmatprep.mubr.f32.mxu0 %v31422_v10 }
 0xe77   :  { %23806 = vmatprep.subr.bf16.mxu0 %v31098_v41 }
 0xe7a   :  { %23808 = vmatpush1.bf16.msra.mxu0 %v31100_v20 }
 0xe7b   :  { %23810 = vmatprep.subr.bf16.mxu0 %v23809_v26 }
 0xe7d   :  { %21970 = vmatmul.mubr.f32.vlgmr.msra.gmra.mrb[42].mxu0 %v30957_v57  ;;  %v21063_v57 = vrot.slane %v21058_v48, %v31806_v16 }
 0xe7e   :  { %23812 = vmatpush1.bf16.msra.mxu0 %v23811_v0  ;;  %22064 = vmatprep.mubr.f32.mxu0 %v31422_v10 }
 0xe7f   :  { %23814 = vmatprep.subr.bf16.mxu0 %v23813_v8 }
 0xe82   :  { %23816 = vmatpush1.bf16.msra.mxu0 %v23815_v32 }
 0xe83   :  { %23818 = vmatprep.subr.bf16.mxu0 %v31096_v63 }
 0xe85   :  { %22066 = vmatmul.mubr.f32.vlgmr.msra.gmra.mrb[42].mxu0 %v30947_v9 }
 0xe86   :  { %23820 = vmatpush1.bf16.msra.mxu0 %v31094_v5  ;;  %22144 = vmatprep.mubr.f32.mxu0 %v31422_v10 }
 0xe87   :  { %23822 = vmatprep.subr.bf16.mxu0 %v31098_v41 }
 0xe8a   :  { %23824 = vmatpush1.bf16.msra.mxu0 %v31100_v20  ;;  %v25055_v20 = vmov 1966171168  }
 0xe8b   :  { %v22183_v43 = vunpack.c.l.s4 %v25055_v20 }
 0xe8d   :  { %22146 = vmatmul.mubr.f32.vlgmr.msra.gmra.mrb[42].mxu0 %v30947_v9  ;;  %v22184_v38 = vunpack.c.0.s8 %v22183_v43 }
 0xe8f   :  { %v22187_v21 = vsub.s32 %v22184_v38, %v31816_v25 }
 0xf30   :  { %v21604_v55 = vpop.f32.mrb[40].mxu0 }
 0xf31   :  { %v23865_v59 = vadd.f32 %v21604_v55, %v21063_v57  ;;  %v21606_v56 = vpop.f32.mrb[41].mxu0 }
 0xf32   :  { %v23866_v39 = vadd.f32 %v21606_v56, %v21063_v57 }
 0xf33   :  { %v22261_v14 = vmul.f32 -1.442695, %v23865_v59 }
 0xf34   :  { %v22262_v34 = vmul.f32 -1.442695, %v23866_v39 }
 0xf35   :  { %24953 = vpow2.f32 %v22261_v14 }
 0xf36   :  { %24955 = vpow2.f32 %v22262_v34 }
 0xf3f   :  { %v24954_v6 = vpop.eup %24953 }
 0xf40   :  { %v24956_v44 = vpop.eup %24955  ;;  %v22164_v10 = vadd.f32 1.0, %v24954_v6 }
 0xf41   :  { %v22165_v13 = vadd.f32 1.0, %v24956_v44 }
 0xf42   :  { %24957 = vrcp.f32 %v22164_v10 }
 0xf43   :  { %24959 = vrcp.f32 %v22165_v13 }
 0xf4c   :  { %v24958_v24 = vpop.eup %24957 }
 0xf4d   :  { %v24960_v5 = vpop.eup %24959 }
 0xf4e   :  { %v22180_v9 = vcombine.low %v24958_v24, %v24960_v5 }
 0xf50   :  { %v22188_v29 = vrot.slane %v22180_v9, %v22187_v21 }
 0xf60   :  { %v22147_v1 = vpop.f32.mrb[42].mxu0 }
 0xf61   :  { %v23867_v27 = vadd.f32 %v22147_v1, %v21063_v57  ;;  %v22149_v16 = vpop.f32.mrb[43].mxu0 }
 0xf62   :  { %v23868_v45 = vadd.f32 %v22149_v16, %v21063_v57 }
 0xf63   :  { %v22263_v63 = vmul.f32 -1.442695, %v23867_v27 }
 0xf64   :  { %v22264_v60 = vmul.f32 -1.442695, %v23868_v45 }
 0xf65   :  { %24961 = vpow2.f32 %v22263_v63 }
 0xf66   :  { %24963 = vpow2.f32 %v22264_v60 }
 0xf6f   :  { %v24962_v18 = vpop.eup %24961 }
 0xf70   :  { %v24964_v41 = vpop.eup %24963  ;;  %v22166_v52 = vadd.f32 1.0, %v24962_v18 }
 0xf71   :  { %v22167_v49 = vadd.f32 1.0, %v24964_v41 }
 0xf72   :  { %24965 = vrcp.f32 %v22166_v52 }
 0xf73   :  { %24967 = vrcp.f32 %v22167_v49 }
 0xf7c   :  { %v24966_v42 = vpop.eup %24965 }
 0xf7d   :  { %v24968_v62 = vpop.eup %24967 }
 0xf7e   :  { %v22181_v53 = vcombine.low %v24966_v42, %v24968_v62 }
 0xf80   :  { %v22195_v22 = vrot.slane %v22181_v53, %v22187_v21 }
 0xf82   :  { %v22196_v37 = vcombine.low %v22188_v29, %v22195_v22 }
 0xf84   :  { %v22203_v23 = vrot.slane %v22196_v37, %v22187_v21 }
 0xf86   :  { %22209 = vst.msk [vmem:[#allocation5] sm:$0xf] %vm22207_vm5, %v22203_v23 }
 0xf87   :  { %25018 = shalt.err (!%p25015_p12)
}
 0xf88   :  { %s25019_s3 = scalar_lea.hbm %s31148_s6, 64 }
 0xf89   :  { %p25020_p13 = scmp.ne.s32.totalorder %s31148_s6, %s25019_s3  ;;  %p25023_p0 = scmp.lt.u32.totalorder %s25019_s3, %s31148_s6 }
 0xf8b   :  { %p25025_p1 = pnand %p25023_p0, %p25020_p13 }
 0xf8d   :  { %25028 = shalt.err (!%p25025_p1)
}
 0xf8e   :  { %22219 = dma.vmem_to_hbm [thread:$0]  %s22217_s11, 64, %s31148_s6, [#allocation4]  }
 0xf8f   :  { %25031 = dma.done.wait [#allocation4], 64  }
 0xf90   :  { %25032 = vsyncadd [#allocation4], 4294967232 }
 0xf91   :  { %22223 = vsyncpa [#allocation3], 1 }
 0xf92   :  { %22224 = vsyncpa [#allocation4], 1 }

</bundles_post_ra>
